<compile_context>
chip_gen: v6e
topology: v6e:2x2x1
jax: 0.10.0
libtpu: 0.0.40
codegen_flags: <defaults>
</compile_context>

<pallas_src>
import functools

import jax
import jax.numpy as jnp
from jax import lax
from jax.experimental import pallas as pl
from jax.experimental.pallas import tpu as pltpu

KERNEL_SIZES = (45, 65, 85)   # height-kernel of the first conv per scale
PADS = (22, 33, 44)           # height-padding of the first conv per scale
C_OUT = 10                    # channels produced by every conv in the module
STRIDE_H = 3                  # height stride of the first conv
POOL = 6                      # MaxPool2d([6,1],[6,1])
N_CH = 3                      # input channels used by the module
N_SCALES = 3
NB = N_CH * N_SCALES          # 9 branches
CP = 16                       # sublane-padded per-row channel block (10 -> 16)
P_MAX = PADS[-1]                                   # 44
KW_MAX = KERNEL_SIZES[-1] + STRIDE_H * (POOL - 1)  # 100: padded-input rows per pool group


def _elu(x):
    # ELU(alpha=1): x if x > 0 else exp(x) - 1 (clamp arg so the dead branch can't overflow)
    return jnp.where(x > 0, x, jnp.exp(jnp.minimum(x, 0.0)) - 1.0)


def _hs_cnn_kernel(xp_ref, a_ref, b1_ref, w2_ref, b2_ref, out_ref, *, Hpool, W2):
    """One batch sample, all 9 branches.

    xp_ref : (1, 3, Hp, W)       Pmax-padded 3-channel input
    a_ref  : (9, 96, 100)        banded conv1 weight per branch (6 x 16-row blocks)
    b1_ref : (9, 96, 1)          conv1 bias tiled over the 6 row blocks (pad rows = 0)
    w2_ref : (9, 96, 288)        conv2 block-diagonal weight per branch
    b2_ref : (9, 16, 1)          conv2 bias (pad rows = 0)
    out_ref: (1, 144, Hpool*W2)  16-row-aligned branch blocks, pooled rows packed in lanes
    """
    for ci in range(N_CH):
        for s in range(N_SCALES):
            b = ci * N_SCALES + s
            a = a_ref[b]          # (96, 100)
            b1 = b1_ref[b]        # (96, 1)
            w2 = w2_ref[b]        # (96, 288)
            b2 = b2_ref[b]        # (16, 1)

            rows = []
            for p in range(Hpool):                       # static unroll (Hpool is static)
                r0 = STRIDE_H * POOL * p
                win = xp_ref[0, ci, r0:r0 + KW_MAX, :]   # (100, W)
                # conv1 for all 6 rows of this pool group in one MXU matmul
                h1 = _elu(jnp.dot(a, win, preferred_element_type=jnp.float32) + b1)  # (96, W)
                # conv2 [1,3]: three lane shifts stacked once, one block-diag matmul
                stk = jnp.concatenate(
                    [h1[:, 0:W2], h1[:, 1:1 + W2], h1[:, 2:2 + W2]], axis=0)         # (288, W2)
                pre = jnp.dot(w2, stk, preferred_element_type=jnp.float32)            # (96, W2)
                # max-pool over the 6 pre-activation rows: aligned 16-row slices
                pooled = pre[0:CP]
                for t in range(1, POOL):
                    pooled = jnp.maximum(pooled, pre[t * CP:(t + 1) * CP])            # (16, W2)
                # ELU + bias after the max (exact: ELU monotone, b2 constant per channel)
                rows.append(_elu(pooled + b2))

            block = rows[0] if Hpool == 1 else jnp.concatenate(rows, axis=-1)  # (16, Hpool*W2)
            # single static, 16-sublane-aligned store per branch
            out_ref[0, b * CP:(b + 1) * CP, :] = block


def _expand_conv1_weight(w1, K, P):
    """(10, K) conv1 weight -> banded (96, 100) matrix for one 6-row pool group.

    Row block t (16 rows, rows >= 10 zero) holds w1 shifted so that, applied to the
    Pmax-padded window starting at row 18p, it reproduces conv1 output row 6p + t of
    the branch with kernel K / padding P (left offset = (Pmax - P) + 3t).
    """
    off = P_MAX - P
    blocks = []
    for t in range(POOL):
        left = off + STRIDE_H * t
        right = KW_MAX - left - K
        blocks.append(jnp.pad(w1, ((0, CP - C_OUT), (left, right))))   # (16, 100)
    return jnp.concatenate(blocks, axis=0)                             # (96, 100)


def _expand_conv2_weight(w2):
    """(10, 10, 3) [out, in, dw] conv2 weight -> (96, 288) block-diagonal weight.

    W2BLK[t*16 + o, dw*96 + t*16 + i] = w2[o, i, dw]; all other entries zero.
    Applied to the stacked shifts S[dw*96 + row, w] = h1[row, w + dw].
    """
    eye = jnp.eye(POOL, dtype=w2.dtype)
    per_dw = []
    for dw in range(3):
        wd = jnp.pad(w2[:, :, dw], ((0, CP - C_OUT), (0, CP - C_OUT)))  # (16, 16)
        per_dw.append(jnp.kron(eye, wd))                                # (96, 96) block-diag
    return jnp.concatenate(per_dw, axis=1)                              # (96, 288)


def _build_branch_weights(params):
    """Stack all 9 branches' prepared weights, branch index b = ci*3 + ki (ref concat order)."""
    A, B1, W2B, B2 = [], [], [], []
    for ci in range(N_CH):
        for ki in range(N_SCALES):
            p = params[(ci, ki)]
            K, P = KERNEL_SIZES[ki], PADS[ki]
            A.append(_expand_conv1_weight(p["w1"], K, P))
            b1p = jnp.pad(p["b1"], ((0, CP - C_OUT), (0, 0)))            # (16, 1)
            B1.append(jnp.tile(b1p, (POOL, 1)))                          # (96, 1)
            W2B.append(_expand_conv2_weight(p["w2"]))                    # (96, 288)
            B2.append(jnp.pad(p["b2"], ((0, CP - C_OUT), (0, 0))))       # (16, 1)
    return jnp.stack(A), jnp.stack(B1), jnp.stack(W2B), jnp.stack(B2)


def hs_cnn_forward(x, params):
    """x: (N, C>=3, H, W) NCHW float32. Returns (N, 90, Hpool, W-2)."""
    N, C, H, W = x.shape
    assert C >= N_CH, "module reads input channels 0,1,2"
    W2 = W - 2
    assert W2 >= 1, "input width too small for Conv2d([1,3])"

    h1s = [(H + 2 * PADS[k] - KERNEL_SIZES[k]) // STRIDE_H + 1 for k in range(N_SCALES)]
    hpools = [h // POOL for h in h1s]
    assert min(hpools) >= 1, "input height too small for MaxPool2d([6,1])"
    assert len(set(hpools)) == 1, (
        f"pooled heights differ across kernel scales ({hpools}); the reference module's "
        "channel concat is undefined for this input height")
    Hpool = hpools[0]

    Hp = H + 2 * P_MAX
    assert STRIDE_H * POOL * (Hpool - 1) + KW_MAX <= Hp

    # one pad for all 9 branches
    xp = jnp.pad(x[:, :N_CH].astype(jnp.float32),
                 ((0, 0), (0, 0), (P_MAX, P_MAX), (0, 0)))
    a, b1, w2b, b2 = _build_branch_weights(params)

    kernel = functools.partial(_hs_cnn_kernel, Hpool=Hpool, W2=W2)
    out = pl.pallas_call(
        kernel,
        out_shape=jax.ShapeDtypeStruct((N, NB * CP, Hpool * W2), jnp.float32),
        grid=(N,),
        in_specs=[
            pl.BlockSpec((1, N_CH, Hp, W), lambda n: (n, 0, 0, 0)),
            # constant index_maps: weights DMA'd once, stay VMEM-resident for all grid steps
            pl.BlockSpec((NB, POOL * CP, KW_MAX), lambda n: (0, 0, 0)),
            pl.BlockSpec((NB, POOL * CP, 1), lambda n: (0, 0, 0)),
            pl.BlockSpec((NB, POOL * CP, 3 * POOL * CP), lambda n: (0, 0, 0)),
            pl.BlockSpec((NB, CP, 1), lambda n: (0, 0, 0)),
        ],
        out_specs=pl.BlockSpec((1, NB * CP, Hpool * W2), lambda n: (n, 0, 0)),
        compiler_params=pltpu.CompilerParams(dimension_semantics=("parallel",)),
    )(xp, a, b1, w2b, b2)

    # undo the 16-row padding and the lane packing outside the kernel (cheap XLA ops)
    out = out.reshape(N, NB, CP, Hpool, W2)[:, :, :C_OUT]
    return out.reshape(N, NB * C_OUT, Hpool, W2)


def init_params(key):
    """Deterministic parameter init matching the module's shapes.

    First conv of every branch: weight ~ N(0, 1e-4) (as in the module's init),
    bias ~ U(-1/sqrt(K), 1/sqrt(K)) (PyTorch default). Second conv: PyTorch-style uniform.
    """
    params = {}
    for ci in range(N_CH):         # which input channel the branch reads
        for ki in range(N_SCALES): # which kernel scale (45 / 65 / 85)
            K = KERNEL_SIZES[ki]
            key, k1, k2, k3, k4 = jax.random.split(key, 5)
            w1 = jax.random.normal(k1, (C_OUT, K), jnp.float32) * 1e-4
            b1_bound = 1.0 / jnp.sqrt(1.0 * K)
            b1 = jax.random.uniform(k2, (C_OUT, 1), jnp.float32, -b1_bound, b1_bound)
            w2_bound = 1.0 / jnp.sqrt(1.0 * C_OUT * 3)
            w2 = jax.random.uniform(k3, (C_OUT, C_OUT, 3), jnp.float32, -w2_bound, w2_bound)
            b2 = jax.random.uniform(k4, (C_OUT, 1), jnp.float32, -w2_bound, w2_bound)
            params[(ci, ki)] = dict(w1=w1, b1=b1, w2=w2, b2=b2)
    return params


def _reference_forward(x, params):
    """Pure-JAX (lax.conv) reference of the PyTorch module for self-checking."""
    outs = []
    for ci in range(N_CH):
        xc = x[:, ci:ci + 1]                                  # (N,1,H,W)
        for ki in range(N_SCALES):
            K, P = KERNEL_SIZES[ki], PADS[ki]
            p = params[(ci, ki)]
            h1 = lax.conv_general_dilated(
                xc, p["w1"].reshape(C_OUT, 1, K, 1),
                window_strides=(STRIDE_H, 1), padding=((P, P), (0, 0)),
                dimension_numbers=("NCHW", "OIHW", "NCHW"),
                precision=lax.Precision.HIGHEST)
            h1 = _elu(h1 + p["b1"].reshape(1, C_OUT, 1, 1))
            h2 = lax.conv_general_dilated(
                h1, p["w2"].reshape(C_OUT, C_OUT, 1, 3),
                window_strides=(1, 1), padding=((0, 0), (0, 0)),
                dimension_numbers=("NCHW", "OIHW", "NCHW"),
                precision=lax.Precision.HIGHEST)
            h2 = _elu(h2 + p["b2"].reshape(1, C_OUT, 1, 1))
            hp = h2.shape[2] // POOL
            pooled = h2[:, :, :hp * POOL].reshape(
                h2.shape[0], C_OUT, hp, POOL, h2.shape[3]).max(axis=3)
            outs.append(pooled)
    return jnp.concatenate(outs, axis=1)


if __name__ == "__main__":
    key = jax.random.PRNGKey(0)
    kx, kp, kx2 = jax.random.split(key, 3)
    params = init_params(kp)
    fwd = jax.jit(hs_cnn_forward)

    # Case 1: H=16 -> pooled height 1 (matches the channel-concat constraint).
    N, C, H, W = 2, 3, 16, 16
    x = jax.random.normal(kx, (N, C, H, W), jnp.float32)
    out = jax.block_until_ready(fwd(x, params))
    assert out.shape == (N, NB * C_OUT, 1, W - 2), out.shape
    assert bool(jnp.all(jnp.isfinite(out)))
    ref = _reference_forward(x, params)
    err = float(jnp.max(jnp.abs(out - ref)))
    assert err < 1e-3, f"max abs error vs reference (H=16): {err}"

    # Case 2: H=34, W=20 -> pooled height 2 (exercises the multi-pool-group / lane-packed
    # store path that the review flagged as untested).
    N2, H2, Wb = 2, 34, 20
    x2 = jax.random.normal(kx2, (N2, C, H2, Wb), jnp.float32)
    out2 = jax.block_until_ready(fwd(x2, params))
    assert out2.shape == (N2, NB * C_OUT, 2, Wb - 2), out2.shape
    assert bool(jnp.all(jnp.isfinite(out2)))
    ref2 = _reference_forward(x2, params)
    err2 = float(jnp.max(jnp.abs(out2 - ref2)))
    assert err2 < 1e-3, f"max abs error vs reference (H=34): {err2}"

    print("KERNEL_OK")
</pallas_src>

<mosaic_0001>
module attributes {stable_mosaic.version = 11 : i64} {
  func.func @_hs_cnn_kernel(%arg0: i32, %arg1: memref<1x3x104x16xf32, #tpu.memory_space<vmem>>, %arg2: memref<9x96x100xf32, #tpu.memory_space<vmem>>, %arg3: memref<9x96x1xf32, #tpu.memory_space<vmem>>, %arg4: memref<9x96x288xf32, #tpu.memory_space<vmem>>, %arg5: memref<9x16x1xf32, #tpu.memory_space<vmem>>, %arg6: memref<1x144x14xf32, #tpu.memory_space<vmem>>) attributes {dimension_semantics = [#tpu.dimension_semantics<parallel>], iteration_bounds = array<i64: 2>, scalar_prefetch = 0 : i64, scratch_operands = 0 : i64, tpu.core_type = #tpu.core_type<tc>, window_params = [{transform_indices = @transform_0, window_bounds = array<i64: 1, 3, 104, 16>}, {pipeline_mode = #tpu.pipeline_mode<synchronous>, transform_indices = @transform_1, window_bounds = array<i64: 9, 96, 100>}, {pipeline_mode = #tpu.pipeline_mode<synchronous>, transform_indices = @transform_2, window_bounds = array<i64: 9, 96, 1>}, {pipeline_mode = #tpu.pipeline_mode<synchronous>, transform_indices = @transform_3, window_bounds = array<i64: 9, 96, 288>}, {pipeline_mode = #tpu.pipeline_mode<synchronous>, transform_indices = @transform_4, window_bounds = array<i64: 9, 16, 1>}, {transform_indices = @transform_5, window_bounds = array<i64: 1, 144, 14>}]} {
    %c0 = arith.constant 0 : index
    %c0_0 = arith.constant 0 : index
    %c0_1 = arith.constant 0 : index
    %0 = vector.load %arg2[%c0, %c0_0, %c0_1] : memref<9x96x100xf32, #tpu.memory_space<vmem>>, vector<1x96x100xf32>
    %1 = vector.shape_cast %0 : vector<1x96x100xf32> to vector<96x100xf32>
    %c0_2 = arith.constant 0 : index
    %c0_3 = arith.constant 0 : index
    %c0_4 = arith.constant 0 : index
    %2 = vector.load %arg3[%c0_2, %c0_3, %c0_4] : memref<9x96x1xf32, #tpu.memory_space<vmem>>, vector<1x96x1xf32>
    %3 = vector.shape_cast %2 : vector<1x96x1xf32> to vector<96x1xf32>
    %c0_5 = arith.constant 0 : index
    %c0_6 = arith.constant 0 : index
    %c0_7 = arith.constant 0 : index
    %4 = vector.load %arg4[%c0_5, %c0_6, %c0_7] : memref<9x96x288xf32, #tpu.memory_space<vmem>>, vector<1x96x288xf32>
    %5 = vector.shape_cast %4 : vector<1x96x288xf32> to vector<96x288xf32>
    %c0_8 = arith.constant 0 : index
    %c0_9 = arith.constant 0 : index
    %c0_10 = arith.constant 0 : index
    %6 = vector.load %arg5[%c0_8, %c0_9, %c0_10] : memref<9x16x1xf32, #tpu.memory_space<vmem>>, vector<1x16x1xf32>
    %7 = vector.shape_cast %6 : vector<1x16x1xf32> to vector<16x1xf32>
    %c0_11 = arith.constant 0 : index
    %c0_12 = arith.constant 0 : index
    %c0_13 = arith.constant 0 : index
    %c0_14 = arith.constant 0 : index
    %8 = vector.load %arg1[%c0_11, %c0_12, %c0_13, %c0_14] : memref<1x3x104x16xf32, #tpu.memory_space<vmem>>, vector<1x1x100x16xf32>
    %9 = vector.shape_cast %8 : vector<1x1x100x16xf32> to vector<100x16xf32>
    %cst = arith.constant dense<0.000000e+00> : vector<96x16xf32>
    %10 = tpu.matmul %1, %9, %cst {dimension_numbers = #tpu.dot_dimension_numbers<[1], [0], [0], [1], [0, 0, 1, 1], [], []>} : vector<96x100xf32>, vector<100x16xf32>, vector<96x16xf32> -> vector<96x16xf32>
    %11 = vector.broadcast %3 : vector<96x1xf32> to vector<96x16xf32>
    %12 = arith.addf %10, %11 : vector<96x16xf32>
    %cst_15 = arith.constant 0.000000e+00 : f32
    %13 = vector.broadcast %cst_15 : f32 to vector<96x16xf32>
    %14 = arith.cmpf ogt, %12, %13 : vector<96x16xf32>
    %cst_16 = arith.constant 0.000000e+00 : f32
    %15 = vector.broadcast %cst_16 : f32 to vector<96x16xf32>
    %16 = arith.minimumf %12, %15 : vector<96x16xf32>
    %17 = math.exp %16 : vector<96x16xf32>
    %cst_17 = arith.constant 1.000000e+00 : f32
    %18 = vector.broadcast %cst_17 : f32 to vector<96x16xf32>
    %19 = arith.subf %17, %18 : vector<96x16xf32>
    %20 = arith.select %14, %12, %19 : vector<96x16xi1>, vector<96x16xf32>
    %21 = vector.extract_strided_slice %20 {offsets = [0, 0], sizes = [96, 14], strides = [1, 1]} : vector<96x16xf32> to vector<96x14xf32>
    %22 = vector.extract_strided_slice %20 {offsets = [0, 1], sizes = [96, 14], strides = [1, 1]} : vector<96x16xf32> to vector<96x14xf32>
    %23 = vector.extract_strided_slice %20 {offsets = [0, 2], sizes = [96, 14], strides = [1, 1]} : vector<96x16xf32> to vector<96x14xf32>
    %24 = tpu.concatenate %21, %22, %23 in 0 : vector<96x14xf32>, vector<96x14xf32>, vector<96x14xf32> -> vector<288x14xf32>
    %cst_18 = arith.constant dense<0.000000e+00> : vector<96x14xf32>
    %25 = tpu.matmul %5, %24, %cst_18 {dimension_numbers = #tpu.dot_dimension_numbers<[1], [0], [0], [1], [0, 0, 1, 1], [], []>} : vector<96x288xf32>, vector<288x14xf32>, vector<96x14xf32> -> vector<96x14xf32>
    %26 = vector.extract_strided_slice %25 {offsets = [0, 0], sizes = [16, 14], strides = [1, 1]} : vector<96x14xf32> to vector<16x14xf32>
    %27 = vector.extract_strided_slice %25 {offsets = [16, 0], sizes = [16, 14], strides = [1, 1]} : vector<96x14xf32> to vector<16x14xf32>
    %28 = arith.maximumf %26, %27 : vector<16x14xf32>
    %29 = vector.extract_strided_slice %25 {offsets = [32, 0], sizes = [16, 14], strides = [1, 1]} : vector<96x14xf32> to vector<16x14xf32>
    %30 = arith.maximumf %28, %29 : vector<16x14xf32>
    %31 = vector.extract_strided_slice %25 {offsets = [48, 0], sizes = [16, 14], strides = [1, 1]} : vector<96x14xf32> to vector<16x14xf32>
    %32 = arith.maximumf %30, %31 : vector<16x14xf32>
    %33 = vector.extract_strided_slice %25 {offsets = [64, 0], sizes = [16, 14], strides = [1, 1]} : vector<96x14xf32> to vector<16x14xf32>
    %34 = arith.maximumf %32, %33 : vector<16x14xf32>
    %35 = vector.extract_strided_slice %25 {offsets = [80, 0], sizes = [16, 14], strides = [1, 1]} : vector<96x14xf32> to vector<16x14xf32>
    %36 = arith.maximumf %34, %35 : vector<16x14xf32>
    %37 = vector.broadcast %7 : vector<16x1xf32> to vector<16x14xf32>
    %38 = arith.addf %36, %37 : vector<16x14xf32>
    %cst_19 = arith.constant 0.000000e+00 : f32
    %39 = vector.broadcast %cst_19 : f32 to vector<16x14xf32>
    %40 = arith.cmpf ogt, %38, %39 : vector<16x14xf32>
    %cst_20 = arith.constant 0.000000e+00 : f32
    %41 = vector.broadcast %cst_20 : f32 to vector<16x14xf32>
    %42 = arith.minimumf %38, %41 : vector<16x14xf32>
    %43 = math.exp %42 : vector<16x14xf32>
    %cst_21 = arith.constant 1.000000e+00 : f32
    %44 = vector.broadcast %cst_21 : f32 to vector<16x14xf32>
    %45 = arith.subf %43, %44 : vector<16x14xf32>
    %46 = arith.select %40, %38, %45 : vector<16x14xi1>, vector<16x14xf32>
    %c0_22 = arith.constant 0 : index
    %c0_23 = arith.constant 0 : index
    %c0_24 = arith.constant 0 : index
    %47 = vector.load %arg6[%c0_22, %c0_23, %c0_24] : memref<1x144x14xf32, #tpu.memory_space<vmem>>, vector<1x16x14xf32>
    %48 = vector.shape_cast %47 : vector<1x16x14xf32> to vector<16x14xf32>
    %49 = vector.shape_cast %46 : vector<16x14xf32> to vector<1x16x14xf32>
    tpu.vector_store %arg6[%c0_22, %c0_23, %c0_24], %49 {strides = array<i32>} : memref<1x144x14xf32, #tpu.memory_space<vmem>>, vector<1x16x14xf32>,
    %c1 = arith.constant 1 : index
    %c0_25 = arith.constant 0 : index
    %c0_26 = arith.constant 0 : index
    %50 = vector.load %arg2[%c1, %c0_25, %c0_26] : memref<9x96x100xf32, #tpu.memory_space<vmem>>, vector<1x96x100xf32>
    %51 = vector.shape_cast %50 : vector<1x96x100xf32> to vector<96x100xf32>
    %c1_27 = arith.constant 1 : index
    %c0_28 = arith.constant 0 : index
    %c0_29 = arith.constant 0 : index
    %52 = vector.load %arg3[%c1_27, %c0_28, %c0_29] : memref<9x96x1xf32, #tpu.memory_space<vmem>>, vector<1x96x1xf32>
    %53 = vector.shape_cast %52 : vector<1x96x1xf32> to vector<96x1xf32>
    %c1_30 = arith.constant 1 : index
    %c0_31 = arith.constant 0 : index
    %c0_32 = arith.constant 0 : index
    %54 = vector.load %arg4[%c1_30, %c0_31, %c0_32] : memref<9x96x288xf32, #tpu.memory_space<vmem>>, vector<1x96x288xf32>
    %55 = vector.shape_cast %54 : vector<1x96x288xf32> to vector<96x288xf32>
    %c1_33 = arith.constant 1 : index
    %c0_34 = arith.constant 0 : index
    %c0_35 = arith.constant 0 : index
    %56 = vector.load %arg5[%c1_33, %c0_34, %c0_35] : memref<9x16x1xf32, #tpu.memory_space<vmem>>, vector<1x16x1xf32>
    %57 = vector.shape_cast %56 : vector<1x16x1xf32> to vector<16x1xf32>
    %c0_36 = arith.constant 0 : index
    %c0_37 = arith.constant 0 : index
    %c0_38 = arith.constant 0 : index
    %c0_39 = arith.constant 0 : index
    %58 = vector.load %arg1[%c0_36, %c0_37, %c0_38, %c0_39] : memref<1x3x104x16xf32, #tpu.memory_space<vmem>>, vector<1x1x100x16xf32>
    %59 = vector.shape_cast %58 : vector<1x1x100x16xf32> to vector<100x16xf32>
    %cst_40 = arith.constant dense<0.000000e+00> : vector<96x16xf32>
    %60 = tpu.matmul %51, %59, %cst_40 {dimension_numbers = #tpu.dot_dimension_numbers<[1], [0], [0], [1], [0, 0, 1, 1], [], []>} : vector<96x100xf32>, vector<100x16xf32>, vector<96x16xf32> -> vector<96x16xf32>
    %61 = vector.broadcast %53 : vector<96x1xf32> to vector<96x16xf32>
    %62 = arith.addf %60, %61 : vector<96x16xf32>
    %cst_41 = arith.constant 0.000000e+00 : f32
    %63 = vector.broadcast %cst_41 : f32 to vector<96x16xf32>
    %64 = arith.cmpf ogt, %62, %63 : vector<96x16xf32>
    %cst_42 = arith.constant 0.000000e+00 : f32
    %65 = vector.broadcast %cst_42 : f32 to vector<96x16xf32>
    %66 = arith.minimumf %62, %65 : vector<96x16xf32>
    %67 = math.exp %66 : vector<96x16xf32>
    %cst_43 = arith.constant 1.000000e+00 : f32
    %68 = vector.broadcast %cst_43 : f32 to vector<96x16xf32>
    %69 = arith.subf %67, %68 : vector<96x16xf32>
    %70 = arith.select %64, %62, %69 : vector<96x16xi1>, vector<96x16xf32>
    %71 = vector.extract_strided_slice %70 {offsets = [0, 0], sizes = [96, 14], strides = [1, 1]} : vector<96x16xf32> to vector<96x14xf32>
    %72 = vector.extract_strided_slice %70 {offsets = [0, 1], sizes = [96, 14], strides = [1, 1]} : vector<96x16xf32> to vector<96x14xf32>
    %73 = vector.extract_strided_slice %70 {offsets = [0, 2], sizes = [96, 14], strides = [1, 1]} : vector<96x16xf32> to vector<96x14xf32>
    %74 = tpu.concatenate %71, %72, %73 in 0 : vector<96x14xf32>, vector<96x14xf32>, vector<96x14xf32> -> vector<288x14xf32>
    %cst_44 = arith.constant dense<0.000000e+00> : vector<96x14xf32>
    %75 = tpu.matmul %55, %74, %cst_44 {dimension_numbers = #tpu.dot_dimension_numbers<[1], [0], [0], [1], [0, 0, 1, 1], [], []>} : vector<96x288xf32>, vector<288x14xf32>, vector<96x14xf32> -> vector<96x14xf32>
    %76 = vector.extract_strided_slice %75 {offsets = [0, 0], sizes = [16, 14], strides = [1, 1]} : vector<96x14xf32> to vector<16x14xf32>
    %77 = vector.extract_strided_slice %75 {offsets = [16, 0], sizes = [16, 14], strides = [1, 1]} : vector<96x14xf32> to vector<16x14xf32>
    %78 = arith.maximumf %76, %77 : vector<16x14xf32>
    %79 = vector.extract_strided_slice %75 {offsets = [32, 0], sizes = [16, 14], strides = [1, 1]} : vector<96x14xf32> to vector<16x14xf32>
    %80 = arith.maximumf %78, %79 : vector<16x14xf32>
    %81 = vector.extract_strided_slice %75 {offsets = [48, 0], sizes = [16, 14], strides = [1, 1]} : vector<96x14xf32> to vector<16x14xf32>
    %82 = arith.maximumf %80, %81 : vector<16x14xf32>
    %83 = vector.extract_strided_slice %75 {offsets = [64, 0], sizes = [16, 14], strides = [1, 1]} : vector<96x14xf32> to vector<16x14xf32>
    %84 = arith.maximumf %82, %83 : vector<16x14xf32>
    %85 = vector.extract_strided_slice %75 {offsets = [80, 0], sizes = [16, 14], strides = [1, 1]} : vector<96x14xf32> to vector<16x14xf32>
    %86 = arith.maximumf %84, %85 : vector<16x14xf32>
    %87 = vector.broadcast %57 : vector<16x1xf32> to vector<16x14xf32>
    %88 = arith.addf %86, %87 : vector<16x14xf32>
    %cst_45 = arith.constant 0.000000e+00 : f32
    %89 = vector.broadcast %cst_45 : f32 to vector<16x14xf32>
    %90 = arith.cmpf ogt, %88, %89 : vector<16x14xf32>
    %cst_46 = arith.constant 0.000000e+00 : f32
    %91 = vector.broadcast %cst_46 : f32 to vector<16x14xf32>
    %92 = arith.minimumf %88, %91 : vector<16x14xf32>
    %93 = math.exp %92 : vector<16x14xf32>
    %cst_47 = arith.constant 1.000000e+00 : f32
    %94 = vector.broadcast %cst_47 : f32 to vector<16x14xf32>
    %95 = arith.subf %93, %94 : vector<16x14xf32>
    %96 = arith.select %90, %88, %95 : vector<16x14xi1>, vector<16x14xf32>
    %c0_48 = arith.constant 0 : index
    %c16 = arith.constant 16 : index
    %c0_49 = arith.constant 0 : index
    %97 = vector.load %arg6[%c0_48, %c16, %c0_49] : memref<1x144x14xf32, #tpu.memory_space<vmem>>, vector<1x16x14xf32>
    %98 = vector.shape_cast %97 : vector<1x16x14xf32> to vector<16x14xf32>
    %99 = vector.shape_cast %96 : vector<16x14xf32> to vector<1x16x14xf32>
    tpu.vector_store %arg6[%c0_48, %c16, %c0_49], %99 {strides = array<i32>} : memref<1x144x14xf32, #tpu.memory_space<vmem>>, vector<1x16x14xf32>,
    %c2 = arith.constant 2 : index
    %c0_50 = arith.constant 0 : index
    %c0_51 = arith.constant 0 : index
    %100 = vector.load %arg2[%c2, %c0_50, %c0_51] : memref<9x96x100xf32, #tpu.memory_space<vmem>>, vector<1x96x100xf32>
    %101 = vector.shape_cast %100 : vector<1x96x100xf32> to vector<96x100xf32>
    %c2_52 = arith.constant 2 : index
    %c0_53 = arith.constant 0 : index
    %c0_54 = arith.constant 0 : index
    %102 = vector.load %arg3[%c2_52, %c0_53, %c0_54] : memref<9x96x1xf32, #tpu.memory_space<vmem>>, vector<1x96x1xf32>
    %103 = vector.shape_cast %102 : vector<1x96x1xf32> to vector<96x1xf32>
    %c2_55 = arith.constant 2 : index
    %c0_56 = arith.constant 0 : index
    %c0_57 = arith.constant 0 : index
    %104 = vector.load %arg4[%c2_55, %c0_56, %c0_57] : memref<9x96x288xf32, #tpu.memory_space<vmem>>, vector<1x96x288xf32>
    %105 = vector.shape_cast %104 : vector<1x96x288xf32> to vector<96x288xf32>
    %c2_58 = arith.constant 2 : index
    %c0_59 = arith.constant 0 : index
    %c0_60 = arith.constant 0 : index
    %106 = vector.load %arg5[%c2_58, %c0_59, %c0_60] : memref<9x16x1xf32, #tpu.memory_space<vmem>>, vector<1x16x1xf32>
    %107 = vector.shape_cast %106 : vector<1x16x1xf32> to vector<16x1xf32>
    %c0_61 = arith.constant 0 : index
    %c0_62 = arith.constant 0 : index
    %c0_63 = arith.constant 0 : index
    %c0_64 = arith.constant 0 : index
    %108 = vector.load %arg1[%c0_61, %c0_62, %c0_63, %c0_64] : memref<1x3x104x16xf32, #tpu.memory_space<vmem>>, vector<1x1x100x16xf32>
    %109 = vector.shape_cast %108 : vector<1x1x100x16xf32> to vector<100x16xf32>
    %cst_65 = arith.constant dense<0.000000e+00> : vector<96x16xf32>
    %110 = tpu.matmul %101, %109, %cst_65 {dimension_numbers = #tpu.dot_dimension_numbers<[1], [0], [0], [1], [0, 0, 1, 1], [], []>} : vector<96x100xf32>, vector<100x16xf32>, vector<96x16xf32> -> vector<96x16xf32>
    %111 = vector.broadcast %103 : vector<96x1xf32> to vector<96x16xf32>
    %112 = arith.addf %110, %111 : vector<96x16xf32>
    %cst_66 = arith.constant 0.000000e+00 : f32
    %113 = vector.broadcast %cst_66 : f32 to vector<96x16xf32>
    %114 = arith.cmpf ogt, %112, %113 : vector<96x16xf32>
    %cst_67 = arith.constant 0.000000e+00 : f32
    %115 = vector.broadcast %cst_67 : f32 to vector<96x16xf32>
    %116 = arith.minimumf %112, %115 : vector<96x16xf32>
    %117 = math.exp %116 : vector<96x16xf32>
    %cst_68 = arith.constant 1.000000e+00 : f32
    %118 = vector.broadcast %cst_68 : f32 to vector<96x16xf32>
    %119 = arith.subf %117, %118 : vector<96x16xf32>
    %120 = arith.select %114, %112, %119 : vector<96x16xi1>, vector<96x16xf32>
    %121 = vector.extract_strided_slice %120 {offsets = [0, 0], sizes = [96, 14], strides = [1, 1]} : vector<96x16xf32> to vector<96x14xf32>
    %122 = vector.extract_strided_slice %120 {offsets = [0, 1], sizes = [96, 14], strides = [1, 1]} : vector<96x16xf32> to vector<96x14xf32>
    %123 = vector.extract_strided_slice %120 {offsets = [0, 2], sizes = [96, 14], strides = [1, 1]} : vector<96x16xf32> to vector<96x14xf32>
    %124 = tpu.concatenate %121, %122, %123 in 0 : vector<96x14xf32>, vector<96x14xf32>, vector<96x14xf32> -> vector<288x14xf32>
    %cst_69 = arith.constant dense<0.000000e+00> : vector<96x14xf32>
    %125 = tpu.matmul %105, %124, %cst_69 {dimension_numbers = #tpu.dot_dimension_numbers<[1], [0], [0], [1], [0, 0, 1, 1], [], []>} : vector<96x288xf32>, vector<288x14xf32>, vector<96x14xf32> -> vector<96x14xf32>
    %126 = vector.extract_strided_slice %125 {offsets = [0, 0], sizes = [16, 14], strides = [1, 1]} : vector<96x14xf32> to vector<16x14xf32>
    %127 = vector.extract_strided_slice %125 {offsets = [16, 0], sizes = [16, 14], strides = [1, 1]} : vector<96x14xf32> to vector<16x14xf32>
    %128 = arith.maximumf %126, %127 : vector<16x14xf32>
    %129 = vector.extract_strided_slice %125 {offsets = [32, 0], sizes = [16, 14], strides = [1, 1]} : vector<96x14xf32> to vector<16x14xf32>
    %130 = arith.maximumf %128, %129 : vector<16x14xf32>
    %131 = vector.extract_strided_slice %125 {offsets = [48, 0], sizes = [16, 14], strides = [1, 1]} : vector<96x14xf32> to vector<16x14xf32>
    %132 = arith.maximumf %130, %131 : vector<16x14xf32>
    %133 = vector.extract_strided_slice %125 {offsets = [64, 0], sizes = [16, 14], strides = [1, 1]} : vector<96x14xf32> to vector<16x14xf32>
    %134 = arith.maximumf %132, %133 : vector<16x14xf32>
    %135 = vector.extract_strided_slice %125 {offsets = [80, 0], sizes = [16, 14], strides = [1, 1]} : vector<96x14xf32> to vector<16x14xf32>
    %136 = arith.maximumf %134, %135 : vector<16x14xf32>
    %137 = vector.broadcast %107 : vector<16x1xf32> to vector<16x14xf32>
    %138 = arith.addf %136, %137 : vector<16x14xf32>
    %cst_70 = arith.constant 0.000000e+00 : f32
    %139 = vector.broadcast %cst_70 : f32 to vector<16x14xf32>
    %140 = arith.cmpf ogt, %138, %139 : vector<16x14xf32>
    %cst_71 = arith.constant 0.000000e+00 : f32
    %141 = vector.broadcast %cst_71 : f32 to vector<16x14xf32>
    %142 = arith.minimumf %138, %141 : vector<16x14xf32>
    %143 = math.exp %142 : vector<16x14xf32>
    %cst_72 = arith.constant 1.000000e+00 : f32
    %144 = vector.broadcast %cst_72 : f32 to vector<16x14xf32>
    %145 = arith.subf %143, %144 : vector<16x14xf32>
    %146 = arith.select %140, %138, %145 : vector<16x14xi1>, vector<16x14xf32>
    %c0_73 = arith.constant 0 : index
    %c32 = arith.constant 32 : index
    %c0_74 = arith.constant 0 : index
    %147 = vector.load %arg6[%c0_73, %c32, %c0_74] : memref<1x144x14xf32, #tpu.memory_space<vmem>>, vector<1x16x14xf32>
    %148 = vector.shape_cast %147 : vector<1x16x14xf32> to vector<16x14xf32>
    %149 = vector.shape_cast %146 : vector<16x14xf32> to vector<1x16x14xf32>
    tpu.vector_store %arg6[%c0_73, %c32, %c0_74], %149 {strides = array<i32>} : memref<1x144x14xf32, #tpu.memory_space<vmem>>, vector<1x16x14xf32>,
    %c3 = arith.constant 3 : index
    %c0_75 = arith.constant 0 : index
    %c0_76 = arith.constant 0 : index
    %150 = vector.load %arg2[%c3, %c0_75, %c0_76] : memref<9x96x100xf32, #tpu.memory_space<vmem>>, vector<1x96x100xf32>
    %151 = vector.shape_cast %150 : vector<1x96x100xf32> to vector<96x100xf32>
    %c3_77 = arith.constant 3 : index
    %c0_78 = arith.constant 0 : index
    %c0_79 = arith.constant 0 : index
    %152 = vector.load %arg3[%c3_77, %c0_78, %c0_79] : memref<9x96x1xf32, #tpu.memory_space<vmem>>, vector<1x96x1xf32>
    %153 = vector.shape_cast %152 : vector<1x96x1xf32> to vector<96x1xf32>
    %c3_80 = arith.constant 3 : index
    %c0_81 = arith.constant 0 : index
    %c0_82 = arith.constant 0 : index
    %154 = vector.load %arg4[%c3_80, %c0_81, %c0_82] : memref<9x96x288xf32, #tpu.memory_space<vmem>>, vector<1x96x288xf32>
    %155 = vector.shape_cast %154 : vector<1x96x288xf32> to vector<96x288xf32>
    %c3_83 = arith.constant 3 : index
    %c0_84 = arith.constant 0 : index
    %c0_85 = arith.constant 0 : index
    %156 = vector.load %arg5[%c3_83, %c0_84, %c0_85] : memref<9x16x1xf32, #tpu.memory_space<vmem>>, vector<1x16x1xf32>
    %157 = vector.shape_cast %156 : vector<1x16x1xf32> to vector<16x1xf32>
    %c0_86 = arith.constant 0 : index
    %c1_87 = arith.constant 1 : index
    %c0_88 = arith.constant 0 : index
    %c0_89 = arith.constant 0 : index
    %158 = vector.load %arg1[%c0_86, %c1_87, %c0_88, %c0_89] : memref<1x3x104x16xf32, #tpu.memory_space<vmem>>, vector<1x1x100x16xf32>
    %159 = vector.shape_cast %158 : vector<1x1x100x16xf32> to vector<100x16xf32>
    %cst_90 = arith.constant dense<0.000000e+00> : vector<96x16xf32>
    %160 = tpu.matmul %151, %159, %cst_90 {dimension_numbers = #tpu.dot_dimension_numbers<[1], [0], [0], [1], [0, 0, 1, 1], [], []>} : vector<96x100xf32>, vector<100x16xf32>, vector<96x16xf32> -> vector<96x16xf32>
    %161 = vector.broadcast %153 : vector<96x1xf32> to vector<96x16xf32>
    %162 = arith.addf %160, %161 : vector<96x16xf32>
    %cst_91 = arith.constant 0.000000e+00 : f32
    %163 = vector.broadcast %cst_91 : f32 to vector<96x16xf32>
    %164 = arith.cmpf ogt, %162, %163 : vector<96x16xf32>
    %cst_92 = arith.constant 0.000000e+00 : f32
    %165 = vector.broadcast %cst_92 : f32 to vector<96x16xf32>
    %166 = arith.minimumf %162, %165 : vector<96x16xf32>
    %167 = math.exp %166 : vector<96x16xf32>
    %cst_93 = arith.constant 1.000000e+00 : f32
    %168 = vector.broadcast %cst_93 : f32 to vector<96x16xf32>
    %169 = arith.subf %167, %168 : vector<96x16xf32>
    %170 = arith.select %164, %162, %169 : vector<96x16xi1>, vector<96x16xf32>
    %171 = vector.extract_strided_slice %170 {offsets = [0, 0], sizes = [96, 14], strides = [1, 1]} : vector<96x16xf32> to vector<96x14xf32>
    %172 = vector.extract_strided_slice %170 {offsets = [0, 1], sizes = [96, 14], strides = [1, 1]} : vector<96x16xf32> to vector<96x14xf32>
    %173 = vector.extract_strided_slice %170 {offsets = [0, 2], sizes = [96, 14], strides = [1, 1]} : vector<96x16xf32> to vector<96x14xf32>
    %174 = tpu.concatenate %171, %172, %173 in 0 : vector<96x14xf32>, vector<96x14xf32>, vector<96x14xf32> -> vector<288x14xf32>
    %cst_94 = arith.constant dense<0.000000e+00> : vector<96x14xf32>
    %175 = tpu.matmul %155, %174, %cst_94 {dimension_numbers = #tpu.dot_dimension_numbers<[1], [0], [0], [1], [0, 0, 1, 1], [], []>} : vector<96x288xf32>, vector<288x14xf32>, vector<96x14xf32> -> vector<96x14xf32>
    %176 = vector.extract_strided_slice %175 {offsets = [0, 0], sizes = [16, 14], strides = [1, 1]} : vector<96x14xf32> to vector<16x14xf32>
    %177 = vector.extract_strided_slice %175 {offsets = [16, 0], sizes = [16, 14], strides = [1, 1]} : vector<96x14xf32> to vector<16x14xf32>
    %178 = arith.maximumf %176, %177 : vector<16x14xf32>
    %179 = vector.extract_strided_slice %175 {offsets = [32, 0], sizes = [16, 14], strides = [1, 1]} : vector<96x14xf32> to vector<16x14xf32>
    %180 = arith.maximumf %178, %179 : vector<16x14xf32>
    %181 = vector.extract_strided_slice %175 {offsets = [48, 0], sizes = [16, 14], strides = [1, 1]} : vector<96x14xf32> to vector<16x14xf32>
    %182 = arith.maximumf %180, %181 : vector<16x14xf32>
    %183 = vector.extract_strided_slice %175 {offsets = [64, 0], sizes = [16, 14], strides = [1, 1]} : vector<96x14xf32> to vector<16x14xf32>
    %184 = arith.maximumf %182, %183 : vector<16x14xf32>
    %185 = vector.extract_strided_slice %175 {offsets = [80, 0], sizes = [16, 14], strides = [1, 1]} : vector<96x14xf32> to vector<16x14xf32>
    %186 = arith.maximumf %184, %185 : vector<16x14xf32>
    %187 = vector.broadcast %157 : vector<16x1xf32> to vector<16x14xf32>
    %188 = arith.addf %186, %187 : vector<16x14xf32>
    %cst_95 = arith.constant 0.000000e+00 : f32
    %189 = vector.broadcast %cst_95 : f32 to vector<16x14xf32>
    %190 = arith.cmpf ogt, %188, %189 : vector<16x14xf32>
    %cst_96 = arith.constant 0.000000e+00 : f32
    %191 = vector.broadcast %cst_96 : f32 to vector<16x14xf32>
    %192 = arith.minimumf %188, %191 : vector<16x14xf32>
    %193 = math.exp %192 : vector<16x14xf32>
    %cst_97 = arith.constant 1.000000e+00 : f32
    %194 = vector.broadcast %cst_97 : f32 to vector<16x14xf32>
    %195 = arith.subf %193, %194 : vector<16x14xf32>
    %196 = arith.select %190, %188, %195 : vector<16x14xi1>, vector<16x14xf32>
    %c0_98 = arith.constant 0 : index
    %c48 = arith.constant 48 : index
    %c0_99 = arith.constant 0 : index
    %197 = vector.load %arg6[%c0_98, %c48, %c0_99] : memref<1x144x14xf32, #tpu.memory_space<vmem>>, vector<1x16x14xf32>
    %198 = vector.shape_cast %197 : vector<1x16x14xf32> to vector<16x14xf32>
    %199 = vector.shape_cast %196 : vector<16x14xf32> to vector<1x16x14xf32>
    tpu.vector_store %arg6[%c0_98, %c48, %c0_99], %199 {strides = array<i32>} : memref<1x144x14xf32, #tpu.memory_space<vmem>>, vector<1x16x14xf32>,
    %c4 = arith.constant 4 : index
    %c0_100 = arith.constant 0 : index
    %c0_101 = arith.constant 0 : index
    %200 = vector.load %arg2[%c4, %c0_100, %c0_101] : memref<9x96x100xf32, #tpu.memory_space<vmem>>, vector<1x96x100xf32>
    %201 = vector.shape_cast %200 : vector<1x96x100xf32> to vector<96x100xf32>
    %c4_102 = arith.constant 4 : index
    %c0_103 = arith.constant 0 : index
    %c0_104 = arith.constant 0 : index
    %202 = vector.load %arg3[%c4_102, %c0_103, %c0_104] : memref<9x96x1xf32, #tpu.memory_space<vmem>>, vector<1x96x1xf32>
    %203 = vector.shape_cast %202 : vector<1x96x1xf32> to vector<96x1xf32>
    %c4_105 = arith.constant 4 : index
    %c0_106 = arith.constant 0 : index
    %c0_107 = arith.constant 0 : index
    %204 = vector.load %arg4[%c4_105, %c0_106, %c0_107] : memref<9x96x288xf32, #tpu.memory_space<vmem>>, vector<1x96x288xf32>
    %205 = vector.shape_cast %204 : vector<1x96x288xf32> to vector<96x288xf32>
    %c4_108 = arith.constant 4 : index
    %c0_109 = arith.constant 0 : index
    %c0_110 = arith.constant 0 : index
    %206 = vector.load %arg5[%c4_108, %c0_109, %c0_110] : memref<9x16x1xf32, #tpu.memory_space<vmem>>, vector<1x16x1xf32>
    %207 = vector.shape_cast %206 : vector<1x16x1xf32> to vector<16x1xf32>
    %c0_111 = arith.constant 0 : index
    %c1_112 = arith.constant 1 : index
    %c0_113 = arith.constant 0 : index
    %c0_114 = arith.constant 0 : index
    %208 = vector.load %arg1[%c0_111, %c1_112, %c0_113, %c0_114] : memref<1x3x104x16xf32, #tpu.memory_space<vmem>>, vector<1x1x100x16xf32>
    %209 = vector.shape_cast %208 : vector<1x1x100x16xf32> to vector<100x16xf32>
    %cst_115 = arith.constant dense<0.000000e+00> : vector<96x16xf32>
    %210 = tpu.matmul %201, %209, %cst_115 {dimension_numbers = #tpu.dot_dimension_numbers<[1], [0], [0], [1], [0, 0, 1, 1], [], []>} : vector<96x100xf32>, vector<100x16xf32>, vector<96x16xf32> -> vector<96x16xf32>
    %211 = vector.broadcast %203 : vector<96x1xf32> to vector<96x16xf32>
    %212 = arith.addf %210, %211 : vector<96x16xf32>
    %cst_116 = arith.constant 0.000000e+00 : f32
    %213 = vector.broadcast %cst_116 : f32 to vector<96x16xf32>
    %214 = arith.cmpf ogt, %212, %213 : vector<96x16xf32>
    %cst_117 = arith.constant 0.000000e+00 : f32
    %215 = vector.broadcast %cst_117 : f32 to vector<96x16xf32>
    %216 = arith.minimumf %212, %215 : vector<96x16xf32>
    %217 = math.exp %216 : vector<96x16xf32>
    %cst_118 = arith.constant 1.000000e+00 : f32
    %218 = vector.broadcast %cst_118 : f32 to vector<96x16xf32>
    %219 = arith.subf %217, %218 : vector<96x16xf32>
    %220 = arith.select %214, %212, %219 : vector<96x16xi1>, vector<96x16xf32>
    %221 = vector.extract_strided_slice %220 {offsets = [0, 0], sizes = [96, 14], strides = [1, 1]} : vector<96x16xf32> to vector<96x14xf32>
    %222 = vector.extract_strided_slice %220 {offsets = [0, 1], sizes = [96, 14], strides = [1, 1]} : vector<96x16xf32> to vector<96x14xf32>
    %223 = vector.extract_strided_slice %220 {offsets = [0, 2], sizes = [96, 14], strides = [1, 1]} : vector<96x16xf32> to vector<96x14xf32>
    %224 = tpu.concatenate %221, %222, %223 in 0 : vector<96x14xf32>, vector<96x14xf32>, vector<96x14xf32> -> vector<288x14xf32>
    %cst_119 = arith.constant dense<0.000000e+00> : vector<96x14xf32>
    %225 = tpu.matmul %205, %224, %cst_119 {dimension_numbers = #tpu.dot_dimension_numbers<[1], [0], [0], [1], [0, 0, 1, 1], [], []>} : vector<96x288xf32>, vector<288x14xf32>, vector<96x14xf32> -> vector<96x14xf32>
    %226 = vector.extract_strided_slice %225 {offsets = [0, 0], sizes = [16, 14], strides = [1, 1]} : vector<96x14xf32> to vector<16x14xf32>
    %227 = vector.extract_strided_slice %225 {offsets = [16, 0], sizes = [16, 14], strides = [1, 1]} : vector<96x14xf32> to vector<16x14xf32>
    %228 = arith.maximumf %226, %227 : vector<16x14xf32>
    %229 = vector.extract_strided_slice %225 {offsets = [32, 0], sizes = [16, 14], strides = [1, 1]} : vector<96x14xf32> to vector<16x14xf32>
    %230 = arith.maximumf %228, %229 : vector<16x14xf32>
    %231 = vector.extract_strided_slice %225 {offsets = [48, 0], sizes = [16, 14], strides = [1, 1]} : vector<96x14xf32> to vector<16x14xf32>
    %232 = arith.maximumf %230, %231 : vector<16x14xf32>
    %233 = vector.extract_strided_slice %225 {offsets = [64, 0], sizes = [16, 14], strides = [1, 1]} : vector<96x14xf32> to vector<16x14xf32>
    %234 = arith.maximumf %232, %233 : vector<16x14xf32>
    %235 = vector.extract_strided_slice %225 {offsets = [80, 0], sizes = [16, 14], strides = [1, 1]} : vector<96x14xf32> to vector<16x14xf32>
    %236 = arith.maximumf %234, %235 : vector<16x14xf32>
    %237 = vector.broadcast %207 : vector<16x1xf32> to vector<16x14xf32>
    %238 = arith.addf %236, %237 : vector<16x14xf32>
    %cst_120 = arith.constant 0.000000e+00 : f32
    %239 = vector.broadcast %cst_120 : f32 to vector<16x14xf32>
    %240 = arith.cmpf ogt, %238, %239 : vector<16x14xf32>
    %cst_121 = arith.constant 0.000000e+00 : f32
    %241 = vector.broadcast %cst_121 : f32 to vector<16x14xf32>
    %242 = arith.minimumf %238, %241 : vector<16x14xf32>
    %243 = math.exp %242 : vector<16x14xf32>
    %cst_122 = arith.constant 1.000000e+00 : f32
    %244 = vector.broadcast %cst_122 : f32 to vector<16x14xf32>
    %245 = arith.subf %243, %244 : vector<16x14xf32>
    %246 = arith.select %240, %238, %245 : vector<16x14xi1>, vector<16x14xf32>
    %c0_123 = arith.constant 0 : index
    %c64 = arith.constant 64 : index
    %c0_124 = arith.constant 0 : index
    %247 = vector.load %arg6[%c0_123, %c64, %c0_124] : memref<1x144x14xf32, #tpu.memory_space<vmem>>, vector<1x16x14xf32>
    %248 = vector.shape_cast %247 : vector<1x16x14xf32> to vector<16x14xf32>
    %249 = vector.shape_cast %246 : vector<16x14xf32> to vector<1x16x14xf32>
    tpu.vector_store %arg6[%c0_123, %c64, %c0_124], %249 {strides = array<i32>} : memref<1x144x14xf32, #tpu.memory_space<vmem>>, vector<1x16x14xf32>,
    %c5 = arith.constant 5 : index
    %c0_125 = arith.constant 0 : index
    %c0_126 = arith.constant 0 : index
    %250 = vector.load %arg2[%c5, %c0_125, %c0_126] : memref<9x96x100xf32, #tpu.memory_space<vmem>>, vector<1x96x100xf32>
    %251 = vector.shape_cast %250 : vector<1x96x100xf32> to vector<96x100xf32>
    %c5_127 = arith.constant 5 : index
    %c0_128 = arith.constant 0 : index
    %c0_129 = arith.constant 0 : index
    %252 = vector.load %arg3[%c5_127, %c0_128, %c0_129] : memref<9x96x1xf32, #tpu.memory_space<vmem>>, vector<1x96x1xf32>
    %253 = vector.shape_cast %252 : vector<1x96x1xf32> to vector<96x1xf32>
    %c5_130 = arith.constant 5 : index
    %c0_131 = arith.constant 0 : index
    %c0_132 = arith.constant 0 : index
    %254 = vector.load %arg4[%c5_130, %c0_131, %c0_132] : memref<9x96x288xf32, #tpu.memory_space<vmem>>, vector<1x96x288xf32>
    %255 = vector.shape_cast %254 : vector<1x96x288xf32> to vector<96x288xf32>
    %c5_133 = arith.constant 5 : index
    %c0_134 = arith.constant 0 : index
    %c0_135 = arith.constant 0 : index
    %256 = vector.load %arg5[%c5_133, %c0_134, %c0_135] : memref<9x16x1xf32, #tpu.memory_space<vmem>>, vector<1x16x1xf32>
    %257 = vector.shape_cast %256 : vector<1x16x1xf32> to vector<16x1xf32>
    %c0_136 = arith.constant 0 : index
    %c1_137 = arith.constant 1 : index
    %c0_138 = arith.constant 0 : index
    %c0_139 = arith.constant 0 : index
    %258 = vector.load %arg1[%c0_136, %c1_137, %c0_138, %c0_139] : memref<1x3x104x16xf32, #tpu.memory_space<vmem>>, vector<1x1x100x16xf32>
    %259 = vector.shape_cast %258 : vector<1x1x100x16xf32> to vector<100x16xf32>
    %cst_140 = arith.constant dense<0.000000e+00> : vector<96x16xf32>
    %260 = tpu.matmul %251, %259, %cst_140 {dimension_numbers = #tpu.dot_dimension_numbers<[1], [0], [0], [1], [0, 0, 1, 1], [], []>} : vector<96x100xf32>, vector<100x16xf32>, vector<96x16xf32> -> vector<96x16xf32>
    %261 = vector.broadcast %253 : vector<96x1xf32> to vector<96x16xf32>
    %262 = arith.addf %260, %261 : vector<96x16xf32>
    %cst_141 = arith.constant 0.000000e+00 : f32
    %263 = vector.broadcast %cst_141 : f32 to vector<96x16xf32>
    %264 = arith.cmpf ogt, %262, %263 : vector<96x16xf32>
    %cst_142 = arith.constant 0.000000e+00 : f32
    %265 = vector.broadcast %cst_142 : f32 to vector<96x16xf32>
    %266 = arith.minimumf %262, %265 : vector<96x16xf32>
    %267 = math.exp %266 : vector<96x16xf32>
    %cst_143 = arith.constant 1.000000e+00 : f32
    %268 = vector.broadcast %cst_143 : f32 to vector<96x16xf32>
    %269 = arith.subf %267, %268 : vector<96x16xf32>
    %270 = arith.select %264, %262, %269 : vector<96x16xi1>, vector<96x16xf32>
    %271 = vector.extract_strided_slice %270 {offsets = [0, 0], sizes = [96, 14], strides = [1, 1]} : vector<96x16xf32> to vector<96x14xf32>
    %272 = vector.extract_strided_slice %270 {offsets = [0, 1], sizes = [96, 14], strides = [1, 1]} : vector<96x16xf32> to vector<96x14xf32>
    %273 = vector.extract_strided_slice %270 {offsets = [0, 2], sizes = [96, 14], strides = [1, 1]} : vector<96x16xf32> to vector<96x14xf32>
    %274 = tpu.concatenate %271, %272, %273 in 0 : vector<96x14xf32>, vector<96x14xf32>, vector<96x14xf32> -> vector<288x14xf32>
    %cst_144 = arith.constant dense<0.000000e+00> : vector<96x14xf32>
    %275 = tpu.matmul %255, %274, %cst_144 {dimension_numbers = #tpu.dot_dimension_numbers<[1], [0], [0], [1], [0, 0, 1, 1], [], []>} : vector<96x288xf32>, vector<288x14xf32>, vector<96x14xf32> -> vector<96x14xf32>
    %276 = vector.extract_strided_slice %275 {offsets = [0, 0], sizes = [16, 14], strides = [1, 1]} : vector<96x14xf32> to vector<16x14xf32>
    %277 = vector.extract_strided_slice %275 {offsets = [16, 0], sizes = [16, 14], strides = [1, 1]} : vector<96x14xf32> to vector<16x14xf32>
    %278 = arith.maximumf %276, %277 : vector<16x14xf32>
    %279 = vector.extract_strided_slice %275 {offsets = [32, 0], sizes = [16, 14], strides = [1, 1]} : vector<96x14xf32> to vector<16x14xf32>
    %280 = arith.maximumf %278, %279 : vector<16x14xf32>
    %281 = vector.extract_strided_slice %275 {offsets = [48, 0], sizes = [16, 14], strides = [1, 1]} : vector<96x14xf32> to vector<16x14xf32>
    %282 = arith.maximumf %280, %281 : vector<16x14xf32>
    %283 = vector.extract_strided_slice %275 {offsets = [64, 0], sizes = [16, 14], strides = [1, 1]} : vector<96x14xf32> to vector<16x14xf32>
    %284 = arith.maximumf %282, %283 : vector<16x14xf32>
    %285 = vector.extract_strided_slice %275 {offsets = [80, 0], sizes = [16, 14], strides = [1, 1]} : vector<96x14xf32> to vector<16x14xf32>
    %286 = arith.maximumf %284, %285 : vector<16x14xf32>
    %287 = vector.broadcast %257 : vector<16x1xf32> to vector<16x14xf32>
    %288 = arith.addf %286, %287 : vector<16x14xf32>
    %cst_145 = arith.constant 0.000000e+00 : f32
    %289 = vector.broadcast %cst_145 : f32 to vector<16x14xf32>
    %290 = arith.cmpf ogt, %288, %289 : vector<16x14xf32>
    %cst_146 = arith.constant 0.000000e+00 : f32
    %291 = vector.broadcast %cst_146 : f32 to vector<16x14xf32>
    %292 = arith.minimumf %288, %291 : vector<16x14xf32>
    %293 = math.exp %292 : vector<16x14xf32>
    %cst_147 = arith.constant 1.000000e+00 : f32
    %294 = vector.broadcast %cst_147 : f32 to vector<16x14xf32>
    %295 = arith.subf %293, %294 : vector<16x14xf32>
    %296 = arith.select %290, %288, %295 : vector<16x14xi1>, vector<16x14xf32>
    %c0_148 = arith.constant 0 : index
    %c80 = arith.constant 80 : index
    %c0_149 = arith.constant 0 : index
    %297 = vector.load %arg6[%c0_148, %c80, %c0_149] : memref<1x144x14xf32, #tpu.memory_space<vmem>>, vector<1x16x14xf32>
    %298 = vector.shape_cast %297 : vector<1x16x14xf32> to vector<16x14xf32>
    %299 = vector.shape_cast %296 : vector<16x14xf32> to vector<1x16x14xf32>
    tpu.vector_store %arg6[%c0_148, %c80, %c0_149], %299 {strides = array<i32>} : memref<1x144x14xf32, #tpu.memory_space<vmem>>, vector<1x16x14xf32>,
    %c6 = arith.constant 6 : index
    %c0_150 = arith.constant 0 : index
    %c0_151 = arith.constant 0 : index
    %300 = vector.load %arg2[%c6, %c0_150, %c0_151] : memref<9x96x100xf32, #tpu.memory_space<vmem>>, vector<1x96x100xf32>
    %301 = vector.shape_cast %300 : vector<1x96x100xf32> to vector<96x100xf32>
    %c6_152 = arith.constant 6 : index
    %c0_153 = arith.constant 0 : index
    %c0_154 = arith.constant 0 : index
    %302 = vector.load %arg3[%c6_152, %c0_153, %c0_154] : memref<9x96x1xf32, #tpu.memory_space<vmem>>, vector<1x96x1xf32>
    %303 = vector.shape_cast %302 : vector<1x96x1xf32> to vector<96x1xf32>
    %c6_155 = arith.constant 6 : index
    %c0_156 = arith.constant 0 : index
    %c0_157 = arith.constant 0 : index
    %304 = vector.load %arg4[%c6_155, %c0_156, %c0_157] : memref<9x96x288xf32, #tpu.memory_space<vmem>>, vector<1x96x288xf32>
    %305 = vector.shape_cast %304 : vector<1x96x288xf32> to vector<96x288xf32>
    %c6_158 = arith.constant 6 : index
    %c0_159 = arith.constant 0 : index
    %c0_160 = arith.constant 0 : index
    %306 = vector.load %arg5[%c6_158, %c0_159, %c0_160] : memref<9x16x1xf32, #tpu.memory_space<vmem>>, vector<1x16x1xf32>
    %307 = vector.shape_cast %306 : vector<1x16x1xf32> to vector<16x1xf32>
    %c0_161 = arith.constant 0 : index
    %c2_162 = arith.constant 2 : index
    %c0_163 = arith.constant 0 : index
    %c0_164 = arith.constant 0 : index
    %308 = vector.load %arg1[%c0_161, %c2_162, %c0_163, %c0_164] : memref<1x3x104x16xf32, #tpu.memory_space<vmem>>, vector<1x1x100x16xf32>
    %309 = vector.shape_cast %308 : vector<1x1x100x16xf32> to vector<100x16xf32>
    %cst_165 = arith.constant dense<0.000000e+00> : vector<96x16xf32>
    %310 = tpu.matmul %301, %309, %cst_165 {dimension_numbers = #tpu.dot_dimension_numbers<[1], [0], [0], [1], [0, 0, 1, 1], [], []>} : vector<96x100xf32>, vector<100x16xf32>, vector<96x16xf32> -> vector<96x16xf32>
    %311 = vector.broadcast %303 : vector<96x1xf32> to vector<96x16xf32>
    %312 = arith.addf %310, %311 : vector<96x16xf32>
    %cst_166 = arith.constant 0.000000e+00 : f32
    %313 = vector.broadcast %cst_166 : f32 to vector<96x16xf32>
    %314 = arith.cmpf ogt, %312, %313 : vector<96x16xf32>
    %cst_167 = arith.constant 0.000000e+00 : f32
    %315 = vector.broadcast %cst_167 : f32 to vector<96x16xf32>
    %316 = arith.minimumf %312, %315 : vector<96x16xf32>
    %317 = math.exp %316 : vector<96x16xf32>
    %cst_168 = arith.constant 1.000000e+00 : f32
    %318 = vector.broadcast %cst_168 : f32 to vector<96x16xf32>
    %319 = arith.subf %317, %318 : vector<96x16xf32>
    %320 = arith.select %314, %312, %319 : vector<96x16xi1>, vector<96x16xf32>
    %321 = vector.extract_strided_slice %320 {offsets = [0, 0], sizes = [96, 14], strides = [1, 1]} : vector<96x16xf32> to vector<96x14xf32>
    %322 = vector.extract_strided_slice %320 {offsets = [0, 1], sizes = [96, 14], strides = [1, 1]} : vector<96x16xf32> to vector<96x14xf32>
    %323 = vector.extract_strided_slice %320 {offsets = [0, 2], sizes = [96, 14], strides = [1, 1]} : vector<96x16xf32> to vector<96x14xf32>
    %324 = tpu.concatenate %321, %322, %323 in 0 : vector<96x14xf32>, vector<96x14xf32>, vector<96x14xf32> -> vector<288x14xf32>
    %cst_169 = arith.constant dense<0.000000e+00> : vector<96x14xf32>
    %325 = tpu.matmul %305, %324, %cst_169 {dimension_numbers = #tpu.dot_dimension_numbers<[1], [0], [0], [1], [0, 0, 1, 1], [], []>} : vector<96x288xf32>, vector<288x14xf32>, vector<96x14xf32> -> vector<96x14xf32>
    %326 = vector.extract_strided_slice %325 {offsets = [0, 0], sizes = [16, 14], strides = [1, 1]} : vector<96x14xf32> to vector<16x14xf32>
    %327 = vector.extract_strided_slice %325 {offsets = [16, 0], sizes = [16, 14], strides = [1, 1]} : vector<96x14xf32> to vector<16x14xf32>
    %328 = arith.maximumf %326, %327 : vector<16x14xf32>
    %329 = vector.extract_strided_slice %325 {offsets = [32, 0], sizes = [16, 14], strides = [1, 1]} : vector<96x14xf32> to vector<16x14xf32>
    %330 = arith.maximumf %328, %329 : vector<16x14xf32>
    %331 = vector.extract_strided_slice %325 {offsets = [48, 0], sizes = [16, 14], strides = [1, 1]} : vector<96x14xf32> to vector<16x14xf32>
    %332 = arith.maximumf %330, %331 : vector<16x14xf32>
    %333 = vector.extract_strided_slice %325 {offsets = [64, 0], sizes = [16, 14], strides = [1, 1]} : vector<96x14xf32> to vector<16x14xf32>
    %334 = arith.maximumf %332, %333 : vector<16x14xf32>
    %335 = vector.extract_strided_slice %325 {offsets = [80, 0], sizes = [16, 14], strides = [1, 1]} : vector<96x14xf32> to vector<16x14xf32>
    %336 = arith.maximumf %334, %335 : vector<16x14xf32>
    %337 = vector.broadcast %307 : vector<16x1xf32> to vector<16x14xf32>
    %338 = arith.addf %336, %337 : vector<16x14xf32>
    %cst_170 = arith.constant 0.000000e+00 : f32
    %339 = vector.broadcast %cst_170 : f32 to vector<16x14xf32>
    %340 = arith.cmpf ogt, %338, %339 : vector<16x14xf32>
    %cst_171 = arith.constant 0.000000e+00 : f32
    %341 = vector.broadcast %cst_171 : f32 to vector<16x14xf32>
    %342 = arith.minimumf %338, %341 : vector<16x14xf32>
    %343 = math.exp %342 : vector<16x14xf32>
    %cst_172 = arith.constant 1.000000e+00 : f32
    %344 = vector.broadcast %cst_172 : f32 to vector<16x14xf32>
    %345 = arith.subf %343, %344 : vector<16x14xf32>
    %346 = arith.select %340, %338, %345 : vector<16x14xi1>, vector<16x14xf32>
    %c0_173 = arith.constant 0 : index
    %c96 = arith.constant 96 : index
    %c0_174 = arith.constant 0 : index
    %347 = vector.load %arg6[%c0_173, %c96, %c0_174] : memref<1x144x14xf32, #tpu.memory_space<vmem>>, vector<1x16x14xf32>
    %348 = vector.shape_cast %347 : vector<1x16x14xf32> to vector<16x14xf32>
    %349 = vector.shape_cast %346 : vector<16x14xf32> to vector<1x16x14xf32>
    tpu.vector_store %arg6[%c0_173, %c96, %c0_174], %349 {strides = array<i32>} : memref<1x144x14xf32, #tpu.memory_space<vmem>>, vector<1x16x14xf32>,
    %c7 = arith.constant 7 : index
    %c0_175 = arith.constant 0 : index
    %c0_176 = arith.constant 0 : index
    %350 = vector.load %arg2[%c7, %c0_175, %c0_176] : memref<9x96x100xf32, #tpu.memory_space<vmem>>, vector<1x96x100xf32>
    %351 = vector.shape_cast %350 : vector<1x96x100xf32> to vector<96x100xf32>
    %c7_177 = arith.constant 7 : index
    %c0_178 = arith.constant 0 : index
    %c0_179 = arith.constant 0 : index
    %352 = vector.load %arg3[%c7_177, %c0_178, %c0_179] : memref<9x96x1xf32, #tpu.memory_space<vmem>>, vector<1x96x1xf32>
    %353 = vector.shape_cast %352 : vector<1x96x1xf32> to vector<96x1xf32>
    %c7_180 = arith.constant 7 : index
    %c0_181 = arith.constant 0 : index
    %c0_182 = arith.constant 0 : index
    %354 = vector.load %arg4[%c7_180, %c0_181, %c0_182] : memref<9x96x288xf32, #tpu.memory_space<vmem>>, vector<1x96x288xf32>
    %355 = vector.shape_cast %354 : vector<1x96x288xf32> to vector<96x288xf32>
    %c7_183 = arith.constant 7 : index
    %c0_184 = arith.constant 0 : index
    %c0_185 = arith.constant 0 : index
    %356 = vector.load %arg5[%c7_183, %c0_184, %c0_185] : memref<9x16x1xf32, #tpu.memory_space<vmem>>, vector<1x16x1xf32>
    %357 = vector.shape_cast %356 : vector<1x16x1xf32> to vector<16x1xf32>
    %c0_186 = arith.constant 0 : index
    %c2_187 = arith.constant 2 : index
    %c0_188 = arith.constant 0 : index
    %c0_189 = arith.constant 0 : index
    %358 = vector.load %arg1[%c0_186, %c2_187, %c0_188, %c0_189] : memref<1x3x104x16xf32, #tpu.memory_space<vmem>>, vector<1x1x100x16xf32>
    %359 = vector.shape_cast %358 : vector<1x1x100x16xf32> to vector<100x16xf32>
    %cst_190 = arith.constant dense<0.000000e+00> : vector<96x16xf32>
    %360 = tpu.matmul %351, %359, %cst_190 {dimension_numbers = #tpu.dot_dimension_numbers<[1], [0], [0], [1], [0, 0, 1, 1], [], []>} : vector<96x100xf32>, vector<100x16xf32>, vector<96x16xf32> -> vector<96x16xf32>
    %361 = vector.broadcast %353 : vector<96x1xf32> to vector<96x16xf32>
    %362 = arith.addf %360, %361 : vector<96x16xf32>
    %cst_191 = arith.constant 0.000000e+00 : f32
    %363 = vector.broadcast %cst_191 : f32 to vector<96x16xf32>
    %364 = arith.cmpf ogt, %362, %363 : vector<96x16xf32>
    %cst_192 = arith.constant 0.000000e+00 : f32
    %365 = vector.broadcast %cst_192 : f32 to vector<96x16xf32>
    %366 = arith.minimumf %362, %365 : vector<96x16xf32>
    %367 = math.exp %366 : vector<96x16xf32>
    %cst_193 = arith.constant 1.000000e+00 : f32
    %368 = vector.broadcast %cst_193 : f32 to vector<96x16xf32>
    %369 = arith.subf %367, %368 : vector<96x16xf32>
    %370 = arith.select %364, %362, %369 : vector<96x16xi1>, vector<96x16xf32>
    %371 = vector.extract_strided_slice %370 {offsets = [0, 0], sizes = [96, 14], strides = [1, 1]} : vector<96x16xf32> to vector<96x14xf32>
    %372 = vector.extract_strided_slice %370 {offsets = [0, 1], sizes = [96, 14], strides = [1, 1]} : vector<96x16xf32> to vector<96x14xf32>
    %373 = vector.extract_strided_slice %370 {offsets = [0, 2], sizes = [96, 14], strides = [1, 1]} : vector<96x16xf32> to vector<96x14xf32>
    %374 = tpu.concatenate %371, %372, %373 in 0 : vector<96x14xf32>, vector<96x14xf32>, vector<96x14xf32> -> vector<288x14xf32>
    %cst_194 = arith.constant dense<0.000000e+00> : vector<96x14xf32>
    %375 = tpu.matmul %355, %374, %cst_194 {dimension_numbers = #tpu.dot_dimension_numbers<[1], [0], [0], [1], [0, 0, 1, 1], [], []>} : vector<96x288xf32>, vector<288x14xf32>, vector<96x14xf32> -> vector<96x14xf32>
    %376 = vector.extract_strided_slice %375 {offsets = [0, 0], sizes = [16, 14], strides = [1, 1]} : vector<96x14xf32> to vector<16x14xf32>
    %377 = vector.extract_strided_slice %375 {offsets = [16, 0], sizes = [16, 14], strides = [1, 1]} : vector<96x14xf32> to vector<16x14xf32>
    %378 = arith.maximumf %376, %377 : vector<16x14xf32>
    %379 = vector.extract_strided_slice %375 {offsets = [32, 0], sizes = [16, 14], strides = [1, 1]} : vector<96x14xf32> to vector<16x14xf32>
    %380 = arith.maximumf %378, %379 : vector<16x14xf32>
    %381 = vector.extract_strided_slice %375 {offsets = [48, 0], sizes = [16, 14], strides = [1, 1]} : vector<96x14xf32> to vector<16x14xf32>
    %382 = arith.maximumf %380, %381 : vector<16x14xf32>
    %383 = vector.extract_strided_slice %375 {offsets = [64, 0], sizes = [16, 14], strides = [1, 1]} : vector<96x14xf32> to vector<16x14xf32>
    %384 = arith.maximumf %382, %383 : vector<16x14xf32>
    %385 = vector.extract_strided_slice %375 {offsets = [80, 0], sizes = [16, 14], strides = [1, 1]} : vector<96x14xf32> to vector<16x14xf32>
    %386 = arith.maximumf %384, %385 : vector<16x14xf32>
    %387 = vector.broadcast %357 : vector<16x1xf32> to vector<16x14xf32>
    %388 = arith.addf %386, %387 : vector<16x14xf32>
    %cst_195 = arith.constant 0.000000e+00 : f32
    %389 = vector.broadcast %cst_195 : f32 to vector<16x14xf32>
    %390 = arith.cmpf ogt, %388, %389 : vector<16x14xf32>
    %cst_196 = arith.constant 0.000000e+00 : f32
    %391 = vector.broadcast %cst_196 : f32 to vector<16x14xf32>
    %392 = arith.minimumf %388, %391 : vector<16x14xf32>
    %393 = math.exp %392 : vector<16x14xf32>
    %cst_197 = arith.constant 1.000000e+00 : f32
    %394 = vector.broadcast %cst_197 : f32 to vector<16x14xf32>
    %395 = arith.subf %393, %394 : vector<16x14xf32>
    %396 = arith.select %390, %388, %395 : vector<16x14xi1>, vector<16x14xf32>
    %c0_198 = arith.constant 0 : index
    %c112 = arith.constant 112 : index
    %c0_199 = arith.constant 0 : index
    %397 = vector.load %arg6[%c0_198, %c112, %c0_199] : memref<1x144x14xf32, #tpu.memory_space<vmem>>, vector<1x16x14xf32>
    %398 = vector.shape_cast %397 : vector<1x16x14xf32> to vector<16x14xf32>
    %399 = vector.shape_cast %396 : vector<16x14xf32> to vector<1x16x14xf32>
    tpu.vector_store %arg6[%c0_198, %c112, %c0_199], %399 {strides = array<i32>} : memref<1x144x14xf32, #tpu.memory_space<vmem>>, vector<1x16x14xf32>,
    %c8 = arith.constant 8 : index
    %c0_200 = arith.constant 0 : index
    %c0_201 = arith.constant 0 : index
    %400 = vector.load %arg2[%c8, %c0_200, %c0_201] : memref<9x96x100xf32, #tpu.memory_space<vmem>>, vector<1x96x100xf32>
    %401 = vector.shape_cast %400 : vector<1x96x100xf32> to vector<96x100xf32>
    %c8_202 = arith.constant 8 : index
    %c0_203 = arith.constant 0 : index
    %c0_204 = arith.constant 0 : index
    %402 = vector.load %arg3[%c8_202, %c0_203, %c0_204] : memref<9x96x1xf32, #tpu.memory_space<vmem>>, vector<1x96x1xf32>
    %403 = vector.shape_cast %402 : vector<1x96x1xf32> to vector<96x1xf32>
    %c8_205 = arith.constant 8 : index
    %c0_206 = arith.constant 0 : index
    %c0_207 = arith.constant 0 : index
    %404 = vector.load %arg4[%c8_205, %c0_206, %c0_207] : memref<9x96x288xf32, #tpu.memory_space<vmem>>, vector<1x96x288xf32>
    %405 = vector.shape_cast %404 : vector<1x96x288xf32> to vector<96x288xf32>
    %c8_208 = arith.constant 8 : index
    %c0_209 = arith.constant 0 : index
    %c0_210 = arith.constant 0 : index
    %406 = vector.load %arg5[%c8_208, %c0_209, %c0_210] : memref<9x16x1xf32, #tpu.memory_space<vmem>>, vector<1x16x1xf32>
    %407 = vector.shape_cast %406 : vector<1x16x1xf32> to vector<16x1xf32>
    %c0_211 = arith.constant 0 : index
    %c2_212 = arith.constant 2 : index
    %c0_213 = arith.constant 0 : index
    %c0_214 = arith.constant 0 : index
    %408 = vector.load %arg1[%c0_211, %c2_212, %c0_213, %c0_214] : memref<1x3x104x16xf32, #tpu.memory_space<vmem>>, vector<1x1x100x16xf32>
    %409 = vector.shape_cast %408 : vector<1x1x100x16xf32> to vector<100x16xf32>
    %cst_215 = arith.constant dense<0.000000e+00> : vector<96x16xf32>
    %410 = tpu.matmul %401, %409, %cst_215 {dimension_numbers = #tpu.dot_dimension_numbers<[1], [0], [0], [1], [0, 0, 1, 1], [], []>} : vector<96x100xf32>, vector<100x16xf32>, vector<96x16xf32> -> vector<96x16xf32>
    %411 = vector.broadcast %403 : vector<96x1xf32> to vector<96x16xf32>
    %412 = arith.addf %410, %411 : vector<96x16xf32>
    %cst_216 = arith.constant 0.000000e+00 : f32
    %413 = vector.broadcast %cst_216 : f32 to vector<96x16xf32>
    %414 = arith.cmpf ogt, %412, %413 : vector<96x16xf32>
    %cst_217 = arith.constant 0.000000e+00 : f32
    %415 = vector.broadcast %cst_217 : f32 to vector<96x16xf32>
    %416 = arith.minimumf %412, %415 : vector<96x16xf32>
    %417 = math.exp %416 : vector<96x16xf32>
    %cst_218 = arith.constant 1.000000e+00 : f32
    %418 = vector.broadcast %cst_218 : f32 to vector<96x16xf32>
    %419 = arith.subf %417, %418 : vector<96x16xf32>
    %420 = arith.select %414, %412, %419 : vector<96x16xi1>, vector<96x16xf32>
    %421 = vector.extract_strided_slice %420 {offsets = [0, 0], sizes = [96, 14], strides = [1, 1]} : vector<96x16xf32> to vector<96x14xf32>
    %422 = vector.extract_strided_slice %420 {offsets = [0, 1], sizes = [96, 14], strides = [1, 1]} : vector<96x16xf32> to vector<96x14xf32>
    %423 = vector.extract_strided_slice %420 {offsets = [0, 2], sizes = [96, 14], strides = [1, 1]} : vector<96x16xf32> to vector<96x14xf32>
    %424 = tpu.concatenate %421, %422, %423 in 0 : vector<96x14xf32>, vector<96x14xf32>, vector<96x14xf32> -> vector<288x14xf32>
    %cst_219 = arith.constant dense<0.000000e+00> : vector<96x14xf32>
    %425 = tpu.matmul %405, %424, %cst_219 {dimension_numbers = #tpu.dot_dimension_numbers<[1], [0], [0], [1], [0, 0, 1, 1], [], []>} : vector<96x288xf32>, vector<288x14xf32>, vector<96x14xf32> -> vector<96x14xf32>
    %426 = vector.extract_strided_slice %425 {offsets = [0, 0], sizes = [16, 14], strides = [1, 1]} : vector<96x14xf32> to vector<16x14xf32>
    %427 = vector.extract_strided_slice %425 {offsets = [16, 0], sizes = [16, 14], strides = [1, 1]} : vector<96x14xf32> to vector<16x14xf32>
    %428 = arith.maximumf %426, %427 : vector<16x14xf32>
    %429 = vector.extract_strided_slice %425 {offsets = [32, 0], sizes = [16, 14], strides = [1, 1]} : vector<96x14xf32> to vector<16x14xf32>
    %430 = arith.maximumf %428, %429 : vector<16x14xf32>
    %431 = vector.extract_strided_slice %425 {offsets = [48, 0], sizes = [16, 14], strides = [1, 1]} : vector<96x14xf32> to vector<16x14xf32>
    %432 = arith.maximumf %430, %431 : vector<16x14xf32>
    %433 = vector.extract_strided_slice %425 {offsets = [64, 0], sizes = [16, 14], strides = [1, 1]} : vector<96x14xf32> to vector<16x14xf32>
    %434 = arith.maximumf %432, %433 : vector<16x14xf32>
    %435 = vector.extract_strided_slice %425 {offsets = [80, 0], sizes = [16, 14], strides = [1, 1]} : vector<96x14xf32> to vector<16x14xf32>
    %436 = arith.maximumf %434, %435 : vector<16x14xf32>
    %437 = vector.broadcast %407 : vector<16x1xf32> to vector<16x14xf32>
    %438 = arith.addf %436, %437 : vector<16x14xf32>
    %cst_220 = arith.constant 0.000000e+00 : f32
    %439 = vector.broadcast %cst_220 : f32 to vector<16x14xf32>
    %440 = arith.cmpf ogt, %438, %439 : vector<16x14xf32>
    %cst_221 = arith.constant 0.000000e+00 : f32
    %441 = vector.broadcast %cst_221 : f32 to vector<16x14xf32>
    %442 = arith.minimumf %438, %441 : vector<16x14xf32>
    %443 = math.exp %442 : vector<16x14xf32>
    %cst_222 = arith.constant 1.000000e+00 : f32
    %444 = vector.broadcast %cst_222 : f32 to vector<16x14xf32>
    %445 = arith.subf %443, %444 : vector<16x14xf32>
    %446 = arith.select %440, %438, %445 : vector<16x14xi1>, vector<16x14xf32>
    %c0_223 = arith.constant 0 : index
    %c128 = arith.constant 128 : index
    %c0_224 = arith.constant 0 : index
    %447 = vector.load %arg6[%c0_223, %c128, %c0_224] : memref<1x144x14xf32, #tpu.memory_space<vmem>>, vector<1x16x14xf32>
    %448 = vector.shape_cast %447 : vector<1x16x14xf32> to vector<16x14xf32>
    %449 = vector.shape_cast %446 : vector<16x14xf32> to vector<1x16x14xf32>
    tpu.vector_store %arg6[%c0_223, %c128, %c0_224], %449 {strides = array<i32>} : memref<1x144x14xf32, #tpu.memory_space<vmem>>, vector<1x16x14xf32>,
    return
  }
  func.func @transform_0(%arg0: i32) -> (i32, i32, i32, i32) {
    %c0_i32 = arith.constant 0 : i32
    %c0_i32_0 = arith.constant 0 : i32
    %c0_i32_1 = arith.constant 0 : i32
    %c0_i32_2 = arith.constant 0 : i32
    return %arg0, %c0_i32, %c0_i32_0, %c0_i32_1 : i32, i32, i32, i32
  }
  func.func @transform_1(%arg0: i32) -> (i32, i32, i32) {
    %c0_i32 = arith.constant 0 : i32
    %c0_i32_0 = arith.constant 0 : i32
    %c0_i32_1 = arith.constant 0 : i32
    %c0_i32_2 = arith.constant 0 : i32
    return %c0_i32, %c0_i32_0, %c0_i32_1 : i32, i32, i32
  }
  func.func @transform_2(%arg0: i32) -> (i32, i32, i32) {
    %c0_i32 = arith.constant 0 : i32
    %c0_i32_0 = arith.constant 0 : i32
    %c0_i32_1 = arith.constant 0 : i32
    %c0_i32_2 = arith.constant 0 : i32
    return %c0_i32, %c0_i32_0, %c0_i32_1 : i32, i32, i32
  }
  func.func @transform_3(%arg0: i32) -> (i32, i32, i32) {
    %c0_i32 = arith.constant 0 : i32
    %c0_i32_0 = arith.constant 0 : i32
    %c0_i32_1 = arith.constant 0 : i32
    %c0_i32_2 = arith.constant 0 : i32
    return %c0_i32, %c0_i32_0, %c0_i32_1 : i32, i32, i32
  }
  func.func @transform_4(%arg0: i32) -> (i32, i32, i32) {
    %c0_i32 = arith.constant 0 : i32
    %c0_i32_0 = arith.constant 0 : i32
    %c0_i32_1 = arith.constant 0 : i32
    %c0_i32_2 = arith.constant 0 : i32
    return %c0_i32, %c0_i32_0, %c0_i32_1 : i32, i32, i32
  }
  func.func @transform_5(%arg0: i32) -> (i32, i32, i32) {
    %c0_i32 = arith.constant 0 : i32
    %c0_i32_0 = arith.constant 0 : i32
    %c0_i32_1 = arith.constant 0 : i32
    return %arg0, %c0_i32, %c0_i32_0 : i32, i32, i32
  }
}

</mosaic_0001>

<bundles_post_ra>
// kernel: hs_cnn_forward.1
= control target key start
LH: loop header
LB: loop body
LE: loop exit
PB: predicated region body
PF: predicated region fallthrough
CT: control target
= control target key end

     0   :  { %s10164_s18 = smov 0   ;;  %s14355_s0 = inlined_call_operand.vmem [shape: f32[2,3,104,16], index: 0, kind: input, shape index: {}]   ;;  %s14356_s1 = inlined_call_operand.vmem [shape: f32[9,96,100], index: 1, kind: input, shape index: {}]   ;;  %s14357_s2 = inlined_call_operand.vmem [shape: f32[9,96,1], index: 2, kind: input, shape index: {}]   ;;  %s14358_s3 = inlined_call_operand.vmem [shape: f32[9,96,288], index: 3, kind: input, shape index: {}]   ;;  %s14359_s4 = inlined_call_operand.vmem [shape: f32[9,16,1], index: 4, kind: input, shape index: {}]   ;;  %s14360_s5 = inlined_call_operand.vmem [shape: f32[2,144,14], index: 5, kind: output, shape index: {}]  }
   0x1 LB: > { %s7311_s19 = sadd.s32 4294967295, %s10129_s18   ;;  %p7315_p0 = scmp.ge.s32.totalorder %s10129_s18, 1  ;;  %s10129_s18 = sphi %s10164_s18, %s15_s18  }
   0x2   : > { %p187_p1 = scmp.lt.s32.totalorder %s10129_s18, 3 }
   0x4   : > { %p188_p2 = pnand %p7315_p0, %p187_p1 }
   0x6   : > { %191 = sbr.rel (%p188_p2) target bundleno = 3890 (0xf32), region = 40 }
   0xb   : > { %p215_p3 = scmp.lt.s32.totalorder %s7311_s19, 1  ;;  %v225_v0 = vld [vmem:[%s14356_s1] sm:$0xff]  ;;  %vm360_vm0 = vcmask 818176   ;;  %v10131_v1 = vmov 0   ;;  %v248_v2 = vld [vmem:[%s14357_s2 + $0x58] sm:$0xff]  ;;  %v246_v3 = vld [vmem:[%s14357_s2 + $0x48] sm:$0xff] }
   0xc   : > { %9252 = vmatprep.mubr.msk.f32.mxu0 %vm360_vm0, %v225_v0  ;;  %9870 = vset.pattern.permute.xlu1 %v10131_v1  ;;  %vm397_vm1 = vcmask 1043456   ;;  %v247_v4 = vld [vmem:[%s14357_s2 + $0x50] sm:$0xff]  ;;  %v245_v7 = vld [vmem:[%s14357_s2 + $0x40] sm:$0xff]  ;;  %v226_v19 = vld [vmem:[%s14356_s1 + $0x8] sm:$0xff]  ;;  %vm682_vm2 = vcmask 261120   ;;  %s10132_s11 = smov 126  }
   0xd   : > { %s14544_s19 = smov (!%p215_p3, %s7311_s19), 1  ;;  %9869 = vset.pattern.permute.xlu0 %v10131_v1  ;;  %347 = vperm.xlu1 %9870, %v246_v3   ;;  %v227_v20 = vld [vmem:[%s14356_s1 + $0x10] sm:$0xff]  ;;  %v228_v21 = vld [vmem:[%s14356_s1 + $0x18] sm:$0xff]  ;;  %v229_v22 = vld [vmem:[%s14356_s1 + $0x20] sm:$0xff]  ;;  %s10133_s26 = smov 127  }
   0xe   : > { %s9856_s22 = smul.u32 312, %s14544_s19  ;;  %357 = vperm.xlu0 %9869, %v248_v2   ;;  %v230_v23 = vld [vmem:[%s14356_s1 + $0x28] sm:$0xff]  ;;  %v231_v24 = vld [vmem:[%s14356_s1 + $0x30] sm:$0xff]  ;;  %v232_v25 = vld [vmem:[%s14356_s1 + $0x38] sm:$0xff] }
   0xf   : > { %v233_v26 = vld [vmem:[%s14356_s1 + $0x40] sm:$0xff]  ;;  %v234_v27 = vld [vmem:[%s14356_s1 + $0x48] sm:$0xff]  ;;  %v235_v28 = vld [vmem:[%s14356_s1 + $0x50] sm:$0xff]  ;;  %s9857_s14 = smul.u32 144, %s14544_s19 }
  0x10   : > { %s10188_s29 = scalar_lea.vmem %s14355_s0, %s9856_s22  ;;  %v236_v29 = vld [vmem:[%s14356_s1 + $0x58] sm:$0xff]  ;;  %v251_v58 = vld [vmem:[%s14358_s3 + $0x10] sm:$0xff] }
  0x11   : > { %v299_v5 = vld [vmem:[%s10188_s29 + $0x60] sm:$0xf]  ;;  %v10195_v6 = vld [vmem:[%s10188_s29 + $0x58] sm:$0xff]  ;;  %v10203_v8 = vld [vmem:[%s10188_s29 + $0x50] sm:$0xff]  ;;  %342 = vperm.xlu1 %9870, %v245_v7   ;;  %s14226_s22 = scalar_lea.vmem %s14360_s5, %s9857_s14 }
  0x12   : > { %9226 = vmatprep.subr.msk.mxu0 %vm397_vm1, %v299_v5  ;;  %352 = vperm.xlu0 %9869, %v247_v4   ;;  %v10208_v9 = vld [vmem:[%s10188_s29 + $0x48] sm:$0xff]  ;;  %v10213_v10 = vld [vmem:[%s10188_s29 + $0x40] sm:$0xff]  ;;  %v10218_v11 = vld [vmem:[%s10188_s29 + $0x38] sm:$0xff] }
  0x13   : > { %9227 = vmatpush3.msk.msra.mxu0 %vm397_vm1, %v299_v5  ;;  %v10223_v12 = vld [vmem:[%s10188_s29 + $0x30] sm:$0xff]  ;;  %v10228_v13 = vld [vmem:[%s10188_s29 + $0x28] sm:$0xff]  ;;  %v10233_v14 = vld [vmem:[%s10188_s29 + $0x20] sm:$0xff] }
  0x14   : > { %9228 = vmatprep.subr.mxu0 %v10195_v6  ;;  %v10238_v15 = vld [vmem:[%s10188_s29 + $0x18] sm:$0xff]  ;;  %v10243_v16 = vld [vmem:[%s10188_s29 + $0x10] sm:$0xff]  ;;  %v10248_v17 = vld [vmem:[%s10188_s29 + $0x8] sm:$0xff] }
  0x15   : > { %9229 = vmatpush3.msra.mxu0 %v10195_v6  ;;  %v10253_v18 = vld [vmem:[%s10188_s29] sm:$0xff] }
  0x16   : > { %9230 = vmatprep.subr.mxu0 %v10203_v8 }
  0x17   : > { %9231 = vmatpush3.msra.mxu0 %v10203_v8 }
  0x18   : > { %9232 = vmatprep.subr.mxu0 %v10208_v9 }
  0x19   : > { %9233 = vmatpush3.msra.mxu0 %v10208_v9 }
  0x1a   : > { %9234 = vmatprep.subr.mxu0 %v10213_v10 }
  0x1b   : > { %9235 = vmatpush3.msra.mxu0 %v10213_v10 }
  0x1c   : > { %9236 = vmatprep.subr.mxu0 %v10218_v11 }
  0x1d   : > { %9237 = vmatpush3.msra.mxu0 %v10218_v11 }
  0x1e   : > { %9238 = vmatprep.subr.mxu0 %v10223_v12 }
  0x1f   : > { %9239 = vmatpush3.msra.mxu0 %v10223_v12 }
  0x20   : > { %9240 = vmatprep.subr.mxu0 %v10228_v13 }
  0x21   : > { %9241 = vmatpush3.msra.mxu0 %v10228_v13 }
  0x22   : > { %9242 = vmatprep.subr.mxu0 %v10233_v14 }
  0x23   : > { %9243 = vmatpush3.msra.mxu0 %v10233_v14 }
  0x24   : > { %9244 = vmatprep.subr.mxu0 %v10238_v15 }
  0x25   : > { %9245 = vmatpush3.msra.mxu0 %v10238_v15 }
  0x26   : > { %9246 = vmatprep.subr.mxu0 %v10243_v16 }
  0x27   : > { %9247 = vmatpush3.msra.mxu0 %v10243_v16 }
  0x28   : > { %9248 = vmatprep.subr.mxu0 %v10248_v17 }
  0x29   : > { %9249 = vmatpush3.msra.mxu0 %v10248_v17 }
  0x2a   : > { %9250 = vmatprep.subr.mxu0 %v10253_v18 }
  0x2b   : > { %9251 = vmatpush3.msra.mxu0 %v10253_v18 }
  0x2c   : > { %9253 = vmatmul.mubr.msk.f32.vlgmr.msra.gmra.mxu0 %vm360_vm0, %v226_v19  ;;  %v7380_v19 = vld [vmem:[%s14357_s2 + $0xb8] sm:$0xff] }
  0x2d   : > { %9255 = vmatprep.mubr.msk.f32.mxu0 %vm360_vm0, %v227_v20  ;;  %v7379_v20 = vld [vmem:[%s14357_s2 + $0xb0] sm:$0xff] }
  0x30   : > { %9256 = vmatmul.mubr.msk.f32.gmra.mxu0 %vm360_vm0, %v228_v21  ;;  %v7378_v21 = vld [vmem:[%s14357_s2 + $0xa8] sm:$0xff] }
  0x31   : > { %9258 = vmatprep.mubr.msk.f32.mxu0 %vm360_vm0, %v229_v22  ;;  %v7377_v22 = vld [vmem:[%s14357_s2 + $0xa0] sm:$0xff] }
  0x34   : > { %9259 = vmatmul.mubr.msk.f32.gmra.mxu0 %vm360_vm0, %v230_v23 }
  0x35   : > { %9261 = vmatprep.mubr.msk.f32.mxu0 %vm360_vm0, %v231_v24 }
  0x38   : > { %9262 = vmatmul.mubr.msk.f32.gmra.mxu0 %vm360_vm0, %v232_v25 }
  0x39   : > { %9264 = vmatprep.mubr.msk.f32.mxu0 %vm360_vm0, %v233_v26 }
  0x3c   : > { %9265 = vmatmul.mubr.msk.f32.gmra.mxu0 %vm360_vm0, %v234_v27  ;;  %v254_v27 = vld [vmem:[%s14358_s3 + $0x28] sm:$0xff] }
  0x3d   : > { %9267 = vmatprep.mubr.msk.f32.mxu0 %vm360_vm0, %v235_v28  ;;  %v1084_v28 = vld [vmem:[%s10188_s29 + $0x60] sm:$0xf] }
  0x40   : > { %9268 = vmatmul.mubr.msk.f32.gmra.mxu0 %vm360_vm0, %v236_v29  ;;  %v257_v29 = vld [vmem:[%s14358_s3 + $0x40] sm:$0xff] }
  0x41   : > { %9278 = vmatprep.mubr.msk.f32.mxu0 %vm682_vm2, %v251_v58  ;;  %v7368_v58 = vld [vmem:[%s14356_s1 + $0xb8] sm:$0xff] }
  0x88   : > { %v348_v36 = vpop.permute.xlu1 %347 }
  0x89   : > { %v358_v39 = vpop.permute.xlu0 %357 }
  0x8c   : > { %v343_v41 = vpop.permute.xlu1 %342 }
  0x8d   : > { %v353_v50 = vpop.permute.xlu0 %352 }
  0xec   : > { %v10303_v30 = vpop.f32.mrf.mxu0 }
  0xee   : > { %v10305_v31 = vpop.f32.mrf.mxu0 }
  0xf0   : > { %v10307_v32 = vpop.f32.mrf.mxu0 }
  0xf2   : > { %v10309_v33 = vpop.f32.mrf.mxu0 }
  0xf4   : > { %v10311_v34 = vpop.f32.mrf.mxu0 }
  0xf6   : > { %v10313_v35 = vpop.f32.mrf.mxu0 }
  0xf8   : > { %v10315_v37 = vpop.f32.mrf.mxu0 }
  0xfa   : > { %v10317_v38 = vpop.f32.mrf.mxu0 }
  0xfc   : > { %v9266_v40 = vpop.f32.mrf.mxu0 }
  0xfd   : > { %v513_v42 = vadd.f32 %v9266_v40, %v348_v36  ;;  %v260_v36 = vld [vmem:[%s14358_s3 + $0x58] sm:$0xff]  ;;  %v266_v40 = vld [vmem:[%s14358_s3 + $0x88] sm:$0xff] }
  0xfe   : > { %v507_v43 = vpop.f32.mrf.mxu0 }
  0xff   : > { %v547_v44 = vmin.f32 %v513_v42, 0.0  ;;  %v508_v45 = vadd.f32 %v507_v43, %v343_v41  ;;  %vm535_vm5 = vcmp.gt.f32.partialorder %v513_v42, 0.0  ;;  %v269_v41 = vld [vmem:[%s14358_s3 + $0xa0] sm:$0xff]  ;;  %v275_v43 = vld [vmem:[%s14358_s3 + $0xd0] sm:$0xff] }
 0x100   : > { %v9269_v46 = vpop.f32.mrf.mxu0 }
 0x101   : > { %v546_v47 = vmin.f32 %v508_v45, 0.0  ;;  %v523_v48 = vadd.f32 %v9269_v46, %v358_v39  ;;  %v568_v49 = vmul.f32 1.442695, %v547_v44  ;;  %vm534_vm6 = vcmp.gt.f32.partialorder %v508_v45, 0.0  ;;  %v263_v39 = vld [vmem:[%s14358_s3 + $0x70] sm:$0xff]  ;;  %v278_v44 = vld [vmem:[%s14358_s3 + $0xe8] sm:$0xff] }
 0x102   : > { %v517_v51 = vpop.f32.mrf.mxu0  ;;  %v284_v46 = vld [vmem:[%s14358_s3 + $0x118] sm:$0xff] }
 0x103   : > { %v549_v52 = vmin.f32 %v523_v48, 0.0  ;;  %v518_v53 = vadd.f32 %v517_v51, %v353_v50  ;;  %v566_v54 = vmul.f32 1.442695, %v546_v47  ;;  %9871 = vpow2.f32 %v568_v49  ;;  %v7357_v47 = vld [vmem:[%s14356_s1 + $0x60] sm:$0xff]  ;;  %v7359_v49 = vld [vmem:[%s14356_s1 + $0x70] sm:$0xff]  ;;  %v7360_v50 = vld [vmem:[%s14356_s1 + $0x78] sm:$0xff] }
 0x104   : > { %vm537_vm3 = vcmp.gt.f32.partialorder %v523_v48, 0.0  ;;  %v7361_v51 = vld [vmem:[%s14356_s1 + $0x80] sm:$0xff] }
 0x105   : > { %v572_v55 = vmul.f32 1.442695, %v549_v52  ;;  %v548_v56 = vmin.f32 %v518_v53, 0.0  ;;  %vm536_vm4 = vcmp.gt.f32.partialorder %v518_v53, 0.0  ;;  %v7362_v52 = vld [vmem:[%s14356_s1 + $0x88] sm:$0xff] }
 0x107   : > { %9873 = vpow2.f32 %v572_v55  ;;  %v570_v57 = vmul.f32 1.442695, %v548_v56  ;;  %v7365_v55 = vld [vmem:[%s14356_s1 + $0xa0] sm:$0xff]  ;;  %v7366_v56 = vld [vmem:[%s14356_s1 + $0xa8] sm:$0xff] }
 0x108   : > { %9875 = vpow2.f32 %v566_v54  ;;  %v7364_v54 = vld [vmem:[%s14356_s1 + $0x98] sm:$0xff] }
 0x109   : > { %9877 = vpow2.f32 %v570_v57  ;;  %v7367_v57 = vld [vmem:[%s14356_s1 + $0xb0] sm:$0xff] }
 0x110   : > { %v9872_v59 = vpop.eup %9871 }
 0x111   : > { %v7340_v2 = vadd.f32 -1.0, %v9872_v59 }
 0x113   : > { %v10331_v5 = vsel %vm535_vm5, %v513_v42, %v7340_v2  ;;  %v272_v42 = vld [vmem:[%s14358_s3 + $0xb8] sm:$0xff] }
 0x114   : > { %v9874_v60 = vpop.eup %9873 }
 0x115   : > { %v9876_v61 = vpop.eup %9875  ;;  %v7342_v62 = vadd.f32 -1.0, %v9874_v60 }
 0x116   : > { %v9878_v63 = vpop.eup %9877  ;;  %v7339_v4 = vadd.f32 -1.0, %v9876_v61 }
 0x117   : > { %v10323_v0 = vsel %vm537_vm3, %v523_v48, %v7342_v62  ;;  %v7341_v1 = vadd.f32 -1.0, %v9878_v63  ;;  %v7358_v48 = vld [vmem:[%s14356_s1 + $0x68] sm:$0xff] }
 0x118   : > { %668 = vrot.lane.b32.xlu0 %v10323_v0, %s10132_s11  ;;  %v10335_v7 = vsel %vm534_vm6, %v508_v45, %v7339_v4  ;;  %v281_v45 = vld [vmem:[%s14358_s3 + $0x100] sm:$0xff] }
 0x119   : > { %v10327_v3 = vsel %vm536_vm4, %v518_v53, %v7341_v1  ;;  %v7363_v53 = vld [vmem:[%s14356_s1 + $0x90] sm:$0xff] }
 0x11a   : > { %666 = vrot.lane.b32.xlu1 %v10327_v3, %s10132_s11 }
 0x11c   : > { %664 = vrot.lane.b32.xlu0 %v10331_v5, %s10132_s11 }
 0x11e   : > { %662 = vrot.lane.b32.xlu1 %v10335_v7, %s10132_s11 }
 0x120   : > { %1142 = vperm.xlu0 %9869, %v7380_v19  }
 0x122   : > { %1137 = vperm.xlu1 %9870, %v7379_v20  }
 0x124   : > { %1132 = vperm.xlu0 %9869, %v7378_v21  }
 0x126   : > { %1127 = vperm.xlu1 %9870, %v7377_v22  }
 0x18a   : > { %v669_v23 = vpop.permute.xlu0 %668 }
 0x18b   : > { %9270 = vmatprep.subr.mxu0 %v669_v23 }
 0x18c   : > { %9271 = vmatpush3.msra.mxu0 %v669_v23  ;;  %v667_v24 = vpop.permute.xlu1 %666 }
 0x18d   : > { %9272 = vmatprep.subr.mxu0 %v667_v24 }
 0x18e   : > { %v665_v25 = vpop.permute.xlu0 %664  ;;  %9273 = vmatpush3.msra.mxu0 %v667_v24 }
 0x18f   : > { %9274 = vmatprep.subr.mxu0 %v665_v25 }
 0x190   : > { %9275 = vmatpush3.msra.mxu0 %v665_v25  ;;  %v663_v26 = vpop.permute.xlu1 %662 }
 0x191   : > { %9276 = vmatprep.subr.mxu0 %v663_v26 }
 0x192   : > { %9277 = vmatpush3.msra.mxu0 %v663_v26 }
 0x193   : > { %9279 = vmatmul.mubr.msk.f32.vlgmr.msra.gmra.mxu0 %vm682_vm2, %v254_v27  ;;  %9296 = vmatprep.subr.msk.mxu0 %vm397_vm1, %v1084_v28 }
 0x194   : > { %9297 = vmatpush3.msk.msra.mxu0 %vm397_vm1, %v1084_v28  ;;  %9281 = vmatprep.mubr.msk.f32.mxu0 %vm682_vm2, %v257_v29 }
 0x195   : > { %9298 = vmatprep.subr.mxu0 %v10195_v6 }
 0x196   : > { %9299 = vmatpush3.msra.mxu0 %v10195_v6 }
 0x197   : > { %9282 = vmatmul.mubr.msk.f32.gmra.mxu0 %vm682_vm2, %v260_v36  ;;  %9300 = vmatprep.subr.mxu0 %v10203_v8 }
 0x198   : > { %9301 = vmatpush3.msra.mxu0 %v10203_v8  ;;  %9284 = vmatprep.mubr.msk.f32.mxu0 %vm682_vm2, %v263_v39 }
 0x199   : > { %9302 = vmatprep.subr.mxu0 %v10208_v9 }
 0x19a   : > { %9303 = vmatpush3.msra.mxu0 %v10208_v9 }
 0x19b   : > { %9285 = vmatmul.mubr.msk.f32.gmra.mxu0 %vm682_vm2, %v266_v40  ;;  %9304 = vmatprep.subr.mxu0 %v10213_v10  ;;  %v1143_v28 = vpop.permute.xlu0 %1142 }
 0x19c   : > { %9305 = vmatpush3.msra.mxu0 %v10213_v10  ;;  %9287 = vmatprep.mubr.msk.f32.mxu0 %vm682_vm2, %v269_v41 }
 0x19d   : > { %9306 = vmatprep.subr.mxu0 %v10218_v11  ;;  %v1138_v36 = vpop.permute.xlu1 %1137 }
 0x19e   : > { %9307 = vmatpush3.msra.mxu0 %v10218_v11 }
 0x19f   : > { %9288 = vmatmul.mubr.msk.f32.gmra.mxu0 %vm682_vm2, %v272_v42  ;;  %9308 = vmatprep.subr.mxu0 %v10223_v12  ;;  %v1133_v41 = vpop.permute.xlu0 %1132 }
 0x1a0   : > { %9309 = vmatpush3.msra.mxu0 %v10223_v12  ;;  %9290 = vmatprep.mubr.msk.f32.mxu0 %vm682_vm2, %v275_v43 }
 0x1a1   : > { %9310 = vmatprep.subr.mxu0 %v10228_v13 }
 0x1a2   : > { %9311 = vmatpush3.msra.mxu0 %v10228_v13 }
 0x1a3   : > { %9291 = vmatmul.mubr.msk.f32.gmra.mxu0 %vm682_vm2, %v278_v44  ;;  %9312 = vmatprep.subr.mxu0 %v10233_v14  ;;  %v1128_v44 = vpop.permute.xlu1 %1127 }
 0x1a4   : > { %9313 = vmatpush3.msra.mxu0 %v10233_v14  ;;  %9293 = vmatprep.mubr.msk.f32.mxu0 %vm682_vm2, %v281_v45 }
 0x1a5   : > { %9314 = vmatprep.subr.mxu0 %v10238_v15 }
 0x1a6   : > { %9315 = vmatpush3.msra.mxu0 %v10238_v15 }
 0x1a7   : > { %9294 = vmatmul.mubr.msk.f32.gmra.mxu0 %vm682_vm2, %v284_v46  ;;  %9316 = vmatprep.subr.mxu0 %v10243_v16 }
 0x1a8   : > { %9317 = vmatpush3.msra.mxu0 %v10243_v16  ;;  %9322 = vmatprep.mubr.msk.f32.mxu0 %vm360_vm0, %v7357_v47 }
 0x1a9   : > { %9318 = vmatprep.subr.mxu0 %v10248_v17 }
 0x1aa   : > { %9319 = vmatpush3.msra.mxu0 %v10248_v17 }
 0x1ab   : > { %9320 = vmatprep.subr.mxu0 %v10253_v18 }
 0x1ac   : > { %9321 = vmatpush3.msra.mxu0 %v10253_v18 }
 0x1ad   : > { %9323 = vmatmul.mubr.msk.f32.vlgmr.msra.gmra.mxu0 %vm360_vm0, %v7358_v48 }
 0x1ae   : > { %9325 = vmatprep.mubr.msk.f32.mxu0 %vm360_vm0, %v7359_v49 }
 0x1b1   : > { %9326 = vmatmul.mubr.msk.f32.gmra.mxu0 %vm360_vm0, %v7360_v50 }
 0x1b2   : > { %9328 = vmatprep.mubr.msk.f32.mxu0 %vm360_vm0, %v7361_v51 }
 0x1b5   : > { %9329 = vmatmul.mubr.msk.f32.gmra.mxu0 %vm360_vm0, %v7362_v52 }
 0x1b6   : > { %9331 = vmatprep.mubr.msk.f32.mxu0 %vm360_vm0, %v7363_v53 }
 0x1b9   : > { %9332 = vmatmul.mubr.msk.f32.gmra.mxu0 %vm360_vm0, %v7364_v54 }
 0x1ba   : > { %9334 = vmatprep.mubr.msk.f32.mxu0 %vm360_vm0, %v7365_v55 }
 0x1bd   : > { %9335 = vmatmul.mubr.msk.f32.gmra.mxu0 %vm360_vm0, %v7366_v56 }
 0x1be   : > { %9337 = vmatprep.mubr.msk.f32.mxu0 %vm360_vm0, %v7367_v57 }
 0x1c1   : > { %9338 = vmatmul.mubr.msk.f32.gmra.mxu0 %vm360_vm0, %v7368_v58 }
 0x253   : > { %v10470_v59 = vpop.f32.mrf.mxu0 }
 0x255   : > { %v10472_v60 = vpop.f32.mrf.mxu0 }
 0x257   : > { %v10474_v61 = vpop.f32.mrf.mxu0 }
 0x259   : > { %v10476_v62 = vpop.f32.mrf.mxu0 }
 0x25b   : > { %v10478_v63 = vpop.f32.mrf.mxu0 }
 0x25d   : > { %v10480_v1 = vpop.f32.mrf.mxu0 }
 0x25f   : > { %v10482_v2 = vpop.f32.mrf.mxu0 }
 0x261   : > { %v10484_v4 = vpop.f32.mrf.mxu0 }
 0x263   : > { %v10486_v19 = vpop.f32.mrf.mxu0 }
 0x265   : > { %v10488_v20 = vpop.f32.mrf.mxu0 }
 0x267   : > { %v10490_v21 = vpop.f32.mrf.mxu0 }
 0x269   : > { %v10492_v22 = vpop.f32.mrf.mxu0 }
 0x26d   : > { %v10494_v23 = vpop.f32.mrf.mxu0 }
 0x26f   : > { %v10496_v24 = vpop.f32.mrf.mxu0 }
 0x271   : > { %v10498_v25 = vpop.f32.mrf.mxu0 }
 0x273   : > { %v10500_v26 = vpop.f32.mrf.mxu0 }
 0x275   : > { %v10502_v27 = vpop.f32.mrf.mxu0 }
 0x277   : > { %v10504_v29 = vpop.f32.mrf.mxu0 }
 0x279   : > { %v10506_v39 = vpop.f32.mrf.mxu0 }
 0x27b   : > { %v10508_v40 = vpop.f32.mrf.mxu0 }
 0x27d   : > { %v9336_v42 = vpop.f32.mrf.mxu0 }
 0x27e   : > { %v1296_v43 = vadd.f32 %v9336_v42, %v1133_v41  ;;  %v7383_v41 = vld [vmem:[%s14358_s3 + $0x130] sm:$0xff] }
 0x27f   : > { %v1290_v45 = vpop.f32.mrf.mxu0  ;;  %9348 = vmatprep.mubr.msk.f32.mxu0 %vm682_vm2, %v7383_v41 }
 0x280   : > { %v1330_v46 = vmin.f32 %v1296_v43, 0.0  ;;  %v1291_v47 = vadd.f32 %v1290_v45, %v1128_v44  ;;  %vm1318_vm9 = vcmp.gt.f32.partialorder %v1296_v43, 0.0 }
 0x281   : > { %v9339_v48 = vpop.f32.mrf.mxu0 }
 0x282   : > { %v1329_v49 = vmin.f32 %v1291_v47, 0.0  ;;  %v1306_v50 = vadd.f32 %v9339_v48, %v1143_v28  ;;  %v1351_v51 = vmul.f32 1.442695, %v1330_v46  ;;  %vm1317_vm10 = vcmp.gt.f32.partialorder %v1291_v47, 0.0 }
 0x283   : > { %v1300_v52 = vpop.f32.mrf.mxu0 }
 0x284   : > { %v1332_v53 = vmin.f32 %v1306_v50, 0.0  ;;  %v1301_v54 = vadd.f32 %v1300_v52, %v1138_v36  ;;  %v1349_v55 = vmul.f32 1.442695, %v1329_v49  ;;  %9879 = vpow2.f32 %v1351_v51 }
 0x285   : > { %vm1320_vm7 = vcmp.gt.f32.partialorder %v1306_v50, 0.0 }
 0x286   : > { %v1355_v56 = vmul.f32 1.442695, %v1332_v53  ;;  %v1331_v57 = vmin.f32 %v1301_v54, 0.0  ;;  %vm1319_vm8 = vcmp.gt.f32.partialorder %v1301_v54, 0.0 }
 0x288   : > { %9881 = vpow2.f32 %v1355_v56  ;;  %v1353_v58 = vmul.f32 1.442695, %v1331_v57 }
 0x289   : > { %9883 = vpow2.f32 %v1349_v55  ;;  %v7481_v55 = vld [vmem:[%s14357_s2 + $0x118] sm:$0xff] }
 0x28a   : > { %9885 = vpow2.f32 %v1353_v58 }
 0x291   : > { %v9880_v42 = vpop.eup %9879 }
 0x292   : > { %v7441_v49 = vadd.f32 -1.0, %v9880_v42  ;;  %v7386_v42 = vld [vmem:[%s14358_s3 + $0x148] sm:$0xff] }
 0x294   : > { %v10522_v53 = vsel %vm1318_vm9, %v1296_v43, %v7441_v49  ;;  %v7479_v43 = vld [vmem:[%s14357_s2 + $0x108] sm:$0xff]  ;;  %v7401_v49 = vld [vmem:[%s14358_s3 + $0x1c0] sm:$0xff] }
 0x295   : > { %v9882_v28 = vpop.eup %9881 }
 0x296   : > { %v9884_v44 = vpop.eup %9883  ;;  %v7443_v45 = vadd.f32 -1.0, %v9882_v28  ;;  %v1865_v28 = vld [vmem:[%s10188_s29 + $0x60] sm:$0xf] }
 0x297   : > { %v9886_v46 = vpop.eup %9885  ;;  %v7440_v52 = vadd.f32 -1.0, %v9884_v44  ;;  %v7389_v44 = vld [vmem:[%s14358_s3 + $0x160] sm:$0xff] }
 0x298   : > { %v10514_v36 = vsel %vm1320_vm7, %v1306_v50, %v7443_v45  ;;  %v7442_v48 = vadd.f32 -1.0, %v9886_v46  ;;  %v7392_v45 = vld [vmem:[%s14358_s3 + $0x178] sm:$0xff]  ;;  %v7395_v46 = vld [vmem:[%s14358_s3 + $0x190] sm:$0xff] }
 0x299   : > { %1451 = vrot.lane.b32.xlu0 %v10514_v36, %s10132_s11  ;;  %v10526_v50 = vsel %vm1317_vm10, %v1291_v47, %v7440_v52  ;;  %v7478_v47 = vld [vmem:[%s14357_s2 + $0x100] sm:$0xff]  ;;  %v7465_v52 = vld [vmem:[%s14356_s1 + $0xf8] sm:$0xff] }
 0x29a   : > { %v10518_v51 = vsel %vm1319_vm8, %v1301_v54, %v7442_v48  ;;  %v7480_v54 = vld [vmem:[%s14357_s2 + $0x110] sm:$0xff]  ;;  %v7398_v48 = vld [vmem:[%s14358_s3 + $0x1a8] sm:$0xff] }
 0x29b   : > { %1449 = vrot.lane.b32.xlu1 %v10518_v51, %s10132_s11 }
 0x29d   : > { %1447 = vrot.lane.b32.xlu0 %v10522_v53, %s10132_s11 }
 0x29f   : > { %1445 = vrot.lane.b32.xlu1 %v10526_v50, %s10132_s11 }
 0x2a1   : > { %1923 = vperm.xlu0 %9869, %v7481_v55   ;;  %v7466_v55 = vld [vmem:[%s14356_s1 + $0x100] sm:$0xff] }
 0x2a3   : > { %1918 = vperm.xlu1 %9870, %v7480_v54   ;;  %v7467_v54 = vld [vmem:[%s14356_s1 + $0x108] sm:$0xff] }
 0x2a5   : > { %1913 = vperm.xlu0 %9869, %v7479_v43   ;;  %v7468_v43 = vld [vmem:[%s14356_s1 + $0x110] sm:$0xff] }
 0x2a7   : > { %1908 = vperm.xlu1 %9870, %v7478_v47   ;;  %v7469_v47 = vld [vmem:[%s14356_s1 + $0x118] sm:$0xff] }
 0x30b   : > { %v1452_v56 = vpop.permute.xlu0 %1451 }
 0x30c   : > { %9340 = vmatprep.subr.mxu0 %v1452_v56 }
 0x30d   : > { %9341 = vmatpush3.msra.mxu0 %v1452_v56  ;;  %v1450_v57 = vpop.permute.xlu1 %1449 }
 0x30e   : > { %9342 = vmatprep.subr.mxu0 %v1450_v57 }
 0x30f   : > { %v1448_v58 = vpop.permute.xlu0 %1447  ;;  %9343 = vmatpush3.msra.mxu0 %v1450_v57 }
 0x310   : > { %9344 = vmatprep.subr.mxu0 %v1448_v58 }
 0x311   : > { %9345 = vmatpush3.msra.mxu0 %v1448_v58  ;;  %v1446_v41 = vpop.permute.xlu1 %1445 }
 0x312   : > { %9346 = vmatprep.subr.mxu0 %v1446_v41 }
 0x313   : > { %9347 = vmatpush3.msra.mxu0 %v1446_v41 }
 0x314   : > { %9349 = vmatmul.mubr.msk.f32.vlgmr.msra.gmra.mxu0 %vm682_vm2, %v7386_v42  ;;  %9366 = vmatprep.subr.msk.mxu0 %vm397_vm1, %v1865_v28 }
 0x315   : > { %9367 = vmatpush3.msk.msra.mxu0 %vm397_vm1, %v1865_v28  ;;  %9351 = vmatprep.mubr.msk.f32.mxu0 %vm682_vm2, %v7389_v44 }
 0x316   : > { %9368 = vmatprep.subr.mxu0 %v10195_v6 }
 0x317   : > { %9369 = vmatpush3.msra.mxu0 %v10195_v6  ;;  %v7404_v6 = vld [vmem:[%s14358_s3 + $0x1d8] sm:$0xff] }
 0x318   : > { %9352 = vmatmul.mubr.msk.f32.gmra.mxu0 %vm682_vm2, %v7392_v45  ;;  %9370 = vmatprep.subr.mxu0 %v10203_v8 }
 0x319   : > { %9371 = vmatpush3.msra.mxu0 %v10203_v8  ;;  %9354 = vmatprep.mubr.msk.f32.mxu0 %vm682_vm2, %v7395_v46  ;;  %v7407_v8 = vld [vmem:[%s14358_s3 + $0x1f0] sm:$0xff] }
 0x31a   : > { %9372 = vmatprep.subr.mxu0 %v10208_v9 }
 0x31b   : > { %9373 = vmatpush3.msra.mxu0 %v10208_v9  ;;  %v7410_v9 = vld [vmem:[%s14358_s3 + $0x208] sm:$0xff] }
 0x31c   : > { %9355 = vmatmul.mubr.msk.f32.gmra.mxu0 %vm682_vm2, %v7398_v48  ;;  %9374 = vmatprep.subr.mxu0 %v10213_v10 }
 0x31d   : > { %9375 = vmatpush3.msra.mxu0 %v10213_v10  ;;  %9357 = vmatprep.mubr.msk.f32.mxu0 %vm682_vm2, %v7401_v49  ;;  %v7413_v10 = vld [vmem:[%s14358_s3 + $0x220] sm:$0xff] }
 0x31e   : > { %9376 = vmatprep.subr.mxu0 %v10218_v11 }
 0x31f   : > { %9377 = vmatpush3.msra.mxu0 %v10218_v11  ;;  %v7416_v11 = vld [vmem:[%s14358_s3 + $0x238] sm:$0xff] }
 0x320   : > { %9358 = vmatmul.mubr.msk.f32.gmra.mxu0 %vm682_vm2, %v7404_v6  ;;  %9378 = vmatprep.subr.mxu0 %v10223_v12 }
 0x321   : > { %9379 = vmatpush3.msra.mxu0 %v10223_v12  ;;  %9360 = vmatprep.mubr.msk.f32.mxu0 %vm682_vm2, %v7407_v8  ;;  %v7458_v12 = vld [vmem:[%s14356_s1 + $0xc0] sm:$0xff] }
 0x322   : > { %9380 = vmatprep.subr.mxu0 %v10228_v13 }
 0x323   : > { %9381 = vmatpush3.msra.mxu0 %v10228_v13  ;;  %v7459_v13 = vld [vmem:[%s14356_s1 + $0xc8] sm:$0xff] }
 0x324   : > { %9361 = vmatmul.mubr.msk.f32.gmra.mxu0 %vm682_vm2, %v7410_v9  ;;  %9382 = vmatprep.subr.mxu0 %v10233_v14 }
 0x325   : > { %9383 = vmatpush3.msra.mxu0 %v10233_v14  ;;  %9363 = vmatprep.mubr.msk.f32.mxu0 %vm682_vm2, %v7413_v10  ;;  %v7460_v14 = vld [vmem:[%s14356_s1 + $0xd0] sm:$0xff] }
 0x326   : > { %9384 = vmatprep.subr.mxu0 %v10238_v15 }
 0x327   : > { %9385 = vmatpush3.msra.mxu0 %v10238_v15  ;;  %v7461_v15 = vld [vmem:[%s14356_s1 + $0xd8] sm:$0xff] }
 0x328   : > { %9364 = vmatmul.mubr.msk.f32.gmra.mxu0 %vm682_vm2, %v7416_v11  ;;  %9386 = vmatprep.subr.mxu0 %v10243_v16 }
 0x329   : > { %9387 = vmatpush3.msra.mxu0 %v10243_v16  ;;  %9392 = vmatprep.mubr.msk.f32.mxu0 %vm360_vm0, %v7458_v12  ;;  %v7462_v16 = vld [vmem:[%s14356_s1 + $0xe0] sm:$0xff] }
 0x32a   : > { %9388 = vmatprep.subr.mxu0 %v10248_v17 }
 0x32b   : > { %9389 = vmatpush3.msra.mxu0 %v10248_v17  ;;  %v7463_v17 = vld [vmem:[%s14356_s1 + $0xe8] sm:$0xff] }
 0x32c   : > { %9390 = vmatprep.subr.mxu0 %v10253_v18 }
 0x32d   : > { %9391 = vmatpush3.msra.mxu0 %v10253_v18  ;;  %v7464_v18 = vld [vmem:[%s14356_s1 + $0xf0] sm:$0xff] }
 0x32e   : > { %9393 = vmatmul.mubr.msk.f32.vlgmr.msra.gmra.mxu0 %vm360_vm0, %v7459_v13  ;;  %v1924_v13 = vpop.permute.xlu0 %1923 }
 0x32f   : > { %9395 = vmatprep.mubr.msk.f32.mxu0 %vm360_vm0, %v7460_v14 }
 0x332   : > { %9396 = vmatmul.mubr.msk.f32.gmra.mxu0 %vm360_vm0, %v7461_v15  ;;  %v1919_v15 = vpop.permute.xlu1 %1918 }
 0x333   : > { %9398 = vmatprep.mubr.msk.f32.mxu0 %vm360_vm0, %v7462_v16 }
 0x336   : > { %9399 = vmatmul.mubr.msk.f32.gmra.mxu0 %vm360_vm0, %v7463_v17 }
 0x337   : > { %9401 = vmatprep.mubr.msk.f32.mxu0 %vm360_vm0, %v7464_v18  ;;  %v1914_v18 = vpop.permute.xlu0 %1913 }
 0x33a   : > { %9402 = vmatmul.mubr.msk.f32.gmra.mxu0 %vm360_vm0, %v7465_v52 }
 0x33b   : > { %9404 = vmatprep.mubr.msk.f32.mxu0 %vm360_vm0, %v7466_v55 }
 0x33e   : > { %9405 = vmatmul.mubr.msk.f32.gmra.mxu0 %vm360_vm0, %v7467_v54  ;;  %v1909_v54 = vpop.permute.xlu1 %1908 }
 0x33f   : > { %9407 = vmatprep.mubr.msk.f32.mxu0 %vm360_vm0, %v7468_v43 }
 0x342   : > { %9408 = vmatmul.mubr.msk.f32.gmra.mxu0 %vm360_vm0, %v7469_v47 }
 0x3d4   : > { %v10661_v56 = vpop.f32.mrf.mxu0 }
 0x3d5   : > { %14373 = vst [vmem:[#allocation2_spill] sm:$0xff] %v10661_v56 }
 0x3d6   : > { %v10663_v57 = vpop.f32.mrf.mxu0 }
 0x3d7   : > { %14374 = vst [vmem:[#allocation3_spill] sm:$0xff] %v10663_v57 }
 0x3d8   : > { %v10665_v58 = vpop.f32.mrf.mxu0 }
 0x3d9   : > { %14375 = vst [vmem:[#allocation4_spill] sm:$0xff] %v10665_v58 }
 0x3da   : > { %v10667_v41 = vpop.f32.mrf.mxu0 }
 0x3db   : > { %14376 = vst [vmem:[#allocation5_spill] sm:$0xff] %v10667_v41 }
 0x3dc   : > { %v10669_v42 = vpop.f32.mrf.mxu0 }
 0x3dd   : > { %14377 = vst [vmem:[#allocation6_spill] sm:$0xff] %v10669_v42 }
 0x3de   : > { %v10671_v28 = vpop.f32.mrf.mxu0 }
 0x3df   : > { %14378 = vst [vmem:[#allocation7_spill] sm:$0xff] %v10671_v28 }
 0x3e0   : > { %v10673_v44 = vpop.f32.mrf.mxu0 }
 0x3e1   : > { %14379 = vst [vmem:[#allocation8_spill] sm:$0xff] %v10673_v44 }
 0x3e2   : > { %v10675_v45 = vpop.f32.mrf.mxu0 }
 0x3e3   : > { %14380 = vst [vmem:[#allocation9_spill] sm:$0xff] %v10675_v45 }
 0x3e4   : > { %v10677_v46 = vpop.f32.mrf.mxu0 }
 0x3e5   : > { %14381 = vst [vmem:[#allocation10_spill] sm:$0xff] %v10677_v46 }
 0x3e6   : > { %v10679_v48 = vpop.f32.mrf.mxu0 }
 0x3e7   : > { %14382 = vst [vmem:[#allocation11_spill] sm:$0xff] %v10679_v48 }
 0x3e8   : > { %v10681_v49 = vpop.f32.mrf.mxu0 }
 0x3e9   : > { %14383 = vst [vmem:[#allocation12_spill] sm:$0xff] %v10681_v49 }
 0x3ea   : > { %v10683_v6 = vpop.f32.mrf.mxu0 }
 0x3eb   : > { %14384 = vst [vmem:[#allocation13_spill] sm:$0xff] %v10683_v6 }
 0x3ee   : > { %v10685_v8 = vpop.f32.mrf.mxu0 }
 0x3f0   : > { %v10687_v9 = vpop.f32.mrf.mxu0 }
 0x3f2   : > { %v10689_v10 = vpop.f32.mrf.mxu0 }
 0x3f4   : > { %v10691_v11 = vpop.f32.mrf.mxu0 }
 0x3f6   : > { %v10693_v12 = vpop.f32.mrf.mxu0 }
 0x3f8   : > { %v10695_v14 = vpop.f32.mrf.mxu0 }
 0x3fa   : > { %v10697_v16 = vpop.f32.mrf.mxu0 }
 0x3fc   : > { %v10699_v17 = vpop.f32.mrf.mxu0 }
 0x3fe   : > { %v9406_v52 = vpop.f32.mrf.mxu0 }
 0x3ff   : > { %v2077_v55 = vadd.f32 %v9406_v52, %v1914_v18  ;;  %v7484_v18 = vld [vmem:[%s14358_s3 + $0x250] sm:$0xff] }
 0x400   : > { %v2071_v43 = vpop.f32.mrf.mxu0  ;;  %9418 = vmatprep.mubr.msk.f32.mxu0 %vm682_vm2, %v7484_v18  ;;  %v237_v18 = vld [vmem:[%s14357_s2] sm:$0xff] }
 0x401   : > { %v2111_v47 = vmin.f32 %v2077_v55, 0.0  ;;  %v2072_v49 = vadd.f32 %v2071_v43, %v1909_v54  ;;  %vm2099_vm13 = vcmp.gt.f32.partialorder %v2077_v55, 0.0 }
 0x402   : > { %v9409_v6 = vpop.f32.mrf.mxu0 }
 0x403   : > { %v2110_v46 = vmin.f32 %v2072_v49, 0.0  ;;  %v2087_v48 = vadd.f32 %v9409_v6, %v1924_v13  ;;  %v2132_v44 = vmul.f32 1.442695, %v2111_v47  ;;  %vm2098_vm14 = vcmp.gt.f32.partialorder %v2072_v49, 0.0  ;;  %v241_v47 = vld [vmem:[%s14357_s2 + $0x20] sm:$0xff] }
 0x404   : > { %v2081_v45 = vpop.f32.mrf.mxu0 }
 0x405   : > { %v2113_v42 = vmin.f32 %v2087_v48, 0.0  ;;  %v2082_v28 = vadd.f32 %v2081_v45, %v1919_v15  ;;  %v2130_v58 = vmul.f32 1.442695, %v2110_v46  ;;  %9887 = vpow2.f32 %v2132_v44  ;;  %v244_v46 = vld [vmem:[%s14357_s2 + $0x38] sm:$0xff]  ;;  %v242_v15 = vld [vmem:[%s14357_s2 + $0x28] sm:$0xff] }
 0x406   : > { %vm2101_vm11 = vcmp.gt.f32.partialorder %v2087_v48, 0.0 }
 0x407   : > { %v2136_v56 = vmul.f32 1.442695, %v2113_v42  ;;  %v2112_v41 = vmin.f32 %v2082_v28, 0.0  ;;  %vm2100_vm12 = vcmp.gt.f32.partialorder %v2082_v28, 0.0 }
 0x409   : > { %9889 = vpow2.f32 %v2136_v56  ;;  %v2134_v57 = vmul.f32 1.442695, %v2112_v41 }
 0x40a   : > { %9891 = vpow2.f32 %v2130_v58 }
 0x40b   : > { %9893 = vpow2.f32 %v2134_v57 }
 0x412   : > { %v9888_v52 = vpop.eup %9887 }
 0x413   : > { %v7542_v44 = vadd.f32 -1.0, %v9888_v52  ;;  %v7376_v52 = vld [vmem:[%s14357_s2 + $0x98] sm:$0xff] }
 0x415   : > { %v10713_v58 = vsel %vm2099_vm13, %v2077_v55, %v7542_v44  ;;  %v238_v55 = vld [vmem:[%s14357_s2 + $0x8] sm:$0xff]  ;;  %v7373_v44 = vld [vmem:[%s14357_s2 + $0x80] sm:$0xff] }
 0x416   : > { %v9890_v6 = vpop.eup %9889 }
 0x417   : > { %v9892_v13 = vpop.eup %9891  ;;  %v7544_v54 = vadd.f32 -1.0, %v9890_v6  ;;  %v7372_v6 = vld [vmem:[%s14357_s2 + $0x78] sm:$0xff] }
 0x418   : > { %v9894_v43 = vpop.eup %9893  ;;  %v7541_v57 = vadd.f32 -1.0, %v9892_v13  ;;  %v7375_v13 = vld [vmem:[%s14357_s2 + $0x90] sm:$0xff] }
 0x419   : > { %v10705_v45 = vsel %vm2101_vm11, %v2087_v48, %v7544_v54  ;;  %v7543_v42 = vadd.f32 -1.0, %v9894_v43  ;;  %v243_v48 = vld [vmem:[%s14357_s2 + $0x30] sm:$0xff]  ;;  %v7374_v43 = vld [vmem:[%s14357_s2 + $0x88] sm:$0xff] }
 0x41a   : > { %2232 = vrot.lane.b32.xlu0 %v10705_v45, %s10132_s11  ;;  %v10717_v41 = vsel %vm2098_vm14, %v2072_v49, %v7541_v57  ;;  %v239_v49 = vld [vmem:[%s14357_s2 + $0x10] sm:$0xff]  ;;  %v7369_v57 = vld [vmem:[%s14357_s2 + $0x60] sm:$0xff] }
 0x41b   : > { %v10709_v56 = vsel %vm2100_vm12, %v2082_v28, %v7543_v42  ;;  %v240_v28 = vld [vmem:[%s14357_s2 + $0x18] sm:$0xff]  ;;  %v7371_v54 = vld [vmem:[%s14357_s2 + $0x70] sm:$0xff]  ;;  %v7370_v42 = vld [vmem:[%s14357_s2 + $0x68] sm:$0xff] }
 0x41c   : > { %2230 = vrot.lane.b32.xlu1 %v10709_v56, %s10132_s11 }
 0x41e   : > { %2228 = vrot.lane.b32.xlu0 %v10713_v58, %s10132_s11 }
 0x420   : > { %2226 = vrot.lane.b32.xlu1 %v10717_v41, %s10132_s11 }
 0x422   : > { %337 = vperm.xlu0 %9869, %v244_v46  }
 0x424   : > { %317 = vperm.xlu1 %9870, %v240_v28  }
 0x426   : > { %332 = vperm.xlu0 %9869, %v243_v48  }
 0x428   : > { %312 = vperm.xlu1 %9870, %v239_v49  }
 0x42a   : > { %327 = vperm.xlu0 %9869, %v242_v15   ;;  %v7633_v15 = vld [vmem:[%s10188_s29 + $0xc8] sm:$0xf] }
 0x42c   : > { %307 = vperm.xlu1 %9870, %v238_v55   ;;  %v7487_v55 = vld [vmem:[%s14358_s3 + $0x268] sm:$0xff] }
 0x42e   : > { %322 = vperm.xlu0 %9869, %v241_v47   ;;  %v7490_v47 = vld [vmem:[%s14358_s3 + $0x280] sm:$0xff] }
 0x430   : > { %302 = vperm.xlu1 %9870, %v237_v18   ;;  %v7632_v18 = vld [vmem:[%s10188_s29 + $0xc0] sm:$0xff] }
 0x432   : > { %1122 = vperm.xlu0 %9869, %v7376_v52   ;;  %v7631_v52 = vld [vmem:[%s10188_s29 + $0xb8] sm:$0xff] }
 0x434   : > { %1102 = vperm.xlu1 %9870, %v7372_v6   ;;  %v7493_v6 = vld [vmem:[%s14358_s3 + $0x298] sm:$0xff] }
 0x436   : > { %1117 = vperm.xlu0 %9869, %v7375_v13   ;;  %v7496_v13 = vld [vmem:[%s14358_s3 + $0x2b0] sm:$0xff] }
 0x438   : > { %1097 = vperm.xlu1 %9870, %v7371_v54   ;;  %v7630_v54 = vld [vmem:[%s10188_s29 + $0xb0] sm:$0xff] }
 0x43a   : > { %1112 = vperm.xlu0 %9869, %v7374_v43   ;;  %v7629_v43 = vld [vmem:[%s10188_s29 + $0xa8] sm:$0xff] }
 0x43c   : > { %1092 = vperm.xlu1 %9870, %v7370_v42   ;;  %v7499_v42 = vld [vmem:[%s14358_s3 + $0x2c8] sm:$0xff] }
 0x43e   : > { %1107 = vperm.xlu0 %9869, %v7373_v44   ;;  %v7502_v44 = vld [vmem:[%s14358_s3 + $0x2e0] sm:$0xff] }
 0x440   : > { %1087 = vperm.xlu1 %9870, %v7369_v57   ;;  %v7628_v57 = vld [vmem:[%s10188_s29 + $0xa0] sm:$0xff] }
 0x48c   : > { %v2233_v46 = vpop.permute.xlu0 %2232 }
 0x48d   : > { %9410 = vmatprep.subr.mxu0 %v2233_v46 }
 0x48e   : > { %9411 = vmatpush3.msra.mxu0 %v2233_v46  ;;  %v2231_v28 = vpop.permute.xlu1 %2230 }
 0x48f   : > { %9412 = vmatprep.subr.mxu0 %v2231_v28 }
 0x490   : > { %v2229_v48 = vpop.permute.xlu0 %2228  ;;  %9413 = vmatpush3.msra.mxu0 %v2231_v28 }
 0x491   : > { %9414 = vmatprep.subr.mxu0 %v2229_v48 }
 0x492   : > { %9415 = vmatpush3.msra.mxu0 %v2229_v48  ;;  %v2227_v49 = vpop.permute.xlu1 %2226  ;;  %v7627_v48 = vld [vmem:[%s10188_s29 + $0x98] sm:$0xff] }
 0x493   : > { %9416 = vmatprep.subr.mxu0 %v2227_v49 }
 0x494   : > { %9417 = vmatpush3.msra.mxu0 %v2227_v49  ;;  %v7505_v49 = vld [vmem:[%s14358_s3 + $0x2f8] sm:$0xff] }
 0x495   : > { %9436 = vmatprep.subr.msk.mxu0 %vm397_vm1, %v7633_v15  ;;  %9419 = vmatmul.mubr.msk.f32.vlgmr.msra.gmra.mxu0 %vm682_vm2, %v7487_v55  ;;  %v7508_v55 = vld [vmem:[%s14358_s3 + $0x310] sm:$0xff] }
 0x496   : > { %9437 = vmatpush3.msk.msra.mxu0 %vm397_vm1, %v7633_v15  ;;  %9421 = vmatprep.mubr.msk.f32.mxu0 %vm682_vm2, %v7490_v47 }
 0x497   : > { %9438 = vmatprep.subr.mxu0 %v7632_v18 }
 0x498   : > { %9439 = vmatpush3.msra.mxu0 %v7632_v18  ;;  %v7626_v18 = vld [vmem:[%s10188_s29 + $0x90] sm:$0xff] }
 0x499   : > { %9440 = vmatprep.subr.mxu0 %v7631_v52  ;;  %9422 = vmatmul.mubr.msk.f32.gmra.mxu0 %vm682_vm2, %v7493_v6 }
 0x49a   : > { %9441 = vmatpush3.msra.mxu0 %v7631_v52  ;;  %9424 = vmatprep.mubr.msk.f32.mxu0 %vm682_vm2, %v7496_v13 }
 0x49b   : > { %9442 = vmatprep.subr.mxu0 %v7630_v54 }
 0x49c   : > { %9443 = vmatpush3.msra.mxu0 %v7630_v54 }
 0x49d   : > { %v338_v46 = vpop.permute.xlu0 %337  ;;  %9444 = vmatprep.subr.mxu0 %v7629_v43  ;;  %9425 = vmatmul.mubr.msk.f32.gmra.mxu0 %vm682_vm2, %v7499_v42 }
 0x49e   : > { %v10801_v28 = vadd.f32 %v10315_v37, %v338_v46  ;;  %9445 = vmatpush3.msra.mxu0 %v7629_v43  ;;  %9427 = vmatprep.mubr.msk.f32.mxu0 %vm682_vm2, %v7502_v44  ;;  %v7625_v43 = vld [vmem:[%s10188_s29 + $0x88] sm:$0xff]  ;;  %v7514_v44 = vld [vmem:[%s14358_s3 + $0x340] sm:$0xff] }
 0x49f   : > { %v318_v15 = vpop.permute.xlu1 %317  ;;  %9446 = vmatprep.subr.mxu0 %v7628_v57 }
 0x4a0   : > { %v545_v47 = vmin.f32 %v10801_v28, 0.0  ;;  %v10813_v37 = vadd.f32 %v10307_v32, %v318_v15  ;;  %9447 = vmatpush3.msra.mxu0 %v7628_v57  ;;  %v7511_v32 = vld [vmem:[%s14358_s3 + $0x328] sm:$0xff]  ;;  %vm533_vm15 = vcmp.gt.f32.partialorder %v10801_v28, 0.0 }
 0x4a1   : > { %v333_v52 = vpop.permute.xlu0 %332  ;;  %9448 = vmatprep.subr.mxu0 %v7627_v48  ;;  %9428 = vmatmul.mubr.msk.f32.gmra.mxu0 %vm682_vm2, %v7505_v49 }
 0x4a2   : > { %v564_v6 = vmul.f32 1.442695, %v545_v47  ;;  %v541_v13 = vmin.f32 %v10813_v37, 0.0  ;;  %v10819_v54 = vadd.f32 %v10317_v38, %v333_v52  ;;  %9449 = vmatpush3.msra.mxu0 %v7627_v48  ;;  %9430 = vmatprep.mubr.msk.f32.mxu0 %vm682_vm2, %v7508_v55  ;;  %v7624_v48 = vld [vmem:[%s10188_s29 + $0x80] sm:$0xff]  ;;  %v7623_v52 = vld [vmem:[%s10188_s29 + $0x78] sm:$0xff]  ;;  %vm529_vm3 = vcmp.gt.f32.partialorder %v10813_v37, 0.0 }
 0x4a3   : > { %v313_v42 = vpop.permute.xlu1 %312  ;;  %9450 = vmatprep.subr.mxu0 %v7626_v18 }
 0x4a4   : > { %9895 = vpow2.f32 %v564_v6  ;;  %v556_v57 = vmul.f32 1.442695, %v541_v13  ;;  %v544_v38 = vmin.f32 %v10819_v54, 0.0  ;;  %v10831_v46 = vadd.f32 %v10309_v33, %v313_v42  ;;  %9451 = vmatpush3.msra.mxu0 %v7626_v18  ;;  %v7517_v33 = vld [vmem:[%s14358_s3 + $0x358] sm:$0xff]  ;;  %v7559_v6 = vld [vmem:[%s14356_s1 + $0x120] sm:$0xff] }
 0x4a5   : > { %v328_v49 = vpop.permute.xlu0 %327  ;;  %9452 = vmatprep.subr.mxu0 %v7625_v43  ;;  %9431 = vmatmul.mubr.msk.f32.gmra.mxu0 %vm682_vm2, %v7511_v32  ;;  %v7622_v32 = vld [vmem:[%s10188_s29 + $0x70] sm:$0xff]  ;;  %vm532_vm4 = vcmp.gt.f32.partialorder %v10819_v54, 0.0 }
 0x4a6   : > { %9897 = vpow2.f32 %v556_v57  ;;  %v562_v15 = vmul.f32 1.442695, %v544_v38  ;;  %v540_v55 = vmin.f32 %v10831_v46, 0.0  ;;  %v10837_v47 = vadd.f32 %v10311_v34, %v328_v49  ;;  %9453 = vmatpush3.msra.mxu0 %v7625_v43  ;;  %9433 = vmatprep.mubr.msk.f32.mxu0 %vm682_vm2, %v7514_v44  ;;  %v7621_v49 = vld [vmem:[%s10188_s29 + $0x68] sm:$0xff] }
 0x4a7   : > { %v308_v18 = vpop.permute.xlu1 %307  ;;  %9454 = vmatprep.subr.mxu0 %v7624_v48  ;;  %vm528_vm5 = vcmp.gt.f32.partialorder %v10831_v46, 0.0 }
 0x4a8   : > { %9899 = vpow2.f32 %v562_v15  ;;  %v554_v13 = vmul.f32 1.442695, %v540_v55  ;;  %v543_v34 = vmin.f32 %v10837_v47, 0.0  ;;  %v10849_v43 = vadd.f32 %v10303_v30, %v308_v18  ;;  %9455 = vmatpush3.msra.mxu0 %v7624_v48 }
 0x4a9   : > { %v323_v42 = vpop.permute.xlu0 %322  ;;  %9456 = vmatprep.subr.mxu0 %v7623_v52  ;;  %9434 = vmatmul.mubr.msk.f32.gmra.mxu0 %vm682_vm2, %v7517_v33  ;;  %v7560_v33 = vld [vmem:[%s14356_s1 + $0x128] sm:$0xff]  ;;  %vm531_vm6 = vcmp.gt.f32.partialorder %v10837_v47, 0.0 }
 0x4aa   : > { %9901 = vpow2.f32 %v554_v13  ;;  %v560_v44 = vmul.f32 1.442695, %v543_v34  ;;  %v539_v57 = vmin.f32 %v10849_v43, 0.0  ;;  %v10855_v38 = vadd.f32 %v10313_v35, %v323_v42  ;;  %9457 = vmatpush3.msra.mxu0 %v7623_v52  ;;  %9462 = vmatprep.mubr.msk.f32.mxu0 %vm360_vm0, %v7559_v6  ;;  %v7561_v35 = vld [vmem:[%s14356_s1 + $0x130] sm:$0xff]  ;;  %v7562_v6 = vld [vmem:[%s14356_s1 + $0x138] sm:$0xff]  ;;  %v7563_v34 = vld [vmem:[%s14356_s1 + $0x140] sm:$0xff] }
 0x4ab   : > { %v303_v15 = vpop.permute.xlu1 %302  ;;  %9458 = vmatprep.subr.mxu0 %v7622_v32  ;;  %vm527_vm7 = vcmp.gt.f32.partialorder %v10849_v43, 0.0 }
 0x4ac   : > { %9903 = vpow2.f32 %v560_v44  ;;  %v552_v30 = vmul.f32 1.442695, %v539_v57  ;;  %v542_v48 = vmin.f32 %v10855_v38, 0.0  ;;  %v10861_v55 = vadd.f32 %v10305_v31, %v303_v15  ;;  %9459 = vmatpush3.msra.mxu0 %v7622_v32  ;;  %v7564_v44 = vld [vmem:[%s14356_s1 + $0x148] sm:$0xff] }
 0x4ad   : > { %9460 = vmatprep.subr.mxu0 %v7621_v49  ;;  %vm530_vm8 = vcmp.gt.f32.partialorder %v10855_v38, 0.0 }
 0x4ae   : > { %9905 = vpow2.f32 %v552_v30  ;;  %v558_v52 = vmul.f32 1.442695, %v542_v48  ;;  %v538_v18 = vmin.f32 %v10861_v55, 0.0  ;;  %9461 = vmatpush3.msra.mxu0 %v7621_v49  ;;  %v7565_v30 = vld [vmem:[%s14356_s1 + $0x150] sm:$0xff]  ;;  %vm526_vm9 = vcmp.gt.f32.partialorder %v10861_v55, 0.0 }
 0x4af   : > { %9463 = vmatmul.mubr.msk.f32.vlgmr.msra.gmra.mxu0 %vm360_vm0, %v7560_v33 }
 0x4b0   : > { %9907 = vpow2.f32 %v558_v52  ;;  %v550_v31 = vmul.f32 1.442695, %v538_v18  ;;  %9465 = vmatprep.mubr.msk.f32.mxu0 %vm360_vm0, %v7561_v35 }
 0x4b1   : > { %v9896_v13 = vpop.eup %9895 }
 0x4b2   : > { %9909 = vpow2.f32 %v550_v31  ;;  %v7338_v42 = vadd.f32 -1.0, %v9896_v13  ;;  %v7567_v31 = vld [vmem:[%s14356_s1 + $0x160] sm:$0xff] }
 0x4b3   : > { %v9898_v32 = vpop.eup %9897  ;;  %9466 = vmatmul.mubr.msk.f32.gmra.mxu0 %vm360_vm0, %v7562_v6 }
 0x4b4   : > { %9468 = vmatprep.mubr.msk.f32.mxu0 %vm360_vm0, %v7563_v34  ;;  %v10885_v49 = vsel %vm533_vm15, %v10801_v28, %v7338_v42  ;;  %v7334_v15 = vadd.f32 -1.0, %v9898_v32  ;;  %v7566_v28 = vld [vmem:[%s14356_s1 + $0x158] sm:$0xff] }
 0x4b5   : > { %v9900_v57 = vpop.eup %9899  ;;  %660 = vrot.lane.b32.xlu0 %v10885_v49, %s10132_s11 }
 0x4b6   : > { %v10894_v33 = vsel %vm529_vm3, %v10813_v37, %v7334_v15  ;;  %v7337_v35 = vadd.f32 -1.0, %v9900_v57 }
 0x4b7   : > { %v9902_v48 = vpop.eup %9901  ;;  %9469 = vmatmul.mubr.msk.f32.gmra.mxu0 %vm360_vm0, %v7564_v44  ;;  %616 = vrot.lane.b32.xlu1 %v10894_v33, %s10133_s26  ;;  %v7569_v44 = vld [vmem:[%s14356_s1 + $0x170] sm:$0xff] }
 0x4b8   : > { %9471 = vmatprep.mubr.msk.f32.mxu0 %vm360_vm0, %v7565_v30  ;;  %v10905_v18 = vsel %vm532_vm4, %v10819_v54, %v7337_v35  ;;  %v7333_v37 = vadd.f32 -1.0, %v9902_v48  ;;  %v7568_v54 = vld [vmem:[%s14356_s1 + $0x168] sm:$0xff]  ;;  %v7570_v35 = vld [vmem:[%s14356_s1 + $0x178] sm:$0xff] }
 0x4b9   : > { %v9904_v52 = vpop.eup %9903  ;;  %658 = vrot.lane.b32.xlu0 %v10905_v18, %s10132_s11 }
 0x4ba   : > { %v10914_v13 = vsel %vm528_vm5, %v10831_v46, %v7333_v37  ;;  %v7336_v34 = vadd.f32 -1.0, %v9904_v52  ;;  %v7477_v52 = vld [vmem:[%s14357_s2 + $0xf8] sm:$0xff] }
 0x4bb   : > { %v9906_v6 = vpop.eup %9905  ;;  %9472 = vmatmul.mubr.msk.f32.gmra.mxu0 %vm360_vm0, %v7566_v28  ;;  %614 = vrot.lane.b32.xlu1 %v10914_v13, %s10133_s26  ;;  %v1123_v28 = vpop.permute.xlu0 %1122 }
 0x4bc   : > { %9474 = vmatprep.mubr.msk.f32.mxu0 %vm360_vm0, %v7567_v31  ;;  %v10925_v42 = vsel %vm531_vm6, %v10837_v47, %v7336_v34  ;;  %v7332_v46 = vadd.f32 -1.0, %v9906_v6  ;;  %v10967_v6 = vadd.f32 %v10506_v39, %v1123_v28  ;;  %v7476_v34 = vld [vmem:[%s14357_s2 + $0xf0] sm:$0xff] }
 0x4bd   : > { %v9908_v32 = vpop.eup %9907  ;;  %656 = vrot.lane.b32.xlu0 %v10925_v42, %s10132_s11 }
 0x4be   : > { %v7335_v57 = vadd.f32 -1.0, %v9908_v32  ;;  %v10934_v30 = vsel %vm527_vm7, %v10849_v43, %v7332_v46  ;;  %v7472_v32 = vld [vmem:[%s14357_s2 + $0xd0] sm:$0xff]  ;;  %vm1316_vm10 = vcmp.gt.f32.partialorder %v10967_v6, 0.0 }
 0x4bf   : > { %v9910_v15 = vpop.eup %9909  ;;  %9475 = vmatmul.mubr.msk.f32.gmra.mxu0 %vm360_vm0, %v7568_v54  ;;  %612 = vrot.lane.b32.xlu1 %v10934_v30, %s10133_s26  ;;  %v1118_v37 = vpop.permute.xlu0 %1117 }
 0x4c0   : > { %v10941_v47 = vsel %vm530_vm8, %v10855_v38, %v7335_v57  ;;  %v7331_v48 = vadd.f32 -1.0, %v9910_v15  ;;  %9477 = vmatprep.mubr.msk.f32.mxu0 %vm360_vm0, %v7569_v44  ;;  %v1103_v38 = vpop.permute.xlu1 %1102  ;;  %v1328_v44 = vmin.f32 %v10967_v6, 0.0  ;;  %v10982_v39 = vadd.f32 %v10508_v40, %v1118_v37 }
 0x4c1   : > { %654 = vrot.lane.b32.xlu0 %v10941_v47, %s10132_s11  ;;  %v10975_v54 = vadd.f32 %v10498_v25, %v1103_v38  ;;  %v7475_v25 = vld [vmem:[%s14357_s2 + $0xe8] sm:$0xff] }
 0x4c2   : > { %v10951_v43 = vsel %vm526_vm9, %v10861_v55, %v7331_v48  ;;  %v7473_v55 = vld [vmem:[%s14357_s2 + $0xd8] sm:$0xff]  ;;  %v1327_v28 = vmin.f32 %v10982_v39, 0.0  ;;  %v7471_v38 = vld [vmem:[%s14357_s2 + $0xc8] sm:$0xff]  ;;  %vm1315_vm12 = vcmp.gt.f32.partialorder %v10982_v39, 0.0 }
 0x4c3   : > { %9478 = vmatmul.mubr.msk.f32.gmra.mxu0 %vm360_vm0, %v7570_v35  ;;  %610 = vrot.lane.b32.xlu1 %v10951_v43, %s10133_s26  ;;  %v1113_v46 = vpop.permute.xlu0 %1112  ;;  %v1324_v15 = vmin.f32 %v10975_v54, 0.0  ;;  %v1347_v35 = vmul.f32 1.442695, %v1328_v44  ;;  %vm1312_vm11 = vcmp.gt.f32.partialorder %v10975_v54, 0.0 }
 0x4c4   : > { %v1098_v31 = vpop.permute.xlu1 %1097  ;;  %v10995_v40 = vadd.f32 %v10502_v27, %v1113_v46  ;;  %v7474_v46 = vld [vmem:[%s14357_s2 + $0xe0] sm:$0xff] }
 0x4c5   : > { %652 = vrot.lane.b32.xlu0 %v10894_v33, %s10132_s11  ;;  %v10986_v48 = vadd.f32 %v10500_v26, %v1098_v31  ;;  %v1339_v26 = vmul.f32 1.442695, %v1324_v15  ;;  %9911 = vpow2.f32 %v1347_v35  ;;  %v7470_v15 = vld [vmem:[%s14357_s2 + $0xc0] sm:$0xff] }
 0x4c6   : > { %vm1314_vm14 = vcmp.gt.f32.partialorder %v10995_v40, 0.0 }
 0x4c7   : > { %650 = vrot.lane.b32.xlu1 %v10914_v13, %s10132_s11  ;;  %9913 = vpow2.f32 %v1339_v26  ;;  %vm1311_vm13 = vcmp.gt.f32.partialorder %v10986_v48, 0.0 }
 0x4c8   : > { %v1093_v57 = vpop.permute.xlu1 %1092 }
 0x4c9   : > { %1903 = vperm.xlu0 %9869, %v7477_v52   ;;  %v1108_v52 = vpop.permute.xlu0 %1107  ;;  %v11002_v37 = vadd.f32 %v10494_v23, %v1093_v57 }
 0x4ca   : > { %v11006_v27 = vadd.f32 %v10504_v29, %v1108_v52 }
 0x4cb   : > { %1883 = vperm.xlu1 %9870, %v7473_v55   ;;  %v1323_v55 = vmin.f32 %v10986_v48, 0.0  ;;  %v1322_v23 = vmin.f32 %v11002_v37, 0.0  ;;  %vm1310_vm15 = vcmp.gt.f32.partialorder %v11002_v37, 0.0 }
 0x4cc   : > { %v1088_v31 = vpop.permute.xlu1 %1087  ;;  %vm1313_vm3 = vcmp.gt.f32.partialorder %v11006_v27, 0.0 }
 0x4cd   : > { %648 = vrot.lane.b32.xlu0 %v10934_v30, %s10132_s11  ;;  %v1337_v44 = vmul.f32 1.442695, %v1323_v55  ;;  %v11015_v57 = vadd.f32 %v10496_v24, %v1088_v31  ;;  %v1335_v35 = vmul.f32 1.442695, %v1322_v23  ;;  %v250_v55 = vld [vmem:[%s14358_s3 + $0x8] sm:$0xff] }
 0x4ce   : > { %783 = vmatprep.mubr.f32.mxu1 %v250_v55 }
 0x4cf   : > { %1898 = vperm.xlu1 %9870, %v7476_v34   ;;  %v1345_v34 = vmul.f32 1.442695, %v1327_v28  ;;  %v1321_v28 = vmin.f32 %v11015_v57, 0.0  ;;  %vm1309_vm4 = vcmp.gt.f32.partialorder %v11015_v57, 0.0 }
 0x4d1   : > { %1878 = vperm.xlu0 %9869, %v7472_v32   ;;  %v1326_v32 = vmin.f32 %v10995_v40, 0.0  ;;  %9915 = vpow2.f32 %v1345_v34 }
 0x4d2   : > { %9917 = vpow2.f32 %v1337_v44  ;;  %v9912_v52 = vpop.eup %9911 }
 0x4d3   : > { %646 = vrot.lane.b32.xlu1 %v10951_v43, %s10132_s11  ;;  %v1343_v29 = vmul.f32 1.442695, %v1326_v32  ;;  %v7439_v31 = vadd.f32 -1.0, %v9912_v52 }
 0x4d4   : > { %v9914_v26 = vpop.eup %9913 }
 0x4d5   : > { %1893 = vperm.xlu0 %9869, %v7475_v25   ;;  %v1325_v25 = vmin.f32 %v11006_v27, 0.0  ;;  %9919 = vpow2.f32 %v1343_v29  ;;  %v7435_v32 = vadd.f32 -1.0, %v9914_v26  ;;  %v11041_v44 = vsel %vm1316_vm10, %v10967_v6, %v7439_v31 }
 0x4d6   : > { %9921 = vpow2.f32 %v1335_v35 }
 0x4d7   : > { %1873 = vperm.xlu1 %9870, %v7471_v38   ;;  %v1341_v24 = vmul.f32 1.442695, %v1325_v25  ;;  %v1333_v38 = vmul.f32 1.442695, %v1321_v28  ;;  %v11047_v29 = vsel %vm1312_vm11, %v10975_v54, %v7435_v32  ;;  %v7576_v32 = vld [vmem:[%s14357_s2 + $0x148] sm:$0xff] }
 0x4d9   : > { %632 = vrot.lane.b32.xlu0 %v10323_v0, %s10133_s26  ;;  %9923 = vpow2.f32 %v1341_v24 }
 0x4da   : > { %9925 = vpow2.f32 %v1333_v38 }
 0x4db   : > { %1888 = vperm.xlu1 %9870, %v7474_v46  }
 0x4dd   : > { %1868 = vperm.xlu0 %9869, %v7470_v15  }
 0x4de   : > { %v9916_v34 = vpop.eup %9915 }
 0x4df   : > { %630 = vrot.lane.b32.xlu1 %v10327_v3, %s10133_s26  ;;  %v9918_v46 = vpop.eup %9917  ;;  %v7438_v23 = vadd.f32 -1.0, %v9916_v34  ;;  %v7573_v34 = vld [vmem:[%s14357_s2 + $0x130] sm:$0xff] }
 0x4e0   : > { %v7434_v25 = vadd.f32 -1.0, %v9918_v46  ;;  %v7572_v46 = vld [vmem:[%s14357_s2 + $0x128] sm:$0xff] }
 0x4e1   : > { %628 = vrot.lane.b32.xlu0 %v10331_v5, %s10133_s26  ;;  %v11053_v6 = vsel %vm1315_vm12, %v10982_v39, %v7438_v23  ;;  %v7575_v23 = vld [vmem:[%s14357_s2 + $0x140] sm:$0xff] }
 0x4e2   : > { %v9920_v15 = vpop.eup %9919  ;;  %v11059_v54 = vsel %vm1311_vm13, %v10986_v48, %v7434_v25  ;;  %v7582_v25 = vld [vmem:[%s14357_s2 + $0x178] sm:$0xff] }
 0x4e3   : > { %626 = vrot.lane.b32.xlu1 %v10335_v7, %s10133_s26  ;;  %v9922_v35 = vpop.eup %9921  ;;  %v7437_v28 = vadd.f32 -1.0, %v9920_v15  ;;  %v7571_v15 = vld [vmem:[%s14357_s2 + $0x120] sm:$0xff] }
 0x4e4   : > { %v7433_v38 = vadd.f32 -1.0, %v9922_v35  ;;  %v7581_v35 = vld [vmem:[%s14357_s2 + $0x170] sm:$0xff] }
 0x4e5   : > { %624 = vrot.lane.b32.xlu0 %v10885_v49, %s10133_s26  ;;  %v11065_v39 = vsel %vm1314_vm14, %v10995_v40, %v7437_v28  ;;  %v7580_v28 = vld [vmem:[%s14357_s2 + $0x168] sm:$0xff] }
 0x4e6   : > { %v9924_v24 = vpop.eup %9923  ;;  %v11071_v55 = vsel %vm1310_vm15, %v11002_v37, %v7433_v38  ;;  %v7578_v37 = vld [vmem:[%s14357_s2 + $0x158] sm:$0xff]  ;;  %v7579_v38 = vld [vmem:[%s14357_s2 + $0x160] sm:$0xff] }
 0x4e7   : > { %622 = vrot.lane.b32.xlu1 %v10905_v18, %s10133_s26  ;;  %v9926_v52 = vpop.eup %9925  ;;  %v7436_v26 = vadd.f32 -1.0, %v9924_v24 }
 0x4e8   : > { %v7432_v48 = vadd.f32 -1.0, %v9926_v52 }
 0x4e9   : > { %620 = vrot.lane.b32.xlu0 %v10925_v42, %s10133_s26  ;;  %v11077_v31 = vsel %vm1313_vm3, %v11006_v27, %v7436_v26  ;;  %v7574_v27 = vld [vmem:[%s14357_s2 + $0x138] sm:$0xff] }
 0x4ea   : > { %v11083_v40 = vsel %vm1309_vm4, %v11015_v57, %v7432_v48  ;;  %v7577_v57 = vld [vmem:[%s14357_s2 + $0x150] sm:$0xff] }
 0x4eb   : > { %618 = vrot.lane.b32.xlu1 %v10941_v47, %s10133_s26 }
 0x4ed   : > { %1443 = vrot.lane.b32.xlu0 %v11041_v44, %s10132_s11 }
 0x4ef   : > { %1399 = vrot.lane.b32.xlu1 %v11047_v29, %s10133_s26 }
 0x4f1   : > { %1441 = vrot.lane.b32.xlu0 %v11053_v6, %s10132_s11 }
 0x4f3   : > { %1397 = vrot.lane.b32.xlu1 %v11059_v54, %s10133_s26 }
 0x4f5   : > { %1439 = vrot.lane.b32.xlu0 %v11065_v39, %s10132_s11 }
 0x4f7   : > { %1395 = vrot.lane.b32.xlu1 %v11071_v55, %s10133_s26 }
 0x4f9   : > { %1437 = vrot.lane.b32.xlu0 %v11077_v31, %s10132_s11 }
 0x4fb   : > { %1393 = vrot.lane.b32.xlu1 %v11083_v40, %s10133_s26 }
 0x4fd   : > { %1435 = vrot.lane.b32.xlu0 %v11047_v29, %s10132_s11 }
 0x4ff   : > { %1433 = vrot.lane.b32.xlu1 %v11059_v54, %s10132_s11 }
 0x501   : > { %2685 = vperm.xlu0 %9869, %v7578_v37  }
 0x503   : > { %2665 = vperm.xlu1 %9870, %v7574_v27  }
 0x505   : > { %1431 = vrot.lane.b32.xlu0 %v11071_v55, %s10132_s11 }
 0x507   : > { %2680 = vperm.xlu1 %9870, %v7577_v57  }
 0x509   : > { %2660 = vperm.xlu0 %9869, %v7573_v34  }
 0x50b   : > { %1429 = vrot.lane.b32.xlu1 %v11083_v40, %s10132_s11 }
 0x50d   : > { %2675 = vperm.xlu0 %9869, %v7576_v32  }
 0x50f   : > { %2655 = vperm.xlu1 %9870, %v7572_v46  }
 0x511   : > { %1415 = vrot.lane.b32.xlu0 %v10514_v36, %s10133_s26 }
 0x513   : > { %2670 = vperm.xlu1 %9870, %v7575_v23  }
 0x515   : > { %2650 = vperm.xlu0 %9869, %v7571_v15  }
 0x517   : > { %1413 = vrot.lane.b32.xlu1 %v10518_v51, %s10133_s26 }
 0x519   : > { %1411 = vrot.lane.b32.xlu0 %v10522_v53, %s10133_s26 }
 0x51b   : > { %1409 = vrot.lane.b32.xlu1 %v10526_v50, %s10133_s26 }
 0x51d   : > { %1407 = vrot.lane.b32.xlu0 %v11041_v44, %s10133_s26 }
 0x51f   : > { %1405 = vrot.lane.b32.xlu1 %v11053_v6, %s10133_s26 }
 0x521   : > { %2705 = vperm.xlu0 %9869, %v7582_v25  }
 0x523   : > { %1403 = vrot.lane.b32.xlu1 %v11065_v39, %s10133_s26 }
 0x525   : > { %2700 = vperm.xlu0 %9869, %v7581_v35  }
 0x527   : > { %v661_v24 = vpop.permute.xlu0 %660  ;;  %1401 = vrot.lane.b32.xlu1 %v11077_v31, %s10133_s26 }
 0x528   : > { %8270 = vmatprep.subr.mxu1 %v661_v24 }
 0x529   : > { %2695 = vperm.xlu0 %9869, %v7580_v28   ;;  %v617_v52 = vpop.permute.xlu1 %616 }
 0x52a   : > { %8271 = vmatpush3.msra.mxu1 %v617_v52 }
 0x52b   : > { %v659_v26 = vpop.permute.xlu0 %658  ;;  %2690 = vperm.xlu1 %9870, %v7579_v38  }
 0x52c   : > { %8272 = vmatprep.subr.mxu1 %v659_v26 }
 0x52d   : > { %v615_v48 = vpop.permute.xlu1 %614 }
 0x52e   : > { %8273 = vmatpush3.msra.mxu1 %v615_v48 }
 0x52f   : > { %v657_v37 = vpop.permute.xlu0 %656 }
 0x530   : > { %8274 = vmatprep.subr.mxu1 %v657_v37 }
 0x531   : > { %v613_v27 = vpop.permute.xlu1 %612 }
 0x532   : > { %8275 = vmatpush3.msra.mxu1 %v613_v27 }
 0x533   : > { %v655_v57 = vpop.permute.xlu0 %654 }
 0x534   : > { %8276 = vmatprep.subr.mxu1 %v655_v57 }
 0x535   : > { %v611_v34 = vpop.permute.xlu1 %610 }
 0x536   : > { %8277 = vmatpush3.msra.mxu1 %v611_v34 }
 0x537   : > { %v653_v32 = vpop.permute.xlu0 %652 }
 0x538   : > { %8278 = vmatprep.subr.mxu1 %v653_v32 }
 0x539   : > { %8279 = vmatpush3.msra.mxu1 %v10323_v0  ;;  %v651_v46 = vpop.permute.xlu1 %650 }
 0x53a   : > { %8280 = vmatprep.subr.mxu1 %v651_v46 }
 0x53b   : > { %8281 = vmatpush3.msra.mxu1 %v10327_v3 }
 0x544   : > { %v1904_v23 = vpop.permute.xlu0 %1903 }
 0x545   : > { %v2067_v15 = vadd.f32 %v10697_v16, %v1904_v23 }
 0x546   : > { %v1884_v25 = vpop.permute.xlu1 %1883 }
 0x547   : > { %v2109_v35 = vmin.f32 %v2067_v15, 0.0  ;;  %v11151_v28 = vadd.f32 %v10689_v10, %v1884_v25  ;;  %vm2097_vm5 = vcmp.gt.f32.partialorder %v2067_v15, 0.0 }
 0x548   : > { %v649_v24 = vpop.permute.xlu0 %648 }
 0x549   : > { %v2128_v38 = vmul.f32 1.442695, %v2109_v35  ;;  %v2105_v52 = vmin.f32 %v11151_v28, 0.0  ;;  %8282 = vmatprep.subr.mxu1 %v649_v24  ;;  %vm2093_vm6 = vcmp.gt.f32.partialorder %v11151_v28, 0.0 }
 0x54a   : > { %8283 = vmatpush3.msra.mxu1 %v10331_v5  ;;  %v1899_v0 = vpop.permute.xlu1 %1898 }
 0x54b   : > { %9927 = vpow2.f32 %v2128_v38  ;;  %v2120_v26 = vmul.f32 1.442695, %v2105_v52  ;;  %v11156_v3 = vadd.f32 %v10699_v17, %v1899_v0 }
 0x54c   : > { %v1879_v48 = vpop.permute.xlu0 %1878 }
 0x54d   : > { %9929 = vpow2.f32 %v2120_v26  ;;  %v2108_v16 = vmin.f32 %v11156_v3, 0.0  ;;  %v11160_v10 = vadd.f32 %v10691_v11, %v1879_v48  ;;  %vm2096_vm7 = vcmp.gt.f32.partialorder %v11156_v3, 0.0 }
 0x54e   : > { %v647_v37 = vpop.permute.xlu1 %646 }
 0x54f   : > { %v2126_v27 = vmul.f32 1.442695, %v2108_v16  ;;  %v2104_v57 = vmin.f32 %v11160_v10, 0.0  ;;  %8284 = vmatprep.subr.mxu1 %v647_v37  ;;  %vm2092_vm8 = vcmp.gt.f32.partialorder %v11160_v10, 0.0 }
 0x550   : > { %v1894_v34 = vpop.permute.xlu0 %1893  ;;  %8285 = vmatpush3.msra.mxu1 %v10335_v7 }
 0x551   : > { %9931 = vpow2.f32 %v2126_v27  ;;  %v2118_v5 = vmul.f32 1.442695, %v2104_v57  ;;  %v11165_v17 = vadd.f32 %v10693_v12, %v1894_v34 }
 0x552   : > { %v1874_v32 = vpop.permute.xlu1 %1873 }
 0x553   : > { %9933 = vpow2.f32 %v2118_v5  ;;  %v2107_v46 = vmin.f32 %v11165_v17, 0.0  ;;  %v11169_v11 = vadd.f32 %v10685_v8, %v1874_v32  ;;  %vm2095_vm9 = vcmp.gt.f32.partialorder %v11165_v17, 0.0 }
 0x554   : > { %v633_v23 = vpop.permute.xlu0 %632 }
 0x555   : > { %v11171_v25 = vpop.f32.mrf.mxu0  ;;  %v2124_v35 = vmul.f32 1.442695, %v2107_v46  ;;  %v2103_v24 = vmin.f32 %v11169_v11, 0.0  ;;  %8286 = vmatprep.subr.mxu1 %v633_v23  ;;  %vm2091_vm10 = vcmp.gt.f32.partialorder %v11169_v11, 0.0 }
 0x556   : > { %8287 = vmatpush3.msra.mxu1 %v10885_v49  ;;  %v1889_v7 = vpop.permute.xlu1 %1888 }
 0x557   : > { %v11175_v38 = vpop.f32.mrf.mxu0  ;;  %9935 = vpow2.f32 %v2124_v35  ;;  %v2116_v12 = vmul.f32 1.442695, %v2103_v24  ;;  %v11178_v52 = vadd.f32 %v10695_v14, %v1889_v7 }
 0x558   : > { %v9928_v0 = vpop.eup %9927  ;;  %v1869_v8 = vpop.permute.xlu0 %1868 }
 0x559   : > { %v11180_v26 = vpop.f32.mrf.mxu0  ;;  %9937 = vpow2.f32 %v2116_v12  ;;  %v2106_v48 = vmin.f32 %v11178_v52, 0.0  ;;  %v11184_v16 = vadd.f32 %v10687_v9, %v1869_v8  ;;  %v7540_v37 = vadd.f32 -1.0, %v9928_v0 }
 0x55a   : > { %v9930_v49 = vpop.eup %9929  ;;  %v631_v27 = vpop.permute.xlu1 %630  ;;  %vm2094_vm11 = vcmp.gt.f32.partialorder %v11178_v52, 0.0 }
 0x55b   : > { %v11186_v57 = vpop.f32.mrf.mxu0  ;;  %v2122_v34 = vmul.f32 1.442695, %v2106_v48  ;;  %v2102_v14 = vmin.f32 %v11184_v16, 0.0  ;;  %8288 = vmatprep.subr.mxu1 %v631_v27  ;;  %v11189_v5 = vsel %vm2097_vm5, %v2067_v15, %v7540_v37  ;;  %v7536_v32 = vadd.f32 -1.0, %v9930_v49 }
 0x55c   : > { %v629_v46 = vpop.permute.xlu0 %628  ;;  %2224 = vrot.lane.b32.xlu0 %v11189_v5, %s10132_s11  ;;  %8289 = vmatpush3.msra.mxu1 %v10905_v18  ;;  %vm2090_vm12 = vcmp.gt.f32.partialorder %v11184_v16, 0.0 }
 0x55d   : > { %v11195_v9 = vpop.f32.mrf.mxu0  ;;  %9939 = vpow2.f32 %v2122_v34  ;;  %v2114_v23 = vmul.f32 1.442695, %v2102_v14  ;;  %8290 = vmatprep.subr.mxu1 %v629_v46  ;;  %v11198_v35 = vsel %vm2093_vm6, %v11151_v28, %v7536_v32 }
 0x55e   : > { %v9932_v24 = vpop.eup %9931  ;;  %2180 = vrot.lane.b32.xlu1 %v11198_v35, %s10133_s26  ;;  %8291 = vmatpush3.msra.mxu1 %v10925_v42  ;;  %v627_v15 = vpop.permute.xlu1 %626 }
 0x55f   : > { %v11203_v7 = vpop.f32.mrf.mxu0  ;;  %9941 = vpow2.f32 %v2114_v23  ;;  %8292 = vmatprep.subr.mxu1 %v627_v15  ;;  %v7539_v18 = vadd.f32 -1.0, %v9932_v24  ;;  %v253_v23 = vld [vmem:[%s14358_s3 + $0x20] sm:$0xff] }
 0x560   : > { %v9934_v12 = vpop.eup %9933  ;;  %v625_v0 = vpop.permute.xlu0 %624  ;;  %8293 = vmatpush3.msra.mxu1 %v10941_v47 }
 0x561   : > { %v11207_v28 = vpop.f32.mrf.mxu0  ;;  %8294 = vmatprep.subr.mxu1 %v625_v0  ;;  %v11210_v8 = vsel %vm2096_vm7, %v11156_v3, %v7539_v18  ;;  %v7535_v48 = vadd.f32 -1.0, %v9934_v12  ;;  %v252_v12 = vld [vmem:[%s14358_s3 + $0x18] sm:$0xff] }
 0x562   : > { %2222 = vrot.lane.b32.xlu0 %v11210_v8, %s10132_s11  ;;  %8295 = vmatpush3.msra.mxu1 %v10894_v33  ;;  %v623_v42 = vpop.permute.xlu1 %622 }
 0x563   : > { %v11216_v37 = vpop.f32.mrf.mxu0  ;;  %8296 = vmatprep.subr.mxu1 %v623_v42  ;;  %v11219_v47 = vsel %vm2092_vm8, %v11160_v10, %v7535_v48  ;;  %v249_v10 = vld [vmem:[%s14358_s3] sm:$0xff]  ;;  %v256_v48 = vld [vmem:[%s14358_s3 + $0x38] sm:$0xff] }
 0x564   : > { %v9936_v49 = vpop.eup %9935  ;;  %v621_v27 = vpop.permute.xlu0 %620  ;;  %2178 = vrot.lane.b32.xlu1 %v11219_v47, %s10133_s26  ;;  %8297 = vmatpush3.msra.mxu1 %v10914_v13 }
 0x565   : > { %v11224_v3 = vpop.f32.mrf.mxu0  ;;  %8298 = vmatprep.subr.mxu1 %v621_v27  ;;  %v7538_v33 = vadd.f32 -1.0, %v9936_v49 }
 0x566   : > { %14385 = vst [vmem:[#allocation14_spill] sm:$0xff] %v11224_v3  ;;  %v9938_v34 = vpop.eup %9937  ;;  %8299 = vmatpush3.msra.mxu1 %v10934_v30  ;;  %v619_v14 = vpop.permute.xlu1 %618 }
 0x567   : > { %v11231_v32 = vpop.f32.mrf.mxu0  ;;  %8300 = vmatprep.subr.mxu1 %v619_v14  ;;  %v11234_v46 = vsel %vm2095_vm9, %v11165_v17, %v7538_v33  ;;  %v7534_v13 = vadd.f32 -1.0, %v9938_v34  ;;  %v255_v14 = vld [vmem:[%s14358_s3 + $0x30] sm:$0xff] }
 0x568   : > { %v1444_v24 = vpop.permute.xlu0 %1443  ;;  %2220 = vrot.lane.b32.xlu0 %v11234_v46, %s10132_s11  ;;  %8301 = vmatpush3.msra.mxu1 %v10951_v43 }
 0x569   : > { %v11243_v30 = vpop.f32.mrf.mxu0  ;;  %784 = vmatmul.mubr.f32.vlgmr.msra.gmra.mxu1 %v249_v10  ;;  %8379 = vmatprep.subr.mxu1 %v1444_v24  ;;  %v11246_v17 = vsel %vm2091_vm10, %v11169_v11, %v7534_v13 }
 0x56a   : > { %14386 = vst [vmem:[#allocation15_spill] sm:$0xff] %v11243_v30  ;;  %v9940_v15 = vpop.eup %9939  ;;  %2176 = vrot.lane.b32.xlu1 %v11246_v17, %s10133_s26  ;;  %v1400_v18 = vpop.permute.xlu1 %1399  ;;  %788 = vmatprep.mubr.f32.mxu1 %v253_v23  ;;  %v276_v30 = vld [vmem:[%s14358_s3 + $0xd8] sm:$0xff] }
 0x56b   : > { %v11253_v43 = vpop.f32.mrf.mxu0  ;;  %8380 = vmatpush3.msra.mxu1 %v1400_v18  ;;  %v7537_v0 = vadd.f32 -1.0, %v9940_v15  ;;  %v262_v18 = vld [vmem:[%s14358_s3 + $0x68] sm:$0xff] }
 0x56c   : > { %14387 = vst [vmem:[#allocation16_spill] sm:$0xff] %v11253_v43  ;;  %v9942_v11 = vpop.eup %9941  ;;  %v1442_v42 = vpop.permute.xlu0 %1441 }
 0x56d   : > { %789 = vmatmul.mubr.f32.gmra.mxu1 %v252_v12  ;;  %8381 = vmatprep.subr.mxu1 %v1442_v42  ;;  %v11260_v49 = vsel %vm2094_vm11, %v11178_v52, %v7537_v0  ;;  %v7533_v27 = vadd.f32 -1.0, %v9942_v11  ;;  %v259_v52 = vld [vmem:[%s14358_s3 + $0x50] sm:$0xff]  ;;  %v261_v11 = vld [vmem:[%s14358_s3 + $0x60] sm:$0xff] }
 0x56e   : > { %2218 = vrot.lane.b32.xlu0 %v11260_v49, %s10132_s11  ;;  %v1398_v33 = vpop.permute.xlu1 %1397  ;;  %793 = vmatprep.mubr.f32.mxu1 %v256_v48 }
 0x56f   : > { %v11264_v34 = vpop.f32.mrf.mxu0  ;;  %8382 = vmatpush3.msra.mxu1 %v1398_v33  ;;  %v11271_v10 = vsel %vm2090_vm12, %v11184_v16, %v7533_v27  ;;  %v258_v16 = vld [vmem:[%s14358_s3 + $0x48] sm:$0xff]  ;;  %v265_v33 = vld [vmem:[%s14358_s3 + $0x80] sm:$0xff] }
 0x570   : > { %v1440_v13 = vpop.permute.xlu0 %1439  ;;  %2174 = vrot.lane.b32.xlu1 %v11271_v10, %s10133_s26 }
 0x571   : > { %v11278_v23 = vpop.f32.mrf.mxu0  ;;  %794 = vmatmul.mubr.f32.gmra.mxu1 %v255_v14  ;;  %8383 = vmatprep.subr.mxu1 %v1440_v13 }
 0x572   : > { %2216 = vrot.lane.b32.xlu0 %v11198_v35, %s10132_s11  ;;  %v1396_v24 = vpop.permute.xlu1 %1395  ;;  %798 = vmatprep.mubr.f32.mxu1 %v259_v52  ;;  %v264_v52 = vld [vmem:[%s14358_s3 + $0x78] sm:$0xff] }
 0x573   : > { %v9467_v15 = vpop.f32.mrf.mxu0  ;;  %8384 = vmatpush3.msra.mxu1 %v1396_v24  ;;  %v268_v24 = vld [vmem:[%s14358_s3 + $0x98] sm:$0xff] }
 0x574   : > { %v1438_v12 = vpop.permute.xlu0 %1437  ;;  %2214 = vrot.lane.b32.xlu1 %v11219_v47, %s10132_s11 }
 0x575   : > { %v2823_v0 = vpop.f32.mrf.mxu0  ;;  %799 = vmatmul.mubr.f32.gmra.mxu1 %v258_v16  ;;  %8385 = vmatprep.subr.mxu1 %v1438_v12 }
 0x576   : > { %2212 = vrot.lane.b32.xlu0 %v11246_v17, %s10132_s11  ;;  %v1394_v48 = vpop.permute.xlu1 %1393  ;;  %803 = vmatprep.mubr.f32.mxu1 %v262_v18  ;;  %v267_v18 = vld [vmem:[%s14358_s3 + $0x90] sm:$0xff] }
 0x577   : > { %8386 = vmatpush3.msra.mxu1 %v1394_v48  ;;  %v9470_v42 = vpop.f32.mrf.mxu0 }
 0x578   : > { %v1436_v27 = vpop.permute.xlu0 %1435  ;;  %2210 = vrot.lane.b32.xlu1 %v11271_v10, %s10132_s11 }
 0x579   : > { %804 = vmatmul.mubr.f32.gmra.mxu1 %v261_v11  ;;  %8387 = vmatprep.subr.mxu1 %v1436_v27  ;;  %v11306_v13 = vpop.f32.mrf.mxu0  ;;  %v271_v11 = vld [vmem:[%s14358_s3 + $0xb0] sm:$0xff] }
 0x57a   : > { %2196 = vrot.lane.b32.xlu0 %v10705_v45, %s10133_s26  ;;  %8388 = vmatpush3.msra.mxu1 %v10514_v36  ;;  %v1434_v14 = vpop.permute.xlu1 %1433 }
 0x57b   : > { %8389 = vmatprep.subr.mxu1 %v1434_v14  ;;  %808 = vmatprep.mubr.f32.mxu1 %v265_v33  ;;  %v9473_v12 = vpop.f32.mrf.mxu0  ;;  %v270_v33 = vld [vmem:[%s14358_s3 + $0xa8] sm:$0xff] }
 0x57c   : > { %v2686_v16 = vpop.permute.xlu0 %2685  ;;  %2194 = vrot.lane.b32.xlu1 %v10709_v56, %s10133_s26  ;;  %8390 = vmatpush3.msra.mxu1 %v10518_v51 }
 0x57d   : > { %809 = vmatmul.mubr.f32.gmra.mxu1 %v264_v52  ;;  %v11324_v51 = vadd.f32 %v9473_v12, %v2686_v16  ;;  %v2843_v14 = vpop.f32.mrf.mxu0  ;;  %v274_v52 = vld [vmem:[%s14358_s3 + $0xc8] sm:$0xff] }
 0x57e   : > { %2192 = vrot.lane.b32.xlu0 %v10713_v58, %s10133_s26  ;;  %v2666_v36 = vpop.permute.xlu1 %2665  ;;  %813 = vmatprep.mubr.f32.mxu1 %v268_v24 }
 0x57f   : > { %v11335_v24 = vadd.f32 %v9467_v15, %v2666_v36  ;;  %v277_v15 = vld [vmem:[%s14358_s3 + $0xe0] sm:$0xff]  ;;  %vm2879_vm15 = vcmp.gt.f32.partialorder %v11324_v51, 0.0 }
 0x580   : > { %v1432_v48 = vpop.permute.xlu0 %1431  ;;  %2190 = vrot.lane.b32.xlu1 %v10717_v41, %s10133_s26 }
 0x581   : > { %814 = vmatmul.mubr.f32.gmra.mxu1 %v267_v18  ;;  %8391 = vmatprep.subr.mxu1 %v1432_v48  ;;  %v273_v48 = vld [vmem:[%s14358_s3 + $0xc0] sm:$0xff]  ;;  %v2887_v36 = vmin.f32 %v11335_v24, 0.0  ;;  %vm2875_vm3 = vcmp.gt.f32.partialorder %v11335_v24, 0.0 }
 0x582   : > { %2188 = vrot.lane.b32.xlu0 %v11189_v5, %s10133_s26  ;;  %8392 = vmatpush3.msra.mxu1 %v10522_v53  ;;  %v2681_v27 = vpop.permute.xlu1 %2680  ;;  %v2891_v53 = vmin.f32 %v11324_v51, 0.0 }
 0x583   : > { %818 = vmatprep.mubr.f32.mxu1 %v271_v11  ;;  %v11340_v18 = vadd.f32 %v2843_v14, %v2681_v27 }
 0x584   : > { %v2661_v16 = vpop.permute.xlu0 %2660  ;;  %2186 = vrot.lane.b32.xlu1 %v11210_v8, %s10133_s26  ;;  %v2910_v14 = vmul.f32 1.442695, %v2891_v53 }
 0x585   : > { %819 = vmatmul.mubr.f32.gmra.mxu1 %v270_v33  ;;  %v11354_v27 = vadd.f32 %v2823_v0, %v2661_v16  ;;  %v2902_v0 = vmul.f32 1.442695, %v2887_v36  ;;  %vm2878_vm4 = vcmp.gt.f32.partialorder %v11340_v18, 0.0 }
 0x586   : > { %2184 = vrot.lane.b32.xlu0 %v11234_v46, %s10133_s26  ;;  %v1430_v12 = vpop.permute.xlu1 %1429  ;;  %823 = vmatprep.mubr.f32.mxu1 %v274_v52  ;;  %v2890_v52 = vmin.f32 %v11340_v18, 0.0  ;;  %9943 = vpow2.f32 %v2910_v14 }
 0x587   : > { %8393 = vmatprep.subr.mxu1 %v1430_v12  ;;  %v2886_v16 = vmin.f32 %v11354_v27, 0.0  ;;  %vm2874_vm5 = vcmp.gt.f32.partialorder %v11354_v27, 0.0 }
 0x588   : > { %v2676_v11 = vpop.permute.xlu0 %2675  ;;  %2182 = vrot.lane.b32.xlu1 %v11260_v49, %s10133_s26  ;;  %8394 = vmatpush3.msra.mxu1 %v10526_v50  ;;  %v280_v50 = vld [vmem:[%s14358_s3 + $0xf8] sm:$0xff] }
 0x589   : > { %v11356_v33 = vadd.f32 %v9470_v42, %v2676_v11  ;;  %824 = vmatmul.mubr.f32.gmra.mxu1 %v273_v48  ;;  %v2900_v14 = vmul.f32 1.442695, %v2886_v16  ;;  %v7382_v16 = vld [vmem:[%s14358_s3 + $0x128] sm:$0xff] }
 0x58a   : > { %v2656_v12 = vpop.permute.xlu1 %2655  ;;  %828 = vmatprep.mubr.f32.mxu1 %v277_v15  ;;  %v2908_v15 = vmul.f32 1.442695, %v2890_v52 }
 0x58b   : > { %v2889_v43 = vmin.f32 %v11356_v33, 0.0  ;;  %v11364_v3 = vadd.f32 %v11264_v34, %v2656_v12  ;;  %v279_v34 = vld [vmem:[%s14358_s3 + $0xf0] sm:$0xff]  ;;  %vm2877_vm13 = vcmp.gt.f32.partialorder %v11356_v33, 0.0 }
 0x58c   : > { %v1416_v42 = vpop.permute.xlu0 %1415 }
 0x58d   : > { %v2906_v53 = vmul.f32 1.442695, %v2889_v43  ;;  %v2885_v48 = vmin.f32 %v11364_v3, 0.0  ;;  %829 = vmatmul.mubr.f32.gmra.mxu1 %v276_v30  ;;  %8395 = vmatprep.subr.mxu1 %v1416_v42  ;;  %v283_v30 = vld [vmem:[%s14358_s3 + $0x110] sm:$0xff]  ;;  %v11388_v42 = vpop.f32.mrf.mxu0  ;;  %vm2873_vm14 = vcmp.gt.f32.partialorder %v11364_v3, 0.0 }
 0x58e   : > { %8396 = vmatpush3.msra.mxu1 %v11041_v44  ;;  %v2671_v11 = vpop.permute.xlu1 %2670  ;;  %833 = vmatprep.mubr.f32.mxu1 %v280_v50 }
 0x58f   : > { %9945 = vpow2.f32 %v2906_v53  ;;  %v2898_v36 = vmul.f32 1.442695, %v2885_v48  ;;  %v11376_v12 = vadd.f32 %v11306_v13, %v2671_v11  ;;  %v282_v13 = vld [vmem:[%s14358_s3 + $0x108] sm:$0xff]  ;;  %v11396_v11 = vpop.f32.mrf.mxu0 }
 0x590   : > { %9947 = vpow2.f32 %v2902_v0  ;;  %v2651_v43 = vpop.permute.xlu0 %2650 }
 0x591   : > { %9949 = vpow2.f32 %v2898_v36  ;;  %v2888_v44 = vmin.f32 %v11376_v12, 0.0  ;;  %v11383_v52 = vadd.f32 %v11278_v23, %v2651_v43  ;;  %834 = vmatmul.mubr.f32.gmra.mxu1 %v279_v34  ;;  %v9479_v36 = vpop.f32.mrf.mxu0  ;;  %vm2876_vm6 = vcmp.gt.f32.partialorder %v11376_v12, 0.0 }
 0x592   : > { %9951 = vpow2.f32 %v2908_v15  ;;  %v1414_v50 = vpop.permute.xlu1 %1413  ;;  %838 = vmatprep.mubr.f32.mxu1 %v283_v30 }
 0x593   : > { %v2904_v53 = vmul.f32 1.442695, %v2888_v44  ;;  %v2884_v0 = vmin.f32 %v11383_v52, 0.0  ;;  %8397 = vmatprep.subr.mxu1 %v1414_v50  ;;  %9953 = vpow2.f32 %v2900_v14  ;;  %v9944_v30 = vpop.eup %9943  ;;  %vm2872_vm7 = vcmp.gt.f32.partialorder %v11383_v52, 0.0 }
 0x594   : > { %v1412_v23 = vpop.permute.xlu0 %1411  ;;  %8398 = vmatpush3.msra.mxu1 %v11053_v6 }
 0x595   : > { %v2896_v48 = vmul.f32 1.442695, %v2884_v0  ;;  %839 = vmatmul.mubr.f32.gmra.mxu1 %v282_v13  ;;  %8399 = vmatprep.subr.mxu1 %v1412_v23  ;;  %9955 = vpow2.f32 %v2904_v53  ;;  %v2863_v0 = vpop.f32.mrf.mxu0 }
 0x596   : > { %8400 = vmatpush3.msra.mxu1 %v11065_v39  ;;  %v1410_v15 = vpop.permute.xlu1 %1409  ;;  %1565 = vmatprep.mubr.f32.mxu1 %v7382_v16 }
 0x597   : > { %8401 = vmatprep.subr.mxu1 %v1410_v15  ;;  %9957 = vpow2.f32 %v2896_v48  ;;  %v7654_v48 = vadd.f32 -1.0, %v9944_v30 }
 0x598   : > { %v1408_v34 = vpop.permute.xlu0 %1407  ;;  %8402 = vmatpush3.msra.mxu1 %v11077_v31 }
 0x599   : > { %8403 = vmatprep.subr.mxu1 %v1408_v34 }
 0x59a   : > { %8404 = vmatpush3.msra.mxu1 %v11047_v29  ;;  %v1406_v6 = vpop.permute.xlu1 %1405 }
 0x59b   : > { %8405 = vmatprep.subr.mxu1 %v1406_v6 }
 0x59c   : > { %v9946_v43 = vpop.eup %9945  ;;  %v2706_v14 = vpop.permute.xlu0 %2705  ;;  %8406 = vmatpush3.msra.mxu1 %v11059_v54 }
 0x59d   : > { %v9948_v39 = vpop.eup %9947  ;;  %v11401_v44 = vadd.f32 %v9479_v36, %v2706_v14  ;;  %v7652_v50 = vadd.f32 -1.0, %v9946_v43 }
 0x59e   : > { %v9950_v13 = vpop.eup %9949  ;;  %v1404_v53 = vpop.permute.xlu1 %1403  ;;  %v7650_v36 = vadd.f32 -1.0, %v9948_v39  ;;  %v7385_v39 = vld [vmem:[%s14358_s3 + $0x140] sm:$0xff] }
 0x59f   : > { %v9952_v31 = vpop.eup %9951  ;;  %v2895_v29 = vmin.f32 %v11401_v44, 0.0  ;;  %8407 = vmatprep.subr.mxu1 %v1404_v53  ;;  %v11406_v16 = vsel %vm2877_vm13, %v11356_v33, %v7652_v50  ;;  %v7648_v23 = vadd.f32 -1.0, %v9950_v13  ;;  %vm2883_vm8 = vcmp.gt.f32.partialorder %v11401_v44, 0.0 }
 0x5a0   : > { %v2701_v15 = vpop.permute.xlu0 %2700  ;;  %3002 = vrot.lane.b32.xlu0 %v11406_v16, %s10132_s11  ;;  %8408 = vmatpush3.msra.mxu1 %v11071_v55  ;;  %v9954_v43 = vpop.eup %9953  ;;  %v7381_v55 = vld [vmem:[%s14358_s3 + $0x120] sm:$0xff]  ;;  %v7653_v30 = vadd.f32 -1.0, %v9952_v31 }
 0x5a1   : > { %v2918_v54 = vmul.f32 1.442695, %v2895_v29  ;;  %v11412_v34 = vadd.f32 %v2863_v0, %v2701_v15  ;;  %v11415_v6 = vsel %vm2873_vm14, %v11364_v3, %v7648_v23  ;;  %v11425_v3 = vsel %vm2879_vm15, %v11324_v51, %v7654_v48  ;;  %v7384_v48 = vld [vmem:[%s14358_s3 + $0x138] sm:$0xff] }
 0x5a2   : > { %2958 = vrot.lane.b32.xlu1 %v11415_v6, %s10133_s26  ;;  %v1402_v33 = vpop.permute.xlu1 %1401  ;;  %v9956_v50 = vpop.eup %9955  ;;  %v11439_v51 = vsel %vm2875_vm3, %v11335_v24, %v7650_v36  ;;  %v7649_v31 = vadd.f32 -1.0, %v9954_v43 }
 0x5a3   : > { %9959 = vpow2.f32 %v2918_v54  ;;  %v2894_v14 = vmin.f32 %v11412_v34, 0.0  ;;  %8409 = vmatprep.subr.mxu1 %v1402_v33  ;;  %v7651_v15 = vadd.f32 -1.0, %v9956_v50  ;;  %v7388_v54 = vld [vmem:[%s14358_s3 + $0x158] sm:$0xff]  ;;  %vm2882_vm9 = vcmp.gt.f32.partialorder %v11412_v34, 0.0 }
 0x5a4   : > { %v2696_v13 = vpop.permute.xlu0 %2695  ;;  %3006 = vrot.lane.b32.xlu0 %v11425_v3, %s10132_s11  ;;  %8410 = vmatpush3.msra.mxu1 %v11083_v40  ;;  %v9958_v29 = vpop.eup %9957  ;;  %v11444_v40 = vsel %vm2878_vm4, %v11340_v18, %v7653_v30  ;;  %v11461_v43 = vsel %vm2874_vm5, %v11354_v27, %v7649_v31  ;;  %v7391_v27 = vld [vmem:[%s14358_s3 + $0x170] sm:$0xff] }
 0x5a5   : > { %v2916_v53 = vmul.f32 1.442695, %v2894_v14  ;;  %v11436_v0 = vadd.f32 %v11388_v42, %v2696_v13  ;;  %1566 = vmatmul.mubr.f32.vlgmr.msra.gmra.mxu1 %v7381_v55  ;;  %v7647_v33 = vadd.f32 -1.0, %v9958_v29  ;;  %v11470_v30 = vsel %vm2876_vm6, %v11376_v12, %v7651_v15  ;;  %v7390_v12 = vld [vmem:[%s14358_s3 + $0x168] sm:$0xff] }
 0x5a6   : > { %2962 = vrot.lane.b32.xlu1 %v11439_v51, %s10133_s26  ;;  %v2691_v23 = vpop.permute.xlu1 %2690  ;;  %1570 = vmatprep.mubr.f32.mxu1 %v7385_v39  ;;  %v7394_v39 = vld [vmem:[%s14358_s3 + $0x188] sm:$0xff] }
 0x5a7   : > { %9961 = vpow2.f32 %v2916_v53  ;;  %v2893_v42 = vmin.f32 %v11436_v0, 0.0  ;;  %v11451_v24 = vadd.f32 %v11396_v11, %v2691_v23  ;;  %v7387_v11 = vld [vmem:[%s14358_s3 + $0x150] sm:$0xff]  ;;  %v11479_v14 = vsel %vm2872_vm7, %v11383_v52, %v7647_v33  ;;  %v7393_v52 = vld [vmem:[%s14358_s3 + $0x180] sm:$0xff]  ;;  %v7396_v23 = vld [vmem:[%s14358_s3 + $0x198] sm:$0xff] }
 0x5a8   : > { %3004 = vrot.lane.b32.xlu0 %v11444_v40, %s10132_s11  ;;  %v7397_v53 = vld [vmem:[%s14358_s3 + $0x1a0] sm:$0xff]  ;;  %vm2881_vm10 = vcmp.gt.f32.partialorder %v11436_v0, 0.0 }
 0x5a9   : > { %v2914_v18 = vmul.f32 1.442695, %v2893_v42  ;;  %v2892_v36 = vmin.f32 %v11451_v24, 0.0  ;;  %1571 = vmatmul.mubr.f32.gmra.mxu1 %v7384_v48  ;;  %v7400_v42 = vld [vmem:[%s14358_s3 + $0x1b8] sm:$0xff]  ;;  %vm2880_vm11 = vcmp.gt.f32.partialorder %v11451_v24, 0.0 }
 0x5aa   : > { %2960 = vrot.lane.b32.xlu1 %v11461_v43, %s10133_s26  ;;  %1575 = vmatprep.mubr.f32.mxu1 %v7388_v54 }
 0x5ab   : > { %9963 = vpow2.f32 %v2914_v18  ;;  %v2912_v55 = vmul.f32 1.442695, %v2892_v36 }
 0x5ac   : > { %3000 = vrot.lane.b32.xlu0 %v11470_v30, %s10132_s11 }
 0x5ad   : > { %9965 = vpow2.f32 %v2912_v55  ;;  %1576 = vmatmul.mubr.f32.gmra.mxu1 %v7387_v11 }
 0x5ae   : > { %2956 = vrot.lane.b32.xlu1 %v11479_v14, %s10133_s26  ;;  %1580 = vmatprep.mubr.f32.mxu1 %v7391_v27  ;;  %v7406_v27 = vld [vmem:[%s14358_s3 + $0x1e8] sm:$0xff] }
 0x5b0   : > { %v9960_v50 = vpop.eup %9959  ;;  %2998 = vrot.lane.b32.xlu0 %v11439_v51, %s10132_s11 }
 0x5b1   : > { %1581 = vmatmul.mubr.f32.gmra.mxu1 %v7390_v12  ;;  %v7658_v13 = vadd.f32 -1.0, %v9960_v50  ;;  %v7409_v12 = vld [vmem:[%s14358_s3 + $0x200] sm:$0xff]  ;;  %v7408_v50 = vld [vmem:[%s14358_s3 + $0x1f8] sm:$0xff] }
 0x5b2   : > { %2996 = vrot.lane.b32.xlu1 %v11461_v43, %s10132_s11  ;;  %1585 = vmatprep.mubr.f32.mxu1 %v7394_v39  ;;  %v7696_v39 = vld [vmem:[%s14357_s2 + $0x1d8] sm:$0xff] }
 0x5b3   : > { %v11508_v48 = vsel %vm2883_vm8, %v11401_v44, %v7658_v13  ;;  %v7399_v44 = vld [vmem:[%s14358_s3 + $0x1b0] sm:$0xff]  ;;  %v7412_v13 = vld [vmem:[%s14358_s3 + $0x218] sm:$0xff] }
 0x5b4   : > { %v9962_v31 = vpop.eup %9961  ;;  %2994 = vrot.lane.b32.xlu0 %v11415_v6, %s10132_s11 }
 0x5b5   : > { %1586 = vmatmul.mubr.f32.gmra.mxu1 %v7393_v52  ;;  %v7657_v29 = vadd.f32 -1.0, %v9962_v31  ;;  %v7695_v52 = vld [vmem:[%s14357_s2 + $0x1d0] sm:$0xff] }
 0x5b6   : > { %2992 = vrot.lane.b32.xlu1 %v11479_v14, %s10132_s11  ;;  %1590 = vmatprep.mubr.f32.mxu1 %v7397_v53  ;;  %v7694_v53 = vld [vmem:[%s14357_s2 + $0x1c8] sm:$0xff]  ;;  %v7411_v31 = vld [vmem:[%s14358_s3 + $0x210] sm:$0xff] }
 0x5b7   : > { %v11517_v54 = vsel %vm2882_vm9, %v11412_v34, %v7657_v29  ;;  %v7403_v34 = vld [vmem:[%s14358_s3 + $0x1d0] sm:$0xff]  ;;  %v7693_v29 = vld [vmem:[%s14357_s2 + $0x1c0] sm:$0xff] }
 0x5b8   : > { %v9964_v15 = vpop.eup %9963  ;;  %2978 = vrot.lane.b32.xlu0 %v11508_v48, %s10133_s26 }
 0x5b9   : > { %1591 = vmatmul.mubr.f32.gmra.mxu1 %v7396_v23  ;;  %v7656_v18 = vadd.f32 -1.0, %v9964_v15  ;;  %v7415_v23 = vld [vmem:[%s14358_s3 + $0x230] sm:$0xff]  ;;  %v7414_v15 = vld [vmem:[%s14358_s3 + $0x228] sm:$0xff] }
 0x5ba   : > { %v9966_v36 = vpop.eup %9965  ;;  %2976 = vrot.lane.b32.xlu1 %v11517_v54, %s10133_s26  ;;  %1595 = vmatprep.mubr.f32.mxu1 %v7400_v42 }
 0x5bb   : > { %v11526_v33 = vsel %vm2881_vm10, %v11436_v0, %v7656_v18  ;;  %v7655_v11 = vadd.f32 -1.0, %v9966_v36  ;;  %v7402_v0 = vld [vmem:[%s14358_s3 + $0x1c8] sm:$0xff] }
 0x5bc   : > { %2974 = vrot.lane.b32.xlu0 %v11526_v33, %s10133_s26  ;;  %v7483_v18 = vld [vmem:[%s14358_s3 + $0x248] sm:$0xff] }
 0x5bd   : > { %1596 = vmatmul.mubr.f32.gmra.mxu1 %v7399_v44  ;;  %v11535_v55 = vsel %vm2880_vm11, %v11451_v24, %v7655_v11  ;;  %v7405_v24 = vld [vmem:[%s14358_s3 + $0x1e0] sm:$0xff] }
 0x5be   : > { %2972 = vrot.lane.b32.xlu1 %v11535_v55, %s10133_s26  ;;  %1600 = vmatprep.mubr.f32.mxu1 %v7403_v34 }
 0x5c0   : > { %2970 = vrot.lane.b32.xlu0 %v11425_v3, %s10133_s26 }
 0x5c1   : > { %1601 = vmatmul.mubr.f32.gmra.mxu1 %v7402_v0 }
 0x5c2   : > { %2968 = vrot.lane.b32.xlu1 %v11444_v40, %s10133_s26  ;;  %1605 = vmatprep.mubr.f32.mxu1 %v7406_v27 }
 0x5c4   : > { %2966 = vrot.lane.b32.xlu0 %v11406_v16, %s10133_s26 }
 0x5c5   : > { %1606 = vmatmul.mubr.f32.gmra.mxu1 %v7405_v24 }
 0x5c6   : > { %2964 = vrot.lane.b32.xlu1 %v11470_v30, %s10133_s26  ;;  %1610 = vmatprep.mubr.f32.mxu1 %v7409_v12 }
 0x5c8   : > { %3486 = vperm.xlu0 %9869, %v7696_v39  }
 0x5c9   : > { %1611 = vmatmul.mubr.f32.gmra.mxu1 %v7408_v50 }
 0x5ca   : > { %3481 = vperm.xlu1 %9870, %v7695_v52   ;;  %1615 = vmatprep.mubr.f32.mxu1 %v7412_v13 }
 0x5cc   : > { %3476 = vperm.xlu0 %9869, %v7694_v53  }
 0x5cd   : > { %1616 = vmatmul.mubr.f32.gmra.mxu1 %v7411_v31 }
 0x5ce   : > { %v2225_v42 = vpop.permute.xlu0 %2224  ;;  %3471 = vperm.xlu1 %9870, %v7693_v29   ;;  %1620 = vmatprep.mubr.f32.mxu1 %v7415_v23  ;;  %v7495_v29 = vld [vmem:[%s14358_s3 + $0x2a8] sm:$0xff]  ;;  %v7494_v23 = vld [vmem:[%s14358_s3 + $0x2a0] sm:$0xff] }
 0x5cf   : > { %8488 = vmatprep.subr.mxu1 %v2225_v42  ;;  %v7498_v42 = vld [vmem:[%s14358_s3 + $0x2c0] sm:$0xff] }
 0x5d0   : > { %v2181_v36 = vpop.permute.xlu1 %2180 }
 0x5d1   : > { %1621 = vmatmul.mubr.f32.gmra.mxu1 %v7414_v15  ;;  %v7497_v15 = vld [vmem:[%s14358_s3 + $0x2b8] sm:$0xff] }
 0x5d2   : > { %8489 = vmatpush3.msra.mxu1 %v2181_v36  ;;  %2346 = vmatprep.mubr.f32.mxu1 %v7483_v18  ;;  %v7501_v18 = vld [vmem:[%s14358_s3 + $0x2d8] sm:$0xff] }
 0x5d4   : > { %v2223_v44 = vpop.permute.xlu0 %2222 }
 0x5d5   : > { %8490 = vmatprep.subr.mxu1 %v2223_v44  ;;  %v7500_v44 = vld [vmem:[%s14358_s3 + $0x2d0] sm:$0xff] }
 0x5d6   : > { %v2179_v11 = vpop.permute.xlu1 %2178 }
 0x5d7   : > { %8491 = vmatpush3.msra.mxu1 %v2179_v11  ;;  %v7504_v11 = vld [vmem:[%s14358_s3 + $0x2f0] sm:$0xff] }
 0x5da   : > { %v2221_v34 = vpop.permute.xlu0 %2220 }
 0x5db   : > { %8492 = vmatprep.subr.mxu1 %v2221_v34 }
 0x5dc   : > { %v2177_v0 = vpop.permute.xlu1 %2176 }
 0x5dd   : > { %8493 = vmatpush3.msra.mxu1 %v2177_v0 }
 0x5e0   : > { %v2219_v27 = vpop.permute.xlu0 %2218 }
 0x5e1   : > { %8494 = vmatprep.subr.mxu1 %v2219_v27  ;;  %v7503_v27 = vld [vmem:[%s14358_s3 + $0x2e8] sm:$0xff] }
 0x5e2   : > { %v2175_v24 = vpop.permute.xlu1 %2174 }
 0x5e3   : > { %8495 = vmatpush3.msra.mxu1 %v2175_v24  ;;  %v7507_v24 = vld [vmem:[%s14358_s3 + $0x308] sm:$0xff] }
 0x5e4   : > { %v2217_v12 = vpop.permute.xlu0 %2216 }
 0x5e5   : > { %8496 = vmatprep.subr.mxu1 %v2217_v12 }
 0x5e6   : > { %8497 = vmatpush3.msra.mxu1 %v10705_v45  ;;  %v2215_v39 = vpop.permute.xlu1 %2214 }
 0x5e7   : > { %8498 = vmatprep.subr.mxu1 %v2215_v39 }
 0x5e8   : > { %v2213_v50 = vpop.permute.xlu0 %2212  ;;  %8499 = vmatpush3.msra.mxu1 %v10709_v56 }
 0x5e9   : > { %8500 = vmatprep.subr.mxu1 %v2213_v50  ;;  %v7506_v50 = vld [vmem:[%s14358_s3 + $0x300] sm:$0xff] }
 0x5ea   : > { %8501 = vmatpush3.msra.mxu1 %v10713_v58  ;;  %v2211_v52 = vpop.permute.xlu1 %2210 }
 0x5eb   : > { %8502 = vmatprep.subr.mxu1 %v2211_v52  ;;  %v7510_v52 = vld [vmem:[%s14358_s3 + $0x320] sm:$0xff] }
 0x5ec   : > { %v2197_v13 = vpop.permute.xlu0 %2196  ;;  %8503 = vmatpush3.msra.mxu1 %v10717_v41 }
 0x5ed   : > { %8504 = vmatprep.subr.mxu1 %v2197_v13 }
 0x5ee   : > { %8505 = vmatpush3.msra.mxu1 %v11189_v5  ;;  %v2195_v53 = vpop.permute.xlu1 %2194 }
 0x5ef   : > { %8506 = vmatprep.subr.mxu1 %v2195_v53 }
 0x5f0   : > { %v2193_v31 = vpop.permute.xlu0 %2192  ;;  %8507 = vmatpush3.msra.mxu1 %v11210_v8  ;;  %v7482_v8 = vld [vmem:[%s14358_s3 + $0x240] sm:$0xff] }
 0x5f1   : > { %8508 = vmatprep.subr.mxu1 %v2193_v31  ;;  %v7509_v31 = vld [vmem:[%s14358_s3 + $0x318] sm:$0xff] }
 0x5f2   : > { %8509 = vmatpush3.msra.mxu1 %v11234_v46  ;;  %v2191_v45 = vpop.permute.xlu1 %2190  ;;  %v7486_v46 = vld [vmem:[%s14358_s3 + $0x260] sm:$0xff] }
 0x5f3   : > { %8510 = vmatprep.subr.mxu1 %v2191_v45  ;;  %v7513_v45 = vld [vmem:[%s14358_s3 + $0x338] sm:$0xff] }
 0x5f4   : > { %v2189_v56 = vpop.permute.xlu0 %2188  ;;  %8511 = vmatpush3.msra.mxu1 %v11260_v49  ;;  %v7492_v49 = vld [vmem:[%s14358_s3 + $0x290] sm:$0xff] }
 0x5f5   : > { %8512 = vmatprep.subr.mxu1 %v2189_v56 }
 0x5f6   : > { %8513 = vmatpush3.msra.mxu1 %v11198_v35  ;;  %v2187_v58 = vpop.permute.xlu1 %2186  ;;  %v7485_v35 = vld [vmem:[%s14358_s3 + $0x258] sm:$0xff] }
 0x5f7   : > { %8514 = vmatprep.subr.mxu1 %v2187_v58 }
 0x5f8   : > { %v2185_v41 = vpop.permute.xlu0 %2184  ;;  %8515 = vmatpush3.msra.mxu1 %v11219_v47  ;;  %v7489_v47 = vld [vmem:[%s14358_s3 + $0x278] sm:$0xff] }
 0x5f9   : > { %8516 = vmatprep.subr.mxu1 %v2185_v41  ;;  %v7512_v41 = vld [vmem:[%s14358_s3 + $0x330] sm:$0xff] }
 0x5fa   : > { %8517 = vmatpush3.msra.mxu1 %v11246_v17  ;;  %v2183_v5 = vpop.permute.xlu1 %2182  ;;  %v7488_v17 = vld [vmem:[%s14358_s3 + $0x270] sm:$0xff] }
 0x5fb   : > { %8518 = vmatprep.subr.mxu1 %v2183_v5  ;;  %v7516_v5 = vld [vmem:[%s14358_s3 + $0x350] sm:$0xff] }
 0x5fc   : > { %8519 = vmatpush3.msra.mxu1 %v11271_v10  ;;  %v7491_v10 = vld [vmem:[%s14358_s3 + $0x288] sm:$0xff] }
 0x5fd   : > { %2347 = vmatmul.mubr.f32.vlgmr.msra.gmra.mxu1 %v7482_v8 }
 0x5fe   : > { %2351 = vmatprep.mubr.f32.mxu1 %v7486_v46 }
 0x601   : > { %2352 = vmatmul.mubr.f32.gmra.mxu1 %v7485_v35  ;;  %v7515_v35 = vld [vmem:[%s14358_s3 + $0x348] sm:$0xff] }
 0x602   : > { %2356 = vmatprep.mubr.f32.mxu1 %v7489_v47  ;;  %v7584_v47 = vld [vmem:[%s14358_s3 + $0x368] sm:$0xff] }
 0x605   : > { %2357 = vmatmul.mubr.f32.gmra.mxu1 %v7488_v17 }
 0x606   : > { %2361 = vmatprep.mubr.f32.mxu1 %v7492_v49 }
 0x609   : > { %2362 = vmatmul.mubr.f32.gmra.mxu1 %v7491_v10 }
 0x60a   : > { %2366 = vmatprep.mubr.f32.mxu1 %v7495_v29 }
 0x60d   : > { %2367 = vmatmul.mubr.f32.gmra.mxu1 %v7494_v23 }
 0x60e   : > { %2371 = vmatprep.mubr.f32.mxu1 %v7498_v42 }
 0x611   : > { %2372 = vmatmul.mubr.f32.gmra.mxu1 %v7497_v15 }
 0x612   : > { %v3003_v36 = vpop.permute.xlu0 %3002  ;;  %2376 = vmatprep.mubr.f32.mxu1 %v7501_v18 }
 0x614   : > { %v2959_v34 = vpop.permute.xlu1 %2958 }
 0x615   : > { %2377 = vmatmul.mubr.f32.gmra.mxu1 %v7500_v44 }
 0x616   : > { %v3007_v0 = vpop.permute.xlu0 %3006  ;;  %2381 = vmatprep.mubr.f32.mxu1 %v7504_v11 }
 0x617   : > { %8597 = vmatprep.subr.mxu1 %v3007_v0 }
 0x618   : > { %v2963_v12 = vpop.permute.xlu1 %2962 }
 0x619   : > { %2382 = vmatmul.mubr.f32.gmra.mxu1 %v7503_v27 }
 0x61a   : > { %8598 = vmatpush3.msra.mxu1 %v2963_v12  ;;  %v3005_v39 = vpop.permute.xlu0 %3004  ;;  %2386 = vmatprep.mubr.f32.mxu1 %v7507_v24 }
 0x61b   : > { %8599 = vmatprep.subr.mxu1 %v3005_v39 }
 0x61c   : > { %v2961_v13 = vpop.permute.xlu1 %2960 }
 0x61d   : > { %2387 = vmatmul.mubr.f32.gmra.mxu1 %v7506_v50 }
 0x61e   : > { %8600 = vmatpush3.msra.mxu1 %v2961_v13  ;;  %v3001_v53 = vpop.permute.xlu0 %3000  ;;  %2391 = vmatprep.mubr.f32.mxu1 %v7510_v52  ;;  %v7583_v13 = vld [vmem:[%s14358_s3 + $0x360] sm:$0xff] }
 0x61f   : > { %8601 = vmatprep.subr.mxu1 %v3003_v36 }
 0x620   : > { %8602 = vmatpush3.msra.mxu1 %v2959_v34  ;;  %v2957_v56 = vpop.permute.xlu1 %2956 }
 0x621   : > { %8603 = vmatprep.subr.mxu1 %v3001_v53  ;;  %2392 = vmatmul.mubr.f32.gmra.mxu1 %v7509_v31  ;;  %v7747_v53 = vld [vmem:[%s10188_s29 + $0xc8] sm:$0xf] }
 0x622   : > { %8604 = vmatpush3.msra.mxu1 %v2957_v56  ;;  %v2999_v58 = vpop.permute.xlu0 %2998  ;;  %2396 = vmatprep.mubr.f32.mxu1 %v7513_v45 }
 0x623   : > { %8605 = vmatprep.subr.mxu1 %v2999_v58 }
 0x624   : > { %8606 = vmatpush3.msra.mxu1 %v11508_v48  ;;  %v2997_v8 = vpop.permute.xlu1 %2996 }
 0x625   : > { %2397 = vmatmul.mubr.f32.gmra.mxu1 %v7512_v41  ;;  %8607 = vmatprep.subr.mxu1 %v2997_v8  ;;  %v7586_v41 = vld [vmem:[%s14358_s3 + $0x378] sm:$0xff]  ;;  %v11714_v8 = vld [vmem:[%s10188_s29 + $0xb0] sm:$0xff] }
 0x626   : > { %v2995_v46 = vpop.permute.xlu0 %2994  ;;  %8608 = vmatpush3.msra.mxu1 %v11517_v54  ;;  %2401 = vmatprep.mubr.f32.mxu1 %v7516_v5 }
 0x627   : > { %8609 = vmatprep.subr.mxu1 %v2995_v46 }
 0x628   : > { %8610 = vmatpush3.msra.mxu1 %v11526_v33  ;;  %v2993_v17 = vpop.permute.xlu1 %2992 }
 0x629   : > { %v8302_v49 = vpop.f32.mrf.mxu1  ;;  %2402 = vmatmul.mubr.f32.gmra.mxu1 %v7515_v35  ;;  %8611 = vmatprep.subr.mxu1 %v2993_v17  ;;  %v7589_v17 = vld [vmem:[%s14358_s3 + $0x390] sm:$0xff] }
 0x62a   : > { %v2979_v10 = vpop.permute.xlu0 %2978  ;;  %8612 = vmatpush3.msra.mxu1 %v11535_v55  ;;  %3128 = vmatprep.mubr.f32.mxu1 %v7584_v47 }
 0x62b   : > { %v8303_v29 = vpop.f32.mrf.mxu1  ;;  %8613 = vmatprep.subr.mxu1 %v2979_v10  ;;  %v7593_v10 = vld [vmem:[%s14358_s3 + $0x3b0] sm:$0xff] }
 0x62c   : > { %8614 = vmatpush3.msra.mxu1 %v11425_v3  ;;  %v2977_v23 = vpop.permute.xlu1 %2976  ;;  %v8304_v11 = vadd.f32 %v8303_v29, %v8302_v49 }
 0x62d   : > { %v8305_v42 = vpop.f32.mrf.mxu1  ;;  %8615 = vmatprep.subr.mxu1 %v2977_v23  ;;  %v11733_v23 = vld [vmem:[%s10188_s29 + $0xa0] sm:$0xff] }
 0x62e   : > { %v2975_v15 = vpop.permute.xlu0 %2974  ;;  %8616 = vmatpush3.msra.mxu1 %v11444_v40  ;;  %v911_v40 = vadd.f32 %v8304_v11, %v10472_v60  ;;  %v7596_v11 = vld [vmem:[%s14358_s3 + $0x3c8] sm:$0xff] }
 0x62f   : > { %v8306_v18 = vpop.f32.mrf.mxu1  ;;  %8617 = vmatprep.subr.mxu1 %v2975_v15 }
 0x630   : > { %8618 = vmatpush3.msra.mxu1 %v11406_v16  ;;  %v2973_v36 = vpop.permute.xlu1 %2972  ;;  %v8307_v12 = vadd.f32 %v8306_v18, %v8305_v42 }
 0x631   : > { %v8308_v44 = vpop.f32.mrf.mxu1  ;;  %8619 = vmatprep.subr.mxu1 %v2973_v36  ;;  %v7592_v36 = vld [vmem:[%s14358_s3 + $0x3a8] sm:$0xff] }
 0x632   : > { %v2971_v34 = vpop.permute.xlu0 %2970  ;;  %8620 = vmatpush3.msra.mxu1 %v11470_v30 }
 0x633   : > { %v8309_v0 = vpop.f32.mrf.mxu1  ;;  %8621 = vmatprep.subr.mxu1 %v2971_v34 }
 0x634   : > { %v8310_v3 = vadd.f32 %v8309_v0, %v8308_v44  ;;  %8622 = vmatpush3.msra.mxu1 %v11439_v51  ;;  %v2969_v27 = vpop.permute.xlu1 %2968  ;;  %v11752_v0 = vld [vmem:[%s10188_s29 + $0x90] sm:$0xff] }
 0x635   : > { %v8311_v24 = vpop.f32.mrf.mxu1  ;;  %8623 = vmatprep.subr.mxu1 %v2969_v27 }
 0x636   : > { %v921_v16 = vadd.f32 %v8310_v3, %v10476_v62  ;;  %v2967_v39 = vpop.permute.xlu0 %2966  ;;  %8624 = vmatpush3.msra.mxu1 %v11461_v43  ;;  %v7587_v62 = vld [vmem:[%s14358_s3 + $0x380] sm:$0xff]  ;;  %v916_v43 = vadd.f32 %v10470_v59, %v8307_v12  ;;  %v11705_v59 = vld [vmem:[%s10188_s29 + $0xb8] sm:$0xff] }
 0x637   : > { %v8312_v50 = vpop.f32.mrf.mxu1  ;;  %8625 = vmatprep.subr.mxu1 %v2967_v39 }
 0x638   : > { %v969_v30 = vmax.f32 %v911_v40, %v921_v16  ;;  %v8313_v52 = vadd.f32 %v8312_v50, %v8311_v24  ;;  %8626 = vmatpush3.msra.mxu1 %v11415_v6  ;;  %v2965_v51 = vpop.permute.xlu1 %2964  ;;  %v11697_v6 = vld [vmem:[%s10188_s29 + $0xc0] sm:$0xff] }
 0x639   : > { %v8314_v60 = vpop.f32.mrf.mxu1  ;;  %8627 = vmatprep.subr.mxu1 %v2965_v51  ;;  %v7595_v40 = vld [vmem:[%s14358_s3 + $0x3c0] sm:$0xff] }
 0x63a   : > { %v926_v31 = vadd.f32 %v10474_v61, %v8313_v52  ;;  %8628 = vmatpush3.msra.mxu1 %v11479_v14  ;;  %v7590_v14 = vld [vmem:[%s14358_s3 + $0x398] sm:$0xff]  ;;  %v7599_v16 = vld [vmem:[%s14358_s3 + $0x3e0] sm:$0xff] }
 0x63b   : > { %v8315_v45 = vpop.f32.mrf.mxu1  ;;  %3129 = vmatmul.mubr.f32.vlgmr.msra.gmra.mxu1 %v7583_v13  ;;  %9506 = vmatprep.subr.msk.mxu1 %vm397_vm1, %v7747_v53  ;;  %v11770_v50 = vld [vmem:[%s10188_s29 + $0x80] sm:$0xff]  ;;  %v7598_v13 = vld [vmem:[%s14358_s3 + $0x3d8] sm:$0xff] }
 0x63c   : > { %v970_v56 = vmax.f32 %v916_v43, %v926_v31  ;;  %v8316_v58 = vadd.f32 %v8315_v45, %v8314_v60  ;;  %3133 = vmatprep.mubr.f32.mxu1 %v7587_v62  ;;  %9507 = vmatpush3.msk.msra.mxu1 %vm397_vm1, %v7747_v53  ;;  %v7602_v60 = vld [vmem:[%s14358_s3 + $0x3f8] sm:$0xff]  ;;  %v11788_v43 = vld [vmem:[%s10188_s29 + $0x70] sm:$0xff] }
 0x63d   : > { %v8317_v61 = vpop.f32.mrf.mxu1  ;;  %9508 = vmatprep.subr.mxu1 %v11697_v6 }
 0x63e   : > { %v931_v5 = vadd.f32 %v8316_v58, %v10480_v1  ;;  %9509 = vmatpush3.msra.mxu1 %v11697_v6  ;;  %v11724_v1 = vld [vmem:[%s10188_s29 + $0xa8] sm:$0xff] }
 0x63f   : > { %v8318_v46 = vpop.f32.mrf.mxu1  ;;  %3134 = vmatmul.mubr.f32.gmra.mxu1 %v7586_v41  ;;  %9510 = vmatprep.subr.mxu1 %v11705_v59  ;;  %v11796_v58 = vld [vmem:[%s10188_s29 + $0x68] sm:$0xff] }
 0x640   : > { %v11717_v35 = vmax.f32 %v969_v30, %v931_v5  ;;  %v8319_v47 = vadd.f32 %v8318_v46, %v8317_v61  ;;  %3138 = vmatprep.mubr.f32.mxu1 %v7590_v14  ;;  %9511 = vmatpush3.msra.mxu1 %v11705_v59  ;;  %v7605_v61 = vld [vmem:[%s14358_s3 + $0x410] sm:$0xff] }
 0x641   : > { %v8320_v49 = vpop.f32.mrf.mxu1  ;;  %9512 = vmatprep.subr.mxu1 %v11714_v8 }
 0x642   : > { %v936_v29 = vadd.f32 %v10478_v63, %v8319_v47  ;;  %9513 = vmatpush3.msra.mxu1 %v11714_v8  ;;  %v11743_v63 = vld [vmem:[%s10188_s29 + $0x98] sm:$0xff] }
 0x643   : > { %v8321_v42 = vpop.f32.mrf.mxu1  ;;  %3139 = vmatmul.mubr.f32.gmra.mxu1 %v7589_v17  ;;  %9514 = vmatprep.subr.mxu1 %v11724_v1 }
 0x644   : > { %v11736_v15 = vmax.f32 %v970_v56, %v936_v29  ;;  %v8322_v18 = vadd.f32 %v8321_v42, %v8320_v49  ;;  %3143 = vmatprep.mubr.f32.mxu1 %v7593_v10  ;;  %9515 = vmatpush3.msra.mxu1 %v11724_v1  ;;  %v7601_v56 = vld [vmem:[%s14358_s3 + $0x3f0] sm:$0xff]  ;;  %v7607_v42 = vld [vmem:[%s14358_s3 + $0x420] sm:$0xff] }
 0x645   : > { %v8323_v44 = vpop.f32.mrf.mxu1  ;;  %9516 = vmatprep.subr.mxu1 %v11733_v23 }
 0x646   : > { %v941_v34 = vadd.f32 %v8322_v18, %v10484_v4  ;;  %9517 = vmatpush3.msra.mxu1 %v11733_v23  ;;  %v11761_v4 = vld [vmem:[%s10188_s29 + $0x88] sm:$0xff]  ;;  %v7611_v18 = vld [vmem:[%s14358_s3 + $0x440] sm:$0xff] }
 0x647   : > { %v8324_v3 = vpop.f32.mrf.mxu1  ;;  %3144 = vmatmul.mubr.f32.gmra.mxu1 %v7592_v36  ;;  %9518 = vmatprep.subr.mxu1 %v11743_v63 }
 0x648   : > { %v973_v27 = vmax.f32 %v11717_v35, %v941_v34  ;;  %v8325_v24 = vadd.f32 %v8324_v3, %v8323_v44  ;;  %3148 = vmatprep.mubr.f32.mxu1 %v7596_v11  ;;  %9519 = vmatpush3.msra.mxu1 %v11743_v63  ;;  %v7604_v35 = vld [vmem:[%s14358_s3 + $0x408] sm:$0xff]  ;;  %v7614_v11 = vld [vmem:[%s14358_s3 + $0x458] sm:$0xff]  ;;  %v7617_v34 = vld [vmem:[%s14358_s3 + $0x470] sm:$0xff] }
 0x649   : > { %v8326_v12 = vpop.f32.mrf.mxu1  ;;  %9520 = vmatprep.subr.mxu1 %v11752_v0  ;;  %v7616_v3 = vld [vmem:[%s14358_s3 + $0x468] sm:$0xff] }
 0x64a   : > { %v946_v39 = vadd.f32 %v10482_v2, %v8325_v24  ;;  %9521 = vmatpush3.msra.mxu1 %v11752_v0  ;;  %v11779_v2 = vld [vmem:[%s10188_s29 + $0x78] sm:$0xff]  ;;  %v7673_v24 = vld [vmem:[%s14356_s1 + $0x180] sm:$0xff] }
 0x64b   : > { %v8327_v30 = vpop.f32.mrf.mxu1  ;;  %3149 = vmatmul.mubr.f32.gmra.mxu1 %v7595_v40  ;;  %9522 = vmatprep.subr.mxu1 %v11761_v4 }
 0x64c   : > { %v974_v52 = vmax.f32 %v11736_v15, %v946_v39  ;;  %v8328_v51 = vadd.f32 %v8327_v30, %v8326_v12  ;;  %3153 = vmatprep.mubr.f32.mxu1 %v7599_v16  ;;  %9523 = vmatpush3.msra.mxu1 %v11761_v4  ;;  %v7674_v12 = vld [vmem:[%s14356_s1 + $0x188] sm:$0xff]  ;;  %v7675_v39 = vld [vmem:[%s14356_s1 + $0x190] sm:$0xff] }
 0x64d   : > { %v8329_v53 = vpop.f32.mrf.mxu1  ;;  %9524 = vmatprep.subr.mxu1 %v11770_v50 }
 0x64e   : > { %v951_v62 = vadd.f32 %v8328_v51, %v10488_v20  ;;  %9525 = vmatpush3.msra.mxu1 %v11770_v50 }
 0x64f   : > { %v8330_v31 = vpop.f32.mrf.mxu1  ;;  %3154 = vmatmul.mubr.f32.gmra.mxu1 %v7598_v13  ;;  %9526 = vmatprep.subr.mxu1 %v11779_v2  ;;  %v7677_v13 = vld [vmem:[%s14356_s1 + $0x1a0] sm:$0xff] }
 0x650   : > { %v8331_v45 = vadd.f32 %v8330_v31, %v8329_v53  ;;  %3158 = vmatprep.mubr.f32.mxu1 %v7602_v60  ;;  %9527 = vmatpush3.msra.mxu1 %v11779_v2  ;;  %v11798_v41 = vmax.f32 %v973_v27, %v951_v62  ;;  %v7678_v31 = vld [vmem:[%s14356_s1 + $0x1a8] sm:$0xff] }
 0x651   : > { %v8332_v20 = vpop.f32.mrf.mxu1  ;;  %9528 = vmatprep.subr.mxu1 %v11788_v43 }
 0x652   : > { %14388 = vst [vmem:[#allocation17_spill] sm:$0xff] %v11798_v41  ;;  %v956_v14 = vadd.f32 %v10486_v19, %v8331_v45  ;;  %9529 = vmatpush3.msra.mxu1 %v11788_v43  ;;  %v7608_v19 = vld [vmem:[%s14358_s3 + $0x428] sm:$0xff] }
 0x653   : > { %v8333_v5 = vpop.f32.mrf.mxu1  ;;  %3159 = vmatmul.mubr.f32.gmra.mxu1 %v7601_v56  ;;  %9530 = vmatprep.subr.mxu1 %v11796_v58  ;;  %v7679_v56 = vld [vmem:[%s14356_s1 + $0x1b0] sm:$0xff] }
 0x654   : > { %v8334_v46 = vadd.f32 %v8333_v5, %v8332_v20  ;;  %3163 = vmatprep.mubr.f32.mxu1 %v7605_v61  ;;  %9531 = vmatpush3.msra.mxu1 %v11796_v58  ;;  %v11811_v47 = vmax.f32 %v974_v52, %v956_v14  ;;  %v7676_v52 = vld [vmem:[%s14356_s1 + $0x198] sm:$0xff]  ;;  %v14392_v20 = vld [vmem:[#allocation3_spill] sm:$0xff] }
 0x655   : > { %v8335_v17 = vpop.f32.mrf.mxu1  ;;  %v14393_v5 = vld [vmem:[#allocation5_spill] sm:$0xff] }
 0x656   : > { %14389 = vst [vmem:[#allocation18_spill] sm:$0xff] %v11811_v47  ;;  %v11817_v49 = vadd.f32 %v8334_v46, %v10492_v22  ;;  %v7610_v22 = vld [vmem:[%s14358_s3 + $0x438] sm:$0xff] }
 0x657   : > { %v8336_v10 = vpop.f32.mrf.mxu1  ;;  %3164 = vmatmul.mubr.f32.gmra.mxu1 %v7604_v35 }
 0x658   : > { %14390 = vst [vmem:[#allocation19_spill] sm:$0xff] %v11817_v49  ;;  %v8337_v29 = vadd.f32 %v8336_v10, %v8335_v17  ;;  %3168 = vmatprep.mubr.f32.mxu1 %v7608_v19  ;;  %v7680_v10 = vld [vmem:[%s14356_s1 + $0x1b8] sm:$0xff] }
 0x65a   : > { %v11828_v36 = vadd.f32 %v10490_v21, %v8337_v29  ;;  %v7613_v21 = vld [vmem:[%s14358_s3 + $0x450] sm:$0xff] }
 0x65b   : > { %3169 = vmatmul.mubr.f32.gmra.mxu1 %v7607_v42  ;;  %v7681_v42 = vld [vmem:[%s14356_s1 + $0x1c0] sm:$0xff] }
 0x65c   : > { %14391 = vst [vmem:[#allocation20_spill] sm:$0xff] %v11828_v36  ;;  %3173 = vmatprep.mubr.f32.mxu1 %v7611_v18  ;;  %v14394_v18 = vld [vmem:[#allocation2_spill] sm:$0xff] }
 0x65f   : > { %3174 = vmatmul.mubr.f32.gmra.mxu1 %v7610_v22 }
 0x660   : > { %3178 = vmatprep.mubr.f32.mxu1 %v7614_v11  ;;  %v14395_v11 = vld [vmem:[#allocation4_spill] sm:$0xff] }
 0x663   : > { %3179 = vmatmul.mubr.f32.gmra.mxu1 %v7613_v21 }
 0x664   : > { %3183 = vmatprep.mubr.f32.mxu1 %v7617_v34 }
 0x665   : > { %v8411_v27 = vpop.f32.mrf.mxu1 }
 0x667   : > { %v8412_v40 = vpop.f32.mrf.mxu1  ;;  %3184 = vmatmul.mubr.f32.gmra.mxu1 %v7616_v3 }
 0x668   : > { %9532 = vmatprep.mubr.msk.f32.mxu1 %vm360_vm0, %v7673_v24  ;;  %v8413_v53 = vadd.f32 %v8412_v40, %v8411_v27  ;;  %v7682_v24 = vld [vmem:[%s14356_s1 + $0x1c8] sm:$0xff] }
 0x669   : > { %v8414_v16 = vpop.f32.mrf.mxu1 }
 0x66a   : > { %v1693_v61 = vadd.f32 %v8413_v53, %v14392_v20 }
 0x66b   : > { %v8415_v30 = vpop.f32.mrf.mxu1  ;;  %9533 = vmatmul.mubr.msk.f32.vlgmr.msra.gmra.mxu1 %vm360_vm0, %v7674_v12  ;;  %v7683_v12 = vld [vmem:[%s14356_s1 + $0x1d0] sm:$0xff] }
 0x66c   : > { %9535 = vmatprep.mubr.msk.f32.mxu1 %vm360_vm0, %v7675_v39  ;;  %v8416_v14 = vadd.f32 %v8415_v30, %v8414_v16  ;;  %v14396_v16 = vld [vmem:[#allocation7_spill] sm:$0xff] }
 0x66d   : > { %v8417_v51 = vpop.f32.mrf.mxu1 }
 0x66e   : > { %v1698_v22 = vadd.f32 %v14394_v18, %v8416_v14 }
 0x66f   : > { %v8418_v60 = vpop.f32.mrf.mxu1  ;;  %9536 = vmatmul.mubr.msk.f32.gmra.mxu1 %vm360_vm0, %v7676_v52 }
 0x670   : > { %v8419_v62 = vadd.f32 %v8418_v60, %v8417_v51  ;;  %9538 = vmatprep.mubr.msk.f32.mxu1 %vm360_vm0, %v7677_v13  ;;  %v7684_v13 = vld [vmem:[%s14356_s1 + $0x1d8] sm:$0xff]  ;;  %v14397_v60 = vld [vmem:[#allocation6_spill] sm:$0xff] }
 0x671   : > { %v8420_v45 = vpop.f32.mrf.mxu1 }
 0x672   : > { %v1703_v46 = vadd.f32 %v8419_v62, %v14393_v5 }
 0x673   : > { %v8421_v35 = vpop.f32.mrf.mxu1  ;;  %9539 = vmatmul.mubr.msk.f32.gmra.mxu1 %vm360_vm0, %v7678_v31 }
 0x674   : > { %v1751_v17 = vmax.f32 %v1693_v61, %v1703_v46  ;;  %v8422_v19 = vadd.f32 %v8421_v35, %v8420_v45  ;;  %9541 = vmatprep.mubr.msk.f32.mxu1 %vm360_vm0, %v7679_v56  ;;  %v14398_v61 = vld [vmem:[#allocation9_spill] sm:$0xff] }
 0x675   : > { %v8423_v29 = vpop.f32.mrf.mxu1 }
 0x676   : > { %v1708_v21 = vadd.f32 %v14395_v11, %v8422_v19  ;;  %v14399_v19 = vld [vmem:[#allocation8_spill] sm:$0xff]  ;;  %v14400_v11 = vld [vmem:[#allocation11_spill] sm:$0xff] }
 0x677   : > { %v8424_v34 = vpop.f32.mrf.mxu1  ;;  %9542 = vmatmul.mubr.msk.f32.gmra.mxu1 %vm360_vm0, %v7680_v10 }
 0x678   : > { %v1752_v3 = vmax.f32 %v1698_v22, %v1708_v21  ;;  %v8425_v27 = vadd.f32 %v8424_v34, %v8423_v29  ;;  %9544 = vmatprep.mubr.msk.f32.mxu1 %vm360_vm0, %v7681_v42 }
 0x679   : > { %v8426_v40 = vpop.f32.mrf.mxu1 }
 0x67a   : > { %v1713_v39 = vadd.f32 %v8425_v27, %v14396_v16 }
 0x67b   : > { %v8427_v30 = vpop.f32.mrf.mxu1  ;;  %9545 = vmatmul.mubr.msk.f32.gmra.mxu1 %vm360_vm0, %v7682_v24 }
 0x67c   : > { %v1753_v52 = vmax.f32 %v1751_v17, %v1713_v39  ;;  %v8428_v51 = vadd.f32 %v8427_v30, %v8426_v40  ;;  %9547 = vmatprep.mubr.msk.f32.mxu1 %vm360_vm0, %v7683_v12  ;;  %v14402_v40 = vld [vmem:[#allocation10_spill] sm:$0xff] }
 0x67d   : > { %v8429_v53 = vpop.f32.mrf.mxu1 }
 0x67e   : > { %v1718_v62 = vadd.f32 %v14397_v60, %v8428_v51  ;;  %v14404_v51 = vld [vmem:[#allocation13_spill] sm:$0xff] }
 0x67f   : > { %v8430_v31 = vpop.f32.mrf.mxu1  ;;  %9548 = vmatmul.mubr.msk.f32.gmra.mxu1 %vm360_vm0, %v7684_v13 }
 0x680   : > { %v1754_v45 = vmax.f32 %v1752_v3, %v1718_v62  ;;  %v8431_v56 = vadd.f32 %v8430_v31, %v8429_v53  ;;  %v14406_v31 = vld [vmem:[#allocation12_spill] sm:$0xff]  ;;  %v3482_v62 = vpop.permute.xlu1 %3481 }
 0x681   : > { %v8432_v20 = vpop.f32.mrf.mxu1 }
 0x682   : > { %v1723_v14 = vadd.f32 %v8431_v56, %v14398_v61 }
 0x683   : > { %v8433_v5 = vpop.f32.mrf.mxu1 }
 0x684   : > { %v1755_v46 = vmax.f32 %v1753_v52, %v1723_v14  ;;  %v8434_v35 = vadd.f32 %v8433_v5, %v8432_v20 }
 0x685   : > { %v8435_v17 = vpop.f32.mrf.mxu1 }
 0x686   : > { %v1728_v10 = vadd.f32 %v14399_v19, %v8434_v35 }
 0x687   : > { %v8436_v29 = vpop.f32.mrf.mxu1 }
 0x688   : > { %v1756_v42 = vmax.f32 %v1754_v45, %v1728_v10  ;;  %v8437_v18 = vadd.f32 %v8436_v29, %v8435_v17 }
 0x689   : > { %v8438_v22 = vpop.f32.mrf.mxu1 }
 0x68a   : > { %v1733_v21 = vadd.f32 %v8437_v18, %v14400_v11 }
 0x68b   : > { %v8439_v34 = vpop.f32.mrf.mxu1 }
 0x68c   : > { %v8440_v27 = vadd.f32 %v8439_v34, %v8438_v22  ;;  %v11904_v24 = vmax.f32 %v1755_v46, %v1733_v21 }
 0x68d   : > { %v8441_v3 = vpop.f32.mrf.mxu1 }
 0x68e   : > { %14401 = vst [vmem:[#allocation3_spill] sm:$0xff] %v11904_v24  ;;  %v1738_v12 = vadd.f32 %v14402_v40, %v8440_v27 }
 0x68f   : > { %v8442_v16 = vpop.f32.mrf.mxu1 }
 0x690   : > { %v8443_v39 = vadd.f32 %v8442_v16, %v8441_v3  ;;  %v11907_v30 = vmax.f32 %v1756_v42, %v1738_v12 }
 0x691   : > { %v8444_v52 = vpop.f32.mrf.mxu1 }
 0x692   : > { %14403 = vst [vmem:[#allocation5_spill] sm:$0xff] %v11907_v30  ;;  %v11910_v13 = vadd.f32 %v8443_v39, %v14404_v51 }
 0x693   : > { %v8445_v53 = vpop.f32.mrf.mxu1 }
 0x694   : > { %14405 = vst [vmem:[#allocation2_spill] sm:$0xff] %v11910_v13  ;;  %v8446_v60 = vadd.f32 %v8445_v53, %v8444_v52 }
 0x696   : > { %v11915_v45 = vadd.f32 %v14406_v31, %v8446_v60 }
 0x698   : > { %14407 = vst [vmem:[#allocation4_spill] sm:$0xff] %v11915_v45 }
 0x6bd   : > { %v8520_v20 = vpop.f32.mrf.mxu1 }
 0x6bf   : > { %v8521_v61 = vpop.f32.mrf.mxu1 }
 0x6c0   : > { %v8522_v35 = vadd.f32 %v8521_v61, %v8520_v20 }
 0x6c1   : > { %v8523_v14 = vpop.f32.mrf.mxu1 }
 0x6c2   : > { %v2474_v29 = vadd.f32 %v8522_v35, %v11175_v38 }
 0x6c3   : > { %v8524_v5 = vpop.f32.mrf.mxu1 }
 0x6c4   : > { %v8525_v42 = vadd.f32 %v8524_v5, %v8523_v14 }
 0x6c5   : > { %v8526_v46 = vpop.f32.mrf.mxu1 }
 0x6c6   : > { %v2479_v27 = vadd.f32 %v11171_v25, %v8525_v42 }
 0x6c7   : > { %v8527_v17 = vpop.f32.mrf.mxu1 }
 0x6c8   : > { %v8528_v19 = vadd.f32 %v8527_v17, %v8526_v46 }
 0x6c9   : > { %v8529_v10 = vpop.f32.mrf.mxu1 }
 0x6ca   : > { %v2484_v18 = vadd.f32 %v8528_v19, %v11186_v57 }
 0x6cb   : > { %v8530_v22 = vpop.f32.mrf.mxu1 }
 0x6cc   : > { %v2532_v11 = vmax.f32 %v2474_v29, %v2484_v18  ;;  %v8531_v21 = vadd.f32 %v8530_v22, %v8529_v10 }
 0x6cd   : > { %v8532_v34 = vpop.f32.mrf.mxu1 }
 0x6ce   : > { %v2489_v3 = vadd.f32 %v11180_v26, %v8531_v21  ;;  %v14409_v21 = vld [vmem:[#allocation14_spill] sm:$0xff] }
 0x6cf   : > { %v8533_v40 = vpop.f32.mrf.mxu1 }
 0x6d0   : > { %v2533_v12 = vmax.f32 %v2479_v27, %v2489_v3  ;;  %v8534_v16 = vadd.f32 %v8533_v40, %v8532_v34 }
 0x6d1   : > { %v8535_v39 = vpop.f32.mrf.mxu1 }
 0x6d2   : > { %v2494_v52 = vadd.f32 %v8534_v16, %v11203_v7 }
 0x6d3   : > { %v8536_v51 = vpop.f32.mrf.mxu1 }
 0x6d4   : > { %v2534_v53 = vmax.f32 %v2532_v11, %v2494_v52  ;;  %v8537_v38 = vadd.f32 %v8536_v51, %v8535_v39  ;;  %v14413_v52 = vld [vmem:[#allocation15_spill] sm:$0xff] }
 0x6d5   : > { %v8538_v60 = vpop.f32.mrf.mxu1 }
 0x6d6   : > { %v2499_v57 = vadd.f32 %v11195_v9, %v8537_v38 }
 0x6d7   : > { %v8539_v31 = vpop.f32.mrf.mxu1 }
 0x6d8   : > { %v2535_v20 = vmax.f32 %v2533_v12, %v2499_v57  ;;  %v8540_v61 = vadd.f32 %v8539_v31, %v8538_v60  ;;  %v14411_v12 = vld [vmem:[#allocation16_spill] sm:$0xff] }
 0x6d9   : > { %v8541_v14 = vpop.f32.mrf.mxu1 }
 0x6da   : > { %v2504_v25 = vadd.f32 %v8540_v61, %v11216_v37 }
 0x6db   : > { %v8542_v5 = vpop.f32.mrf.mxu1 }
 0x6dc   : > { %v2536_v26 = vmax.f32 %v2534_v53, %v2504_v25  ;;  %v8543_v46 = vadd.f32 %v8542_v5, %v8541_v14 }
 0x6dd   : > { %v8544_v35 = vpop.f32.mrf.mxu1 }
 0x6de   : > { %v2509_v17 = vadd.f32 %v11207_v28, %v8543_v46 }
 0x6df   : > { %v8545_v19 = vpop.f32.mrf.mxu1 }
 0x6e0   : > { %v2537_v7 = vmax.f32 %v2535_v20, %v2509_v17  ;;  %v8546_v10 = vadd.f32 %v8545_v19, %v8544_v35 }
 0x6e1   : > { %v8547_v29 = vpop.f32.mrf.mxu1 }
 0x6e2   : > { %v2514_v42 = vadd.f32 %v8546_v10, %v11231_v32 }
 0x6e3   : > { %v8548_v18 = vpop.f32.mrf.mxu1 }
 0x6e4   : > { %v8549_v9 = vadd.f32 %v8548_v18, %v8547_v29  ;;  %v11928_v22 = vmax.f32 %v2536_v26, %v2514_v42 }
 0x6e5   : > { %v8550_v11 = vpop.f32.mrf.mxu1 }
 0x6e6   : > { %14408 = vst [vmem:[#allocation7_spill] sm:$0xff] %v11928_v22  ;;  %v2519_v34 = vadd.f32 %v14409_v21, %v8549_v9  ;;  %v3472_v22 = vpop.permute.xlu1 %3471 }
 0x6e7   : > { %v8551_v37 = vpop.f32.mrf.mxu1 }
 0x6e8   : > { %v8552_v27 = vadd.f32 %v8551_v37, %v8550_v11  ;;  %v11931_v3 = vmax.f32 %v2537_v7, %v2519_v34 }
 0x6e9   : > { %v8553_v40 = vpop.f32.mrf.mxu1 }
 0x6ea   : > { %14410 = vst [vmem:[#allocation6_spill] sm:$0xff] %v11931_v3  ;;  %v11934_v28 = vadd.f32 %v8552_v27, %v14411_v12 }
 0x6eb   : > { %v8554_v16 = vpop.f32.mrf.mxu1 }
 0x6ec   : > { %14412 = vst [vmem:[#allocation9_spill] sm:$0xff] %v11934_v28  ;;  %v8555_v39 = vadd.f32 %v8554_v16, %v8553_v40 }
 0x6ee   : > { %v11939_v51 = vadd.f32 %v14413_v52, %v8555_v39  ;;  %v3487_v52 = vpop.permute.xlu0 %3486 }
 0x6f0   : > { %14414 = vst [vmem:[#allocation8_spill] sm:$0xff] %v11939_v51 }
 0x6f2   : > { %v3477_v56 = vpop.permute.xlu0 %3476 }
 0x6fb   : > { %v11943_v38 = vpop.f32.mrf.mxu1 }
 0x6fc   : > { %14415 = vst [vmem:[#allocation11_spill] sm:$0xff] %v11943_v38 }
 0x6fd   : > { %v11945_v60 = vpop.f32.mrf.mxu1 }
 0x6fe   : > { %14416 = vst [vmem:[#allocation10_spill] sm:$0xff] %v11945_v60 }
 0x6ff   : > { %v11947_v57 = vpop.f32.mrf.mxu1 }
 0x700   : > { %14417 = vst [vmem:[#allocation13_spill] sm:$0xff] %v11947_v57 }
 0x701   : > { %v11949_v31 = vpop.f32.mrf.mxu1 }
 0x702   : > { %14418 = vst [vmem:[#allocation12_spill] sm:$0xff] %v11949_v31 }
 0x703   : > { %v11951_v20 = vpop.f32.mrf.mxu1 }
 0x704   : > { %14419 = vst [vmem:[#allocation14_spill] sm:$0xff] %v11951_v20 }
 0x705   : > { %v11953_v61 = vpop.f32.mrf.mxu1 }
 0x706   : > { %14420 = vst [vmem:[#allocation16_spill] sm:$0xff] %v11953_v61 }
 0x707   : > { %v11955_v14 = vpop.f32.mrf.mxu1 }
 0x708   : > { %14421 = vst [vmem:[#allocation15_spill] sm:$0xff] %v11955_v14 }
 0x709   : > { %v11957_v25 = vpop.f32.mrf.mxu1 }
 0x70a   : > { %14422 = vst [vmem:[#allocation21_spill] sm:$0xff] %v11957_v25 }
 0x70b   : > { %v11959_v5 = vpop.f32.mrf.mxu1 }
 0x70c   : > { %14423 = vst [vmem:[#allocation22_spill] sm:$0xff] %v11959_v5 }
 0x70d   : > { %v11961_v26 = vpop.f32.mrf.mxu1 }
 0x70e   : > { %14424 = vst [vmem:[#allocation23_spill] sm:$0xff] %v11961_v26 }
 0x70f   : > { %v11963_v46 = vpop.f32.mrf.mxu1 }
 0x710   : > { %14425 = vst [vmem:[#allocation24_spill] sm:$0xff] %v11963_v46 }
 0x711   : > { %v11965_v35 = vpop.f32.mrf.mxu1 }
 0x712   : > { %14426 = vst [vmem:[#allocation25_spill] sm:$0xff] %v11965_v35 }
 0x713   : > { %v11967_v17 = vpop.f32.mrf.mxu1 }
 0x714   : > { %14427 = vst [vmem:[#allocation26_spill] sm:$0xff] %v11967_v17 }
 0x715   : > { %v11969_v19 = vpop.f32.mrf.mxu1 }
 0x716   : > { %14428 = vst [vmem:[#allocation27_spill] sm:$0xff] %v11969_v19 }
 0x717   : > { %v11971_v7 = vpop.f32.mrf.mxu1 }
 0x718   : > { %14429 = vst [vmem:[#allocation28_spill] sm:$0xff] %v11971_v7 }
 0x719   : > { %v11973_v10 = vpop.f32.mrf.mxu1 }
 0x71a   : > { %14430 = vst [vmem:[#allocation29_spill] sm:$0xff] %v11973_v10 }
 0x71b   : > { %v11975_v29 = vpop.f32.mrf.mxu1 }
 0x71c   : > { %14431 = vst [vmem:[#allocation30_spill] sm:$0xff] %v11975_v29 }
 0x71d   : > { %v11977_v42 = vpop.f32.mrf.mxu1 }
 0x71e   : > { %14432 = vst [vmem:[#allocation31_spill] sm:$0xff] %v11977_v42  ;;  %v7906_v42 = vld [vmem:[%s14356_s1 + $0x268] sm:$0xff] }
 0x71f   : > { %v11979_v18 = vpop.f32.mrf.mxu1 }
 0x720   : > { %14433 = vst [vmem:[#allocation32_spill] sm:$0xff] %v11979_v18 }
 0x721   : > { %v11981_v9 = vpop.f32.mrf.mxu1 }
 0x722   : > { %14434 = vst [vmem:[#allocation33_spill] sm:$0xff] %v11981_v9 }
 0x723   : > { %v11983_v11 = vpop.f32.mrf.mxu1 }
 0x724   : > { %14435 = vst [vmem:[#allocation34_spill] sm:$0xff] %v11983_v11 }
 0x725   : > { %v11985_v21 = vpop.f32.mrf.mxu1 }
 0x726   : > { %14436 = vst [vmem:[#allocation35_spill] sm:$0xff] %v11985_v21 }
 0x727   : > { %v11987_v34 = vpop.f32.mrf.mxu1 }
 0x728   : > { %14437 = vst [vmem:[#allocation36_spill] sm:$0xff] %v11987_v34 }
 0x729   : > { %v11989_v37 = vpop.f32.mrf.mxu1 }
 0x72a   : > { %14438 = vst [vmem:[#allocation37_spill] sm:$0xff] %v11989_v37 }
 0x72b   : > { %v11991_v27 = vpop.f32.mrf.mxu1 }
 0x72d   : > { %v11993_v40 = vpop.f32.mrf.mxu1 }
 0x72f   : > { %v11995_v12 = vpop.f32.mrf.mxu1 }
 0x731   : > { %v11997_v16 = vpop.f32.mrf.mxu1 }
 0x733   : > { %v11999_v39 = vpop.f32.mrf.mxu1 }
 0x735   : > { %v12001_v32 = vpop.f32.mrf.mxu1 }
 0x737   : > { %v12003_v53 = vpop.f32.mrf.mxu1 }
 0x739   : > { %v12005_v15 = vpop.f32.mrf.mxu1 }
 0x73b   : > { %v9546_v44 = vpop.f32.mrf.mxu1 }
 0x73c   : > { %v3640_v28 = vadd.f32 %v9546_v44, %v3477_v56  ;;  %v7699_v44 = vld [vmem:[%s14358_s3 + $0x490] sm:$0xff] }
 0x73d   : > { %v3634_v13 = vpop.f32.mrf.mxu1  ;;  %9558 = vmatprep.mubr.msk.f32.mxu1 %vm682_vm2, %v7699_v44 }
 0x73e   : > { %v3674_v24 = vmin.f32 %v3640_v28, 0.0  ;;  %v3635_v51 = vadd.f32 %v3634_v13, %v3472_v22  ;;  %vm3662_vm14 = vcmp.gt.f32.partialorder %v3640_v28, 0.0 }
 0x73f   : > { %v9549_v3 = vpop.f32.mrf.mxu1 }
 0x740   : > { %v3673_v49 = vmin.f32 %v3635_v51, 0.0  ;;  %v3650_v41 = vadd.f32 %v9549_v3, %v3487_v52  ;;  %v3695_v45 = vmul.f32 1.442695, %v3674_v24  ;;  %vm3661_vm15 = vcmp.gt.f32.partialorder %v3635_v51, 0.0 }
 0x741   : > { %v3644_v30 = vpop.f32.mrf.mxu1 }
 0x742   : > { %v3676_v36 = vmin.f32 %v3650_v41, 0.0  ;;  %v3645_v47 = vadd.f32 %v3644_v30, %v3482_v62  ;;  %v3693_v21 = vmul.f32 1.442695, %v3673_v49  ;;  %9967 = vpow2.f32 %v3695_v45 }
 0x743   : > { %vm3664_vm12 = vcmp.gt.f32.partialorder %v3650_v41, 0.0 }
 0x744   : > { %v3699_v11 = vmul.f32 1.442695, %v3676_v36  ;;  %v3675_v37 = vmin.f32 %v3645_v47, 0.0  ;;  %vm3663_vm13 = vcmp.gt.f32.partialorder %v3645_v47, 0.0 }
 0x746   : > { %9969 = vpow2.f32 %v3699_v11  ;;  %v3697_v34 = vmul.f32 1.442695, %v3675_v37 }
 0x747   : > { %9971 = vpow2.f32 %v3693_v21 }
 0x748   : > { %9973 = vpow2.f32 %v3697_v34 }
 0x74f   : > { %v9968_v13 = vpop.eup %9967 }
 0x750   : > { %v7770_v36 = vadd.f32 -1.0, %v9968_v13  ;;  %v7702_v13 = vld [vmem:[%s14358_s3 + $0x4a8] sm:$0xff] }
 0x752   : > { %v12019_v11 = vsel %vm3662_vm14, %v3640_v28, %v7770_v36  ;;  %v7808_v28 = vld [vmem:[%s14357_s2 + $0x228] sm:$0xff] }
 0x753   : > { %v9970_v56 = vpop.eup %9969  ;;  %v7714_v36 = vld [vmem:[%s14358_s3 + $0x508] sm:$0xff] }
 0x754   : > { %v7772_v24 = vadd.f32 -1.0, %v9970_v56  ;;  %v9972_v22 = vpop.eup %9971  ;;  %v7861_v56 = vld [vmem:[%s10188_s29 + $0xc8] sm:$0xf] }
 0x755   : > { %v9974_v30 = vpop.eup %9973  ;;  %v7769_v3 = vadd.f32 -1.0, %v9972_v22  ;;  %v7708_v22 = vld [vmem:[%s14358_s3 + $0x4d8] sm:$0xff] }
 0x756   : > { %v12011_v49 = vsel %vm3664_vm12, %v3650_v41, %v7772_v24  ;;  %v7771_v62 = vadd.f32 -1.0, %v9974_v30  ;;  %v7810_v41 = vld [vmem:[%s14357_s2 + $0x238] sm:$0xff]  ;;  %v7705_v24 = vld [vmem:[%s14358_s3 + $0x4c0] sm:$0xff]  ;;  %v7711_v30 = vld [vmem:[%s14358_s3 + $0x4f0] sm:$0xff] }
 0x757   : > { %3795 = vrot.lane.b32.xlu0 %v12011_v49, %s10132_s11  ;;  %v12026_v21 = vsel %vm3661_vm15, %v3635_v51, %v7769_v3  ;;  %v7807_v51 = vld [vmem:[%s14357_s2 + $0x220] sm:$0xff]  ;;  %v7794_v3 = vld [vmem:[%s14356_s1 + $0x218] sm:$0xff] }
 0x758   : > { %v12015_v45 = vsel %vm3663_vm13, %v3645_v47, %v7771_v62  ;;  %v7809_v47 = vld [vmem:[%s14357_s2 + $0x230] sm:$0xff]  ;;  %v7717_v62 = vld [vmem:[%s14358_s3 + $0x520] sm:$0xff] }
 0x759   : > { %3793 = vrot.lane.b32.xlu1 %v12015_v45, %s10132_s11 }
 0x75b   : > { %3791 = vrot.lane.b32.xlu0 %v12019_v11, %s10132_s11 }
 0x75d   : > { %3789 = vrot.lane.b32.xlu1 %v12026_v21, %s10132_s11 }
 0x75f   : > { %4267 = vperm.xlu0 %9869, %v7810_v41   ;;  %v7795_v41 = vld [vmem:[%s14356_s1 + $0x220] sm:$0xff] }
 0x761   : > { %4262 = vperm.xlu1 %9870, %v7809_v47   ;;  %v7796_v47 = vld [vmem:[%s14356_s1 + $0x228] sm:$0xff] }
 0x763   : > { %4257 = vperm.xlu0 %9869, %v7808_v28   ;;  %v7797_v28 = vld [vmem:[%s14356_s1 + $0x230] sm:$0xff] }
 0x765   : > { %4252 = vperm.xlu1 %9870, %v7807_v51   ;;  %v7798_v51 = vld [vmem:[%s14356_s1 + $0x238] sm:$0xff] }
 0x7c9   : > { %v3796_v34 = vpop.permute.xlu0 %3795 }
 0x7ca   : > { %9550 = vmatprep.subr.mxu1 %v3796_v34 }
 0x7cb   : > { %9551 = vmatpush3.msra.mxu1 %v3796_v34  ;;  %v3794_v37 = vpop.permute.xlu1 %3793 }
 0x7cc   : > { %9552 = vmatprep.subr.mxu1 %v3794_v37 }
 0x7cd   : > { %v3792_v52 = vpop.permute.xlu0 %3791  ;;  %9553 = vmatpush3.msra.mxu1 %v3794_v37 }
 0x7ce   : > { %9554 = vmatprep.subr.mxu1 %v3792_v52 }
 0x7cf   : > { %9555 = vmatpush3.msra.mxu1 %v3792_v52  ;;  %v3790_v44 = vpop.permute.xlu1 %3789 }
 0x7d0   : > { %9556 = vmatprep.subr.mxu1 %v3790_v44 }
 0x7d1   : > { %9557 = vmatpush3.msra.mxu1 %v3790_v44 }
 0x7d2   : > { %9559 = vmatmul.mubr.msk.f32.vlgmr.msra.gmra.mxu1 %vm682_vm2, %v7702_v13  ;;  %9576 = vmatprep.subr.msk.mxu1 %vm397_vm1, %v7861_v56 }
 0x7d3   : > { %9577 = vmatpush3.msk.msra.mxu1 %vm397_vm1, %v7861_v56  ;;  %9561 = vmatprep.mubr.msk.f32.mxu1 %vm682_vm2, %v7705_v24 }
 0x7d4   : > { %9578 = vmatprep.subr.mxu1 %v11697_v6 }
 0x7d5   : > { %9579 = vmatpush3.msra.mxu1 %v11697_v6  ;;  %v7720_v6 = vld [vmem:[%s14358_s3 + $0x538] sm:$0xff] }
 0x7d6   : > { %9562 = vmatmul.mubr.msk.f32.gmra.mxu1 %vm682_vm2, %v7708_v22  ;;  %9580 = vmatprep.subr.mxu1 %v11705_v59 }
 0x7d7   : > { %9581 = vmatpush3.msra.mxu1 %v11705_v59  ;;  %9564 = vmatprep.mubr.msk.f32.mxu1 %vm682_vm2, %v7711_v30  ;;  %v7723_v59 = vld [vmem:[%s14358_s3 + $0x550] sm:$0xff] }
 0x7d8   : > { %9582 = vmatprep.subr.mxu1 %v11714_v8 }
 0x7d9   : > { %9583 = vmatpush3.msra.mxu1 %v11714_v8  ;;  %v7726_v8 = vld [vmem:[%s14358_s3 + $0x568] sm:$0xff] }
 0x7da   : > { %9565 = vmatmul.mubr.msk.f32.gmra.mxu1 %vm682_vm2, %v7714_v36  ;;  %9584 = vmatprep.subr.mxu1 %v11724_v1 }
 0x7db   : > { %9585 = vmatpush3.msra.mxu1 %v11724_v1  ;;  %9567 = vmatprep.mubr.msk.f32.mxu1 %vm682_vm2, %v7717_v62  ;;  %v7729_v1 = vld [vmem:[%s14358_s3 + $0x580] sm:$0xff] }
 0x7dc   : > { %9586 = vmatprep.subr.mxu1 %v11733_v23 }
 0x7dd   : > { %9587 = vmatpush3.msra.mxu1 %v11733_v23  ;;  %v7732_v23 = vld [vmem:[%s14358_s3 + $0x598] sm:$0xff] }
 0x7de   : > { %9568 = vmatmul.mubr.msk.f32.gmra.mxu1 %vm682_vm2, %v7720_v6  ;;  %9588 = vmatprep.subr.mxu1 %v11743_v63 }
 0x7df   : > { %9589 = vmatpush3.msra.mxu1 %v11743_v63  ;;  %9570 = vmatprep.mubr.msk.f32.mxu1 %vm682_vm2, %v7723_v59  ;;  %v7787_v63 = vld [vmem:[%s14356_s1 + $0x1e0] sm:$0xff] }
 0x7e0   : > { %9590 = vmatprep.subr.mxu1 %v11752_v0 }
 0x7e1   : > { %9591 = vmatpush3.msra.mxu1 %v11752_v0  ;;  %v7788_v0 = vld [vmem:[%s14356_s1 + $0x1e8] sm:$0xff] }
 0x7e2   : > { %9571 = vmatmul.mubr.msk.f32.gmra.mxu1 %vm682_vm2, %v7726_v8  ;;  %9592 = vmatprep.subr.mxu1 %v11761_v4 }
 0x7e3   : > { %9593 = vmatpush3.msra.mxu1 %v11761_v4  ;;  %9573 = vmatprep.mubr.msk.f32.mxu1 %vm682_vm2, %v7729_v1  ;;  %v7789_v4 = vld [vmem:[%s14356_s1 + $0x1f0] sm:$0xff] }
 0x7e4   : > { %9594 = vmatprep.subr.mxu1 %v11770_v50 }
 0x7e5   : > { %9595 = vmatpush3.msra.mxu1 %v11770_v50  ;;  %v7790_v50 = vld [vmem:[%s14356_s1 + $0x1f8] sm:$0xff] }
 0x7e6   : > { %9574 = vmatmul.mubr.msk.f32.gmra.mxu1 %vm682_vm2, %v7732_v23  ;;  %9596 = vmatprep.subr.mxu1 %v11779_v2 }
 0x7e7   : > { %9597 = vmatpush3.msra.mxu1 %v11779_v2  ;;  %9602 = vmatprep.mubr.msk.f32.mxu1 %vm360_vm0, %v7787_v63  ;;  %v7791_v2 = vld [vmem:[%s14356_s1 + $0x200] sm:$0xff] }
 0x7e8   : > { %9598 = vmatprep.subr.mxu1 %v11788_v43 }
 0x7e9   : > { %9599 = vmatpush3.msra.mxu1 %v11788_v43  ;;  %v7792_v43 = vld [vmem:[%s14356_s1 + $0x208] sm:$0xff] }
 0x7ea   : > { %9600 = vmatprep.subr.mxu1 %v11796_v58 }
 0x7eb   : > { %9601 = vmatpush3.msra.mxu1 %v11796_v58  ;;  %v7793_v58 = vld [vmem:[%s14356_s1 + $0x210] sm:$0xff] }
 0x7ec   : > { %9603 = vmatmul.mubr.msk.f32.vlgmr.msra.gmra.mxu1 %vm360_vm0, %v7788_v0  ;;  %v4268_v0 = vpop.permute.xlu0 %4267 }
 0x7ed   : > { %9605 = vmatprep.mubr.msk.f32.mxu1 %vm360_vm0, %v7789_v4 }
 0x7f0   : > { %9606 = vmatmul.mubr.msk.f32.gmra.mxu1 %vm360_vm0, %v7790_v50  ;;  %v4263_v50 = vpop.permute.xlu1 %4262 }
 0x7f1   : > { %9608 = vmatprep.mubr.msk.f32.mxu1 %vm360_vm0, %v7791_v2 }
 0x7f4   : > { %9609 = vmatmul.mubr.msk.f32.gmra.mxu1 %vm360_vm0, %v7792_v43 }
 0x7f5   : > { %9611 = vmatprep.mubr.msk.f32.mxu1 %vm360_vm0, %v7793_v58  ;;  %v4258_v58 = vpop.permute.xlu0 %4257 }
 0x7f8   : > { %9612 = vmatmul.mubr.msk.f32.gmra.mxu1 %vm360_vm0, %v7794_v3 }
 0x7f9   : > { %9614 = vmatprep.mubr.msk.f32.mxu1 %vm360_vm0, %v7795_v41 }
 0x7fc   : > { %9615 = vmatmul.mubr.msk.f32.gmra.mxu1 %vm360_vm0, %v7796_v47  ;;  %v4253_v47 = vpop.permute.xlu1 %4252 }
 0x7fd   : > { %9617 = vmatprep.mubr.msk.f32.mxu1 %vm360_vm0, %v7797_v28 }
 0x800   : > { %9618 = vmatmul.mubr.msk.f32.gmra.mxu1 %vm360_vm0, %v7798_v51 }
 0x892   : > { %v12158_v34 = vpop.f32.mrf.mxu1 }
 0x893   : > { %14439 = vst [vmem:[#allocation38_spill] sm:$0xff] %v12158_v34 }
 0x894   : > { %v12160_v37 = vpop.f32.mrf.mxu1 }
 0x895   : > { %14440 = vst [vmem:[#allocation39_spill] sm:$0xff] %v12160_v37 }
 0x896   : > { %v12162_v52 = vpop.f32.mrf.mxu1 }
 0x897   : > { %14441 = vst [vmem:[#allocation40_spill] sm:$0xff] %v12162_v52 }
 0x898   : > { %v12164_v44 = vpop.f32.mrf.mxu1 }
 0x899   : > { %14442 = vst [vmem:[#allocation41_spill] sm:$0xff] %v12164_v44 }
 0x89a   : > { %v12166_v13 = vpop.f32.mrf.mxu1 }
 0x89b   : > { %14443 = vst [vmem:[#allocation42_spill] sm:$0xff] %v12166_v13 }
 0x89c   : > { %v12168_v56 = vpop.f32.mrf.mxu1 }
 0x89d   : > { %14444 = vst [vmem:[#allocation43_spill] sm:$0xff] %v12168_v56 }
 0x89e   : > { %v12170_v24 = vpop.f32.mrf.mxu1 }
 0x89f   : > { %14445 = vst [vmem:[#allocation44_spill] sm:$0xff] %v12170_v24 }
 0x8a0   : > { %v12172_v22 = vpop.f32.mrf.mxu1 }
 0x8a1   : > { %14446 = vst [vmem:[#allocation45_spill] sm:$0xff] %v12172_v22 }
 0x8a2   : > { %v12174_v30 = vpop.f32.mrf.mxu1 }
 0x8a3   : > { %14447 = vst [vmem:[#allocation46_spill] sm:$0xff] %v12174_v30 }
 0x8a4   : > { %v12176_v36 = vpop.f32.mrf.mxu1 }
 0x8a5   : > { %14448 = vst [vmem:[#allocation47_spill] sm:$0xff] %v12176_v36 }
 0x8a6   : > { %v12178_v62 = vpop.f32.mrf.mxu1 }
 0x8a7   : > { %14449 = vst [vmem:[#allocation48_spill] sm:$0xff] %v12178_v62 }
 0x8a8   : > { %v12180_v6 = vpop.f32.mrf.mxu1 }
 0x8a9   : > { %14450 = vst [vmem:[#allocation49_spill] sm:$0xff] %v12180_v6 }
 0x8ac   : > { %v12182_v59 = vpop.f32.mrf.mxu1 }
 0x8ae   : > { %v12184_v8 = vpop.f32.mrf.mxu1 }
 0x8b0   : > { %v12186_v1 = vpop.f32.mrf.mxu1 }
 0x8b2   : > { %v12188_v23 = vpop.f32.mrf.mxu1 }
 0x8b4   : > { %v12190_v63 = vpop.f32.mrf.mxu1 }
 0x8b6   : > { %v12192_v4 = vpop.f32.mrf.mxu1 }
 0x8b8   : > { %v12194_v2 = vpop.f32.mrf.mxu1 }
 0x8ba   : > { %v12196_v43 = vpop.f32.mrf.mxu1 }
 0x8bc   : > { %v9616_v3 = vpop.f32.mrf.mxu1 }
 0x8bd   : > { %v4421_v41 = vadd.f32 %v9616_v3, %v4258_v58  ;;  %v7813_v58 = vld [vmem:[%s14358_s3 + $0x5b0] sm:$0xff] }
 0x8be   : > { %v4415_v28 = vpop.f32.mrf.mxu1  ;;  %9628 = vmatprep.mubr.msk.f32.mxu1 %vm682_vm2, %v7813_v58 }
 0x8bf   : > { %v4455_v51 = vmin.f32 %v4421_v41, 0.0  ;;  %v4416_v62 = vadd.f32 %v4415_v28, %v4253_v47  ;;  %vm4443_vm5 = vcmp.gt.f32.partialorder %v4421_v41, 0.0 }
 0x8c0   : > { %v9619_v6 = vpop.f32.mrf.mxu1 }
 0x8c1   : > { %v4454_v30 = vmin.f32 %v4416_v62, 0.0  ;;  %v4431_v36 = vadd.f32 %v9619_v6, %v4268_v0  ;;  %v4476_v24 = vmul.f32 1.442695, %v4455_v51  ;;  %vm4442_vm6 = vcmp.gt.f32.partialorder %v4416_v62, 0.0 }
 0x8c2   : > { %v4425_v22 = vpop.f32.mrf.mxu1 }
 0x8c3   : > { %v4457_v13 = vmin.f32 %v4431_v36, 0.0  ;;  %v4426_v56 = vadd.f32 %v4425_v22, %v4263_v50  ;;  %v4474_v52 = vmul.f32 1.442695, %v4454_v30  ;;  %9975 = vpow2.f32 %v4476_v24  ;;  %v7924_v24 = vld [vmem:[%s14357_s2 + $0x298] sm:$0xff]  ;;  %v7922_v50 = vld [vmem:[%s14357_s2 + $0x288] sm:$0xff] }
 0x8c4   : > { %vm4445_vm3 = vcmp.gt.f32.partialorder %v4431_v36, 0.0 }
 0x8c5   : > { %v4480_v34 = vmul.f32 1.442695, %v4457_v13  ;;  %v4456_v44 = vmin.f32 %v4426_v56, 0.0  ;;  %vm4444_vm4 = vcmp.gt.f32.partialorder %v4426_v56, 0.0 }
 0x8c7   : > { %9977 = vpow2.f32 %v4480_v34  ;;  %v4478_v37 = vmul.f32 1.442695, %v4456_v44 }
 0x8c8   : > { %9979 = vpow2.f32 %v4474_v52 }
 0x8c9   : > { %9981 = vpow2.f32 %v4478_v37 }
 0x8d0   : > { %v9976_v3 = vpop.eup %9975 }
 0x8d1   : > { %v7884_v13 = vadd.f32 -1.0, %v9976_v3  ;;  %v7816_v3 = vld [vmem:[%s14358_s3 + $0x5c8] sm:$0xff] }
 0x8d3   : > { %v12210_v44 = vsel %vm4443_vm5, %v4421_v41, %v7884_v13  ;;  %v7822_v13 = vld [vmem:[%s14358_s3 + $0x5f8] sm:$0xff] }
 0x8d4   : > { %v9978_v6 = vpop.eup %9977 }
 0x8d5   : > { %v7886_v0 = vadd.f32 -1.0, %v9978_v6  ;;  %v9980_v47 = vpop.eup %9979  ;;  %v7975_v6 = vld [vmem:[%s10188_s29 + $0x130] sm:$0xf] }
 0x8d6   : > { %v9982_v22 = vpop.eup %9981  ;;  %v7883_v52 = vadd.f32 -1.0, %v9980_v47  ;;  %v12238_v47 = vld [vmem:[%s10188_s29 + $0x128] sm:$0xff] }
 0x8d7   : > { %v12202_v30 = vsel %vm4445_vm3, %v4431_v36, %v7886_v0  ;;  %v7885_v34 = vadd.f32 -1.0, %v9982_v22  ;;  %v7819_v0 = vld [vmem:[%s14358_s3 + $0x5e0] sm:$0xff] }
 0x8d8   : > { %4576 = vrot.lane.b32.xlu0 %v12202_v30, %s10132_s11  ;;  %v12217_v36 = vsel %vm4442_vm6, %v4416_v62, %v7883_v52  ;;  %v7921_v62 = vld [vmem:[%s14357_s2 + $0x280] sm:$0xff]  ;;  %v12256_v52 = vld [vmem:[%s10188_s29 + $0x118] sm:$0xff] }
 0x8d9   : > { %v12206_v37 = vsel %vm4444_vm4, %v4426_v56, %v7885_v34  ;;  %v7923_v56 = vld [vmem:[%s14357_s2 + $0x290] sm:$0xff]  ;;  %v12245_v22 = vld [vmem:[%s10188_s29 + $0x120] sm:$0xff] }
 0x8da   : > { %4574 = vrot.lane.b32.xlu1 %v12206_v37, %s10132_s11  ;;  %v7825_v34 = vld [vmem:[%s14358_s3 + $0x610] sm:$0xff] }
 0x8dc   : > { %4572 = vrot.lane.b32.xlu0 %v12210_v44, %s10132_s11 }
 0x8de   : > { %4570 = vrot.lane.b32.xlu1 %v12217_v36, %s10132_s11 }
 0x8e0   : > { %5049 = vperm.xlu0 %9869, %v7924_v24   ;;  %v12263_v24 = vld [vmem:[%s10188_s29 + $0x110] sm:$0xff] }
 0x8e2   : > { %5044 = vperm.xlu1 %9870, %v7923_v56   ;;  %v7828_v56 = vld [vmem:[%s14358_s3 + $0x628] sm:$0xff] }
 0x8e4   : > { %5039 = vperm.xlu0 %9869, %v7922_v50   ;;  %v7831_v50 = vld [vmem:[%s14358_s3 + $0x640] sm:$0xff] }
 0x8e6   : > { %5034 = vperm.xlu1 %9870, %v7921_v62   ;;  %v12274_v62 = vld [vmem:[%s10188_s29 + $0x108] sm:$0xff] }
 0x94a   : > { %v4577_v41 = vpop.permute.xlu0 %4576 }
 0x94b   : > { %9620 = vmatprep.subr.mxu1 %v4577_v41 }
 0x94c   : > { %9621 = vmatpush3.msra.mxu1 %v4577_v41  ;;  %v4575_v28 = vpop.permute.xlu1 %4574  ;;  %v12281_v41 = vld [vmem:[%s10188_s29 + $0x100] sm:$0xff] }
 0x94d   : > { %9622 = vmatprep.subr.mxu1 %v4575_v28 }
 0x94e   : > { %v4573_v51 = vpop.permute.xlu0 %4572  ;;  %9623 = vmatpush3.msra.mxu1 %v4575_v28  ;;  %v7834_v28 = vld [vmem:[%s14358_s3 + $0x658] sm:$0xff] }
 0x94f   : > { %9624 = vmatprep.subr.mxu1 %v4573_v51 }
 0x950   : > { %9625 = vmatpush3.msra.mxu1 %v4573_v51  ;;  %v4571_v58 = vpop.permute.xlu1 %4570  ;;  %v7837_v51 = vld [vmem:[%s14358_s3 + $0x670] sm:$0xff] }
 0x951   : > { %9626 = vmatprep.subr.mxu1 %v4571_v58 }
 0x952   : > { %9627 = vmatpush3.msra.mxu1 %v4571_v58  ;;  %v12292_v58 = vld [vmem:[%s10188_s29 + $0xf8] sm:$0xff] }
 0x953   : > { %9629 = vmatmul.mubr.msk.f32.vlgmr.msra.gmra.mxu1 %vm682_vm2, %v7816_v3  ;;  %9646 = vmatprep.subr.msk.mxu1 %vm397_vm1, %v7975_v6  ;;  %v12299_v3 = vld [vmem:[%s10188_s29 + $0xf0] sm:$0xff] }
 0x954   : > { %9647 = vmatpush3.msk.msra.mxu1 %vm397_vm1, %v7975_v6  ;;  %9631 = vmatprep.mubr.msk.f32.mxu1 %vm682_vm2, %v7819_v0  ;;  %v7840_v6 = vld [vmem:[%s14358_s3 + $0x688] sm:$0xff]  ;;  %v7843_v0 = vld [vmem:[%s14358_s3 + $0x6a0] sm:$0xff] }
 0x955   : > { %9648 = vmatprep.subr.mxu1 %v12238_v47 }
 0x956   : > { %9649 = vmatpush3.msra.mxu1 %v12238_v47 }
 0x957   : > { %9650 = vmatprep.subr.mxu1 %v12245_v22  ;;  %9632 = vmatmul.mubr.msk.f32.gmra.mxu1 %vm682_vm2, %v7822_v13  ;;  %v12310_v13 = vld [vmem:[%s10188_s29 + $0xe8] sm:$0xff] }
 0x958   : > { %9651 = vmatpush3.msra.mxu1 %v12245_v22  ;;  %9634 = vmatprep.mubr.msk.f32.mxu1 %vm682_vm2, %v7825_v34  ;;  %v12317_v34 = vld [vmem:[%s10188_s29 + $0xe0] sm:$0xff] }
 0x959   : > { %9652 = vmatprep.subr.mxu1 %v12256_v52 }
 0x95a   : > { %9653 = vmatpush3.msra.mxu1 %v12256_v52 }
 0x95b   : > { %9654 = vmatprep.subr.mxu1 %v12263_v24  ;;  %9635 = vmatmul.mubr.msk.f32.gmra.mxu1 %vm682_vm2, %v7828_v56  ;;  %v7846_v56 = vld [vmem:[%s14358_s3 + $0x6b8] sm:$0xff] }
 0x95c   : > { %9655 = vmatpush3.msra.mxu1 %v12263_v24  ;;  %9637 = vmatprep.mubr.msk.f32.mxu1 %vm682_vm2, %v7831_v50  ;;  %v7901_v50 = vld [vmem:[%s14356_s1 + $0x240] sm:$0xff] }
 0x95d   : > { %9656 = vmatprep.subr.mxu1 %v12274_v62 }
 0x95e   : > { %9657 = vmatpush3.msra.mxu1 %v12274_v62 }
 0x95f   : > { %9658 = vmatprep.subr.mxu1 %v12281_v41  ;;  %9638 = vmatmul.mubr.msk.f32.gmra.mxu1 %vm682_vm2, %v7834_v28  ;;  %v12328_v28 = vld [vmem:[%s10188_s29 + $0xd8] sm:$0xff] }
 0x960   : > { %9659 = vmatpush3.msra.mxu1 %v12281_v41  ;;  %9640 = vmatprep.mubr.msk.f32.mxu1 %vm682_vm2, %v7837_v51  ;;  %v12334_v51 = vld [vmem:[%s10188_s29 + $0xd0] sm:$0xff] }
 0x961   : > { %9660 = vmatprep.subr.mxu1 %v12292_v58 }
 0x962   : > { %9661 = vmatpush3.msra.mxu1 %v12292_v58 }
 0x963   : > { %9662 = vmatprep.subr.mxu1 %v12299_v3  ;;  %9641 = vmatmul.mubr.msk.f32.gmra.mxu1 %vm682_vm2, %v7840_v6  ;;  %v7902_v6 = vld [vmem:[%s14356_s1 + $0x248] sm:$0xff] }
 0x964   : > { %9663 = vmatpush3.msra.mxu1 %v12299_v3  ;;  %9643 = vmatprep.mubr.msk.f32.mxu1 %vm682_vm2, %v7843_v0  ;;  %v7903_v0 = vld [vmem:[%s14356_s1 + $0x250] sm:$0xff] }
 0x965   : > { %9664 = vmatprep.subr.mxu1 %v12310_v13 }
 0x966   : > { %9665 = vmatpush3.msra.mxu1 %v12310_v13 }
 0x967   : > { %9666 = vmatprep.subr.mxu1 %v12317_v34  ;;  %9644 = vmatmul.mubr.msk.f32.gmra.mxu1 %vm682_vm2, %v7846_v56  ;;  %v7904_v56 = vld [vmem:[%s14356_s1 + $0x258] sm:$0xff] }
 0x968   : > { %9667 = vmatpush3.msra.mxu1 %v12317_v34  ;;  %9672 = vmatprep.mubr.msk.f32.mxu1 %vm360_vm0, %v7901_v50  ;;  %v7905_v50 = vld [vmem:[%s14356_s1 + $0x260] sm:$0xff] }
 0x969   : > { %9668 = vmatprep.subr.mxu1 %v12328_v28 }
 0x96a   : > { %9669 = vmatpush3.msra.mxu1 %v12328_v28 }
 0x96b   : > { %9670 = vmatprep.subr.mxu1 %v12334_v51 }
 0x96c   : > { %9671 = vmatpush3.msra.mxu1 %v12334_v51 }
 0x96d   : > { %9673 = vmatmul.mubr.msk.f32.vlgmr.msra.gmra.mxu1 %vm360_vm0, %v7902_v6  ;;  %v7907_v6 = vld [vmem:[%s14356_s1 + $0x270] sm:$0xff] }
 0x96e   : > { %9675 = vmatprep.mubr.msk.f32.mxu1 %vm360_vm0, %v7903_v0  ;;  %v7908_v0 = vld [vmem:[%s14356_s1 + $0x278] sm:$0xff] }
 0x971   : > { %9676 = vmatmul.mubr.msk.f32.gmra.mxu1 %vm360_vm0, %v7904_v56  ;;  %v7909_v56 = vld [vmem:[%s14356_s1 + $0x280] sm:$0xff] }
 0x972   : > { %9678 = vmatprep.mubr.msk.f32.mxu1 %vm360_vm0, %v7905_v50  ;;  %v7910_v50 = vld [vmem:[%s14356_s1 + $0x288] sm:$0xff] }
 0x975   : > { %9679 = vmatmul.mubr.msk.f32.gmra.mxu1 %vm360_vm0, %v7906_v42  ;;  %v7911_v42 = vld [vmem:[%s14356_s1 + $0x290] sm:$0xff] }
 0x976   : > { %9681 = vmatprep.mubr.msk.f32.mxu1 %vm360_vm0, %v7907_v6  ;;  %v7912_v6 = vld [vmem:[%s14356_s1 + $0x298] sm:$0xff] }
 0x979   : > { %9682 = vmatmul.mubr.msk.f32.gmra.mxu1 %vm360_vm0, %v7908_v0 }
 0x97a   : > { %9684 = vmatprep.mubr.msk.f32.mxu1 %vm360_vm0, %v7909_v56 }
 0x97d   : > { %9685 = vmatmul.mubr.msk.f32.gmra.mxu1 %vm360_vm0, %v7910_v50 }
 0x97e   : > { %9687 = vmatprep.mubr.msk.f32.mxu1 %vm360_vm0, %v7911_v42 }
 0x981   : > { %9688 = vmatmul.mubr.msk.f32.gmra.mxu1 %vm360_vm0, %v7912_v6 }
 0xa13   : > { %v12385_v0 = vpop.f32.mrf.mxu1 }
 0xa14   : > { %14451 = vst [vmem:[#allocation50_spill] sm:$0xff] %v12385_v0 }
 0xa15   : > { %v12387_v56 = vpop.f32.mrf.mxu1 }
 0xa16   : > { %14452 = vst [vmem:[#allocation51_spill] sm:$0xff] %v12387_v56 }
 0xa17   : > { %v12389_v29 = vpop.f32.mrf.mxu1 }
 0xa18   : > { %14453 = vst [vmem:[#allocation52_spill] sm:$0xff] %v12389_v29 }
 0xa19   : > { %v12391_v9 = vpop.f32.mrf.mxu1 }
 0xa1a   : > { %14454 = vst [vmem:[#allocation53_spill] sm:$0xff] %v12391_v9 }
 0xa1b   : > { %v12393_v18 = vpop.f32.mrf.mxu1 }
 0xa1c   : > { %14455 = vst [vmem:[#allocation54_spill] sm:$0xff] %v12393_v18 }
 0xa1d   : > { %v12395_v19 = vpop.f32.mrf.mxu1 }
 0xa1e   : > { %14456 = vst [vmem:[#allocation55_spill] sm:$0xff] %v12395_v19 }
 0xa1f   : > { %v12397_v50 = vpop.f32.mrf.mxu1 }
 0xa20   : > { %14457 = vst [vmem:[#allocation56_spill] sm:$0xff] %v12397_v50  ;;  %v5050_v50 = vpop.permute.xlu0 %5049 }
 0xa21   : > { %v12399_v42 = vpop.f32.mrf.mxu1 }
 0xa22   : > { %14458 = vst [vmem:[#allocation57_spill] sm:$0xff] %v12399_v42 }
 0xa23   : > { %v12401_v17 = vpop.f32.mrf.mxu1 }
 0xa24   : > { %14459 = vst [vmem:[#allocation58_spill] sm:$0xff] %v12401_v17  ;;  %v5045_v17 = vpop.permute.xlu1 %5044 }
 0xa25   : > { %v12403_v10 = vpop.f32.mrf.mxu1 }
 0xa26   : > { %14460 = vst [vmem:[#allocation59_spill] sm:$0xff] %v12403_v10 }
 0xa27   : > { %v12405_v6 = vpop.f32.mrf.mxu1 }
 0xa28   : > { %14461 = vst [vmem:[#allocation60_spill] sm:$0xff] %v12405_v6  ;;  %v5040_v6 = vpop.permute.xlu0 %5039  ;;  %v5035_v5 = vpop.permute.xlu1 %5034 }
 0xa29   : > { %v12407_v0 = vpop.f32.mrf.mxu1 }
 0xa2a   : > { %14462 = vst [vmem:[#allocation61_spill] sm:$0xff] %v12407_v0 }
 0xa2d   : > { %v12409_v56 = vpop.f32.mrf.mxu1 }
 0xa2e   : > { %14463 = vst [vmem:[#allocation62_spill] sm:$0xff] %v12409_v56 }
 0xa2f   : > { %v12411_v29 = vpop.f32.mrf.mxu1 }
 0xa30   : > { %14464 = vst [vmem:[#allocation63_spill] sm:$0xff] %v12411_v29 }
 0xa31   : > { %v12413_v9 = vpop.f32.mrf.mxu1 }
 0xa33   : > { %v12415_v18 = vpop.f32.mrf.mxu1 }
 0xa35   : > { %v12417_v19 = vpop.f32.mrf.mxu1 }
 0xa36   : > { %14465 = vst [vmem:[#allocation64_spill] sm:$0xff] %v12417_v19 }
 0xa37   : > { %v12419_v42 = vpop.f32.mrf.mxu1 }
 0xa38   : > { %14466 = vst [vmem:[#allocation65_spill] sm:$0xff] %v12419_v42 }
 0xa39   : > { %v12421_v7 = vpop.f32.mrf.mxu1 }
 0xa3b   : > { %v12423_v10 = vpop.f32.mrf.mxu1 }
 0xa3d   : > { %v9686_v0 = vpop.f32.mrf.mxu1 }
 0xa3e   : > { %v5203_v26 = vadd.f32 %v9686_v0, %v5040_v6  ;;  %v7689_v6 = vld [vmem:[%s14357_s2 + $0x1a0] sm:$0xff] }
 0xa3f   : > { %v5197_v35 = vpop.f32.mrf.mxu1 }
 0xa40   : > { %v5237_v46 = vmin.f32 %v5203_v26, 0.0  ;;  %v5198_v61 = vadd.f32 %v5197_v35, %v5035_v5  ;;  %v7927_v5 = vld [vmem:[%s14358_s3 + $0x6d0] sm:$0xff]  ;;  %vm5225_vm9 = vcmp.gt.f32.partialorder %v5203_v26, 0.0 }
 0xa41   : > { %v9689_v20 = vpop.f32.mrf.mxu1  ;;  %9698 = vmatprep.mubr.msk.f32.mxu1 %vm682_vm2, %v7927_v5  ;;  %v7806_v5 = vld [vmem:[%s14357_s2 + $0x218] sm:$0xff] }
 0xa42   : > { %v5236_v60 = vmin.f32 %v5198_v61, 0.0  ;;  %v5213_v38 = vadd.f32 %v9689_v20, %v5050_v50  ;;  %v5258_v25 = vmul.f32 1.442695, %v5237_v46  ;;  %vm5224_vm10 = vcmp.gt.f32.partialorder %v5198_v61, 0.0  ;;  %v7687_v50 = vld [vmem:[%s14357_s2 + $0x190] sm:$0xff] }
 0xa43   : > { %v5207_v14 = vpop.f32.mrf.mxu1 }
 0xa44   : > { %v5239_v31 = vmin.f32 %v5213_v38, 0.0  ;;  %v5208_v57 = vadd.f32 %v5207_v14, %v5045_v17  ;;  %v5256_v29 = vmul.f32 1.442695, %v5236_v60  ;;  %9983 = vpow2.f32 %v5258_v25 }
 0xa45   : > { %vm5227_vm7 = vcmp.gt.f32.partialorder %v5213_v38, 0.0 }
 0xa46   : > { %v5262_v42 = vmul.f32 1.442695, %v5239_v31  ;;  %v5238_v56 = vmin.f32 %v5208_v57, 0.0  ;;  %vm5226_vm8 = vcmp.gt.f32.partialorder %v5208_v57, 0.0 }
 0xa48   : > { %9985 = vpow2.f32 %v5262_v42  ;;  %v5260_v19 = vmul.f32 1.442695, %v5238_v56  ;;  %v7686_v42 = vld [vmem:[%s14357_s2 + $0x188] sm:$0xff] }
 0xa49   : > { %9987 = vpow2.f32 %v5256_v29 }
 0xa4a   : > { %9989 = vpow2.f32 %v5260_v19 }
 0xa51   : > { %v9984_v0 = vpop.eup %9983 }
 0xa52   : > { %v7998_v31 = vadd.f32 -1.0, %v9984_v0  ;;  %v7685_v0 = vld [vmem:[%s14357_s2 + $0x180] sm:$0xff] }
 0xa54   : > { %v12437_v29 = vsel %vm5225_vm9, %v5203_v26, %v7998_v31  ;;  %v7691_v26 = vld [vmem:[%s14357_s2 + $0x1b0] sm:$0xff]  ;;  %v7800_v31 = vld [vmem:[%s14357_s2 + $0x1e8] sm:$0xff] }
 0xa55   : > { %v9986_v35 = vpop.eup %9985 }
 0xa56   : > { %v8000_v20 = vadd.f32 -1.0, %v9986_v35  ;;  %v9988_v46 = vpop.eup %9987  ;;  %v7802_v35 = vld [vmem:[%s14357_s2 + $0x1f8] sm:$0xff] }
 0xa57   : > { %v9990_v14 = vpop.eup %9989  ;;  %v7997_v19 = vadd.f32 -1.0, %v9988_v46  ;;  %v7801_v46 = vld [vmem:[%s14357_s2 + $0x1f0] sm:$0xff] }
 0xa58   : > { %v12429_v60 = vsel %vm5227_vm7, %v5213_v38, %v8000_v20  ;;  %v7999_v25 = vadd.f32 -1.0, %v9990_v14  ;;  %v7692_v38 = vld [vmem:[%s14357_s2 + $0x1b8] sm:$0xff]  ;;  %v7805_v20 = vld [vmem:[%s14357_s2 + $0x210] sm:$0xff]  ;;  %v7804_v14 = vld [vmem:[%s14357_s2 + $0x208] sm:$0xff] }
 0xa59   : > { %5358 = vrot.lane.b32.xlu0 %v12429_v60, %s10132_s11  ;;  %v12444_v56 = vsel %vm5224_vm10, %v5198_v61, %v7997_v19  ;;  %v7690_v61 = vld [vmem:[%s14357_s2 + $0x1a8] sm:$0xff]  ;;  %v7799_v19 = vld [vmem:[%s14357_s2 + $0x1e0] sm:$0xff] }
 0xa5a   : > { %v12433_v17 = vsel %vm5226_vm8, %v5208_v57, %v7999_v25  ;;  %v7688_v57 = vld [vmem:[%s14357_s2 + $0x198] sm:$0xff]  ;;  %v7803_v25 = vld [vmem:[%s14357_s2 + $0x200] sm:$0xff] }
 0xa5b   : > { %5356 = vrot.lane.b32.xlu1 %v12433_v17, %s10132_s11 }
 0xa5d   : > { %5354 = vrot.lane.b32.xlu0 %v12437_v29, %s10132_s11 }
 0xa5f   : > { %5352 = vrot.lane.b32.xlu1 %v12444_v56, %s10132_s11 }
 0xa61   : > { %3466 = vperm.xlu0 %9869, %v7692_v38   ;;  %v7585_v38 = vld [vmem:[%s14358_s3 + $0x370] sm:$0xff] }
 0xa62   : > { %9488 = vmatprep.mubr.msk.f32.mxu0 %vm682_vm2, %v7585_v38 }
 0xa63   : > { %3446 = vperm.xlu1 %9870, %v7688_v57  }
 0xa65   : > { %3461 = vperm.xlu0 %9869, %v7691_v26  }
 0xa67   : > { %3441 = vperm.xlu1 %9870, %v7687_v50   ;;  %v8089_v50 = vld [vmem:[%s10188_s29 + $0x130] sm:$0xf] }
 0xa69   : > { %3456 = vperm.xlu0 %9869, %v7690_v61   ;;  %v7936_v61 = vld [vmem:[%s14358_s3 + $0x718] sm:$0xff] }
 0xa6b   : > { %3436 = vperm.xlu1 %9870, %v7686_v42   ;;  %v7939_v42 = vld [vmem:[%s14358_s3 + $0x730] sm:$0xff] }
 0xa6d   : > { %3451 = vperm.xlu0 %9869, %v7689_v6   ;;  %v7942_v6 = vld [vmem:[%s14358_s3 + $0x748] sm:$0xff] }
 0xa6f   : > { %3431 = vperm.xlu1 %9870, %v7685_v0   ;;  %v7945_v0 = vld [vmem:[%s14358_s3 + $0x760] sm:$0xff] }
 0xa71   : > { %4247 = vperm.xlu0 %9869, %v7806_v5  }
 0xa73   : > { %4227 = vperm.xlu1 %9870, %v7802_v35  }
 0xa75   : > { %4242 = vperm.xlu0 %9869, %v7805_v20  }
 0xa77   : > { %4222 = vperm.xlu1 %9870, %v7801_v46  }
 0xa79   : > { %4237 = vperm.xlu0 %9869, %v7804_v14  }
 0xa7b   : > { %4217 = vperm.xlu1 %9870, %v7800_v31  }
 0xa7d   : > { %4232 = vperm.xlu0 %9869, %v7803_v25  }
 0xa7f   : > { %4212 = vperm.xlu1 %9870, %v7799_v19  }
 0xa81   : > { %3014 = vrot.lane.b32.xlu0 %v11508_v48, %s10132_s11 }
 0xa83   : > { %3012 = vrot.lane.b32.xlu1 %v11517_v54, %s10132_s11 }
 0xa85   : > { %3010 = vrot.lane.b32.xlu0 %v11526_v33, %s10132_s11  ;;  %v7930_v33 = vld [vmem:[%s14358_s3 + $0x6e8] sm:$0xff] }
 0xa87   : > { %3008 = vrot.lane.b32.xlu1 %v11535_v55, %s10132_s11  ;;  %v7933_v55 = vld [vmem:[%s14358_s3 + $0x700] sm:$0xff] }
 0xacb   : > { %v5359_v57 = vpop.permute.xlu0 %5358 }
 0xacc   : > { %9690 = vmatprep.subr.mxu1 %v5359_v57 }
 0xacd   : > { %9691 = vmatpush3.msra.mxu1 %v5359_v57  ;;  %v5357_v48 = vpop.permute.xlu1 %5356 }
 0xace   : > { %9692 = vmatprep.subr.mxu1 %v5357_v48 }
 0xacf   : > { %v5355_v26 = vpop.permute.xlu0 %5354  ;;  %9693 = vmatpush3.msra.mxu1 %v5357_v48 }
 0xad0   : > { %9694 = vmatprep.subr.mxu1 %v5355_v26 }
 0xad1   : > { %9695 = vmatpush3.msra.mxu1 %v5355_v26  ;;  %v5353_v54 = vpop.permute.xlu1 %5352 }
 0xad2   : > { %9696 = vmatprep.subr.mxu1 %v5353_v54 }
 0xad3   : > { %9697 = vmatpush3.msra.mxu1 %v5353_v54  ;;  %v8015_v54 = vld [vmem:[%s14356_s1 + $0x2a0] sm:$0xff] }
 0xad4   : > { %9716 = vmatprep.subr.msk.mxu1 %vm397_vm1, %v8089_v50  ;;  %9699 = vmatmul.mubr.msk.f32.vlgmr.msra.gmra.mxu1 %vm682_vm2, %v7930_v33 }
 0xad5   : > { %9717 = vmatpush3.msk.msra.mxu1 %vm397_vm1, %v8089_v50  ;;  %9701 = vmatprep.mubr.msk.f32.mxu1 %vm682_vm2, %v7933_v55 }
 0xad6   : > { %9718 = vmatprep.subr.mxu1 %v12238_v47 }
 0xad7   : > { %9719 = vmatpush3.msra.mxu1 %v12238_v47 }
 0xad8   : > { %9720 = vmatprep.subr.mxu1 %v12245_v22  ;;  %9702 = vmatmul.mubr.msk.f32.gmra.mxu1 %vm682_vm2, %v7936_v61 }
 0xad9   : > { %9721 = vmatpush3.msra.mxu1 %v12245_v22  ;;  %9704 = vmatprep.mubr.msk.f32.mxu1 %vm682_vm2, %v7939_v42  ;;  %v7948_v22 = vld [vmem:[%s14358_s3 + $0x778] sm:$0xff] }
 0xada   : > { %9722 = vmatprep.subr.mxu1 %v12256_v52 }
 0xadb   : > { %9723 = vmatpush3.msra.mxu1 %v12256_v52 }
 0xadc   : > { %v3467_v5 = vpop.permute.xlu0 %3466  ;;  %9724 = vmatprep.subr.mxu1 %v12263_v24  ;;  %9705 = vmatmul.mubr.msk.f32.gmra.mxu1 %vm682_vm2, %v7942_v6 }
 0xadd   : > { %v12537_v47 = vadd.f32 %v12003_v53, %v3467_v5  ;;  %9725 = vmatpush3.msra.mxu1 %v12263_v24  ;;  %9707 = vmatprep.mubr.msk.f32.mxu1 %vm682_vm2, %v7945_v0  ;;  %v7951_v53 = vld [vmem:[%s14358_s3 + $0x790] sm:$0xff] }
 0xade   : > { %v3447_v20 = vpop.permute.xlu1 %3446  ;;  %9726 = vmatprep.subr.mxu1 %v12274_v62 }
 0xadf   : > { %v3672_v35 = vmin.f32 %v12537_v47, 0.0  ;;  %v12552_v52 = vadd.f32 %v11995_v12, %v3447_v20  ;;  %9727 = vmatpush3.msra.mxu1 %v12274_v62  ;;  %v7954_v12 = vld [vmem:[%s14358_s3 + $0x7a8] sm:$0xff]  ;;  %vm3660_vm11 = vcmp.gt.f32.partialorder %v12537_v47, 0.0 }
 0xae0   : > { %v3462_v46 = vpop.permute.xlu0 %3461  ;;  %9728 = vmatprep.subr.mxu1 %v12281_v41  ;;  %9708 = vmatmul.mubr.msk.f32.gmra.mxu1 %vm682_vm2, %v7948_v22  ;;  %v8017_v22 = vld [vmem:[%s14356_s1 + $0x2b0] sm:$0xff] }
 0xae1   : > { %v3691_v24 = vmul.f32 1.442695, %v3672_v35  ;;  %v12556_v14 = vadd.f32 %v12005_v15, %v3462_v46  ;;  %v3668_v31 = vmin.f32 %v12552_v52, 0.0  ;;  %9729 = vmatpush3.msra.mxu1 %v12281_v41  ;;  %9710 = vmatprep.mubr.msk.f32.mxu1 %vm682_vm2, %v7951_v53  ;;  %v7957_v15 = vld [vmem:[%s14358_s3 + $0x7c0] sm:$0xff]  ;;  %v8018_v46 = vld [vmem:[%s14356_s1 + $0x2b8] sm:$0xff]  ;;  %vm3656_vm12 = vcmp.gt.f32.partialorder %v12552_v52, 0.0 }
 0xae2   : > { %v3442_v25 = vpop.permute.xlu1 %3441  ;;  %9730 = vmatprep.subr.mxu1 %v12292_v58 }
 0xae3   : > { %9991 = vpow2.f32 %v3691_v24  ;;  %v3671_v62 = vmin.f32 %v12556_v14, 0.0  ;;  %v3683_v19 = vmul.f32 1.442695, %v3668_v31  ;;  %v12572_v38 = vadd.f32 %v11997_v16, %v3442_v25  ;;  %9731 = vmatpush3.msra.mxu1 %v12292_v58  ;;  %v7960_v16 = vld [vmem:[%s14358_s3 + $0x7d8] sm:$0xff] }
 0xae4   : > { %v3457_v41 = vpop.permute.xlu0 %3456  ;;  %9732 = vmatprep.subr.mxu1 %v12299_v3  ;;  %9711 = vmatmul.mubr.msk.f32.gmra.mxu1 %vm682_vm2, %v7954_v12  ;;  %vm3659_vm13 = vcmp.gt.f32.partialorder %v12556_v14, 0.0 }
 0xae5   : > { %v3689_v57 = vmul.f32 1.442695, %v3671_v62  ;;  %v12576_v48 = vadd.f32 %v11999_v39, %v3457_v41  ;;  %9993 = vpow2.f32 %v3683_v19  ;;  %v3667_v26 = vmin.f32 %v12572_v38, 0.0  ;;  %9733 = vmatpush3.msra.mxu1 %v12299_v3  ;;  %9713 = vmatprep.mubr.msk.f32.mxu1 %vm682_vm2, %v7957_v15  ;;  %v8020_v41 = vld [vmem:[%s14356_s1 + $0x2c8] sm:$0xff] }
 0xae6   : > { %v3437_v39 = vpop.permute.xlu1 %3436  ;;  %9734 = vmatprep.subr.mxu1 %v12310_v13  ;;  %vm3655_vm14 = vcmp.gt.f32.partialorder %v12572_v38, 0.0 }
 0xae7   : > { %9995 = vpow2.f32 %v3689_v57  ;;  %v3670_v58 = vmin.f32 %v12576_v48, 0.0  ;;  %v3681_v50 = vmul.f32 1.442695, %v3667_v26  ;;  %v12592_v33 = vadd.f32 %v11991_v27, %v3437_v39  ;;  %9735 = vmatpush3.msra.mxu1 %v12310_v13 }
 0xae8   : > { %v3452_v3 = vpop.permute.xlu0 %3451  ;;  %9736 = vmatprep.subr.mxu1 %v12317_v34  ;;  %9714 = vmatmul.mubr.msk.f32.gmra.mxu1 %vm682_vm2, %v7960_v16  ;;  %vm3658_vm15 = vcmp.gt.f32.partialorder %v12576_v48, 0.0 }
 0xae9   : > { %v3687_v55 = vmul.f32 1.442695, %v3670_v58  ;;  %v12596_v61 = vadd.f32 %v12001_v32, %v3452_v3  ;;  %9997 = vpow2.f32 %v3681_v50  ;;  %v3666_v42 = vmin.f32 %v12592_v33, 0.0  ;;  %9737 = vmatpush3.msra.mxu1 %v12317_v34  ;;  %9742 = vmatprep.mubr.msk.f32.mxu1 %vm360_vm0, %v8015_v54  ;;  %v8016_v34 = vld [vmem:[%s14356_s1 + $0x2a8] sm:$0xff]  ;;  %v8022_v3 = vld [vmem:[%s14356_s1 + $0x2d8] sm:$0xff] }
 0xaea   : > { %v3432_v6 = vpop.permute.xlu1 %3431  ;;  %9738 = vmatprep.subr.mxu1 %v12328_v28  ;;  %vm3654_vm3 = vcmp.gt.f32.partialorder %v12592_v33, 0.0 }
 0xaeb   : > { %9999 = vpow2.f32 %v3687_v55  ;;  %v3669_v27 = vmin.f32 %v12596_v61, 0.0  ;;  %v3679_v13 = vmul.f32 1.442695, %v3666_v42  ;;  %v12606_v32 = vadd.f32 %v11993_v40, %v3432_v6  ;;  %9739 = vmatpush3.msra.mxu1 %v12328_v28 }
 0xaec   : > { %v12608_v0 = vpop.permute.xlu0 %4247  ;;  %9740 = vmatprep.subr.mxu1 %v12334_v51  ;;  %vm3657_vm4 = vcmp.gt.f32.partialorder %v12596_v61, 0.0 }
 0xaed   : > { %v3685_v5 = vmul.f32 1.442695, %v3669_v27  ;;  %10001 = vpow2.f32 %v3679_v13  ;;  %v3665_v35 = vmin.f32 %v12606_v32, 0.0  ;;  %9741 = vmatpush3.msra.mxu1 %v12334_v51  ;;  %v8019_v51 = vld [vmem:[%s14356_s1 + $0x2c0] sm:$0xff]  ;;  %vm3653_vm5 = vcmp.gt.f32.partialorder %v12606_v32, 0.0 }
 0xaee   : > { %v12620_v40 = vpop.permute.xlu1 %4227  ;;  %9743 = vmatmul.mubr.msk.f32.vlgmr.msra.gmra.mxu1 %vm360_vm0, %v8016_v34 }
 0xaef   : > { %10003 = vpow2.f32 %v3685_v5  ;;  %v3677_v20 = vmul.f32 1.442695, %v3665_v35  ;;  %9745 = vmatprep.mubr.msk.f32.mxu1 %vm360_vm0, %v8017_v22  ;;  %v8024_v22 = vld [vmem:[%s14356_s1 + $0x2e8] sm:$0xff] }
 0xaf0   : > { %v9992_v28 = vpop.eup %9991  ;;  %v12623_v53 = vpop.permute.xlu0 %4242 }
 0xaf1   : > { %v7768_v24 = vadd.f32 -1.0, %v9992_v28  ;;  %10005 = vpow2.f32 %v3677_v20  ;;  %v8025_v28 = vld [vmem:[%s14356_s1 + $0x2f0] sm:$0xff] }
 0xaf2   : > { %v9994_v31 = vpop.eup %9993  ;;  %v12633_v12 = vpop.permute.xlu1 %4222  ;;  %9746 = vmatmul.mubr.msk.f32.gmra.mxu1 %vm360_vm0, %v8018_v46 }
 0xaf3   : > { %v12637_v62 = vsel %vm3660_vm11, %v12537_v47, %v7768_v24  ;;  %9748 = vmatprep.mubr.msk.f32.mxu1 %vm360_vm0, %v8019_v51  ;;  %v7764_v19 = vadd.f32 -1.0, %v9994_v31  ;;  %v8021_v47 = vld [vmem:[%s14356_s1 + $0x2d0] sm:$0xff] }
 0xaf4   : > { %v9996_v25 = vpop.eup %9995  ;;  %3787 = vrot.lane.b32.xlu0 %v12637_v62, %s10132_s11  ;;  %v12641_v15 = vpop.permute.xlu0 %4237 }
 0xaf5   : > { %v7767_v57 = vadd.f32 -1.0, %v9996_v25  ;;  %v12652_v26 = vsel %vm3656_vm12, %v12552_v52, %v7764_v19  ;;  %v7588_v19 = vld [vmem:[%s14358_s3 + $0x388] sm:$0xff] }
 0xaf6   : > { %v9998_v16 = vpop.eup %9997  ;;  %3743 = vrot.lane.b32.xlu1 %v12652_v26, %s10133_s26  ;;  %v12657_v58 = vpop.permute.xlu1 %4217  ;;  %9749 = vmatmul.mubr.msk.f32.gmra.mxu1 %vm360_vm0, %v8020_v41  ;;  %v7920_v41 = vld [vmem:[%s14357_s2 + $0x278] sm:$0xff] }
 0xaf7   : > { %v12661_v39 = vsel %vm3659_vm13, %v12556_v14, %v7767_v57  ;;  %9751 = vmatprep.mubr.msk.f32.mxu1 %vm360_vm0, %v8021_v47  ;;  %v7763_v52 = vadd.f32 -1.0, %v9998_v16  ;;  %v8023_v14 = vld [vmem:[%s14356_s1 + $0x2e0] sm:$0xff]  ;;  %v7594_v57 = vld [vmem:[%s14358_s3 + $0x3b8] sm:$0xff]  ;;  %v7597_v16 = vld [vmem:[%s14358_s3 + $0x3d0] sm:$0xff] }
 0xaf8   : > { %v10000_v54 = vpop.eup %9999  ;;  %3785 = vrot.lane.b32.xlu0 %v12661_v39, %s10132_s11  ;;  %v12665_v50 = vpop.permute.xlu0 %4232  ;;  %v7916_v47 = vld [vmem:[%s14357_s2 + $0x258] sm:$0xff] }
 0xaf9   : > { %v7766_v55 = vadd.f32 -1.0, %v10000_v54  ;;  %v12676_v42 = vsel %vm3655_vm14, %v12572_v38, %v7763_v52  ;;  %v12747_v54 = vadd.f32 %v12194_v2, %v12608_v0  ;;  %v7600_v52 = vld [vmem:[%s14358_s3 + $0x3e8] sm:$0xff]  ;;  %v7915_v2 = vld [vmem:[%s14357_s2 + $0x250] sm:$0xff]  ;;  %v12766_v0 = vadd.f32 %v12186_v1, %v12620_v40 }
 0xafa   : > { %v10002_v27 = vpop.eup %10001  ;;  %3741 = vrot.lane.b32.xlu1 %v12676_v42, %s10133_s26  ;;  %v12681_v6 = vpop.permute.xlu1 %4212  ;;  %9752 = vmatmul.mubr.msk.f32.gmra.mxu1 %vm360_vm0, %v8022_v3  ;;  %v7919_v3 = vld [vmem:[%s14357_s2 + $0x270] sm:$0xff]  ;;  %v7918_v40 = vld [vmem:[%s14357_s2 + $0x268] sm:$0xff] }
 0xafb   : > { %v12685_v13 = vsel %vm3658_vm15, %v12576_v48, %v7766_v55  ;;  %v7762_v38 = vadd.f32 -1.0, %v10002_v27  ;;  %9754 = vmatprep.mubr.msk.f32.mxu1 %vm360_vm0, %v8023_v14  ;;  %v7603_v55 = vld [vmem:[%s14358_s3 + $0x400] sm:$0xff]  ;;  %v4453_v14 = vmin.f32 %v12747_v54, 0.0  ;;  %v12772_v27 = vadd.f32 %v12196_v43, %v12623_v53  ;;  %v7609_v1 = vld [vmem:[%s14358_s3 + $0x430] sm:$0xff] }
 0xafc   : > { %v10004_v34 = vpop.eup %10003  ;;  %3783 = vrot.lane.b32.xlu0 %v12685_v13, %s10132_s11  ;;  %v3015_v5 = vpop.permute.xlu0 %3014  ;;  %v12787_v43 = vadd.f32 %v12188_v23, %v12633_v12  ;;  %v7914_v23 = vld [vmem:[%s14357_s2 + $0x248] sm:$0xff]  ;;  %v7615_v12 = vld [vmem:[%s14358_s3 + $0x460] sm:$0xff]  ;;  %vm4441_vm6 = vcmp.gt.f32.partialorder %v12747_v54, 0.0  ;;  %vm4437_vm7 = vcmp.gt.f32.partialorder %v12766_v0, 0.0 }
 0xafd   : > { %9480 = vmatprep.subr.mxu0 %v3015_v5  ;;  %v7765_v35 = vadd.f32 -1.0, %v10004_v34  ;;  %v12695_v48 = vsel %vm3654_vm3, %v12592_v33, %v7762_v38  ;;  %v7606_v34 = vld [vmem:[%s14358_s3 + $0x418] sm:$0xff]  ;;  %v4472_v53 = vmul.f32 1.442695, %v4453_v14  ;;  %v4452_v38 = vmin.f32 %v12772_v27, 0.0 }
 0xafe   : > { %9481 = vmatpush3.msra.mxu0 %v3015_v5  ;;  %v10006_v20 = vpop.eup %10005  ;;  %3739 = vrot.lane.b32.xlu1 %v12695_v48, %s10133_s26  ;;  %v3013_v46 = vpop.permute.xlu1 %3012  ;;  %v4449_v5 = vmin.f32 %v12766_v0, 0.0  ;;  %vm4440_vm8 = vcmp.gt.f32.partialorder %v12772_v27, 0.0  ;;  %vm4436_vm9 = vcmp.gt.f32.partialorder %v12787_v43, 0.0 }
 0xaff   : > { %v12704_v24 = vsel %vm3657_vm4, %v12596_v61, %v7765_v35  ;;  %9755 = vmatmul.mubr.msk.f32.gmra.mxu1 %vm360_vm0, %v8024_v22  ;;  %9482 = vmatprep.subr.mxu0 %v3013_v46  ;;  %v7761_v51 = vadd.f32 -1.0, %v10006_v20  ;;  %v8026_v61 = vld [vmem:[%s14356_s1 + $0x2f8] sm:$0xff]  ;;  %v12793_v22 = vadd.f32 %v12190_v63, %v12641_v15  ;;  %v7612_v35 = vld [vmem:[%s14358_s3 + $0x448] sm:$0xff]  ;;  %v4448_v15 = vmin.f32 %v12787_v43, 0.0 }
 0xb00   : > { %3781 = vrot.lane.b32.xlu0 %v12704_v24, %s10132_s11  ;;  %v3011_v33 = vpop.permute.xlu0 %3010  ;;  %9483 = vmatpush3.msra.mxu0 %v3013_v46  ;;  %v4464_v63 = vmul.f32 1.442695, %v4449_v5  ;;  %10007 = vpow2.f32 %v4472_v53  ;;  %v4470_v20 = vmul.f32 1.442695, %v4452_v38 }
 0xb01   : > { %9757 = vmatprep.mubr.msk.f32.mxu1 %vm360_vm0, %v8025_v28  ;;  %9484 = vmatprep.subr.mxu0 %v3011_v33  ;;  %v12712_v31 = vsel %vm3653_vm5, %v12606_v32, %v7761_v51  ;;  %v7591_v32 = vld [vmem:[%s14358_s3 + $0x3a0] sm:$0xff]  ;;  %v12810_v28 = vadd.f32 %v12182_v59, %v12657_v58  ;;  %v4451_v46 = vmin.f32 %v12793_v22, 0.0  ;;  %v7618_v51 = vld [vmem:[%s14358_s3 + $0x478] sm:$0xff]  ;;  %vm4439_vm10 = vcmp.gt.f32.partialorder %v12793_v22, 0.0 }
 0xb02   : > { %3737 = vrot.lane.b32.xlu1 %v12712_v31, %s10133_s26  ;;  %9485 = vmatpush3.msra.mxu0 %v3011_v33  ;;  %v3009_v25 = vpop.permute.xlu1 %3008  ;;  %v12816_v33 = vadd.f32 %v12192_v4, %v12665_v50  ;;  %v7917_v59 = vld [vmem:[%s14357_s2 + $0x260] sm:$0xff]  ;;  %10009 = vpow2.f32 %v4464_v63  ;;  %v4462_v4 = vmul.f32 1.442695, %v4448_v15 }
 0xb03   : > { %9486 = vmatprep.subr.mxu0 %v3009_v25  ;;  %9758 = vmatmul.mubr.msk.f32.gmra.mxu1 %vm360_vm0, %v8026_v61  ;;  %v7913_v58 = vld [vmem:[%s14357_s2 + $0x240] sm:$0xff]  ;;  %v4447_v50 = vmin.f32 %v12810_v28, 0.0  ;;  %v12833_v61 = vadd.f32 %v12184_v8, %v12681_v6  ;;  %10011 = vpow2.f32 %v4470_v20  ;;  %vm4435_vm11 = vcmp.gt.f32.partialorder %v12810_v28, 0.0 }
 0xb04   : > { %3779 = vrot.lane.b32.xlu0 %v12652_v26, %s10132_s11  ;;  %9487 = vmatpush3.msra.mxu0 %v3009_v25  ;;  %v4468_v25 = vmul.f32 1.442695, %v4451_v46  ;;  %10013 = vpow2.f32 %v4462_v4  ;;  %vm4438_vm12 = vcmp.gt.f32.partialorder %v12816_v33, 0.0  ;;  %v8030_v46 = vld [vmem:[%s14357_s2 + $0x2b8] sm:$0xff]  ;;  %v8031_v4 = vld [vmem:[%s14357_s2 + $0x2c0] sm:$0xff] }
 0xb05   : > { %9489 = vmatmul.mubr.msk.f32.vlgmr.msra.gmra.mxu0 %vm682_vm2, %v7588_v19  ;;  %v4450_v19 = vmin.f32 %v12816_v33, 0.0  ;;  %vm4434_vm13 = vcmp.gt.f32.partialorder %v12833_v61, 0.0 }
 0xb06   : > { %3777 = vrot.lane.b32.xlu1 %v12676_v42, %s10132_s11  ;;  %9491 = vmatprep.mubr.msk.f32.mxu0 %vm682_vm2, %v7591_v32  ;;  %v4460_v32 = vmul.f32 1.442695, %v4447_v50  ;;  %10015 = vpow2.f32 %v4468_v25  ;;  %v8027_v50 = vld [vmem:[%s14357_s2 + $0x2a0] sm:$0xff]  ;;  %v8037_v25 = vld [vmem:[%s14357_s2 + $0x2f0] sm:$0xff] }
 0xb08   : > { %5029 = vperm.xlu0 %9869, %v7920_v41   ;;  %v4446_v41 = vmin.f32 %v12833_v61, 0.0  ;;  %10017 = vpow2.f32 %v4460_v32 }
 0xb09   : > { %9492 = vmatmul.mubr.msk.f32.gmra.mxu0 %vm682_vm2, %v7594_v57  ;;  %v4466_v57 = vmul.f32 1.442695, %v4450_v19  ;;  %v8036_v19 = vld [vmem:[%s14357_s2 + $0x2e8] sm:$0xff] }
 0xb0a   : > { %5009 = vperm.xlu1 %9870, %v7916_v47   ;;  %9494 = vmatprep.mubr.msk.f32.mxu0 %vm682_vm2, %v7597_v16  ;;  %v4458_v8 = vmul.f32 1.442695, %v4446_v41  ;;  %v8035_v41 = vld [vmem:[%s14357_s2 + $0x2e0] sm:$0xff] }
 0xb0b   : > { %10019 = vpow2.f32 %v4466_v57 }
 0xb0c   : > { %3775 = vrot.lane.b32.xlu0 %v12695_v48, %s10132_s11  ;;  %10021 = vpow2.f32 %v4458_v8 }
 0xb0d   : > { %9495 = vmatmul.mubr.msk.f32.gmra.mxu0 %vm682_vm2, %v7600_v52  ;;  %v10008_v6 = vpop.eup %10007  ;;  %v7698_v52 = vld [vmem:[%s14358_s3 + $0x488] sm:$0xff] }
 0xb0e   : > { %5024 = vperm.xlu1 %9870, %v7919_v3   ;;  %9497 = vmatprep.mubr.msk.f32.mxu0 %vm682_vm2, %v7603_v55  ;;  %v7882_v16 = vadd.f32 -1.0, %v10008_v6 }
 0xb0f   : > { %v10010_v47 = vpop.eup %10009 }
 0xb10   : > { %5004 = vperm.xlu0 %9869, %v7915_v2   ;;  %v10012_v3 = vpop.eup %10011  ;;  %v7878_v55 = vadd.f32 -1.0, %v10010_v47  ;;  %v12857_v14 = vsel %vm4441_vm6, %v12747_v54, %v7882_v16 }
 0xb11   : > { %9498 = vmatmul.mubr.msk.f32.gmra.mxu0 %vm682_vm2, %v7606_v34  ;;  %v10014_v2 = vpop.eup %10013  ;;  %v7881_v34 = vadd.f32 -1.0, %v10012_v3 }
 0xb12   : > { %3773 = vrot.lane.b32.xlu1 %v12712_v31, %s10132_s11  ;;  %9500 = vmatprep.mubr.msk.f32.mxu0 %vm682_vm2, %v7609_v1  ;;  %v7877_v5 = vadd.f32 -1.0, %v10014_v2 }
 0xb13   : > { %v10016_v1 = vpop.eup %10015  ;;  %v12869_v54 = vsel %vm4440_vm8, %v12772_v27, %v7881_v34 }
 0xb14   : > { %5019 = vperm.xlu0 %9869, %v7918_v40   ;;  %v12863_v40 = vsel %vm4437_vm7, %v12766_v0, %v7878_v55  ;;  %v7880_v38 = vadd.f32 -1.0, %v10016_v1  ;;  %v12875_v0 = vsel %vm4436_vm9, %v12787_v43, %v7877_v5 }
 0xb15   : > { %9501 = vmatmul.mubr.msk.f32.gmra.mxu0 %vm682_vm2, %v7612_v35  ;;  %v10018_v53 = vpop.eup %10017 }
 0xb16   : > { %4999 = vperm.xlu1 %9870, %v7914_v23   ;;  %9503 = vmatprep.mubr.msk.f32.mxu0 %vm682_vm2, %v7615_v12  ;;  %v7876_v23 = vadd.f32 -1.0, %v10018_v53  ;;  %v12881_v27 = vsel %vm4439_vm10, %v12793_v22, %v7880_v38 }
 0xb18   : > { %3759 = vrot.lane.b32.xlu0 %v12011_v49, %s10133_s26  ;;  %v10020_v35 = vpop.eup %10019  ;;  %v12887_v15 = vsel %vm4435_vm11, %v12810_v28, %v7876_v23  ;;  %v8034_v28 = vld [vmem:[%s14357_s2 + $0x2d8] sm:$0xff] }
 0xb19   : > { %9504 = vmatmul.mubr.msk.f32.gmra.mxu0 %vm682_vm2, %v7618_v51  ;;  %v10022_v12 = vpop.eup %10021  ;;  %v7879_v63 = vadd.f32 -1.0, %v10020_v35  ;;  %v8029_v51 = vld [vmem:[%s14357_s2 + $0x2b0] sm:$0xff] }
 0xb1a   : > { %5014 = vperm.xlu1 %9870, %v7917_v59   ;;  %3909 = vmatprep.mubr.f32.mxu0 %v7698_v52  ;;  %v7875_v43 = vadd.f32 -1.0, %v10022_v12  ;;  %v8032_v59 = vld [vmem:[%s14357_s2 + $0x2c8] sm:$0xff] }
 0xb1b   : > { %v12893_v20 = vsel %vm4438_vm12, %v12816_v33, %v7879_v63  ;;  %v8033_v33 = vld [vmem:[%s14357_s2 + $0x2d0] sm:$0xff] }
 0xb1c   : > { %4994 = vperm.xlu0 %9869, %v7913_v58   ;;  %v12899_v22 = vsel %vm4434_vm13, %v12833_v61, %v7875_v43  ;;  %v8028_v58 = vld [vmem:[%s14357_s2 + $0x2a8] sm:$0xff]  ;;  %v8038_v61 = vld [vmem:[%s14357_s2 + $0x2f8] sm:$0xff] }
 0xb1e   : > { %3757 = vrot.lane.b32.xlu1 %v12015_v45, %s10133_s26 }
 0xb20   : > { %3755 = vrot.lane.b32.xlu0 %v12019_v11, %s10133_s26 }
 0xb22   : > { %3753 = vrot.lane.b32.xlu1 %v12026_v21, %s10133_s26 }
 0xb24   : > { %3751 = vrot.lane.b32.xlu0 %v12637_v62, %s10133_s26 }
 0xb26   : > { %3749 = vrot.lane.b32.xlu1 %v12661_v39, %s10133_s26 }
 0xb28   : > { %3747 = vrot.lane.b32.xlu0 %v12685_v13, %s10133_s26 }
 0xb2a   : > { %3745 = vrot.lane.b32.xlu1 %v12704_v24, %s10133_s26 }
 0xb2c   : > { %4568 = vrot.lane.b32.xlu0 %v12857_v14, %s10132_s11 }
 0xb2e   : > { %4524 = vrot.lane.b32.xlu1 %v12863_v40, %s10133_s26 }
 0xb30   : > { %4566 = vrot.lane.b32.xlu0 %v12869_v54, %s10132_s11 }
 0xb32   : > { %4522 = vrot.lane.b32.xlu1 %v12875_v0, %s10133_s26 }
 0xb34   : > { %4564 = vrot.lane.b32.xlu0 %v12881_v27, %s10132_s11 }
 0xb36   : > { %4520 = vrot.lane.b32.xlu1 %v12887_v15, %s10133_s26 }
 0xb38   : > { %4562 = vrot.lane.b32.xlu0 %v12893_v20, %s10132_s11 }
 0xb3a   : > { %4518 = vrot.lane.b32.xlu1 %v12899_v22, %s10133_s26 }
 0xb3c   : > { %4560 = vrot.lane.b32.xlu0 %v12863_v40, %s10132_s11 }
 0xb3e   : > { %4558 = vrot.lane.b32.xlu1 %v12875_v0, %s10132_s11 }
 0xb40   : > { %5810 = vperm.xlu0 %9869, %v8034_v28  }
 0xb42   : > { %5790 = vperm.xlu1 %9870, %v8030_v46  }
 0xb44   : > { %4556 = vrot.lane.b32.xlu0 %v12887_v15, %s10132_s11 }
 0xb46   : > { %5805 = vperm.xlu1 %9870, %v8033_v33  }
 0xb48   : > { %5785 = vperm.xlu0 %9869, %v8029_v51  }
 0xb4a   : > { %4554 = vrot.lane.b32.xlu1 %v12899_v22, %s10132_s11 }
 0xb4c   : > { %5800 = vperm.xlu0 %9869, %v8032_v59   ;;  %v14467_v59 = vld [vmem:[#allocation64_spill] sm:$0xff] }
 0xb4e   : > { %5780 = vperm.xlu1 %9870, %v8028_v58  }
 0xb50   : > { %4540 = vrot.lane.b32.xlu0 %v12202_v30, %s10133_s26 }
 0xb52   : > { %5795 = vperm.xlu1 %9870, %v8031_v4   ;;  %v14468_v4 = vld [vmem:[#allocation62_spill] sm:$0xff] }
 0xb54   : > { %5775 = vperm.xlu0 %9869, %v8027_v50  }
 0xb56   : > { %4538 = vrot.lane.b32.xlu1 %v12206_v37, %s10133_s26 }
 0xb58   : > { %4536 = vrot.lane.b32.xlu0 %v12210_v44, %s10133_s26 }
 0xb5a   : > { %4534 = vrot.lane.b32.xlu1 %v12217_v36, %s10133_s26 }
 0xb5c   : > { %4532 = vrot.lane.b32.xlu0 %v12857_v14, %s10133_s26 }
 0xb5e   : > { %4530 = vrot.lane.b32.xlu1 %v12869_v54, %s10133_s26 }
 0xb60   : > { %5830 = vperm.xlu0 %9869, %v8038_v61  }
 0xb62   : > { %4528 = vrot.lane.b32.xlu1 %v12881_v27, %s10133_s26 }
 0xb64   : > { %5825 = vperm.xlu0 %9869, %v8037_v25  }
 0xb66   : > { %v3788_v32 = vpop.permute.xlu0 %3787  ;;  %4526 = vrot.lane.b32.xlu1 %v12893_v20, %s10133_s26 }
 0xb67   : > { %8706 = vmatprep.subr.mxu0 %v3788_v32 }
 0xb68   : > { %5820 = vperm.xlu0 %9869, %v8036_v19   ;;  %v3744_v57 = vpop.permute.xlu1 %3743 }
 0xb69   : > { %8707 = vmatpush3.msra.mxu0 %v3744_v57 }
 0xb6a   : > { %v3786_v8 = vpop.permute.xlu0 %3785  ;;  %5815 = vperm.xlu1 %9870, %v8035_v41  }
 0xb6b   : > { %8708 = vmatprep.subr.mxu0 %v3786_v8  ;;  %v14469_v8 = vld [vmem:[#allocation65_spill] sm:$0xff] }
 0xb6c   : > { %v3742_v6 = vpop.permute.xlu1 %3741 }
 0xb6d   : > { %8709 = vmatpush3.msra.mxu0 %v3742_v6 }
 0xb6e   : > { %v3784_v47 = vpop.permute.xlu0 %3783 }
 0xb6f   : > { %8710 = vmatprep.subr.mxu0 %v3784_v47 }
 0xb70   : > { %v3740_v16 = vpop.permute.xlu1 %3739 }
 0xb71   : > { %8711 = vmatpush3.msra.mxu0 %v3740_v16 }
 0xb72   : > { %v3782_v52 = vpop.permute.xlu0 %3781 }
 0xb73   : > { %8712 = vmatprep.subr.mxu0 %v3782_v52  ;;  %v14470_v52 = vld [vmem:[#allocation63_spill] sm:$0xff] }
 0xb74   : > { %v3738_v3 = vpop.permute.xlu1 %3737 }
 0xb75   : > { %8713 = vmatpush3.msra.mxu0 %v3738_v3 }
 0xb76   : > { %v3780_v55 = vpop.permute.xlu0 %3779 }
 0xb77   : > { %8714 = vmatprep.subr.mxu0 %v3780_v55 }
 0xb78   : > { %8715 = vmatpush3.msra.mxu0 %v12011_v49  ;;  %v3778_v2 = vpop.permute.xlu1 %3777 }
 0xb79   : > { %8716 = vmatprep.subr.mxu0 %v3778_v2 }
 0xb7a   : > { %8717 = vmatpush3.msra.mxu0 %v12015_v45 }
 0xb83   : > { %v5030_v34 = vpop.permute.xlu0 %5029 }
 0xb84   : > { %v5193_v1 = vadd.f32 %v12421_v7, %v5030_v34 }
 0xb85   : > { %v5010_v53 = vpop.permute.xlu1 %5009 }
 0xb86   : > { %v5235_v5 = vmin.f32 %v5193_v1, 0.0  ;;  %v5173_v38 = vadd.f32 %v12413_v9, %v5010_v53  ;;  %vm5223_vm14 = vcmp.gt.f32.partialorder %v5193_v1, 0.0 }
 0xb87   : > { %v3776_v35 = vpop.permute.xlu0 %3775 }
 0xb88   : > { %v5254_v23 = vmul.f32 1.442695, %v5235_v5  ;;  %8718 = vmatprep.subr.mxu0 %v3776_v35  ;;  %v5231_v12 = vmin.f32 %v5173_v38, 0.0  ;;  %vm5219_vm15 = vcmp.gt.f32.partialorder %v5173_v38, 0.0 }
 0xb89   : > { %8719 = vmatpush3.msra.mxu0 %v12019_v11  ;;  %v5025_v63 = vpop.permute.xlu1 %5024 }
 0xb8a   : > { %10023 = vpow2.f32 %v5254_v23  ;;  %v5246_v49 = vmul.f32 1.442695, %v5231_v12  ;;  %v12969_v43 = vadd.f32 %v12423_v10, %v5025_v63 }
 0xb8b   : > { %v5005_v45 = vpop.permute.xlu0 %5004 }
 0xb8c   : > { %v12972_v28 = vadd.f32 %v12415_v18, %v5005_v45  ;;  %10025 = vpow2.f32 %v5246_v49  ;;  %v5234_v7 = vmin.f32 %v12969_v43, 0.0  ;;  %vm5222_vm3 = vcmp.gt.f32.partialorder %v12969_v43, 0.0 }
 0xb8d   : > { %v3774_v46 = vpop.permute.xlu1 %3773 }
 0xb8e   : > { %v5230_v9 = vmin.f32 %v12972_v28, 0.0  ;;  %v5252_v33 = vmul.f32 1.442695, %v5234_v7  ;;  %8720 = vmatprep.subr.mxu0 %v3774_v46  ;;  %vm5218_vm4 = vcmp.gt.f32.partialorder %v12972_v28, 0.0 }
 0xb8f   : > { %v5020_v51 = vpop.permute.xlu0 %5019  ;;  %8721 = vmatpush3.msra.mxu0 %v12026_v21 }
 0xb90   : > { %v5244_v11 = vmul.f32 1.442695, %v5230_v9  ;;  %v12977_v58 = vadd.f32 %v14467_v59, %v5020_v51  ;;  %10027 = vpow2.f32 %v5252_v33 }
 0xb91   : > { %v5000_v18 = vpop.permute.xlu1 %4999 }
 0xb92   : > { %10029 = vpow2.f32 %v5244_v11  ;;  %v5233_v10 = vmin.f32 %v12977_v58, 0.0  ;;  %v12982_v50 = vadd.f32 %v14468_v4, %v5000_v18  ;;  %vm5221_vm5 = vcmp.gt.f32.partialorder %v12977_v58, 0.0 }
 0xb93   : > { %v3760_v61 = vpop.permute.xlu0 %3759 }
 0xb94   : > { %v5250_v25 = vmul.f32 1.442695, %v5233_v10  ;;  %8722 = vmatprep.subr.mxu0 %v3760_v61  ;;  %v5229_v19 = vmin.f32 %v12982_v50, 0.0  ;;  %v12986_v32 = vpop.f32.mrf.mxu1  ;;  %vm5217_vm6 = vcmp.gt.f32.partialorder %v12982_v50, 0.0 }
 0xb95   : > { %8723 = vmatpush3.msra.mxu0 %v12637_v62  ;;  %v5015_v41 = vpop.permute.xlu1 %5014 }
 0xb96   : > { %10031 = vpow2.f32 %v5250_v25  ;;  %v5242_v57 = vmul.f32 1.442695, %v5229_v19  ;;  %v12989_v6 = vadd.f32 %v14469_v8, %v5015_v41  ;;  %v12991_v16 = vpop.f32.mrf.mxu1  ;;  %v7697_v41 = vld [vmem:[%s14358_s3 + $0x480] sm:$0xff] }
 0xb97   : > { %v10024_v21 = vpop.eup %10023  ;;  %v4995_v47 = vpop.permute.xlu0 %4994 }
 0xb98   : > { %v12994_v3 = vadd.f32 %v14470_v52, %v4995_v47  ;;  %v7996_v55 = vadd.f32 -1.0, %v10024_v21  ;;  %10033 = vpow2.f32 %v5242_v57  ;;  %v5232_v2 = vmin.f32 %v12989_v6, 0.0  ;;  %v12997_v62 = vpop.f32.mrf.mxu1 }
 0xb99   : > { %v10026_v34 = vpop.eup %10025  ;;  %v3758_v53 = vpop.permute.xlu1 %3757  ;;  %vm5220_vm7 = vcmp.gt.f32.partialorder %v12989_v6, 0.0 }
 0xb9a   : > { %v5228_v5 = vmin.f32 %v12994_v3, 0.0  ;;  %v13000_v35 = vsel %vm5223_vm14, %v5193_v1, %v7996_v55  ;;  %v5248_v23 = vmul.f32 1.442695, %v5232_v2  ;;  %8724 = vmatprep.subr.mxu0 %v3758_v53  ;;  %v13004_v63 = vpop.f32.mrf.mxu1  ;;  %v7992_v49 = vadd.f32 -1.0, %v10026_v34  ;;  %v7700_v55 = vld [vmem:[%s14358_s3 + $0x498] sm:$0xff] }
 0xb9b   : > { %v3756_v12 = vpop.permute.xlu0 %3755  ;;  %5350 = vrot.lane.b32.xlu0 %v13000_v35, %s10132_s11  ;;  %8725 = vmatpush3.msra.mxu0 %v12661_v39  ;;  %vm5216_vm8 = vcmp.gt.f32.partialorder %v12994_v3, 0.0 }
 0xb9c   : > { %v5240_v45 = vmul.f32 1.442695, %v5228_v5  ;;  %10035 = vpow2.f32 %v5248_v23  ;;  %8726 = vmatprep.subr.mxu0 %v3756_v12  ;;  %v13007_v7 = vsel %vm5219_vm15, %v5173_v38, %v7992_v49  ;;  %v13009_v9 = vpop.f32.mrf.mxu1 }
 0xb9d   : > { %v10028_v1 = vpop.eup %10027  ;;  %5306 = vrot.lane.b32.xlu1 %v13007_v7, %s10133_s26  ;;  %8727 = vmatpush3.msra.mxu0 %v12685_v13  ;;  %v3754_v46 = vpop.permute.xlu1 %3753 }
 0xb9e   : > { %10037 = vpow2.f32 %v5240_v45  ;;  %8728 = vmatprep.subr.mxu0 %v3754_v46  ;;  %v13014_v11 = vpop.f32.mrf.mxu1  ;;  %v7995_v39 = vadd.f32 -1.0, %v10028_v1  ;;  %v7703_v45 = vld [vmem:[%s14358_s3 + $0x4b0] sm:$0xff] }
 0xb9f   : > { %v10030_v33 = vpop.eup %10029  ;;  %v3752_v51 = vpop.permute.xlu0 %3751  ;;  %8729 = vmatpush3.msra.mxu0 %v12704_v24 }
 0xba0   : > { %v7991_v38 = vadd.f32 -1.0, %v10030_v33  ;;  %8730 = vmatprep.subr.mxu0 %v3752_v51  ;;  %v13019_v59 = vsel %vm5222_vm3, %v12969_v43, %v7995_v39  ;;  %v13021_v10 = vpop.f32.mrf.mxu1  ;;  %v7706_v51 = vld [vmem:[%s14358_s3 + $0x4c8] sm:$0xff] }
 0xba1   : > { %5348 = vrot.lane.b32.xlu0 %v13019_v59, %s10132_s11  ;;  %8731 = vmatpush3.msra.mxu0 %v12652_v26  ;;  %v3750_v13 = vpop.permute.xlu1 %3749 }
 0xba2   : > { %v13028_v18 = vsel %vm5218_vm4, %v12972_v28, %v7991_v38  ;;  %8732 = vmatprep.subr.mxu0 %v3750_v13  ;;  %v13032_v43 = vpop.f32.mrf.mxu1  ;;  %v7710_v13 = vld [vmem:[%s14358_s3 + $0x4e8] sm:$0xff] }
 0xba3   : > { %v10032_v24 = vpop.eup %10031  ;;  %v3748_v4 = vpop.permute.xlu0 %3747  ;;  %5304 = vrot.lane.b32.xlu1 %v13028_v18, %s10133_s26  ;;  %8733 = vmatpush3.msra.mxu0 %v12676_v42 }
 0xba4   : > { %v7994_v61 = vadd.f32 -1.0, %v10032_v24  ;;  %8734 = vmatprep.subr.mxu0 %v3748_v4  ;;  %v13035_v25 = vpop.f32.mrf.mxu1 }
 0xba5   : > { %v10034_v26 = vpop.eup %10033  ;;  %8735 = vmatpush3.msra.mxu0 %v12695_v48  ;;  %v3746_v28 = vpop.permute.xlu1 %3745  ;;  %v7701_v48 = vld [vmem:[%s14358_s3 + $0x4a0] sm:$0xff] }
 0xba6   : > { %v13040_v19 = vsel %vm5221_vm5, %v12977_v58, %v7994_v61  ;;  %8736 = vmatprep.subr.mxu0 %v3746_v28  ;;  %v13047_v42 = vpop.f32.mrf.mxu1  ;;  %v7990_v57 = vadd.f32 -1.0, %v10034_v26  ;;  %v7709_v61 = vld [vmem:[%s14358_s3 + $0x4e0] sm:$0xff] }
 0xba7   : > { %v4569_v21 = vpop.permute.xlu0 %4568  ;;  %5346 = vrot.lane.b32.xlu0 %v13040_v19, %s10132_s11  ;;  %8737 = vmatpush3.msra.mxu0 %v12712_v31 }
 0xba8   : > { %3910 = vmatmul.mubr.f32.vlgmr.msra.gmra.mxu0 %v7697_v41  ;;  %8815 = vmatprep.subr.mxu0 %v4569_v21  ;;  %v13055_v58 = vsel %vm5217_vm6, %v12982_v50, %v7990_v57  ;;  %v13057_v8 = vpop.f32.mrf.mxu1  ;;  %v7704_v50 = vld [vmem:[%s14358_s3 + $0x4b8] sm:$0xff]  ;;  %v7713_v21 = vld [vmem:[%s14358_s3 + $0x500] sm:$0xff] }
 0xba9   : > { %14471 = vst [vmem:[#allocation64_spill] sm:$0xff] %v13057_v8  ;;  %v10036_v47 = vpop.eup %10035  ;;  %5302 = vrot.lane.b32.xlu1 %v13055_v58, %s10133_s26  ;;  %v4525_v52 = vpop.permute.xlu1 %4524  ;;  %3914 = vmatprep.mubr.f32.mxu0 %v7701_v48  ;;  %v7712_v48 = vld [vmem:[%s14358_s3 + $0x4f8] sm:$0xff] }
 0xbaa   : > { %8816 = vmatpush3.msra.mxu0 %v4525_v52  ;;  %v13064_v34 = vpop.f32.mrf.mxu1  ;;  %v7993_v5 = vadd.f32 -1.0, %v10036_v47  ;;  %v7716_v52 = vld [vmem:[%s14358_s3 + $0x518] sm:$0xff] }
 0xbab   : > { %v10038_v31 = vpop.eup %10037  ;;  %v4567_v2 = vpop.permute.xlu0 %4566  ;;  %14472 = vst [vmem:[#allocation62_spill] sm:$0xff] %v13064_v34 }
 0xbac   : > { %8817 = vmatprep.subr.mxu0 %v4567_v2  ;;  %v7989_v53 = vadd.f32 -1.0, %v10038_v31  ;;  %3915 = vmatmul.mubr.f32.gmra.mxu0 %v7700_v55  ;;  %v13071_v23 = vsel %vm5220_vm7, %v12989_v6, %v7993_v5  ;;  %v7707_v6 = vld [vmem:[%s14358_s3 + $0x4d0] sm:$0xff] }
 0xbad   : > { %5344 = vrot.lane.b32.xlu0 %v13071_v23, %s10132_s11  ;;  %v4523_v12 = vpop.permute.xlu1 %4522  ;;  %3919 = vmatprep.mubr.f32.mxu0 %v7704_v50  ;;  %v7715_v31 = vld [vmem:[%s14358_s3 + $0x510] sm:$0xff] }
 0xbae   : > { %v13077_v49 = vsel %vm5216_vm8, %v12994_v3, %v7989_v53  ;;  %8818 = vmatpush3.msra.mxu0 %v4523_v12  ;;  %v13082_v1 = vpop.f32.mrf.mxu1  ;;  %v7718_v53 = vld [vmem:[%s14358_s3 + $0x528] sm:$0xff] }
 0xbaf   : > { %v4565_v46 = vpop.permute.xlu0 %4564  ;;  %5300 = vrot.lane.b32.xlu1 %v13077_v49, %s10133_s26 }
 0xbb0   : > { %8819 = vmatprep.subr.mxu0 %v4565_v46  ;;  %3920 = vmatmul.mubr.f32.gmra.mxu0 %v7703_v45  ;;  %v13089_v3 = vpop.f32.mrf.mxu1  ;;  %v7722_v46 = vld [vmem:[%s14358_s3 + $0x548] sm:$0xff] }
 0xbb1   : > { %5342 = vrot.lane.b32.xlu0 %v13007_v7, %s10132_s11  ;;  %v4521_v33 = vpop.permute.xlu1 %4520  ;;  %3924 = vmatprep.mubr.f32.mxu0 %v7707_v6 }
 0xbb2   : > { %8820 = vmatpush3.msra.mxu0 %v4521_v33  ;;  %v9747_v39 = vpop.f32.mrf.mxu1 }
 0xbb3   : > { %v4563_v38 = vpop.permute.xlu0 %4562  ;;  %5340 = vrot.lane.b32.xlu1 %v13028_v18, %s10132_s11 }
 0xbb4   : > { %8821 = vmatprep.subr.mxu0 %v4563_v38  ;;  %3925 = vmatmul.mubr.f32.gmra.mxu0 %v7706_v51  ;;  %v5948_v24 = vpop.f32.mrf.mxu1  ;;  %v14474_v51 = vld [vmem:[#allocation12_spill] sm:$0xff] }
 0xbb5   : > { %5338 = vrot.lane.b32.xlu0 %v13055_v58, %s10132_s11  ;;  %v4519_v4 = vpop.permute.xlu1 %4518  ;;  %3929 = vmatprep.mubr.f32.mxu0 %v7710_v13 }
 0xbb6   : > { %8822 = vmatpush3.msra.mxu0 %v4519_v4  ;;  %v9750_v26 = vpop.f32.mrf.mxu1 }
 0xbb7   : > { %v4561_v28 = vpop.permute.xlu0 %4560  ;;  %5336 = vrot.lane.b32.xlu1 %v13077_v49, %s10132_s11 }
 0xbb8   : > { %8823 = vmatprep.subr.mxu0 %v4561_v28  ;;  %3930 = vmatmul.mubr.f32.gmra.mxu0 %v7709_v61  ;;  %v13108_v41 = vpop.f32.mrf.mxu1  ;;  %v7721_v28 = vld [vmem:[%s14358_s3 + $0x540] sm:$0xff] }
 0xbb9   : > { %5322 = vrot.lane.b32.xlu0 %v12429_v60, %s10133_s26  ;;  %8824 = vmatpush3.msra.mxu0 %v12202_v30  ;;  %v4559_v57 = vpop.permute.xlu1 %4558 }
 0xbba   : > { %8825 = vmatprep.subr.mxu0 %v4559_v57  ;;  %3934 = vmatprep.mubr.f32.mxu0 %v7713_v21  ;;  %v9753_v55 = vpop.f32.mrf.mxu1  ;;  %v7725_v57 = vld [vmem:[%s14358_s3 + $0x560] sm:$0xff] }
 0xbbb   : > { %v5811_v47 = vpop.permute.xlu0 %5810  ;;  %5320 = vrot.lane.b32.xlu1 %v12433_v17, %s10133_s26  ;;  %8826 = vmatpush3.msra.mxu0 %v12206_v37  ;;  %v7719_v37 = vld [vmem:[%s14358_s3 + $0x530] sm:$0xff] }
 0xbbc   : > { %3935 = vmatmul.mubr.f32.gmra.mxu0 %v7712_v48  ;;  %v13132_v5 = vadd.f32 %v9753_v55, %v5811_v47  ;;  %v5968_v12 = vpop.f32.mrf.mxu1 }
 0xbbd   : > { %5318 = vrot.lane.b32.xlu0 %v12437_v29, %s10133_s26  ;;  %v5791_v30 = vpop.permute.xlu1 %5790  ;;  %3939 = vmatprep.mubr.f32.mxu0 %v7716_v52 }
 0xbbe   : > { %v6016_v6 = vmin.f32 %v13132_v5, 0.0  ;;  %v13149_v33 = vadd.f32 %v9747_v39, %v5791_v30  ;;  %vm6004_vm11 = vcmp.gt.f32.partialorder %v13132_v5, 0.0 }
 0xbbf   : > { %v4557_v2 = vpop.permute.xlu0 %4556  ;;  %5316 = vrot.lane.b32.xlu1 %v12444_v56, %s10133_s26 }
 0xbc0   : > { %8827 = vmatprep.subr.mxu0 %v4557_v2  ;;  %3940 = vmatmul.mubr.f32.gmra.mxu0 %v7715_v31  ;;  %v6035_v48 = vmul.f32 1.442695, %v6016_v6  ;;  %v6012_v47 = vmin.f32 %v13149_v33, 0.0  ;;  %v14475_v31 = vld [vmem:[#allocation15_spill] sm:$0xff]  ;;  %v14476_v2 = vld [vmem:[#allocation21_spill] sm:$0xff]  ;;  %vm6000_vm12 = vcmp.gt.f32.partialorder %v13149_v33, 0.0 }
 0xbc1   : > { %5314 = vrot.lane.b32.xlu0 %v13000_v35, %s10133_s26  ;;  %8828 = vmatpush3.msra.mxu0 %v12210_v44  ;;  %v5806_v50 = vpop.permute.xlu1 %5805  ;;  %v14473_v44 = vld [vmem:[#allocation13_spill] sm:$0xff] }
 0xbc2   : > { %3944 = vmatprep.mubr.f32.mxu0 %v7719_v37  ;;  %v8634_v38 = vadd.f32 %v14474_v51, %v14473_v44  ;;  %v13153_v13 = vadd.f32 %v5968_v12, %v5806_v50  ;;  %v8640_v37 = vadd.f32 %v14476_v2, %v14475_v31  ;;  %v14477_v50 = vld [vmem:[#allocation11_spill] sm:$0xff]  ;;  %v7728_v2 = vld [vmem:[%s14358_s3 + $0x578] sm:$0xff]  ;;  %10039 = vpow2.f32 %v6035_v48 }
 0xbc3   : > { %v5786_v45 = vpop.permute.xlu0 %5785  ;;  %5312 = vrot.lane.b32.xlu1 %v13019_v59, %s10133_s26 }
 0xbc4   : > { %3945 = vmatmul.mubr.f32.gmra.mxu0 %v7718_v53  ;;  %v13166_v52 = vadd.f32 %v5948_v24, %v5786_v45  ;;  %v14478_v53 = vld [vmem:[#allocation10_spill] sm:$0xff]  ;;  %v7724_v24 = vld [vmem:[%s14358_s3 + $0x558] sm:$0xff]  ;;  %vm6003_vm13 = vcmp.gt.f32.partialorder %v13153_v13, 0.0 }
 0xbc5   : > { %v9490_v4 = vpop.f32.mrf.mxu0  ;;  %5310 = vrot.lane.b32.xlu0 %v13040_v19, %s10133_s26  ;;  %v4555_v61 = vpop.permute.xlu1 %4554  ;;  %3949 = vmatprep.mubr.f32.mxu0 %v7722_v46  ;;  %v8631_v12 = vadd.f32 %v14478_v53, %v14477_v50  ;;  %v6015_v46 = vmin.f32 %v13153_v13, 0.0 }
 0xbc6   : > { %v3261_v21 = vadd.f32 %v9490_v4, %v8634_v38  ;;  %8829 = vmatprep.subr.mxu0 %v4555_v61  ;;  %v14481_v38 = vld [vmem:[#allocation24_spill] sm:$0xff]  ;;  %v14482_v4 = vld [vmem:[#allocation25_spill] sm:$0xff]  ;;  %v6011_v50 = vmin.f32 %v13166_v52, 0.0  ;;  %vm5999_vm14 = vcmp.gt.f32.partialorder %v13166_v52, 0.0 }
 0xbc7   : > { %v5801_v39 = vpop.permute.xlu0 %5800  ;;  %5308 = vrot.lane.b32.xlu1 %v13071_v23, %s10133_s26  ;;  %v3255_v30 = vpop.f32.mrf.mxu0  ;;  %8830 = vmatpush3.msra.mxu0 %v12217_v36  ;;  %v14480_v36 = vld [vmem:[#allocation16_spill] sm:$0xff]  ;;  %v8646_v61 = vadd.f32 %v14482_v4, %v14481_v38  ;;  %v6033_v4 = vmul.f32 1.442695, %v6015_v46 }
 0xbc8   : > { %v13168_v55 = vadd.f32 %v9750_v26, %v5801_v39  ;;  %3950 = vmatmul.mubr.f32.gmra.mxu0 %v7721_v28  ;;  %v14479_v26 = vld [vmem:[#allocation14_spill] sm:$0xff]  ;;  %v7731_v46 = vld [vmem:[%s14358_s3 + $0x590] sm:$0xff] }
 0xbc9   : > { %v9493_v44 = vpop.f32.mrf.mxu0  ;;  %v5781_v51 = vpop.permute.xlu1 %5780  ;;  %3954 = vmatprep.mubr.f32.mxu0 %v7725_v57  ;;  %v8637_v45 = vadd.f32 %v14480_v36, %v14479_v26  ;;  %v6027_v57 = vmul.f32 1.442695, %v6012_v47  ;;  %v3256_v26 = vadd.f32 %v8631_v12, %v3255_v30  ;;  %v7727_v47 = vld [vmem:[%s14358_s3 + $0x570] sm:$0xff] }
 0xbca   : > { %v6014_v6 = vmin.f32 %v13168_v55, 0.0  ;;  %v3271_v28 = vadd.f32 %v9493_v44, %v8640_v37  ;;  %v13185_v39 = vadd.f32 %v13082_v1, %v5781_v51  ;;  %v14483_v1 = vld [vmem:[#allocation22_spill] sm:$0xff]  ;;  %v14484_v44 = vld [vmem:[#allocation23_spill] sm:$0xff]  ;;  %vm6002_vm9 = vcmp.gt.f32.partialorder %v13168_v55, 0.0 }
 0xbcb   : > { %v4541_v31 = vpop.permute.xlu0 %4540  ;;  %v3265_v8 = vpop.f32.mrf.mxu0  ;;  %v8643_v51 = vadd.f32 %v14484_v44, %v14483_v1 }
 0xbcc   : > { %v6031_v53 = vmul.f32 1.442695, %v6014_v6  ;;  %8831 = vmatprep.subr.mxu0 %v4541_v31  ;;  %v3315_v36 = vmax.f32 %v3261_v21, %v3271_v28  ;;  %v6010_v38 = vmin.f32 %v13185_v39, 0.0  ;;  %v3266_v37 = vadd.f32 %v8637_v45, %v3265_v8  ;;  %3955 = vmatmul.mubr.f32.gmra.mxu0 %v7724_v24  ;;  %v14485_v24 = vld [vmem:[#allocation28_spill] sm:$0xff]  ;;  %v14486_v45 = vld [vmem:[#allocation29_spill] sm:$0xff] }
 0xbcd   : > { %v9496_v34 = vpop.f32.mrf.mxu0  ;;  %8832 = vmatpush3.msra.mxu0 %v12857_v14  ;;  %v5796_v48 = vpop.permute.xlu1 %5795  ;;  %3959 = vmatprep.mubr.f32.mxu0 %v7728_v2  ;;  %v8652_v14 = vadd.f32 %v14486_v45, %v14485_v24  ;;  %v6025_v28 = vmul.f32 1.442695, %v6011_v50  ;;  %v14488_v50 = vld [vmem:[#allocation27_spill] sm:$0xff]  ;;  %vm5998_vm10 = vcmp.gt.f32.partialorder %v13185_v39, 0.0 }
 0xbce   : > { %10041 = vpow2.f32 %v6031_v53  ;;  %v6023_v30 = vmul.f32 1.442695, %v6010_v38  ;;  %v3314_v21 = vmax.f32 %v3256_v26, %v3266_v37  ;;  %v3281_v12 = vadd.f32 %v9496_v34, %v8646_v61  ;;  %v13210_v61 = vpop.f32.mrf.mxu1 }
 0xbcf   : > { %v13199_v8 = vadd.f32 %v13108_v41, %v5796_v48  ;;  %v5776_v6 = vpop.permute.xlu0 %5775  ;;  %10043 = vpow2.f32 %v6027_v57  ;;  %v3275_v2 = vpop.f32.mrf.mxu0  ;;  %v14487_v57 = vld [vmem:[#allocation26_spill] sm:$0xff] }
 0xbd0   : > { %v13207_v31 = vadd.f32 %v13089_v3, %v5776_v6  ;;  %10045 = vpow2.f32 %v6023_v30  ;;  %v3317_v53 = vmax.f32 %v3315_v36, %v3281_v12  ;;  %v3276_v41 = vadd.f32 %v8643_v51, %v3275_v2  ;;  %3960 = vmatmul.mubr.f32.gmra.mxu0 %v7727_v47  ;;  %v7730_v3 = vld [vmem:[%s14358_s3 + $0x588] sm:$0xff]  ;;  %v14489_v47 = vld [vmem:[#allocation32_spill] sm:$0xff]  ;;  %v14490_v30 = vld [vmem:[#allocation33_spill] sm:$0xff] }
 0xbd1   : > { %v6013_v34 = vmin.f32 %v13199_v8, 0.0  ;;  %10047 = vpow2.f32 %v6033_v4  ;;  %v9499_v38 = vpop.f32.mrf.mxu0  ;;  %v4539_v37 = vpop.permute.xlu1 %4538  ;;  %3964 = vmatprep.mubr.f32.mxu0 %v7731_v46  ;;  %v8649_v1 = vadd.f32 %v14488_v50, %v14487_v57  ;;  %v7812_v4 = vld [vmem:[%s14358_s3 + $0x5a8] sm:$0xff]  ;;  %v8658_v12 = vadd.f32 %v14490_v30, %v14489_v47 }
 0xbd2   : > { %v6009_v26 = vmin.f32 %v13207_v31, 0.0  ;;  %v3316_v44 = vmax.f32 %v3314_v21, %v3276_v41  ;;  %v3291_v48 = vadd.f32 %v9499_v38, %v8652_v14  ;;  %8833 = vmatprep.subr.mxu0 %v4539_v37  ;;  %10049 = vpow2.f32 %v6025_v28  ;;  %v13224_v21 = vpop.f32.mrf.mxu1  ;;  %v14492_v41 = vld [vmem:[#allocation31_spill] sm:$0xff] }
 0xbd3   : > { %v6029_v36 = vmul.f32 1.442695, %v6013_v34  ;;  %v4537_v51 = vpop.permute.xlu0 %4536  ;;  %v3285_v6 = vpop.f32.mrf.mxu0  ;;  %8834 = vmatpush3.msra.mxu0 %v12869_v54  ;;  %v14491_v34 = vld [vmem:[#allocation30_spill] sm:$0xff]  ;;  %v14496_v47 = vld [vmem:[#allocation35_spill] sm:$0xff]  ;;  %vm6001_vm15 = vcmp.gt.f32.partialorder %v13199_v8, 0.0  ;;  %vm5997_vm3 = vcmp.gt.f32.partialorder %v13207_v31, 0.0 }
 0xbd4   : > { %v6021_v46 = vmul.f32 1.442695, %v6009_v26  ;;  %v3319_v24 = vmax.f32 %v3317_v53, %v3291_v48  ;;  %v3286_v45 = vadd.f32 %v8649_v1, %v3285_v6  ;;  %3965 = vmatmul.mubr.f32.gmra.mxu0 %v7730_v3  ;;  %8835 = vmatprep.subr.mxu0 %v4537_v51  ;;  %v8655_v38 = vadd.f32 %v14492_v41, %v14491_v34  ;;  %v10040_v53 = vpop.eup %10039  ;;  %v14493_v26 = vld [vmem:[#allocation36_spill] sm:$0xff]  ;;  %v14494_v3 = vld [vmem:[#allocation37_spill] sm:$0xff] }
 0xbd5   : > { %10051 = vpow2.f32 %v6029_v36  ;;  %v9502_v14 = vpop.f32.mrf.mxu0  ;;  %8836 = vmatpush3.msra.mxu0 %v12881_v27  ;;  %v4535_v2 = vpop.permute.xlu1 %4534  ;;  %4690 = vmatprep.mubr.f32.mxu0 %v7812_v4  ;;  %v8664_v50 = vadd.f32 %v14494_v3, %v14493_v26  ;;  %v14495_v4 = vld [vmem:[#allocation34_spill] sm:$0xff] }
 0xbd6   : > { %v3318_v37 = vmax.f32 %v3316_v44, %v3286_v45  ;;  %v3301_v57 = vadd.f32 %v9502_v14, %v8658_v12  ;;  %8837 = vmatprep.subr.mxu0 %v4535_v2  ;;  %10053 = vpow2.f32 %v6021_v46  ;;  %v9759_v36 = vpop.f32.mrf.mxu1  ;;  %v8661_v30 = vadd.f32 %v14496_v47, %v14495_v4 }
 0xbd7   : > { %v4533_v54 = vpop.permute.xlu0 %4532  ;;  %v3295_v28 = vpop.f32.mrf.mxu0  ;;  %8838 = vmatpush3.msra.mxu0 %v12893_v20 }
 0xbd8   : > { %v13232_v1 = vmax.f32 %v3319_v24, %v3301_v57  ;;  %v3296_v27 = vadd.f32 %v8655_v38, %v3295_v28  ;;  %8839 = vmatprep.subr.mxu0 %v4533_v54  ;;  %v8110_v54 = vadd.f32 -1.0, %v10040_v53 }
 0xbd9   : > { %v9505_v48 = vpop.f32.mrf.mxu0  ;;  %8840 = vmatpush3.msra.mxu0 %v12863_v40  ;;  %v4531_v44 = vpop.permute.xlu1 %4530 }
 0xbda   : > { %v13237_v12 = vmax.f32 %v3318_v37, %v3296_v27  ;;  %v13239_v20 = vadd.f32 %v9505_v48, %v8664_v50  ;;  %8841 = vmatprep.subr.mxu0 %v4531_v44  ;;  %v5988_v40 = vpop.f32.mrf.mxu1 }
 0xbdb   : > { %v10042_v51 = vpop.eup %10041  ;;  %v5831_v6 = vpop.permute.xlu0 %5830  ;;  %8842 = vmatpush3.msra.mxu0 %v12875_v0 }
 0xbdc   : > { %v13241_v46 = vadd.f32 %v9759_v36, %v5831_v6  ;;  %v3305_v24 = vpop.f32.mrf.mxu0  ;;  %v8108_v45 = vadd.f32 -1.0, %v10042_v51  ;;  %v10044_v14 = vpop.eup %10043  ;;  %v3323_v34 = vmax.f32 %v13232_v1, %v13239_v20  ;;  %v13269_v51 = vsel %vm6004_vm11, %v13132_v5, %v8110_v54  ;;  %v14538_v20 = vld [vmem:[#allocation7_spill] sm:$0xff] }
 0xbdd   : > { %v13244_v2 = vadd.f32 %v8661_v30, %v3305_v24  ;;  %v10046_v41 = vpop.eup %10045  ;;  %v4529_v37 = vpop.permute.xlu1 %4528  ;;  %v8106_v53 = vadd.f32 -1.0, %v10044_v14  ;;  %v7815_v30 = vld [vmem:[%s14358_s3 + $0x5c0] sm:$0xff] }
 0xbde   : > { %v6020_v38 = vmin.f32 %v13241_v46, 0.0  ;;  %v13251_v57 = vsel %vm6002_vm9, %v13168_v55, %v8108_v45  ;;  %v10048_v28 = vpop.eup %10047  ;;  %8843 = vmatprep.subr.mxu0 %v4529_v37  ;;  %v8104_v26 = vadd.f32 -1.0, %v10046_v41  ;;  %v7818_v37 = vld [vmem:[%s14358_s3 + $0x5d8] sm:$0xff]  ;;  %vm6008_vm4 = vcmp.gt.f32.partialorder %v13241_v46, 0.0 }
 0xbdf   : > { %v5826_v0 = vpop.permute.xlu0 %5825  ;;  %6127 = vrot.lane.b32.xlu0 %v13251_v57, %s10132_s11  ;;  %v3322_v3 = vmax.f32 %v13237_v12, %v13244_v2  ;;  %8844 = vmatpush3.msra.mxu0 %v12887_v15  ;;  %v10050_v36 = vpop.eup %10049  ;;  %v7811_v15 = vld [vmem:[%s14358_s3 + $0x5a0] sm:$0xff]  ;;  %v13285_v5 = vsel %vm6000_vm12, %v13149_v33, %v8106_v53  ;;  %v7820_v53 = vld [vmem:[%s14358_s3 + $0x5e8] sm:$0xff] }
 0xbe0   : > { %v6043_v50 = vmul.f32 1.442695, %v6020_v38  ;;  %v13257_v27 = vadd.f32 %v5988_v40, %v5826_v0  ;;  %v13262_v55 = vsel %vm5998_vm10, %v13185_v39, %v8104_v26  ;;  %v8109_v39 = vadd.f32 -1.0, %v10048_v28  ;;  %v7817_v26 = vld [vmem:[%s14358_s3 + $0x5d0] sm:$0xff]  ;;  %v8181_v2 = vld [vmem:[%s14358_s3 + $0x9e0] sm:$0xff] }
 0xbe1   : > { %6083 = vrot.lane.b32.xlu1 %v13262_v55, %s10133_s26  ;;  %v4527_v44 = vpop.permute.xlu1 %4526  ;;  %v8105_v45 = vadd.f32 -1.0, %v10050_v36 }
 0xbe2   : > { %10055 = vpow2.f32 %v6043_v50  ;;  %v6019_v48 = vmin.f32 %v13257_v27, 0.0  ;;  %v10052_v4 = vpop.eup %10051  ;;  %8845 = vmatprep.subr.mxu0 %v4527_v44  ;;  %v13292_v41 = vsel %vm6003_vm13, %v13153_v13, %v8109_v39  ;;  %v7827_v39 = vld [vmem:[%s14358_s3 + $0x620] sm:$0xff]  ;;  %vm6007_vm5 = vcmp.gt.f32.partialorder %v13257_v27, 0.0 }
 0xbe3   : > { %v5821_v47 = vpop.permute.xlu0 %5820  ;;  %6131 = vrot.lane.b32.xlu0 %v13269_v51, %s10132_s11  ;;  %8846 = vmatpush3.msra.mxu0 %v12899_v22  ;;  %v10054_v14 = vpop.eup %10053  ;;  %v7814_v22 = vld [vmem:[%s14358_s3 + $0x5b8] sm:$0xff]  ;;  %v8107_v33 = vadd.f32 -1.0, %v10052_v4  ;;  %v13305_v28 = vsel %vm5999_vm14, %v13166_v52, %v8105_v45  ;;  %v7821_v52 = vld [vmem:[%s14358_s3 + $0x5f0] sm:$0xff] }
 0xbe4   : > { %v6041_v6 = vmul.f32 1.442695, %v6019_v48  ;;  %v13280_v24 = vadd.f32 %v13210_v61, %v5821_v47  ;;  %4691 = vmatmul.mubr.f32.vlgmr.msra.gmra.mxu0 %v7811_v15  ;;  %v8103_v0 = vadd.f32 -1.0, %v10054_v14  ;;  %v7824_v48 = vld [vmem:[%s14358_s3 + $0x608] sm:$0xff]  ;;  %v7830_v45 = vld [vmem:[%s14358_s3 + $0x638] sm:$0xff] }
 0xbe5   : > { %6087 = vrot.lane.b32.xlu1 %v13285_v5, %s10133_s26  ;;  %v5816_v61 = vpop.permute.xlu1 %5815  ;;  %4695 = vmatprep.mubr.f32.mxu0 %v7815_v30  ;;  %v7826_v30 = vld [vmem:[%s14358_s3 + $0x618] sm:$0xff] }
 0xbe6   : > { %10057 = vpow2.f32 %v6041_v6  ;;  %v6018_v40 = vmin.f32 %v13280_v24, 0.0  ;;  %v5979_v38 = vadd.f32 %v13224_v21, %v5816_v61  ;;  %v13311_v21 = vsel %vm6001_vm15, %v13199_v8, %v8107_v33 }
 0xbe7   : > { %6129 = vrot.lane.b32.xlu0 %v13292_v41, %s10132_s11  ;;  %v13323_v8 = vsel %vm5997_vm3, %v13207_v31, %v8103_v0  ;;  %v7823_v31 = vld [vmem:[%s14358_s3 + $0x600] sm:$0xff]  ;;  %vm6006_vm6 = vcmp.gt.f32.partialorder %v13280_v24, 0.0  ;;  %v8148_v0 = vld [vmem:[%s14357_s2 + $0x338] sm:$0xff] }
 0xbe8   : > { %v6039_v54 = vmul.f32 1.442695, %v6018_v40  ;;  %v6017_v13 = vmin.f32 %v5979_v38, 0.0  ;;  %4696 = vmatmul.mubr.f32.gmra.mxu0 %v7814_v22  ;;  %v7829_v22 = vld [vmem:[%s14358_s3 + $0x630] sm:$0xff]  ;;  %vm6005_vm7 = vcmp.gt.f32.partialorder %v5979_v38, 0.0 }
 0xbe9   : > { %6085 = vrot.lane.b32.xlu1 %v13305_v28, %s10133_s26  ;;  %4700 = vmatprep.mubr.f32.mxu0 %v7818_v37 }
 0xbea   : > { %10059 = vpow2.f32 %v6039_v54  ;;  %v6037_v50 = vmul.f32 1.442695, %v6017_v13  ;;  %v7836_v54 = vld [vmem:[%s14358_s3 + $0x668] sm:$0xff]  ;;  %v7839_v13 = vld [vmem:[%s14358_s3 + $0x680] sm:$0xff] }
 0xbeb   : > { %6125 = vrot.lane.b32.xlu0 %v13311_v21, %s10132_s11 }
 0xbec   : > { %10061 = vpow2.f32 %v6037_v50  ;;  %4701 = vmatmul.mubr.f32.gmra.mxu0 %v7817_v26  ;;  %v7838_v26 = vld [vmem:[%s14358_s3 + $0x678] sm:$0xff] }
 0xbed   : > { %6081 = vrot.lane.b32.xlu1 %v13323_v8, %s10133_s26  ;;  %4705 = vmatprep.mubr.f32.mxu0 %v7821_v52  ;;  %v8144_v50 = vld [vmem:[%s14357_s2 + $0x318] sm:$0xff] }
 0xbee   : > { %v7842_v52 = vld [vmem:[%s14358_s3 + $0x698] sm:$0xff] }
 0xbef   : > { %v10056_v36 = vpop.eup %10055  ;;  %6123 = vrot.lane.b32.xlu0 %v13285_v5, %s10132_s11 }
 0xbf0   : > { %4706 = vmatmul.mubr.f32.gmra.mxu0 %v7820_v53  ;;  %v8114_v44 = vadd.f32 -1.0, %v10056_v36  ;;  %v8147_v53 = vld [vmem:[%s14357_s2 + $0x330] sm:$0xff] }
 0xbf1   : > { %6121 = vrot.lane.b32.xlu1 %v13305_v28, %s10132_s11  ;;  %4710 = vmatprep.mubr.f32.mxu0 %v7824_v48  ;;  %v7841_v36 = vld [vmem:[%s14358_s3 + $0x690] sm:$0xff] }
 0xbf2   : > { %v13349_v47 = vsel %vm6008_vm4, %v13241_v46, %v8114_v44  ;;  %v8143_v48 = vld [vmem:[%s14357_s2 + $0x310] sm:$0xff] }
 0xbf3   : > { %v10058_v15 = vpop.eup %10057  ;;  %6119 = vrot.lane.b32.xlu0 %v13262_v55, %s10132_s11  ;;  %v7845_v44 = vld [vmem:[%s14358_s3 + $0x6b0] sm:$0xff] }
 0xbf4   : > { %4711 = vmatmul.mubr.f32.gmra.mxu0 %v7823_v31  ;;  %v8113_v4 = vadd.f32 -1.0, %v10058_v15  ;;  %v8146_v31 = vld [vmem:[%s14357_s2 + $0x328] sm:$0xff] }
 0xbf5   : > { %6117 = vrot.lane.b32.xlu1 %v13323_v8, %s10132_s11  ;;  %4715 = vmatprep.mubr.f32.mxu0 %v7827_v39  ;;  %v7844_v39 = vld [vmem:[%s14358_s3 + $0x6a8] sm:$0xff] }
 0xbf6   : > { %v13361_v46 = vsel %vm6007_vm5, %v13257_v27, %v8113_v4  ;;  %v7833_v27 = vld [vmem:[%s14358_s3 + $0x650] sm:$0xff]  ;;  %v8142_v4 = vld [vmem:[%s14357_s2 + $0x308] sm:$0xff] }
 0xbf7   : > { %v10060_v6 = vpop.eup %10059  ;;  %6103 = vrot.lane.b32.xlu0 %v13349_v47, %s10133_s26 }
 0xbf8   : > { %v8112_v14 = vadd.f32 -1.0, %v10060_v6  ;;  %4716 = vmatmul.mubr.f32.gmra.mxu0 %v7826_v30  ;;  %v8145_v6 = vld [vmem:[%s14357_s2 + $0x320] sm:$0xff] }
 0xbf9   : > { %v10062_v40 = vpop.eup %10061  ;;  %6101 = vrot.lane.b32.xlu1 %v13361_v46, %s10133_s26  ;;  %4720 = vmatprep.mubr.f32.mxu0 %v7830_v45  ;;  %v7926_v45 = vld [vmem:[%s14358_s3 + $0x6c8] sm:$0xff] }
 0xbfa   : > { %v13367_v61 = vsel %vm6006_vm6, %v13280_v24, %v8112_v14  ;;  %v8111_v33 = vadd.f32 -1.0, %v10062_v40  ;;  %v7832_v24 = vld [vmem:[%s14358_s3 + $0x648] sm:$0xff]  ;;  %v8141_v14 = vld [vmem:[%s14357_s2 + $0x300] sm:$0xff] }
 0xbfb   : > { %6099 = vrot.lane.b32.xlu0 %v13367_v61, %s10133_s26 }
 0xbfc   : > { %4721 = vmatmul.mubr.f32.gmra.mxu0 %v7829_v22  ;;  %v13377_v37 = vsel %vm6005_vm7, %v5979_v38, %v8111_v33  ;;  %v7835_v38 = vld [vmem:[%s14358_s3 + $0x660] sm:$0xff]  ;;  %v8152_v22 = vld [vmem:[%s14357_s2 + $0x358] sm:$0xff] }
 0xbfd   : > { %6097 = vrot.lane.b32.xlu1 %v13377_v37, %s10133_s26  ;;  %4725 = vmatprep.mubr.f32.mxu0 %v7833_v27  ;;  %v8151_v27 = vld [vmem:[%s14357_s2 + $0x350] sm:$0xff] }
 0xbff   : > { %6095 = vrot.lane.b32.xlu0 %v13269_v51, %s10133_s26 }
 0xc00   : > { %4726 = vmatmul.mubr.f32.gmra.mxu0 %v7832_v24  ;;  %v8150_v24 = vld [vmem:[%s14357_s2 + $0x348] sm:$0xff] }
 0xc01   : > { %6093 = vrot.lane.b32.xlu1 %v13292_v41, %s10133_s26  ;;  %4730 = vmatprep.mubr.f32.mxu0 %v7836_v54 }
 0xc03   : > { %6091 = vrot.lane.b32.xlu0 %v13251_v57, %s10133_s26 }
 0xc04   : > { %4731 = vmatmul.mubr.f32.gmra.mxu0 %v7835_v38  ;;  %v8149_v38 = vld [vmem:[%s14357_s2 + $0x340] sm:$0xff] }
 0xc05   : > { %6089 = vrot.lane.b32.xlu1 %v13311_v21, %s10133_s26  ;;  %4735 = vmatprep.mubr.f32.mxu0 %v7839_v13 }
 0xc07   : > { %6591 = vperm.xlu0 %9869, %v8148_v0  }
 0xc08   : > { %4736 = vmatmul.mubr.f32.gmra.mxu0 %v7838_v26 }
 0xc09   : > { %6571 = vperm.xlu1 %9870, %v8144_v50   ;;  %4740 = vmatprep.mubr.f32.mxu0 %v7842_v52 }
 0xc0b   : > { %6586 = vperm.xlu0 %9869, %v8147_v53   ;;  %v8041_v53 = vld [vmem:[%s14358_s3 + $0x7f0] sm:$0xff] }
 0xc0c   : > { %4741 = vmatmul.mubr.f32.gmra.mxu0 %v7841_v36  ;;  %9768 = vmatprep.mubr.msk.f32.mxu1 %vm682_vm2, %v8041_v53  ;;  %v7952_v53 = vld [vmem:[%s14358_s3 + $0x798] sm:$0xff] }
 0xc0d   : > { %v5351_v15 = vpop.permute.xlu0 %5350  ;;  %6566 = vperm.xlu1 %9870, %v8143_v48   ;;  %4745 = vmatprep.mubr.f32.mxu0 %v7845_v44 }
 0xc0e   : > { %8924 = vmatprep.subr.mxu0 %v5351_v15 }
 0xc0f   : > { %6581 = vperm.xlu0 %9869, %v8146_v31   ;;  %v5307_v30 = vpop.permute.xlu1 %5306 }
 0xc10   : > { %4746 = vmatmul.mubr.f32.gmra.mxu0 %v7844_v39  ;;  %v7938_v39 = vld [vmem:[%s14358_s3 + $0x728] sm:$0xff] }
 0xc11   : > { %8925 = vmatpush3.msra.mxu0 %v5307_v30  ;;  %6561 = vperm.xlu1 %9870, %v8142_v4   ;;  %v7937_v4 = vld [vmem:[%s14358_s3 + $0x720] sm:$0xff] }
 0xc12   : > { %5472 = vmatprep.mubr.f32.mxu0 %v7926_v45  ;;  %v7941_v30 = vld [vmem:[%s14358_s3 + $0x740] sm:$0xff]  ;;  %v7944_v45 = vld [vmem:[%s14358_s3 + $0x758] sm:$0xff] }
 0xc13   : > { %6576 = vperm.xlu0 %9869, %v8145_v6   ;;  %v5349_v40 = vpop.permute.xlu0 %5348  ;;  %v7940_v6 = vld [vmem:[%s14358_s3 + $0x738] sm:$0xff] }
 0xc14   : > { %8926 = vmatprep.subr.mxu0 %v5349_v40  ;;  %v7943_v40 = vld [vmem:[%s14358_s3 + $0x750] sm:$0xff] }
 0xc15   : > { %v5305_v33 = vpop.permute.xlu1 %5304  ;;  %6556 = vperm.xlu1 %9870, %v8141_v14  }
 0xc16   : > { %8927 = vmatpush3.msra.mxu0 %v5305_v33 }
 0xc17   : > { %6611 = vperm.xlu0 %9869, %v8152_v22   ;;  %v7947_v22 = vld [vmem:[%s14358_s3 + $0x770] sm:$0xff] }
 0xc19   : > { %v5347_v54 = vpop.permute.xlu0 %5346  ;;  %6606 = vperm.xlu1 %9870, %v8151_v27  }
 0xc1a   : > { %8928 = vmatprep.subr.mxu0 %v5347_v54  ;;  %v7950_v54 = vld [vmem:[%s14358_s3 + $0x788] sm:$0xff] }
 0xc1b   : > { %6601 = vperm.xlu0 %9869, %v8150_v24   ;;  %v5303_v13 = vpop.permute.xlu1 %5302  ;;  %v7946_v24 = vld [vmem:[%s14358_s3 + $0x768] sm:$0xff] }
 0xc1c   : > { %8929 = vmatpush3.msra.mxu0 %v5303_v13 }
 0xc1d   : > { %6596 = vperm.xlu1 %9870, %v8149_v38  }
 0xc1f   : > { %6139 = vrot.lane.b32.xlu0 %v13349_v47, %s10132_s11  ;;  %v5345_v0 = vpop.permute.xlu0 %5344 }
 0xc20   : > { %8930 = vmatprep.subr.mxu0 %v5345_v0  ;;  %v7949_v0 = vld [vmem:[%s14358_s3 + $0x780] sm:$0xff] }
 0xc21   : > { %v5301_v26 = vpop.permute.xlu1 %5300  ;;  %6133 = vrot.lane.b32.xlu1 %v13377_v37, %s10132_s11 }
 0xc22   : > { %8931 = vmatpush3.msra.mxu0 %v5301_v26  ;;  %v7953_v26 = vld [vmem:[%s14358_s3 + $0x7a0] sm:$0xff] }
 0xc23   : > { %6135 = vrot.lane.b32.xlu0 %v13367_v61, %s10132_s11  ;;  %v5343_v50 = vpop.permute.xlu0 %5342 }
 0xc24   : > { %8932 = vmatprep.subr.mxu0 %v5343_v50 }
 0xc25   : > { %v5341_v52 = vpop.permute.xlu1 %5340  ;;  %6137 = vrot.lane.b32.xlu1 %v13361_v46, %s10132_s11  ;;  %8933 = vmatpush3.msra.mxu0 %v12429_v60 }
 0xc26   : > { %8934 = vmatprep.subr.mxu0 %v5341_v52 }
 0xc27   : > { %v5339_v36 = vpop.permute.xlu0 %5338  ;;  %8935 = vmatpush3.msra.mxu0 %v12433_v17 }
 0xc28   : > { %8936 = vmatprep.subr.mxu0 %v5339_v36  ;;  %v7956_v36 = vld [vmem:[%s14358_s3 + $0x7b8] sm:$0xff] }
 0xc29   : > { %v5337_v48 = vpop.permute.xlu1 %5336  ;;  %8937 = vmatpush3.msra.mxu0 %v12437_v29 }
 0xc2a   : > { %8938 = vmatprep.subr.mxu0 %v5337_v48 }
 0xc2b   : > { %v5323_v31 = vpop.permute.xlu0 %5322  ;;  %8939 = vmatpush3.msra.mxu0 %v12444_v56 }
 0xc2c   : > { %8940 = vmatprep.subr.mxu0 %v5323_v31 }
 0xc2d   : > { %v5321_v60 = vpop.permute.xlu1 %5320  ;;  %8941 = vmatpush3.msra.mxu0 %v13000_v35 }
 0xc2e   : > { %8942 = vmatprep.subr.mxu0 %v5321_v60  ;;  %v7955_v60 = vld [vmem:[%s14358_s3 + $0x7b0] sm:$0xff] }
 0xc2f   : > { %v5319_v44 = vpop.permute.xlu0 %5318  ;;  %8943 = vmatpush3.msra.mxu0 %v13019_v59  ;;  %v7925_v59 = vld [vmem:[%s14358_s3 + $0x6c0] sm:$0xff] }
 0xc30   : > { %8944 = vmatprep.subr.mxu0 %v5319_v44  ;;  %v7959_v44 = vld [vmem:[%s14358_s3 + $0x7d0] sm:$0xff] }
 0xc31   : > { %v5317_v17 = vpop.permute.xlu1 %5316  ;;  %8945 = vmatpush3.msra.mxu0 %v13040_v19  ;;  %v7929_v19 = vld [vmem:[%s14358_s3 + $0x6e0] sm:$0xff] }
 0xc32   : > { %8946 = vmatprep.subr.mxu0 %v5317_v17 }
 0xc33   : > { %v5315_v15 = vpop.permute.xlu0 %5314  ;;  %8947 = vmatpush3.msra.mxu0 %v13071_v23  ;;  %v7935_v23 = vld [vmem:[%s14358_s3 + $0x710] sm:$0xff] }
 0xc34   : > { %8948 = vmatprep.subr.mxu0 %v5315_v15 }
 0xc35   : > { %v5313_v29 = vpop.permute.xlu1 %5312  ;;  %8949 = vmatpush3.msra.mxu0 %v13007_v7  ;;  %v7928_v7 = vld [vmem:[%s14358_s3 + $0x6d8] sm:$0xff] }
 0xc36   : > { %8950 = vmatprep.subr.mxu0 %v5313_v29  ;;  %v7958_v29 = vld [vmem:[%s14358_s3 + $0x7c8] sm:$0xff] }
 0xc37   : > { %v5311_v56 = vpop.permute.xlu0 %5310  ;;  %8951 = vmatpush3.msra.mxu0 %v13028_v18  ;;  %v7932_v18 = vld [vmem:[%s14358_s3 + $0x6f8] sm:$0xff] }
 0xc38   : > { %8952 = vmatprep.subr.mxu0 %v5311_v56  ;;  %v8040_v56 = vld [vmem:[%s14358_s3 + $0x7e8] sm:$0xff] }
 0xc39   : > { %v5309_v35 = vpop.permute.xlu1 %5308  ;;  %8953 = vmatpush3.msra.mxu0 %v13055_v58  ;;  %v7931_v58 = vld [vmem:[%s14358_s3 + $0x6f0] sm:$0xff] }
 0xc3a   : > { %8954 = vmatprep.subr.mxu0 %v5309_v35 }
 0xc3b   : > { %8955 = vmatpush3.msra.mxu0 %v13077_v49  ;;  %v7934_v49 = vld [vmem:[%s14358_s3 + $0x708] sm:$0xff] }
 0xc3c   : > { %5473 = vmatmul.mubr.f32.vlgmr.msra.gmra.mxu0 %v7925_v59 }
 0xc3d   : > { %5477 = vmatprep.mubr.f32.mxu0 %v7929_v19 }
 0xc40   : > { %5478 = vmatmul.mubr.f32.gmra.mxu0 %v7928_v7 }
 0xc41   : > { %5482 = vmatprep.mubr.f32.mxu0 %v7932_v18 }
 0xc44   : > { %5483 = vmatmul.mubr.f32.gmra.mxu0 %v7931_v58 }
 0xc45   : > { %5487 = vmatprep.mubr.f32.mxu0 %v7935_v23 }
 0xc48   : > { %5488 = vmatmul.mubr.f32.gmra.mxu0 %v7934_v49 }
 0xc49   : > { %5492 = vmatprep.mubr.f32.mxu0 %v7938_v39 }
 0xc4c   : > { %5493 = vmatmul.mubr.f32.gmra.mxu0 %v7937_v4 }
 0xc4d   : > { %5497 = vmatprep.mubr.f32.mxu0 %v7941_v30 }
 0xc50   : > { %5498 = vmatmul.mubr.f32.gmra.mxu0 %v7940_v6  ;;  %v14497_v6 = vld [vmem:[#allocation39_spill] sm:$0xff] }
 0xc51   : > { %v6128_v14 = vpop.permute.xlu0 %6127  ;;  %5502 = vmatprep.mubr.f32.mxu0 %v7944_v45 }
 0xc53   : > { %v6084_v33 = vpop.permute.xlu1 %6083 }
 0xc54   : > { %5503 = vmatmul.mubr.f32.gmra.mxu0 %v7943_v40 }
 0xc55   : > { %v6132_v27 = vpop.permute.xlu0 %6131  ;;  %5507 = vmatprep.mubr.f32.mxu0 %v7947_v22 }
 0xc56   : > { %9033 = vmatprep.subr.mxu0 %v6132_v27  ;;  %v8039_v27 = vld [vmem:[%s14358_s3 + $0x7e0] sm:$0xff] }
 0xc57   : > { %v6088_v38 = vpop.permute.xlu1 %6087 }
 0xc58   : > { %5508 = vmatmul.mubr.f32.gmra.mxu0 %v7946_v24  ;;  %v8203_v24 = vld [vmem:[%s10188_s29 + $0x130] sm:$0xf] }
 0xc59   : > { %v6130_v13 = vpop.permute.xlu0 %6129  ;;  %9034 = vmatpush3.msra.mxu0 %v6088_v38  ;;  %5512 = vmatprep.mubr.f32.mxu0 %v7950_v54  ;;  %v8043_v38 = vld [vmem:[%s14358_s3 + $0x800] sm:$0xff] }
 0xc5a   : > { %9035 = vmatprep.subr.mxu0 %v6130_v13 }
 0xc5b   : > { %v6086_v50 = vpop.permute.xlu1 %6085 }
 0xc5c   : > { %5513 = vmatmul.mubr.f32.gmra.mxu0 %v7949_v0  ;;  %v14500_v0 = vld [vmem:[#allocation40_spill] sm:$0xff] }
 0xc5d   : > { %v6126_v52 = vpop.permute.xlu0 %6125  ;;  %9036 = vmatpush3.msra.mxu0 %v6086_v50  ;;  %5517 = vmatprep.mubr.f32.mxu0 %v7953_v26 }
 0xc5e   : > { %9037 = vmatprep.subr.mxu0 %v6128_v14  ;;  %v14498_v14 = vld [vmem:[#allocation41_spill] sm:$0xff] }
 0xc5f   : > { %9038 = vmatpush3.msra.mxu0 %v6084_v33  ;;  %v6082_v48 = vpop.permute.xlu1 %6081 }
 0xc60   : > { %9039 = vmatprep.subr.mxu0 %v6126_v52  ;;  %5518 = vmatmul.mubr.f32.gmra.mxu0 %v7952_v53 }
 0xc61   : > { %v6124_v31 = vpop.permute.xlu0 %6123  ;;  %9040 = vmatpush3.msra.mxu0 %v6082_v48  ;;  %5522 = vmatprep.mubr.f32.mxu0 %v7956_v36  ;;  %v8042_v36 = vld [vmem:[%s14358_s3 + $0x7f8] sm:$0xff]  ;;  %v8201_v48 = vld [vmem:[%s10188_s29 + $0x120] sm:$0xff] }
 0xc62   : > { %9041 = vmatprep.subr.mxu0 %v6124_v31 }
 0xc63   : > { %9042 = vmatpush3.msra.mxu0 %v13349_v47  ;;  %v6122_v17 = vpop.permute.xlu1 %6121 }
 0xc64   : > { %5523 = vmatmul.mubr.f32.gmra.mxu0 %v7955_v60  ;;  %9043 = vmatprep.subr.mxu0 %v6122_v17  ;;  %v14501_v60 = vld [vmem:[#allocation43_spill] sm:$0xff]  ;;  %v8200_v17 = vld [vmem:[%s10188_s29 + $0x118] sm:$0xff] }
 0xc65   : > { %v6120_v15 = vpop.permute.xlu0 %6119  ;;  %9044 = vmatpush3.msra.mxu0 %v13361_v46  ;;  %5527 = vmatprep.mubr.f32.mxu0 %v7959_v44 }
 0xc66   : > { %9045 = vmatprep.subr.mxu0 %v6120_v15 }
 0xc67   : > { %9046 = vmatpush3.msra.mxu0 %v13367_v61  ;;  %v6118_v35 = vpop.permute.xlu1 %6117 }
 0xc68   : > { %v8738_v47 = vpop.f32.mrf.mxu0  ;;  %5528 = vmatmul.mubr.f32.gmra.mxu0 %v7958_v29  ;;  %9047 = vmatprep.subr.mxu0 %v6118_v35  ;;  %v8045_v35 = vld [vmem:[%s14358_s3 + $0x810] sm:$0xff] }
 0xc69   : > { %v6104_v59 = vpop.permute.xlu0 %6103  ;;  %9048 = vmatpush3.msra.mxu0 %v13377_v37  ;;  %6253 = vmatprep.mubr.f32.mxu0 %v8040_v56 }
 0xc6a   : > { %v8739_v46 = vpop.f32.mrf.mxu0  ;;  %9049 = vmatprep.subr.mxu0 %v6104_v59 }
 0xc6b   : > { %9050 = vmatpush3.msra.mxu0 %v13269_v51  ;;  %v6102_v19 = vpop.permute.xlu1 %6101  ;;  %v8740_v37 = vadd.f32 %v8739_v46, %v8738_v47  ;;  %v8199_v47 = vld [vmem:[%s10188_s29 + $0x110] sm:$0xff] }
 0xc6c   : > { %v8741_v7 = vpop.f32.mrf.mxu0  ;;  %9051 = vmatprep.subr.mxu0 %v6102_v19  ;;  %v8049_v46 = vld [vmem:[%s14358_s3 + $0x830] sm:$0xff]  ;;  %v14502_v19 = vld [vmem:[#allocation42_spill] sm:$0xff] }
 0xc6d   : > { %v6100_v18 = vpop.permute.xlu0 %6099  ;;  %9052 = vmatpush3.msra.mxu0 %v13292_v41  ;;  %v4037_v45 = vadd.f32 %v8740_v37, %v14497_v6  ;;  %v8048_v37 = vld [vmem:[%s14358_s3 + $0x828] sm:$0xff] }
 0xc6e   : > { %v8742_v58 = vpop.f32.mrf.mxu0  ;;  %9053 = vmatprep.subr.mxu0 %v6100_v18 }
 0xc6f   : > { %9054 = vmatpush3.msra.mxu0 %v13251_v57  ;;  %v6098_v61 = vpop.permute.xlu1 %6097  ;;  %v8743_v57 = vadd.f32 %v8742_v58, %v8741_v7  ;;  %v8198_v58 = vld [vmem:[%s10188_s29 + $0x108] sm:$0xff] }
 0xc70   : > { %v8744_v23 = vpop.f32.mrf.mxu0  ;;  %9055 = vmatprep.subr.mxu0 %v6098_v61 }
 0xc71   : > { %v6096_v49 = vpop.permute.xlu0 %6095  ;;  %9056 = vmatpush3.msra.mxu0 %v13311_v21 }
 0xc72   : > { %v8745_v39 = vpop.f32.mrf.mxu0  ;;  %9057 = vmatprep.subr.mxu0 %v6096_v49 }
 0xc73   : > { %v8746_v51 = vadd.f32 %v8745_v39, %v8744_v23  ;;  %9058 = vmatpush3.msra.mxu0 %v13285_v5  ;;  %v6094_v4 = vpop.permute.xlu1 %6093  ;;  %v8197_v39 = vld [vmem:[%s10188_s29 + $0x100] sm:$0xff] }
 0xc74   : > { %v8747_v30 = vpop.f32.mrf.mxu0  ;;  %9059 = vmatprep.subr.mxu0 %v6094_v4 }
 0xc75   : > { %v6092_v41 = vpop.permute.xlu0 %6091  ;;  %v4047_v40 = vadd.f32 %v8746_v51, %v14498_v14  ;;  %9060 = vmatpush3.msra.mxu0 %v13305_v28  ;;  %v14499_v28 = vld [vmem:[#allocation38_spill] sm:$0xff] }
 0xc76   : > { %v8748_v22 = vpop.f32.mrf.mxu0  ;;  %9061 = vmatprep.subr.mxu0 %v6092_v41  ;;  %v4042_v13 = vadd.f32 %v14499_v28, %v8743_v57  ;;  %v14503_v41 = vld [vmem:[#allocation45_spill] sm:$0xff] }
 0xc77   : > { %v4095_v21 = vmax.f32 %v4037_v45, %v4047_v40  ;;  %v8749_v33 = vadd.f32 %v8748_v22, %v8747_v30  ;;  %9062 = vmatpush3.msra.mxu0 %v13262_v55  ;;  %v6090_v5 = vpop.permute.xlu1 %6089  ;;  %v8202_v55 = vld [vmem:[%s10188_s29 + $0x128] sm:$0xff]  ;;  %v8196_v57 = vld [vmem:[%s10188_s29 + $0xf8] sm:$0xff] }
 0xc78   : > { %v8750_v54 = vpop.f32.mrf.mxu0  ;;  %9063 = vmatprep.subr.mxu0 %v6090_v5  ;;  %v8052_v30 = vld [vmem:[%s14358_s3 + $0x848] sm:$0xff] }
 0xc79   : > { %v4052_v26 = vadd.f32 %v14500_v0, %v8749_v33  ;;  %9064 = vmatpush3.msra.mxu0 %v13323_v8  ;;  %v8046_v8 = vld [vmem:[%s14358_s3 + $0x818] sm:$0xff]  ;;  %v8195_v33 = vld [vmem:[%s10188_s29 + $0xf0] sm:$0xff] }
 0xc7a   : > { %v8751_v50 = vpop.f32.mrf.mxu0  ;;  %6254 = vmatmul.mubr.f32.vlgmr.msra.gmra.mxu0 %v8039_v27  ;;  %9786 = vmatprep.subr.msk.mxu0 %vm397_vm1, %v8203_v24 }
 0xc7b   : > { %v4096_v52 = vmax.f32 %v4042_v13, %v4052_v26  ;;  %v8752_v53 = vadd.f32 %v8751_v50, %v8750_v54  ;;  %6258 = vmatprep.mubr.f32.mxu0 %v8043_v38  ;;  %9787 = vmatpush3.msk.msra.mxu0 %vm397_vm1, %v8203_v24  ;;  %v8055_v24 = vld [vmem:[%s14358_s3 + $0x860] sm:$0xff]  ;;  %v14504_v54 = vld [vmem:[#allocation44_spill] sm:$0xff]  ;;  %v8194_v13 = vld [vmem:[%s10188_s29 + $0xe8] sm:$0xff] }
 0xc7c   : > { %v8753_v31 = vpop.f32.mrf.mxu0  ;;  %9788 = vmatprep.subr.mxu0 %v8202_v55  ;;  %v8054_v50 = vld [vmem:[%s14358_s3 + $0x858] sm:$0xff] }
 0xc7d   : > { %v4057_v44 = vadd.f32 %v8752_v53, %v14501_v60  ;;  %9789 = vmatpush3.msra.mxu0 %v8202_v55 }
 0xc7e   : > { %v8754_v15 = vpop.f32.mrf.mxu0  ;;  %6259 = vmatmul.mubr.f32.gmra.mxu0 %v8042_v36  ;;  %9790 = vmatprep.subr.mxu0 %v8201_v48 }
 0xc7f   : > { %v13586_v29 = vmax.f32 %v4095_v21, %v4057_v44  ;;  %v8755_v56 = vadd.f32 %v8754_v15, %v8753_v31  ;;  %6263 = vmatprep.mubr.f32.mxu0 %v8046_v8  ;;  %9791 = vmatpush3.msra.mxu0 %v8201_v48  ;;  %v8051_v21 = vld [vmem:[%s14358_s3 + $0x840] sm:$0xff]  ;;  %v8058_v48 = vld [vmem:[%s14358_s3 + $0x878] sm:$0xff]  ;;  %v14505_v31 = vld [vmem:[#allocation47_spill] sm:$0xff] }
 0xc80   : > { %v8756_v59 = vpop.f32.mrf.mxu0  ;;  %9792 = vmatprep.subr.mxu0 %v8200_v17  ;;  %v8192_v44 = vld [vmem:[%s10188_s29 + $0xd8] sm:$0xff] }
 0xc81   : > { %v4062_v7 = vadd.f32 %v14502_v19, %v8755_v56  ;;  %9793 = vmatpush3.msra.mxu0 %v8200_v17  ;;  %v8191_v56 = vld [vmem:[%s10188_s29 + $0xd0] sm:$0xff]  ;;  %v14506_v19 = vld [vmem:[#allocation46_spill] sm:$0xff] }
 0xc82   : > { %v13596_v18 = vpop.permute.xlu0 %6591  ;;  %v8757_v61 = vpop.f32.mrf.mxu0  ;;  %6264 = vmatmul.mubr.f32.gmra.mxu0 %v8045_v35  ;;  %9794 = vmatprep.subr.mxu0 %v8199_v47 }
 0xc83   : > { %v13599_v23 = vmax.f32 %v4096_v52, %v4062_v7  ;;  %v8758_v49 = vadd.f32 %v8757_v61, %v8756_v59  ;;  %6268 = vmatprep.mubr.f32.mxu0 %v8049_v46  ;;  %9795 = vmatpush3.msra.mxu0 %v8199_v47  ;;  %v8193_v52 = vld [vmem:[%s10188_s29 + $0xe0] sm:$0xff]  ;;  %v8061_v46 = vld [vmem:[%s14358_s3 + $0x890] sm:$0xff] }
 0xc84   : > { %v8759_v51 = vpop.f32.mrf.mxu0  ;;  %v13605_v4 = vpop.permute.xlu1 %6571  ;;  %9796 = vmatprep.subr.mxu0 %v8198_v58 }
 0xc85   : > { %v4067_v6 = vadd.f32 %v8758_v49, %v14503_v41  ;;  %9797 = vmatpush3.msra.mxu0 %v8198_v58  ;;  %v8060_v49 = vld [vmem:[%s14358_s3 + $0x888] sm:$0xff]  ;;  %v14507_v41 = vld [vmem:[#allocation49_spill] sm:$0xff] }
 0xc86   : > { %v13611_v45 = vpop.permute.xlu0 %6586  ;;  %v8760_v14 = vpop.f32.mrf.mxu0  ;;  %6269 = vmatmul.mubr.f32.gmra.mxu0 %v8048_v37  ;;  %9798 = vmatprep.subr.mxu0 %v8197_v39 }
 0xc87   : > { %v4099_v40 = vmax.f32 %v13586_v29, %v4067_v6  ;;  %v8761_v22 = vadd.f32 %v8760_v14, %v8759_v51  ;;  %6273 = vmatprep.mubr.f32.mxu0 %v8052_v30  ;;  %9799 = vmatpush3.msra.mxu0 %v8197_v39  ;;  %v8057_v29 = vld [vmem:[%s14358_s3 + $0x870] sm:$0xff]  ;;  %v8064_v30 = vld [vmem:[%s14358_s3 + $0x8a8] sm:$0xff] }
 0xc88   : > { %v8762_v5 = vpop.f32.mrf.mxu0  ;;  %v13619_v27 = vpop.permute.xlu1 %6566  ;;  %9800 = vmatprep.subr.mxu0 %v8196_v57 }
 0xc89   : > { %v4072_v38 = vadd.f32 %v14504_v54, %v8761_v22  ;;  %9801 = vmatpush3.msra.mxu0 %v8196_v57  ;;  %v8063_v22 = vld [vmem:[%s14358_s3 + $0x8a0] sm:$0xff] }
 0xc8a   : > { %v13625_v28 = vpop.permute.xlu0 %6581  ;;  %v8763_v0 = vpop.f32.mrf.mxu0  ;;  %6274 = vmatmul.mubr.f32.gmra.mxu0 %v8051_v21  ;;  %9802 = vmatprep.subr.mxu0 %v8195_v33 }
 0xc8b   : > { %v4100_v26 = vmax.f32 %v13599_v23, %v4072_v38  ;;  %v8764_v55 = vadd.f32 %v8763_v0, %v8762_v5  ;;  %6278 = vmatprep.mubr.f32.mxu0 %v8055_v24  ;;  %9803 = vmatpush3.msra.mxu0 %v8195_v33  ;;  %v8067_v5 = vld [vmem:[%s14358_s3 + $0x8c0] sm:$0xff]  ;;  %v14508_v24 = vld [vmem:[#allocation48_spill] sm:$0xff] }
 0xc8c   : > { %v8765_v53 = vpop.f32.mrf.mxu0  ;;  %v13633_v36 = vpop.permute.xlu1 %6561  ;;  %9804 = vmatprep.subr.mxu0 %v8194_v13 }
 0xc8d   : > { %v4077_v8 = vadd.f32 %v8764_v55, %v14505_v31  ;;  %9805 = vmatpush3.msra.mxu0 %v8194_v13  ;;  %v8066_v13 = vld [vmem:[%s14358_s3 + $0x8b8] sm:$0xff]  ;;  %v8072_v31 = vld [vmem:[%s14358_s3 + $0x8e8] sm:$0xff] }
 0xc8e   : > { %v13639_v60 = vpop.permute.xlu0 %6576  ;;  %v8766_v17 = vpop.f32.mrf.mxu0  ;;  %6279 = vmatmul.mubr.f32.gmra.mxu0 %v8054_v50  ;;  %9806 = vmatprep.subr.mxu0 %v8193_v52  ;;  %v8070_v55 = vld [vmem:[%s14358_s3 + $0x8d8] sm:$0xff]  ;;  %v8069_v50 = vld [vmem:[%s14358_s3 + $0x8d0] sm:$0xff] }
 0xc8f   : > { %v8767_v15 = vadd.f32 %v8766_v17, %v8765_v53  ;;  %6283 = vmatprep.mubr.f32.mxu0 %v8058_v48  ;;  %9807 = vmatpush3.msra.mxu0 %v8193_v52  ;;  %v13646_v35 = vmax.f32 %v4099_v40, %v4077_v8  ;;  %v8073_v53 = vld [vmem:[%s14358_s3 + $0x8f0] sm:$0xff]  ;;  %v8129_v17 = vld [vmem:[%s14356_s1 + $0x300] sm:$0xff] }
 0xc90   : > { %v8768_v47 = vpop.f32.mrf.mxu0  ;;  %v13648_v59 = vpop.permute.xlu1 %6556  ;;  %9808 = vmatprep.subr.mxu0 %v8192_v44 }
 0xc91   : > { %v4082_v7 = vadd.f32 %v14506_v19, %v8767_v15  ;;  %9809 = vmatpush3.msra.mxu0 %v8192_v44  ;;  %v8044_v44 = vld [vmem:[%s14358_s3 + $0x808] sm:$0xff]  ;;  %v8047_v15 = vld [vmem:[%s14358_s3 + $0x820] sm:$0xff]  ;;  %v8050_v19 = vld [vmem:[%s14358_s3 + $0x838] sm:$0xff] }
 0xc92   : > { %v13654_v58 = vpop.permute.xlu0 %6611  ;;  %v8769_v61 = vpop.f32.mrf.mxu0  ;;  %6284 = vmatmul.mubr.f32.gmra.mxu0 %v8057_v29  ;;  %9810 = vmatprep.subr.mxu0 %v8191_v56 }
 0xc93   : > { %v8770_v23 = vadd.f32 %v8769_v61, %v8768_v47  ;;  %6288 = vmatprep.mubr.f32.mxu0 %v8061_v46  ;;  %9811 = vmatpush3.msra.mxu0 %v8191_v56  ;;  %v13659_v37 = vmax.f32 %v4100_v26, %v4082_v7  ;;  %v8130_v47 = vld [vmem:[%s14356_s1 + $0x308] sm:$0xff]  ;;  %v8131_v7 = vld [vmem:[%s14356_s1 + $0x310] sm:$0xff] }
 0xc94   : > { %v8771_v39 = vpop.f32.mrf.mxu0  ;;  %v13661_v51 = vpop.permute.xlu1 %6606  ;;  %v8053_v61 = vld [vmem:[%s14358_s3 + $0x850] sm:$0xff] }
 0xc95   : > { %v13667_v6 = vadd.f32 %v8770_v23, %v14507_v41  ;;  %v8056_v41 = vld [vmem:[%s14358_s3 + $0x868] sm:$0xff] }
 0xc96   : > { %v13669_v57 = vpop.permute.xlu0 %6601  ;;  %v8772_v14 = vpop.f32.mrf.mxu0  ;;  %6289 = vmatmul.mubr.f32.gmra.mxu0 %v8060_v49 }
 0xc97   : > { %v8773_v40 = vadd.f32 %v8772_v14, %v8771_v39  ;;  %6293 = vmatprep.mubr.f32.mxu0 %v8064_v30  ;;  %v4103_v21 = vmax.f32 %v13646_v35, %v13667_v6  ;;  %v8132_v39 = vld [vmem:[%s14356_s1 + $0x318] sm:$0xff]  ;;  %v8133_v14 = vld [vmem:[%s14356_s1 + $0x320] sm:$0xff] }
 0xc98   : > { %v13676_v33 = vpop.permute.xlu1 %6596  ;;  %v8184_v35 = vld [vmem:[%s14358_s3 + $0x9f8] sm:$0xff] }
 0xc99   : > { %v13682_v54 = vadd.f32 %v14508_v24, %v8773_v40  ;;  %v8059_v40 = vld [vmem:[%s14358_s3 + $0x880] sm:$0xff]  ;;  %v8134_v24 = vld [vmem:[%s14356_s1 + $0x328] sm:$0xff] }
 0xc9a   : > { %v6140_v38 = vpop.permute.xlu0 %6139  ;;  %6294 = vmatmul.mubr.f32.gmra.mxu0 %v8063_v22 }
 0xc9b   : > { %9760 = vmatprep.subr.mxu1 %v6140_v38  ;;  %6298 = vmatprep.mubr.f32.mxu0 %v8067_v5  ;;  %v4104_v0 = vmax.f32 %v13659_v37, %v13682_v54 }
 0xc9c   : > { %9761 = vmatpush3.msra.mxu1 %v6140_v38  ;;  %v6134_v26 = vpop.permute.xlu1 %6133 }
 0xc9e   : > { %6299 = vmatmul.mubr.f32.gmra.mxu0 %v8066_v13  ;;  %v6136_v48 = vpop.permute.xlu0 %6135  ;;  %v8062_v13 = vld [vmem:[%s14358_s3 + $0x898] sm:$0xff] }
 0xc9f   : > { %6303 = vmatprep.mubr.f32.mxu0 %v8070_v55  ;;  %v14509_v55 = vld [vmem:[#allocation51_spill] sm:$0xff] }
 0xca0   : > { %v6138_v52 = vpop.permute.xlu1 %6137 }
 0xca1   : > { %9762 = vmatprep.subr.mxu1 %v6138_v52 }
 0xca2   : > { %6304 = vmatmul.mubr.f32.gmra.mxu0 %v8069_v50  ;;  %9763 = vmatpush3.msra.mxu1 %v6138_v52  ;;  %v14510_v52 = vld [vmem:[#allocation53_spill] sm:$0xff] }
 0xca3   : > { %9764 = vmatprep.subr.mxu1 %v6136_v48  ;;  %6308 = vmatprep.mubr.f32.mxu0 %v8073_v53 }
 0xca4   : > { %v8847_v8 = vpop.f32.mrf.mxu0  ;;  %9765 = vmatpush3.msra.mxu1 %v6136_v48  ;;  %v8065_v48 = vld [vmem:[%s14358_s3 + $0x8b0] sm:$0xff] }
 0xca5   : > { %9766 = vmatprep.subr.mxu1 %v6134_v26 }
 0xca6   : > { %v8848_v29 = vpop.f32.mrf.mxu0  ;;  %6309 = vmatmul.mubr.f32.gmra.mxu0 %v8072_v31  ;;  %9767 = vmatpush3.msra.mxu1 %v6134_v26  ;;  %v8135_v26 = vld [vmem:[%s14356_s1 + $0x330] sm:$0xff] }
 0xca7   : > { %v8849_v56 = vadd.f32 %v8848_v29, %v8847_v8  ;;  %9769 = vmatmul.mubr.msk.f32.vlgmr.msra.gmra.mxu1 %vm682_vm2, %v8044_v44  ;;  %9812 = vmatprep.mubr.msk.f32.mxu0 %vm360_vm0, %v8129_v17  ;;  %v8136_v17 = vld [vmem:[%s14356_s1 + $0x338] sm:$0xff]  ;;  %v8068_v29 = vld [vmem:[%s14358_s3 + $0x8c8] sm:$0xff] }
 0xca8   : > { %v8850_v46 = vpop.f32.mrf.mxu0  ;;  %9771 = vmatprep.mubr.msk.f32.mxu1 %vm682_vm2, %v8047_v15 }
 0xca9   : > { %v4818_v50 = vadd.f32 %v8849_v56, %v14509_v55  ;;  %v8137_v56 = vld [vmem:[%s14356_s1 + $0x340] sm:$0xff] }
 0xcaa   : > { %v8851_v23 = vpop.f32.mrf.mxu0  ;;  %9813 = vmatmul.mubr.msk.f32.vlgmr.msra.gmra.mxu0 %vm360_vm0, %v8130_v47  ;;  %v14511_v47 = vld [vmem:[#allocation50_spill] sm:$0xff] }
 0xcab   : > { %v8852_v49 = vadd.f32 %v8851_v23, %v8850_v46  ;;  %9772 = vmatmul.mubr.msk.f32.gmra.mxu1 %vm682_vm2, %v8050_v19  ;;  %9815 = vmatprep.mubr.msk.f32.mxu0 %vm360_vm0, %v8131_v7  ;;  %v14512_v19 = vld [vmem:[#allocation52_spill] sm:$0xff] }
 0xcac   : > { %v8853_v30 = vpop.f32.mrf.mxu0  ;;  %9774 = vmatprep.mubr.msk.f32.mxu1 %vm682_vm2, %v8053_v61  ;;  %v8071_v61 = vld [vmem:[%s14358_s3 + $0x8e0] sm:$0xff] }
 0xcad   : > { %v4823_v46 = vadd.f32 %v14511_v47, %v8852_v49 }
 0xcae   : > { %v8854_v22 = vpop.f32.mrf.mxu0  ;;  %9816 = vmatmul.mubr.msk.f32.gmra.mxu0 %vm360_vm0, %v8132_v39 }
 0xcaf   : > { %v8855_v5 = vadd.f32 %v8854_v22, %v8853_v30  ;;  %9775 = vmatmul.mubr.msk.f32.gmra.mxu1 %vm682_vm2, %v8056_v41  ;;  %9818 = vmatprep.mubr.msk.f32.mxu0 %vm360_vm0, %v8133_v14  ;;  %v8138_v41 = vld [vmem:[%s14356_s1 + $0x348] sm:$0xff]  ;;  %v8074_v14 = vld [vmem:[%s14358_s3 + $0x8f8] sm:$0xff] }
 0xcb0   : > { %v8856_v38 = vpop.f32.mrf.mxu0  ;;  %9777 = vmatprep.mubr.msk.f32.mxu1 %vm682_vm2, %v8059_v40  ;;  %v8139_v40 = vld [vmem:[%s14356_s1 + $0x350] sm:$0xff]  ;;  %v14513_v22 = vld [vmem:[#allocation55_spill] sm:$0xff] }
 0xcb1   : > { %v4828_v53 = vadd.f32 %v8855_v5, %v14510_v52 }
 0xcb2   : > { %v8857_v31 = vpop.f32.mrf.mxu0  ;;  %9819 = vmatmul.mubr.msk.f32.gmra.mxu0 %vm360_vm0, %v8134_v24 }
 0xcb3   : > { %v4876_v8 = vmax.f32 %v4818_v50, %v4828_v53  ;;  %v8858_v44 = vadd.f32 %v8857_v31, %v8856_v38  ;;  %9778 = vmatmul.mubr.msk.f32.gmra.mxu1 %vm682_vm2, %v8062_v13  ;;  %9821 = vmatprep.mubr.msk.f32.mxu0 %vm360_vm0, %v8135_v26  ;;  %v8140_v26 = vld [vmem:[%s14356_s1 + $0x358] sm:$0xff]  ;;  %v14514_v50 = vld [vmem:[#allocation54_spill] sm:$0xff] }
 0xcb4   : > { %v8859_v15 = vpop.f32.mrf.mxu0  ;;  %9780 = vmatprep.mubr.msk.f32.mxu1 %vm682_vm2, %v8065_v48 }
 0xcb5   : > { %v4833_v7 = vadd.f32 %v14512_v19, %v8858_v44 }
 0xcb6   : > { %v8860_v23 = vpop.f32.mrf.mxu0  ;;  %9822 = vmatmul.mubr.msk.f32.gmra.mxu0 %vm360_vm0, %v8136_v17  ;;  %v14515_v17 = vld [vmem:[#allocation57_spill] sm:$0xff] }
 0xcb7   : > { %v4877_v39 = vmax.f32 %v4823_v46, %v4833_v7  ;;  %v8861_v30 = vadd.f32 %v8860_v23, %v8859_v15  ;;  %9781 = vmatmul.mubr.msk.f32.gmra.mxu1 %vm682_vm2, %v8068_v29  ;;  %9824 = vmatprep.mubr.msk.f32.mxu0 %vm360_vm0, %v8137_v56  ;;  %v14516_v46 = vld [vmem:[#allocation56_spill] sm:$0xff] }
 0xcb8   : > { %v8862_v49 = vpop.f32.mrf.mxu0  ;;  %9783 = vmatprep.mubr.msk.f32.mxu1 %vm682_vm2, %v8071_v61 }
 0xcb9   : > { %v4838_v5 = vadd.f32 %v8861_v30, %v14513_v22 }
 0xcba   : > { %v8863_v24 = vpop.f32.mrf.mxu0  ;;  %9825 = vmatmul.mubr.msk.f32.gmra.mxu0 %vm360_vm0, %v8138_v41  ;;  %v14517_v41 = vld [vmem:[#allocation59_spill] sm:$0xff] }
 0xcbb   : > { %v4878_v38 = vmax.f32 %v4876_v8, %v4838_v5  ;;  %v8864_v13 = vadd.f32 %v8863_v24, %v8862_v49  ;;  %9784 = vmatmul.mubr.msk.f32.gmra.mxu1 %vm682_vm2, %v8074_v14  ;;  %9827 = vmatprep.mubr.msk.f32.mxu0 %vm360_vm0, %v8139_v40  ;;  %v14518_v5 = vld [vmem:[#allocation58_spill] sm:$0xff] }
 0xcbc   : > { %v8865_v55 = vpop.f32.mrf.mxu0 }
 0xcbd   : > { %v4843_v52 = vadd.f32 %v14514_v50, %v8864_v13  ;;  %v14519_v50 = vld [vmem:[#allocation61_spill] sm:$0xff] }
 0xcbe   : > { %v8866_v53 = vpop.f32.mrf.mxu0  ;;  %9828 = vmatmul.mubr.msk.f32.gmra.mxu0 %vm360_vm0, %v8140_v26 }
 0xcbf   : > { %v4879_v48 = vmax.f32 %v4877_v39, %v4843_v52  ;;  %v8867_v31 = vadd.f32 %v8866_v53, %v8865_v55 }
 0xcc0   : > { %v8868_v44 = vpop.f32.mrf.mxu0 }
 0xcc1   : > { %v4848_v8 = vadd.f32 %v8867_v31, %v14515_v17 }
 0xcc2   : > { %v8869_v15 = vpop.f32.mrf.mxu0 }
 0xcc3   : > { %v4880_v29 = vmax.f32 %v4878_v38, %v4848_v8  ;;  %v8870_v56 = vadd.f32 %v8869_v15, %v8868_v44  ;;  %v14520_v44 = vld [vmem:[#allocation60_spill] sm:$0xff] }
 0xcc4   : > { %v8871_v47 = vpop.f32.mrf.mxu0 }
 0xcc5   : > { %v4853_v19 = vadd.f32 %v14516_v46, %v8870_v56 }
 0xcc6   : > { %v8872_v7 = vpop.f32.mrf.mxu0 }
 0xcc7   : > { %v4881_v61 = vmax.f32 %v4879_v48, %v4853_v19  ;;  %v8873_v23 = vadd.f32 %v8872_v7, %v8871_v47 }
 0xcc8   : > { %v8874_v30 = vpop.f32.mrf.mxu0 }
 0xcc9   : > { %v4858_v49 = vadd.f32 %v8873_v23, %v14517_v41 }
 0xcca   : > { %v8875_v14 = vpop.f32.mrf.mxu0 }
 0xccb   : > { %v8876_v40 = vadd.f32 %v8875_v14, %v8874_v30  ;;  %v13802_v22 = vmax.f32 %v4880_v29, %v4858_v49 }
 0xccc   : > { %v8877_v39 = vpop.f32.mrf.mxu0 }
 0xccd   : > { %v4863_v24 = vadd.f32 %v14518_v5, %v8876_v40 }
 0xcce   : > { %v8878_v13 = vpop.f32.mrf.mxu0 }
 0xccf   : > { %v8879_v26 = vadd.f32 %v8878_v13, %v8877_v39  ;;  %v13805_v38 = vmax.f32 %v4881_v61, %v4863_v24 }
 0xcd0   : > { %v8880_v55 = vpop.f32.mrf.mxu0 }
 0xcd1   : > { %v13808_v52 = vadd.f32 %v8879_v26, %v14519_v50 }
 0xcd2   : > { %v8881_v53 = vpop.f32.mrf.mxu0 }
 0xcd3   : > { %v8882_v48 = vadd.f32 %v8881_v53, %v8880_v55 }
 0xcd5   : > { %v13813_v17 = vadd.f32 %v14520_v44, %v8882_v48 }
 0xcd7   : > { %v4885_v8 = vmax.f32 %v13805_v38, %v13813_v17 }
 0xcfc   : > { %v8956_v15 = vpop.f32.mrf.mxu0 }
 0xcfe   : > { %v8957_v29 = vpop.f32.mrf.mxu0 }
 0xcff   : > { %v8958_v56 = vadd.f32 %v8957_v29, %v8956_v15 }
 0xd00   : > { %v8959_v47 = vpop.f32.mrf.mxu0 }
 0xd01   : > { %v5600_v41 = vadd.f32 %v8958_v56, %v12991_v16 }
 0xd02   : > { %v8960_v46 = vpop.f32.mrf.mxu0 }
 0xd03   : > { %v8961_v19 = vadd.f32 %v8960_v46, %v8959_v47 }
 0xd04   : > { %v8962_v7 = vpop.f32.mrf.mxu0 }
 0xd05   : > { %v5605_v24 = vadd.f32 %v12986_v32, %v8961_v19 }
 0xd06   : > { %v8963_v61 = vpop.f32.mrf.mxu0 }
 0xd07   : > { %v8964_v23 = vadd.f32 %v8963_v61, %v8962_v7 }
 0xd08   : > { %v8965_v30 = vpop.f32.mrf.mxu0 }
 0xd09   : > { %v5610_v49 = vadd.f32 %v8964_v23, %v13004_v63 }
 0xd0a   : > { %v8966_v14 = vpop.f32.mrf.mxu0 }
 0xd0b   : > { %v5658_v40 = vmax.f32 %v5600_v41, %v5610_v49  ;;  %v8967_v39 = vadd.f32 %v8966_v14, %v8965_v30 }
 0xd0c   : > { %v8968_v5 = vpop.f32.mrf.mxu0 }
 0xd0d   : > { %v5615_v13 = vadd.f32 %v12997_v62, %v8967_v39 }
 0xd0e   : > { %v8969_v26 = vpop.f32.mrf.mxu0 }
 0xd0f   : > { %v5659_v55 = vmax.f32 %v5605_v24, %v5615_v13  ;;  %v8970_v50 = vadd.f32 %v8969_v26, %v8968_v5 }
 0xd10   : > { %v8971_v53 = vpop.f32.mrf.mxu0 }
 0xd11   : > { %v5620_v48 = vadd.f32 %v8970_v50, %v13014_v11 }
 0xd12   : > { %v8972_v44 = vpop.f32.mrf.mxu0 }
 0xd13   : > { %v5660_v15 = vmax.f32 %v5658_v40, %v5620_v48  ;;  %v8973_v29 = vadd.f32 %v8972_v44, %v8971_v53  ;;  %v14521_v53 = vld [vmem:[#allocation62_spill] sm:$0xff] }
 0xd14   : > { %v8974_v16 = vpop.f32.mrf.mxu0 }
 0xd15   : > { %v5625_v63 = vadd.f32 %v13009_v9, %v8973_v29 }
 0xd16   : > { %v8975_v56 = vpop.f32.mrf.mxu0 }
 0xd17   : > { %v5661_v47 = vmax.f32 %v5659_v55, %v5625_v63  ;;  %v8976_v46 = vadd.f32 %v8975_v56, %v8974_v16 }
 0xd18   : > { %v8977_v7 = vpop.f32.mrf.mxu0 }
 0xd19   : > { %v5630_v32 = vadd.f32 %v8976_v46, %v13032_v43 }
 0xd1a   : > { %v8978_v19 = vpop.f32.mrf.mxu0 }
 0xd1b   : > { %v5662_v62 = vmax.f32 %v5660_v15, %v5630_v32  ;;  %v8979_v61 = vadd.f32 %v8978_v19, %v8977_v7  ;;  %v14522_v15 = vld [vmem:[#allocation64_spill] sm:$0xff] }
 0xd1c   : > { %v8980_v23 = vpop.f32.mrf.mxu0 }
 0xd1d   : > { %v5635_v30 = vadd.f32 %v13021_v10, %v8979_v61 }
 0xd1e   : > { %v8981_v41 = vpop.f32.mrf.mxu0 }
 0xd1f   : > { %v5663_v11 = vmax.f32 %v5661_v47, %v5635_v30  ;;  %v8982_v49 = vadd.f32 %v8981_v41, %v8980_v23 }
 0xd20   : > { %v8983_v14 = vpop.f32.mrf.mxu0 }
 0xd21   : > { %v5640_v40 = vadd.f32 %v8982_v49, %v13047_v42 }
 0xd22   : > { %v8984_v39 = vpop.f32.mrf.mxu0 }
 0xd23   : > { %v8985_v9 = vadd.f32 %v8984_v39, %v8983_v14  ;;  %v13826_v5 = vmax.f32 %v5662_v62, %v5640_v40 }
 0xd24   : > { %v8986_v24 = vpop.f32.mrf.mxu0 }
 0xd25   : > { %v5645_v13 = vadd.f32 %v13035_v25, %v8985_v9 }
 0xd26   : > { %v8987_v43 = vpop.f32.mrf.mxu0 }
 0xd27   : > { %v8988_v26 = vadd.f32 %v8987_v43, %v8986_v24  ;;  %v13829_v55 = vmax.f32 %v5663_v11, %v5645_v13 }
 0xd28   : > { %v8989_v50 = vpop.f32.mrf.mxu0 }
 0xd29   : > { %v13832_v10 = vadd.f32 %v8988_v26, %v14521_v53 }
 0xd2a   : > { %v8990_v48 = vpop.f32.mrf.mxu0 }
 0xd2b   : > { %v8991_v44 = vadd.f32 %v8990_v48, %v8989_v50 }
 0xd2d   : > { %v13837_v29 = vadd.f32 %v14522_v15, %v8991_v44 }
 0xd2f   : > { %v5667_v16 = vmax.f32 %v13829_v55, %v13837_v29 }
 0xd3a   : > { %v9065_v25 = vpop.f32.mrf.mxu0 }
 0xd3c   : > { %v9066_v63 = vpop.f32.mrf.mxu0 }
 0xd3d   : > { %v9067_v56 = vadd.f32 %v9066_v63, %v9065_v25 }
 0xd3e   : > { %v9068_v47 = vpop.f32.mrf.mxu0 }
 0xd40   : > { %v9069_v46 = vpop.f32.mrf.mxu0 }
 0xd41   : > { %v9070_v7 = vadd.f32 %v9069_v46, %v9068_v47 }
 0xd42   : > { %v9071_v32 = vpop.f32.mrf.mxu0 }
 0xd44   : > { %v9072_v19 = vpop.f32.mrf.mxu0 }
 0xd45   : > { %v9073_v62 = vadd.f32 %v9072_v19, %v9071_v32 }
 0xd46   : > { %v9074_v61 = vpop.f32.mrf.mxu0 }
 0xd48   : > { %v9075_v23 = vpop.f32.mrf.mxu0 }
 0xd49   : > { %v9076_v30 = vadd.f32 %v9075_v23, %v9074_v61 }
 0xd4a   : > { %v9077_v41 = vpop.f32.mrf.mxu0 }
 0xd4c   : > { %v9078_v11 = vpop.f32.mrf.mxu0 }
 0xd4d   : > { %v9079_v49 = vadd.f32 %v9078_v11, %v9077_v41 }
 0xd4e   : > { %v9080_v14 = vpop.f32.mrf.mxu0 }
 0xd50   : > { %v9081_v40 = vpop.f32.mrf.mxu0 }
 0xd51   : > { %v9082_v39 = vadd.f32 %v9081_v40, %v9080_v14 }
 0xd52   : > { %v9083_v9 = vpop.f32.mrf.mxu0 }
 0xd54   : > { %v9084_v24 = vpop.f32.mrf.mxu0 }
 0xd55   : > { %v9085_v13 = vadd.f32 %v9084_v24, %v9083_v9 }
 0xd56   : > { %v9086_v43 = vpop.f32.mrf.mxu0 }
 0xd58   : > { %v9087_v26 = vpop.f32.mrf.mxu0 }
 0xd59   : > { %v9088_v50 = vadd.f32 %v9087_v26, %v9086_v43 }
 0xd5a   : > { %v9089_v53 = vpop.f32.mrf.mxu0 }
 0xd5c   : > { %v9090_v48 = vpop.f32.mrf.mxu0 }
 0xd5d   : > { %v13841_v44 = vadd.f32 %v9090_v48, %v9089_v53 }
 0xd5e   : > { %v9092_v15 = vpop.f32.mrf.mxu0 }
 0xd60   : > { %v9093_v25 = vpop.f32.mrf.mxu0 }
 0xd61   : > { %v9094_v63 = vadd.f32 %v9093_v25, %v9092_v15 }
 0xd62   : > { %v9095_v47 = vpop.f32.mrf.mxu0 }
 0xd64   : > { %v9096_v46 = vpop.f32.mrf.mxu0 }
 0xd65   : > { %v13843_v32 = vadd.f32 %v9096_v46, %v9095_v47 }
 0xd66   : > { %v9098_v19 = vpop.f32.mrf.mxu0 }
 0xd67   : > { %v9770_v61 = vpop.f32.mrf.mxu1 }
 0xd68   : > { %v9099_v23 = vpop.f32.mrf.mxu0  ;;  %v6386_v24 = vadd.f32 %v9770_v61, %v9070_v7 }
 0xd69   : > { %v13845_v41 = vadd.f32 %v9099_v23, %v9098_v19  ;;  %v6380_v11 = vpop.f32.mrf.mxu1 }
 0xd6a   : > { %v9814_v14 = vpop.f32.mrf.mxu0  ;;  %v6381_v15 = vadd.f32 %v9067_v56, %v6380_v11 }
 0xd6b   : > { %v13848_v40 = vadd.f32 %v9814_v14, %v13633_v36  ;;  %v9773_v9 = vpop.f32.mrf.mxu1 }
 0xd6c   : > { %v6396_v43 = vadd.f32 %v9773_v9, %v9076_v30  ;;  %v6719_v26 = vpop.f32.mrf.mxu0 }
 0xd6d   : > { %v6791_v53 = vmin.f32 %v13848_v40, 0.0  ;;  %v6390_v48 = vpop.f32.mrf.mxu1  ;;  %v13852_v47 = vadd.f32 %v6719_v26, %v13648_v59  ;;  %vm6779_vm0 = vcmp.gt.f32.partialorder %v13848_v40, 0.0 }
 0xd6e   : > { %v6440_v25 = vmax.f32 %v6386_v24, %v6396_v43  ;;  %v6391_v46 = vadd.f32 %v9073_v62, %v6390_v48  ;;  %v9817_v19 = vpop.f32.mrf.mxu0 }
 0xd6f   : > { %v6804_v23 = vmul.f32 1.442695, %v6791_v53  ;;  %v13855_v42 = vadd.f32 %v9817_v19, %v13605_v4  ;;  %v9776_v36 = vpop.f32.mrf.mxu1  ;;  %v6790_v56 = vmin.f32 %v13852_v47, 0.0  ;;  %vm6778_vm11 = vcmp.gt.f32.partialorder %v13852_v47, 0.0 }
 0xd70   : > { %v6439_v14 = vmax.f32 %v6381_v15, %v6391_v46  ;;  %v6406_v31 = vadd.f32 %v9776_v36, %v9082_v39  ;;  %v6729_v7 = vpop.f32.mrf.mxu0 }
 0xd71   : > { %10063 = vpow2.f32 %v6804_v23  ;;  %v6793_v30 = vmin.f32 %v13855_v42, 0.0  ;;  %v6400_v61 = vpop.f32.mrf.mxu1  ;;  %v13860_v59 = vadd.f32 %v6729_v7, %v13619_v27  ;;  %vm6781_vm1 = vcmp.gt.f32.partialorder %v13855_v42, 0.0 }
 0xd72   : > { %v6442_v11 = vmax.f32 %v6440_v25, %v6406_v31  ;;  %v6401_v62 = vadd.f32 %v9079_v49, %v6400_v61  ;;  %v9820_v9 = vpop.f32.mrf.mxu0  ;;  %v6802_v25 = vmul.f32 1.442695, %v6790_v56 }
 0xd73   : > { %v6808_v24 = vmul.f32 1.442695, %v6793_v30  ;;  %v13863_v4 = vadd.f32 %v9820_v9, %v13625_v28  ;;  %v9779_v43 = vpop.f32.mrf.mxu1  ;;  %v6792_v39 = vmin.f32 %v13860_v59, 0.0  ;;  %vm6780_vm9 = vcmp.gt.f32.partialorder %v13860_v59, 0.0 }
 0xd74   : > { %v6441_v26 = vmax.f32 %v6439_v14, %v6401_v62  ;;  %v6416_v53 = vadd.f32 %v9779_v43, %v9088_v50  ;;  %v6739_v48 = vpop.f32.mrf.mxu0 }
 0xd75   : > { %10065 = vpow2.f32 %v6808_v24  ;;  %v6795_v15 = vmin.f32 %v13863_v4, 0.0  ;;  %v13868_v31 = vadd.f32 %v6739_v48, %v13639_v60  ;;  %v6410_v27 = vpop.f32.mrf.mxu1  ;;  %v6806_v49 = vmul.f32 1.442695, %v6792_v39 }
 0xd76   : > { %v6444_v46 = vmax.f32 %v6442_v11, %v6416_v53  ;;  %v6411_v19 = vadd.f32 %v9085_v13, %v6410_v27  ;;  %v9823_v23 = vpop.f32.mrf.mxu0  ;;  %vm6783_vm8 = vcmp.gt.f32.partialorder %v13863_v4, 0.0 }
 0xd77   : > { %v6812_v28 = vmul.f32 1.442695, %v6795_v15  ;;  %v13871_v36 = vadd.f32 %v9823_v23, %v13596_v18  ;;  %v9782_v7 = vpop.f32.mrf.mxu1  ;;  %10067 = vpow2.f32 %v6806_v49  ;;  %v6794_v61 = vmin.f32 %v13868_v31, 0.0 }
 0xd78   : > { %v6443_v50 = vmax.f32 %v6441_v26, %v6411_v19  ;;  %v6426_v14 = vadd.f32 %v9782_v7, %v9094_v63  ;;  %v6749_v30 = vpop.f32.mrf.mxu0  ;;  %vm6782_vm13 = vcmp.gt.f32.partialorder %v13868_v31, 0.0 }
 0xd79   : > { %10069 = vpow2.f32 %v6812_v28  ;;  %v6797_v60 = vmin.f32 %v13871_v36, 0.0  ;;  %v6420_v62 = vpop.f32.mrf.mxu1  ;;  %v13878_v13 = vadd.f32 %v6749_v30, %v13611_v45  ;;  %v6810_v53 = vmul.f32 1.442695, %v6794_v61 }
 0xd7a   : > { %10071 = vpow2.f32 %v6802_v25  ;;  %v13875_v56 = vmax.f32 %v6444_v46, %v6426_v14  ;;  %v6421_v18 = vadd.f32 %v13841_v44, %v6420_v62  ;;  %v9826_v11 = vpop.f32.mrf.mxu0  ;;  %vm6785_vm10 = vcmp.gt.f32.partialorder %v13871_v36, 0.0 }
 0xd7b   : > { %v6816_v9 = vmul.f32 1.442695, %v6797_v60  ;;  %v9785_v24 = vpop.f32.mrf.mxu1  ;;  %v6796_v63 = vmin.f32 %v13878_v13, 0.0  ;;  %v13910_v61 = vadd.f32 %v9826_v11, %v13669_v57  ;;  %vm6784_vm12 = vcmp.gt.f32.partialorder %v13878_v13, 0.0 }
 0xd7c   : > { %v13882_v43 = vmax.f32 %v6443_v50, %v6421_v18  ;;  %v13885_v39 = vadd.f32 %v9785_v24, %v13845_v41  ;;  %v6759_v26 = vpop.f32.mrf.mxu0 }
 0xd7d   : > { %10073 = vpow2.f32 %v6816_v9  ;;  %v6430_v48 = vpop.f32.mrf.mxu1  ;;  %v6814_v27 = vmul.f32 1.442695, %v6796_v63  ;;  %v13888_v45 = vadd.f32 %v6759_v26, %v13676_v33  ;;  %v6799_v57 = vmin.f32 %v13910_v61, 0.0 }
 0xd7e   : > { %v10064_v15 = vpop.eup %10063  ;;  %v13891_v44 = vadd.f32 %v13843_v32, %v6430_v48  ;;  %v9829_v25 = vpop.f32.mrf.mxu0  ;;  %v6448_v49 = vmax.f32 %v13875_v56, %v13885_v39  ;;  %vm6787_vm4 = vcmp.gt.f32.partialorder %v13910_v61, 0.0 }
 0xd7f   : > { %10075 = vpow2.f32 %v6814_v27  ;;  %v8218_v41 = vadd.f32 -1.0, %v10064_v15  ;;  %v13899_v23 = vadd.f32 %v9829_v25, %v13654_v58  ;;  %v6798_v32 = vmin.f32 %v13888_v45, 0.0 }
 0xd80   : > { %v6769_v46 = vpop.f32.mrf.mxu0  ;;  %v6447_v19 = vmax.f32 %v13882_v43, %v13891_v44  ;;  %10077 = vpow2.f32 %v6810_v53  ;;  %vm6786_vm15 = vcmp.gt.f32.partialorder %v13888_v45, 0.0 }
 0xd81   : > { %v6770_v28 = vadd.f32 %v6769_v46, %v13661_v51  ;;  %v13904_v7 = vsel %vm6779_vm0, %v13848_v40, %v8218_v41  ;;  %v6801_v58 = vmin.f32 %v13899_v23, 0.0  ;;  %v6818_v62 = vmul.f32 1.442695, %v6798_v32 }
 0xd82   : > { %v10066_v33 = vpop.eup %10065  ;;  %6864 = vrot.lane.b32.xlu1 %v13904_v7, %s10133_s26  ;;  %vm6789_vm3 = vcmp.gt.f32.partialorder %v13899_v23, 0.0 }
 0xd83   : > { %v8220_v50 = vadd.f32 -1.0, %v10066_v33  ;;  %v6800_v14 = vmin.f32 %v6770_v28, 0.0  ;;  %v6824_v11 = vmul.f32 1.442695, %v6801_v58  ;;  %vm6788_vm14 = vcmp.gt.f32.partialorder %v6770_v28, 0.0 }
 0xd84   : > { %v10068_v30 = vpop.eup %10067 }
 0xd85   : > { %v13914_v60 = vsel %vm6781_vm1, %v13855_v42, %v8220_v50  ;;  %v6822_v40 = vmul.f32 1.442695, %v6800_v14  ;;  %v8219_v18 = vadd.f32 -1.0, %v10068_v30 }
 0xd86   : > { %v10070_v51 = vpop.eup %10069  ;;  %6868 = vrot.lane.b32.xlu1 %v13914_v60, %s10133_s26 }
 0xd87   : > { %v10072_v9 = vpop.eup %10071  ;;  %v8222_v24 = vadd.f32 -1.0, %v10070_v51  ;;  %10079 = vpow2.f32 %v6822_v40  ;;  %v13927_v26 = vsel %vm6780_vm9, %v13860_v59, %v8219_v18  ;;  %v7418_v18 = vld [vmem:[%s14359_s4 + $0x18] sm:$0xff] }
 0xd88   : > { %10081 = vpow2.f32 %v6818_v62  ;;  %v8217_v53 = vadd.f32 -1.0, %v10072_v9  ;;  %v285_v9 = vld [vmem:[%s14359_s4] sm:$0xff] }
 0xd89   : > { %v13922_v42 = vsel %vm6783_vm8, %v13863_v4, %v8222_v24  ;;  %v6820_v4 = vmul.f32 1.442695, %v6799_v57  ;;  %10083 = vpow2.f32 %v6824_v11  ;;  %v7519_v24 = vld [vmem:[%s14359_s4 + $0x28] sm:$0xff]  ;;  %v7417_v57 = vld [vmem:[%s14359_s4 + $0x10] sm:$0xff]  ;;  %v7620_v11 = vld [vmem:[%s14359_s4 + $0x38] sm:$0xff] }
 0xd8a   : > { %v10074_v63 = vpop.eup %10073  ;;  %6908 = vrot.lane.b32.xlu0 %v13922_v42, %s10132_s11  ;;  %6866 = vrot.lane.b32.xlu1 %v13927_v26, %s10133_s26  ;;  %v13939_v59 = vsel %vm6778_vm11, %v13852_v47, %v8217_v53  ;;  %v7734_v53 = vld [vmem:[%s14359_s4 + $0x48] sm:$0xff] }
 0xd8b   : > { %v8224_v48 = vadd.f32 -1.0, %v10074_v63  ;;  %10085 = vpow2.f32 %v6820_v4  ;;  %v7518_v63 = vld [vmem:[%s14359_s4 + $0x20] sm:$0xff] }
 0xd8c   : > { %v10076_v15 = vpop.eup %10075  ;;  %v7733_v4 = vld [vmem:[%s14359_s4 + $0x40] sm:$0xff] }
 0xd8d   : > { %v13934_v27 = vsel %vm6785_vm10, %v13871_v36, %v8224_v48  ;;  %v10078_v25 = vpop.eup %10077  ;;  %v8223_v46 = vadd.f32 -1.0, %v10076_v15  ;;  %v7619_v48 = vld [vmem:[%s14359_s4 + $0x30] sm:$0xff]  ;;  %v7848_v15 = vld [vmem:[%s14359_s4 + $0x58] sm:$0xff] }
 0xd8e   : > { %6912 = vrot.lane.b32.xlu0 %v13934_v27, %s10132_s11  ;;  %6862 = vrot.lane.b32.xlu1 %v13939_v59, %s10133_s26  ;;  %v8221_v33 = vadd.f32 -1.0, %v10078_v25  ;;  %v7962_v25 = vld [vmem:[%s14359_s4 + $0x68] sm:$0xff] }
 0xd8f   : > { %v13945_v41 = vsel %vm6784_vm12, %v13878_v13, %v8223_v46  ;;  %v7847_v46 = vld [vmem:[%s14359_s4 + $0x50] sm:$0xff] }
 0xd90   : > { %v13953_v36 = vsel %vm6782_vm13, %v13868_v31, %v8221_v33  ;;  %v8076_v33 = vld [vmem:[%s14359_s4 + $0x78] sm:$0xff] }
 0xd92   : > { %6910 = vrot.lane.b32.xlu0 %v13945_v41, %s10132_s11  ;;  %6902 = vrot.lane.b32.xlu1 %v13927_v26, %s10132_s11 }
 0xd94   : > { %v10080_v47 = vpop.eup %10079 }
 0xd95   : > { %v8227_v32 = vadd.f32 -1.0, %v10080_v47  ;;  %v10082_v50 = vpop.eup %10081  ;;  %v7961_v47 = vld [vmem:[%s14359_s4 + $0x60] sm:$0xff] }
 0xd96   : > { %6906 = vrot.lane.b32.xlu0 %v13953_v36, %s10132_s11  ;;  %6898 = vrot.lane.b32.xlu1 %v13939_v59, %s10132_s11  ;;  %v10084_v13 = vpop.eup %10083  ;;  %v8225_v30 = vadd.f32 -1.0, %v10082_v50  ;;  %v8075_v50 = vld [vmem:[%s14359_s4 + $0x70] sm:$0xff] }
 0xd97   : > { %v13961_v14 = vsel %vm6788_vm14, %v6770_v28, %v8227_v32  ;;  %v8228_v31 = vadd.f32 -1.0, %v10084_v13  ;;  %v8190_v32 = vld [vmem:[%s14359_s4 + $0x88] sm:$0xff]  ;;  %v8189_v13 = vld [vmem:[%s14359_s4 + $0x80] sm:$0xff] }
 0xd98   : > { %v10086_v58 = vpop.eup %10085  ;;  %v13969_v51 = vsel %vm6786_vm15, %v13888_v45, %v8225_v30  ;;  %v8154_v45 = vld [vmem:[%s14358_s3 + $0x908] sm:$0xff] }
 0xd99   : > { %v13975_v28 = vsel %vm6789_vm3, %v13899_v23, %v8228_v31  ;;  %v8226_v62 = vadd.f32 -1.0, %v10086_v58  ;;  %7034 = vmatprep.mubr.f32.mxu1 %v8154_v45  ;;  %v8155_v23 = vld [vmem:[%s14358_s3 + $0x910] sm:$0xff] }
 0xd9a   : > { %6904 = vrot.lane.b32.xlu0 %v13914_v60, %s10132_s11  ;;  %6882 = vrot.lane.b32.xlu1 %v13961_v14, %s10133_s26 }
 0xd9b   : > { %v13986_v40 = vsel %vm6787_vm4, %v13910_v61, %v8226_v62  ;;  %9838 = vmatprep.mubr.msk.f32.mxu0 %vm682_vm2, %v8155_v23  ;;  %v286_v61 = vld [vmem:[%s14359_s4 + $0x8] sm:$0xff] }
 0xd9e   : > { %6900 = vrot.lane.b32.xlu0 %v13904_v7, %s10132_s11  ;;  %6878 = vrot.lane.b32.xlu1 %v13969_v51, %s10133_s26 }
 0xda2   : > { %6884 = vrot.lane.b32.xlu0 %v13975_v28, %s10133_s26  ;;  %6874 = vrot.lane.b32.xlu1 %v13945_v41, %s10133_s26 }
 0xda6   : > { %6880 = vrot.lane.b32.xlu0 %v13986_v40, %s10133_s26  ;;  %6870 = vrot.lane.b32.xlu1 %v13953_v36, %s10133_s26 }
 0xdaa   : > { %6876 = vrot.lane.b32.xlu0 %v13934_v27, %s10133_s26  ;;  %6918 = vrot.lane.b32.xlu1 %v13961_v14, %s10132_s11 }
 0xdae   : > { %6872 = vrot.lane.b32.xlu0 %v13922_v42, %s10133_s26  ;;  %6914 = vrot.lane.b32.xlu1 %v13969_v51, %s10132_s11 }
 0xdb2   : > { %6920 = vrot.lane.b32.xlu0 %v13975_v28, %s10132_s11  ;;  %986 = vperm.xlu1 %9870, %v286_v61  }
 0xdb6   : > { %6916 = vrot.lane.b32.xlu0 %v13986_v40, %s10132_s11  ;;  %1768 = vperm.xlu1 %9870, %v7418_v18  }
 0xdba   : > { %981 = vperm.xlu0 %9869, %v285_v9   ;;  %2549 = vperm.xlu1 %9870, %v7519_v24  }
 0xdbe   : > { %1763 = vperm.xlu0 %9869, %v7417_v57   ;;  %3331 = vperm.xlu1 %9870, %v7620_v11  }
 0xdc2   : > { %2544 = vperm.xlu0 %9869, %v7518_v63   ;;  %4112 = vperm.xlu1 %9870, %v7734_v53  }
 0xdc6   : > { %3326 = vperm.xlu0 %9869, %v7619_v48   ;;  %4893 = vperm.xlu1 %9870, %v7848_v15  }
 0xdca   : > { %4107 = vperm.xlu0 %9869, %v7733_v4   ;;  %5675 = vperm.xlu1 %9870, %v7962_v25   ;;  %v8158_v25 = vld [vmem:[%s14358_s3 + $0x928] sm:$0xff] }
 0xdce   : > { %4888 = vperm.xlu0 %9869, %v7847_v46   ;;  %6456 = vperm.xlu1 %9870, %v8076_v33   ;;  %v8163_v46 = vld [vmem:[%s14358_s3 + $0x950] sm:$0xff]  ;;  %v8161_v33 = vld [vmem:[%s14358_s3 + $0x940] sm:$0xff] }
 0xdd2   : > { %5670 = vperm.xlu0 %9869, %v7961_v47   ;;  %7237 = vperm.xlu1 %9870, %v8190_v32   ;;  %v8162_v32 = vld [vmem:[%s14358_s3 + $0x948] sm:$0xff] }
 0xdd6   : > { %6451 = vperm.xlu0 %9869, %v8075_v50   ;;  %v8164_v50 = vld [vmem:[%s14358_s3 + $0x958] sm:$0xff] }
 0xdda   : > { %7232 = vperm.xlu0 %9869, %v8189_v13   ;;  %v14523_v13 = vld [vmem:[#allocation18_spill] sm:$0xff] }
 0xdf4   : > { %v6865_v30 = vpop.permute.xlu1 %6864 }
 0xdf8   : > { %v6869_v31 = vpop.permute.xlu1 %6868 }
 0xdfc   : > { %v6909_v58 = vpop.permute.xlu0 %6908  ;;  %v6867_v62 = vpop.permute.xlu1 %6866 }
 0xe00   : > { %v6913_v45 = vpop.permute.xlu0 %6912  ;;  %v6863_v23 = vpop.permute.xlu1 %6862 }
 0xe01   : > { %9142 = vmatprep.subr.mxu1 %v6913_v45  ;;  %v8167_v45 = vld [vmem:[%s14358_s3 + $0x970] sm:$0xff] }
 0xe02   : > { %9143 = vmatpush3.msra.mxu1 %v6869_v31 }
 0xe04   : > { %v6911_v61 = vpop.permute.xlu0 %6910  ;;  %v6903_v18 = vpop.permute.xlu1 %6902 }
 0xe05   : > { %9144 = vmatprep.subr.mxu1 %v6911_v61 }
 0xe06   : > { %9145 = vmatpush3.msra.mxu1 %v6867_v62  ;;  %v8166_v62 = vld [vmem:[%s14358_s3 + $0x968] sm:$0xff] }
 0xe07   : > { %9146 = vmatprep.subr.mxu1 %v6909_v58 }
 0xe08   : > { %v6907_v9 = vpop.permute.xlu0 %6906  ;;  %9147 = vmatpush3.msra.mxu1 %v6865_v30  ;;  %v6899_v24 = vpop.permute.xlu1 %6898  ;;  %v14524_v30 = vld [vmem:[#allocation20_spill] sm:$0xff] }
 0xe09   : > { %9148 = vmatprep.subr.mxu1 %v6907_v9  ;;  %v14525_v31 = vmax.f32 %v14523_v13, %v14524_v30  ;;  %v8170_v9 = vld [vmem:[%s14358_s3 + $0x988] sm:$0xff] }
 0xe0a   : > { %9149 = vmatpush3.msra.mxu1 %v6863_v23  ;;  %v14535_v30 = vld [vmem:[#allocation3_spill] sm:$0xff] }
 0xe0c   : > { %v6905_v57 = vpop.permute.xlu0 %6904  ;;  %v6883_v11 = vpop.permute.xlu1 %6882 }
 0xe0d   : > { %9150 = vmatprep.subr.mxu1 %v6905_v57  ;;  %v14526_v57 = vld [vmem:[#allocation5_spill] sm:$0xff] }
 0xe0e   : > { %9151 = vmatpush3.msra.mxu1 %v13975_v28 }
 0xe0f   : > { %9152 = vmatprep.subr.mxu1 %v6903_v18  ;;  %v8165_v18 = vld [vmem:[%s14358_s3 + $0x960] sm:$0xff] }
 0xe10   : > { %v6901_v63 = vpop.permute.xlu0 %6900  ;;  %9153 = vmatpush3.msra.mxu1 %v13961_v14  ;;  %v6879_v53 = vpop.permute.xlu1 %6878 }
 0xe11   : > { %9154 = vmatprep.subr.mxu1 %v6901_v63 }
 0xe12   : > { %9155 = vmatpush3.msra.mxu1 %v13986_v40 }
 0xe13   : > { %9156 = vmatprep.subr.mxu1 %v6899_v24 }
 0xe14   : > { %v6885_v48 = vpop.permute.xlu0 %6884  ;;  %9157 = vmatpush3.msra.mxu1 %v13969_v51  ;;  %v6875_v15 = vpop.permute.xlu1 %6874 }
 0xe15   : > { %9158 = vmatprep.subr.mxu1 %v6885_v48  ;;  %v8169_v48 = vld [vmem:[%s14358_s3 + $0x980] sm:$0xff] }
 0xe16   : > { %9159 = vmatpush3.msra.mxu1 %v13934_v27  ;;  %v8153_v27 = vld [vmem:[%s14358_s3 + $0x900] sm:$0xff] }
 0xe17   : > { %9160 = vmatprep.subr.mxu1 %v6883_v11  ;;  %v14527_v11 = vld [vmem:[#allocation4_spill] sm:$0xff] }
 0xe18   : > { %v6881_v4 = vpop.permute.xlu0 %6880  ;;  %9161 = vmatpush3.msra.mxu1 %v13945_v41  ;;  %v6871_v28 = vpop.permute.xlu1 %6870  ;;  %v14528_v63 = vmax.f32 %v14526_v57, %v14527_v11  ;;  %v8175_v57 = vld [vmem:[%s14358_s3 + $0x9b0] sm:$0xff]  ;;  %v8185_v11 = vld [vmem:[%s14358_s3 + $0xa00] sm:$0xff] }
 0xe19   : > { %9162 = vmatprep.subr.mxu1 %v6881_v4 }
 0xe1a   : > { %9163 = vmatpush3.msra.mxu1 %v13922_v42  ;;  %v8157_v42 = vld [vmem:[%s14358_s3 + $0x920] sm:$0xff] }
 0xe1b   : > { %9164 = vmatprep.subr.mxu1 %v6879_v53 }
 0xe1c   : > { %v6877_v14 = vpop.permute.xlu0 %6876  ;;  %9165 = vmatpush3.msra.mxu1 %v13953_v36  ;;  %v6919_v41 = vpop.permute.xlu1 %6918 }
 0xe1d   : > { %9166 = vmatprep.subr.mxu1 %v6877_v14 }
 0xe1e   : > { %9167 = vmatpush3.msra.mxu1 %v13914_v60  ;;  %v8160_v60 = vld [vmem:[%s14358_s3 + $0x938] sm:$0xff] }
 0xe1f   : > { %9168 = vmatprep.subr.mxu1 %v6875_v15  ;;  %v8173_v15 = vld [vmem:[%s14358_s3 + $0x9a0] sm:$0xff] }
 0xe20   : > { %v6873_v51 = vpop.permute.xlu0 %6872  ;;  %9169 = vmatpush3.msra.mxu1 %v13927_v26  ;;  %v6915_v40 = vpop.permute.xlu1 %6914 }
 0xe21   : > { %9170 = vmatprep.subr.mxu1 %v6873_v51  ;;  %v14530_v51 = vld [vmem:[#allocation19_spill] sm:$0xff] }
 0xe22   : > { %9171 = vmatpush3.msra.mxu1 %v13904_v7  ;;  %v8156_v7 = vld [vmem:[%s14358_s3 + $0x918] sm:$0xff] }
 0xe23   : > { %9172 = vmatprep.subr.mxu1 %v6871_v28  ;;  %v14529_v28 = vld [vmem:[#allocation17_spill] sm:$0xff] }
 0xe24   : > { %v6921_v36 = vpop.permute.xlu0 %6920  ;;  %9173 = vmatpush3.msra.mxu1 %v13939_v59  ;;  %v8159_v59 = vld [vmem:[%s14358_s3 + $0x930] sm:$0xff] }
 0xe25   : > { %7035 = vmatmul.mubr.f32.vlgmr.msra.gmra.mxu1 %v8153_v27  ;;  %9830 = vmatprep.subr.mxu0 %v6921_v36  ;;  %v14531_v27 = vmax.f32 %v14529_v28, %v14530_v51  ;;  %v8174_v51 = vld [vmem:[%s14358_s3 + $0x9a8] sm:$0xff] }
 0xe26   : > { %9831 = vmatpush3.msra.mxu0 %v6921_v36  ;;  %7039 = vmatprep.mubr.f32.mxu1 %v8157_v42  ;;  %v8168_v36 = vld [vmem:[%s14358_s3 + $0x978] sm:$0xff] }
 0xe27   : > { %9832 = vmatprep.subr.mxu0 %v6919_v41 }
 0xe28   : > { %v6917_v26 = vpop.permute.xlu0 %6916  ;;  %9833 = vmatpush3.msra.mxu0 %v6919_v41 }
 0xe29   : > { %7040 = vmatmul.mubr.f32.gmra.mxu1 %v8156_v7  ;;  %9834 = vmatprep.subr.mxu0 %v6917_v26  ;;  %v8176_v7 = vld [vmem:[%s14358_s3 + $0x9b8] sm:$0xff] }
 0xe2a   : > { %9835 = vmatpush3.msra.mxu0 %v6917_v26  ;;  %7044 = vmatprep.mubr.f32.mxu1 %v8160_v60  ;;  %v14532_v26 = vld [vmem:[#allocation6_spill] sm:$0xff] }
 0xe2b   : > { %9836 = vmatprep.subr.mxu0 %v6915_v40 }
 0xe2c   : > { %9837 = vmatpush3.msra.mxu0 %v6915_v40  ;;  %v14533_v40 = vld [vmem:[#allocation8_spill] sm:$0xff] }
 0xe2d   : > { %7045 = vmatmul.mubr.f32.gmra.mxu1 %v8159_v59  ;;  %9839 = vmatmul.mubr.msk.f32.vlgmr.msra.gmra.mxu0 %vm682_vm2, %v8158_v25  ;;  %v987_v47 = vpop.permute.xlu1 %986  ;;  %v14534_v59 = vmax.f32 %v14532_v26, %v14533_v40 }
 0xe2e   : > { %7049 = vmatprep.mubr.f32.mxu1 %v8163_v46  ;;  %9841 = vmatprep.mubr.msk.f32.mxu0 %vm682_vm2, %v8161_v33  ;;  %v14109_v58 = vadd.f32 %v987_v47, %v14525_v31  ;;  %v8172_v46 = vld [vmem:[%s14358_s3 + $0x998] sm:$0xff]  ;;  %v8179_v33 = vld [vmem:[%s14358_s3 + $0x9d0] sm:$0xff]  ;;  %v14536_v31 = vld [vmem:[#allocation2_spill] sm:$0xff] }
 0xe30   : > { %v994_v23 = vmin.f32 %v14109_v58, 0.0  ;;  %vm992_vm5 = vcmp.gt.f32.partialorder %v14109_v58, 0.0 }
 0xe31   : > { %7050 = vmatmul.mubr.f32.gmra.mxu1 %v8162_v32  ;;  %9842 = vmatmul.mubr.msk.f32.gmra.mxu0 %vm682_vm2, %v8164_v50  ;;  %v1769_v61 = vpop.permute.xlu1 %1768 }
 0xe32   : > { %7054 = vmatprep.mubr.f32.mxu1 %v8166_v62  ;;  %9844 = vmatprep.mubr.msk.f32.mxu0 %vm682_vm2, %v8167_v45  ;;  %v997_v24 = vmul.f32 1.442695, %v994_v23  ;;  %v14129_v53 = vadd.f32 %v1769_v61, %v14528_v63  ;;  %v14537_v62 = vmax.f32 %v14535_v30, %v14536_v31  ;;  %v8171_v61 = vld [vmem:[%s14358_s3 + $0x990] sm:$0xff] }
 0xe34   : > { %10087 = vpow2.f32 %v997_v24  ;;  %v1776_v4 = vmin.f32 %v14129_v53, 0.0  ;;  %vm1774_vm6 = vcmp.gt.f32.partialorder %v14129_v53, 0.0 }
 0xe35   : > { %v982_v14 = vpop.permute.xlu0 %981  ;;  %7055 = vmatmul.mubr.f32.gmra.mxu1 %v8165_v18  ;;  %9845 = vmatmul.mubr.msk.f32.gmra.mxu0 %vm682_vm2, %v8170_v9  ;;  %v2550_v41 = vpop.permute.xlu1 %2549  ;;  %v8182_v18 = vld [vmem:[%s14358_s3 + $0x9e8] sm:$0xff] }
 0xe36   : > { %v14142_v42 = vadd.f32 %v982_v14, %v14531_v27  ;;  %7059 = vmatprep.mubr.f32.mxu1 %v8169_v48  ;;  %9847 = vmatprep.mubr.msk.f32.mxu0 %vm682_vm2, %v8173_v15  ;;  %v1779_v60 = vmul.f32 1.442695, %v1776_v4  ;;  %v14154_v25 = vadd.f32 %v2550_v41, %v14534_v59  ;;  %v8188_v27 = vld [vmem:[%s14358_s3 + $0xa18] sm:$0xff] }
 0xe38   : > { %v993_v47 = vmin.f32 %v14142_v42, 0.0  ;;  %10089 = vpow2.f32 %v1779_v60  ;;  %v2557_v32 = vmin.f32 %v14154_v25, 0.0  ;;  %vm991_vm7 = vcmp.gt.f32.partialorder %v14142_v42, 0.0 }
 0xe39   : > { %v1764_v50 = vpop.permute.xlu0 %1763  ;;  %7060 = vmatmul.mubr.f32.gmra.mxu1 %v8168_v36  ;;  %9848 = vmatmul.mubr.msk.f32.gmra.mxu0 %vm682_vm2, %v8176_v7  ;;  %v3332_v23 = vpop.permute.xlu1 %3331  ;;  %v8178_v7 = vld [vmem:[%s14358_s3 + $0x9c8] sm:$0xff]  ;;  %vm2555_vm0 = vcmp.gt.f32.partialorder %v14154_v25, 0.0 }
 0xe3a   : > { %v995_v13 = vmul.f32 1.442695, %v993_v47  ;;  %v14168_v45 = vadd.f32 %v1764_v50, %v14537_v62  ;;  %7064 = vmatprep.mubr.f32.mxu1 %v8172_v46  ;;  %9850 = vmatprep.mubr.msk.f32.mxu0 %vm682_vm2, %v8179_v33  ;;  %v2560_v9 = vmul.f32 1.442695, %v2557_v32  ;;  %v14180_v24 = vadd.f32 %v3332_v23, %v3323_v34  ;;  %v14539_v34 = vld [vmem:[#allocation9_spill] sm:$0xff] }
 0xe3b   : > { %v14540_v4 = vmax.f32 %v14538_v20, %v14539_v34 }
 0xe3c   : > { %10091 = vpow2.f32 %v995_v13  ;;  %v1775_v63 = vmin.f32 %v14168_v45, 0.0  ;;  %v3339_v48 = vmin.f32 %v14180_v24, 0.0  ;;  %vm1773_vm1 = vcmp.gt.f32.partialorder %v14168_v45, 0.0 }
 0xe3d   : > { %10093 = vpow2.f32 %v2560_v9  ;;  %v2545_v15 = vpop.permute.xlu0 %2544  ;;  %7065 = vmatmul.mubr.f32.gmra.mxu1 %v8171_v61  ;;  %9851 = vmatmul.mubr.msk.f32.gmra.mxu0 %vm682_vm2, %v8182_v18  ;;  %v4113_v28 = vpop.permute.xlu1 %4112  ;;  %vm3337_vm8 = vcmp.gt.f32.partialorder %v14180_v24, 0.0 }
 0xe3e   : > { %v1777_v1 = vmul.f32 1.442695, %v1775_v63  ;;  %v14194_v14 = vadd.f32 %v2545_v15, %v14540_v4  ;;  %7069 = vmatprep.mubr.f32.mxu1 %v8175_v57  ;;  %9853 = vmatprep.mubr.msk.f32.mxu0 %vm682_vm2, %v8185_v11  ;;  %v3342_v41 = vmul.f32 1.442695, %v3339_v48  ;;  %v14207_v36 = vadd.f32 %v4113_v28, %v4104_v0  ;;  %v8177_v0 = vld [vmem:[%s14358_s3 + $0x9c0] sm:$0xff] }
 0xe3f   : > { %v14541_v57 = vmax.f32 %v13802_v22, %v13808_v52  ;;  %v8187_v22 = vld [vmem:[%s14358_s3 + $0xa10] sm:$0xff] }
 0xe40   : > { %10095 = vpow2.f32 %v1777_v1  ;;  %v2556_v60 = vmin.f32 %v14194_v14, 0.0  ;;  %v4120_v26 = vmin.f32 %v14207_v36, 0.0  ;;  %vm2554_vm9 = vcmp.gt.f32.partialorder %v14194_v14, 0.0 }
 0xe41   : > { %10097 = vpow2.f32 %v3342_v41  ;;  %v3327_v40 = vpop.permute.xlu0 %3326  ;;  %7070 = vmatmul.mubr.f32.gmra.mxu1 %v8174_v51  ;;  %9854 = vmatmul.mubr.msk.f32.gmra.mxu0 %vm682_vm2, %v8188_v27  ;;  %v10088_v59 = vpop.eup %10087  ;;  %vm1003_vm2 = vcmask 113664   ;;  %v14542_v51 = vmax.f32 %v13826_v5, %v13832_v10  ;;  %vm4118_vm10 = vcmp.gt.f32.partialorder %v14207_v36, 0.0 }
 0xe42   : > { %v2558_v46 = vmul.f32 1.442695, %v2556_v60  ;;  %v14218_v37 = vadd.f32 %v3327_v40, %v3322_v3  ;;  %v4894_v54 = vpop.permute.xlu1 %4893  ;;  %7074 = vmatprep.mubr.f32.mxu1 %v8178_v7  ;;  %v7356_v33 = vadd.f32 -1.0, %v10088_v59  ;;  %v4123_v47 = vmul.f32 1.442695, %v4120_v26 }
 0xe43   : > { %v14231_v12 = vadd.f32 %v4894_v54, %v4885_v8 }
 0xe44   : > { %10099 = vpow2.f32 %v2558_v46  ;;  %v3338_v3 = vmin.f32 %v14218_v37, 0.0  ;;  %v1002_v32 = vsel %vm992_vm5, %v14109_v58, %v7356_v33  ;;  %v8180_v58 = vld [vmem:[%s14358_s3 + $0x9d8] sm:$0xff]  ;;  %vm3336_vm11 = vcmp.gt.f32.partialorder %v14218_v37, 0.0 }
 0xe45   : > { %10101 = vpow2.f32 %v4123_v47  ;;  %v4901_v50 = vmin.f32 %v14231_v12, 0.0  ;;  %v4108_v13 = vpop.permute.xlu0 %4107  ;;  %7075 = vmatmul.mubr.f32.gmra.mxu1 %v8177_v0  ;;  %v10090_v30 = vpop.eup %10089  ;;  %1005 = vst.msk [vmem:[%s14226_s22 + $0x8] sm:$0xff] %vm1003_vm2, %v1002_v32  ;;  %vm4899_vm12 = vcmp.gt.f32.partialorder %v14231_v12, 0.0 }
 0xe46   : > { %v3340_v38 = vmul.f32 1.442695, %v3338_v3  ;;  %v14245_v17 = vadd.f32 %v4108_v13, %v4103_v21  ;;  %v5676_v8 = vpop.permute.xlu1 %5675  ;;  %7079 = vmatprep.mubr.f32.mxu1 %v8181_v2  ;;  %v7457_v31 = vadd.f32 -1.0, %v10090_v30 }
 0xe47   : > { %v4904_v62 = vmul.f32 1.442695, %v4901_v50  ;;  %v14253_v23 = vadd.f32 %v5676_v8, %v5667_v16 }
 0xe48   : > { %10103 = vpow2.f32 %v3340_v38  ;;  %v4119_v6 = vmin.f32 %v14245_v17, 0.0  ;;  %v1784_v61 = vsel %vm1774_vm6, %v14129_v53, %v7457_v31  ;;  %v8183_v53 = vld [vmem:[%s14358_s3 + $0x9f0] sm:$0xff]  ;;  %vm4117_vm13 = vcmp.gt.f32.partialorder %v14245_v17, 0.0 }
 0xe49   : > { %v10092_v21 = vpop.eup %10091  ;;  %10105 = vpow2.f32 %v4904_v62  ;;  %v5683_v18 = vmin.f32 %v14253_v23, 0.0  ;;  %v4889_v9 = vpop.permute.xlu0 %4888  ;;  %7080 = vmatmul.mubr.f32.gmra.mxu1 %v8180_v58  ;;  %1786 = vst.msk [vmem:[%s14226_s22 + $0x18] sm:$0xff] %vm1003_vm2, %v1784_v61  ;;  %vm5681_vm14 = vcmp.gt.f32.partialorder %v14253_v23, 0.0 }
 0xe4a   : > { %v10094_v55 = vpop.eup %10093  ;;  %v7355_v29 = vadd.f32 -1.0, %v10092_v21  ;;  %v4121_v16 = vmul.f32 1.442695, %v4119_v6  ;;  %v14267_v11 = vadd.f32 %v4889_v9, %v14541_v57  ;;  %v6457_v63 = vpop.permute.xlu1 %6456  ;;  %7084 = vmatprep.mubr.f32.mxu1 %v8184_v35 }
 0xe4b   : > { %v7558_v48 = vadd.f32 -1.0, %v10094_v55  ;;  %v5686_v15 = vmul.f32 1.442695, %v5683_v18  ;;  %v14276_v1 = vadd.f32 %v6457_v63, %v6448_v49 }
 0xe4c   : > { %v1001_v52 = vsel %vm991_vm7, %v14142_v42, %v7355_v29  ;;  %10107 = vpow2.f32 %v4121_v16  ;;  %v4900_v20 = vmin.f32 %v14267_v11, 0.0  ;;  %vm4898_vm15 = vcmp.gt.f32.partialorder %v14267_v11, 0.0 }
 0xe4d   : > { %v10096_v34 = vpop.eup %10095  ;;  %1004 = vst.msk [vmem:[%s14226_s22] sm:$0xff] %vm1003_vm2, %v1001_v52  ;;  %v2565_v4 = vsel %vm2555_vm0, %v14154_v25, %v7558_v48  ;;  %10109 = vpow2.f32 %v5686_v15  ;;  %v6464_v56 = vmin.f32 %v14276_v1, 0.0  ;;  %v5671_v39 = vpop.permute.xlu0 %5670  ;;  %7085 = vmatmul.mubr.f32.gmra.mxu1 %v8183_v53  ;;  %v8186_v25 = vld [vmem:[%s14358_s3 + $0xa08] sm:$0xff]  ;;  %vm6462_vm3 = vcmp.gt.f32.partialorder %v14276_v1, 0.0 }
 0xe4e   : > { %v10098_v49 = vpop.eup %10097  ;;  %2567 = vst.msk [vmem:[%s14226_s22 + $0x28] sm:$0xff] %vm1003_vm2, %v2565_v4  ;;  %v7456_v42 = vadd.f32 -1.0, %v10096_v34  ;;  %v4902_v28 = vmul.f32 1.442695, %v4900_v20  ;;  %v14293_v27 = vadd.f32 %v5671_v39, %v14542_v51  ;;  %7089 = vmatprep.mubr.f32.mxu1 %v8187_v22 }
 0xe4f   : > { %v7672_v41 = vadd.f32 -1.0, %v10098_v49  ;;  %v6467_v7 = vmul.f32 1.442695, %v6464_v56 }
 0xe50   : > { %v1783_v60 = vsel %vm1773_vm1, %v14168_v45, %v7456_v42  ;;  %10111 = vpow2.f32 %v4902_v28  ;;  %v5682_v26 = vmin.f32 %v14293_v27, 0.0  ;;  %vm5680_vm4 = vcmp.gt.f32.partialorder %v14293_v27, 0.0 }
 0xe51   : > { %v10100_v5 = vpop.eup %10099  ;;  %1785 = vst.msk [vmem:[%s14226_s22 + $0x10] sm:$0xff] %vm1003_vm2, %v1783_v60  ;;  %v3347_v10 = vsel %vm3337_vm8, %v14180_v24, %v7672_v41  ;;  %10113 = vpow2.f32 %v6467_v7  ;;  %v6452_v40 = vpop.permute.xlu0 %6451  ;;  %7090 = vmatmul.mubr.f32.gmra.mxu1 %v8186_v25 }
 0xe52   : > { %v10102_v59 = vpop.eup %10101  ;;  %3349 = vst.msk [vmem:[%s14226_s22 + $0x38] sm:$0xff] %vm1003_vm2, %v3347_v10  ;;  %v7557_v46 = vadd.f32 -1.0, %v10100_v5  ;;  %v5684_v45 = vmul.f32 1.442695, %v5682_v26  ;;  %v6459_v54 = vadd.f32 %v6452_v40, %v6447_v19 }
 0xe53   : > { %v7786_v0 = vadd.f32 -1.0, %v10102_v59 }
 0xe54   : > { %v2564_v33 = vsel %vm2554_vm9, %v14194_v14, %v7557_v46  ;;  %10115 = vpow2.f32 %v5684_v45  ;;  %v6463_v24 = vmin.f32 %v6459_v54, 0.0  ;;  %vm6461_vm5 = vcmp.gt.f32.partialorder %v6459_v54, 0.0 }
 0xe55   : > { %v10104_v47 = vpop.eup %10103  ;;  %2566 = vst.msk [vmem:[%s14226_s22 + $0x20] sm:$0xff] %vm1003_vm2, %v2564_v33  ;;  %v4128_v2 = vsel %vm4118_vm10, %v14207_v36, %v7786_v0 }
 0xe56   : > { %v10106_v3 = vpop.eup %10105  ;;  %4130 = vst.msk [vmem:[%s14226_s22 + $0x48] sm:$0xff] %vm1003_vm2, %v4128_v2  ;;  %v7671_v43 = vadd.f32 -1.0, %v10104_v47  ;;  %v6465_v44 = vmul.f32 1.442695, %v6463_v24 }
 0xe57   : > { %v7900_v19 = vadd.f32 -1.0, %v10106_v3 }
 0xe58   : > { %v3346_v14 = vsel %vm3336_vm11, %v14218_v37, %v7671_v43  ;;  %10117 = vpow2.f32 %v6465_v44 }
 0xe59   : > { %v10108_v32 = vpop.eup %10107  ;;  %3348 = vst.msk [vmem:[%s14226_s22 + $0x30] sm:$0xff] %vm1003_vm2, %v3346_v14  ;;  %v4909_v36 = vsel %vm4899_vm12, %v14231_v12, %v7900_v19 }
 0xe5a   : > { %v10110_v50 = vpop.eup %10109  ;;  %4911 = vst.msk [vmem:[%s14226_s22 + $0x58] sm:$0xff] %vm1003_vm2, %v4909_v36  ;;  %v7785_v13 = vadd.f32 -1.0, %v10108_v32 }
 0xe5b   : > { %v8014_v30 = vadd.f32 -1.0, %v10110_v50 }
 0xe5c   : > { %v4127_v37 = vsel %vm4117_vm13, %v14245_v17, %v7785_v13 }
 0xe5d   : > { %v10112_v38 = vpop.eup %10111  ;;  %4129 = vst.msk [vmem:[%s14226_s22 + $0x40] sm:$0xff] %vm1003_vm2, %v4127_v37  ;;  %v5691_v8 = vsel %vm5681_vm14, %v14253_v23, %v8014_v30 }
 0xe5e   : > { %v10114_v12 = vpop.eup %10113  ;;  %5693 = vst.msk [vmem:[%s14226_s22 + $0x68] sm:$0xff] %vm1003_vm2, %v5691_v8  ;;  %v7899_v58 = vadd.f32 -1.0, %v10112_v38 }
 0xe5f   : > { %v8128_v31 = vadd.f32 -1.0, %v10114_v12 }
 0xe60   : > { %v4908_v62 = vsel %vm4898_vm15, %v14267_v11, %v7899_v58 }
 0xe61   : > { %v10116_v17 = vpop.eup %10115  ;;  %4910 = vst.msk [vmem:[%s14226_s22 + $0x50] sm:$0xff] %vm1003_vm2, %v4908_v62  ;;  %v6472_v35 = vsel %vm6462_vm3, %v14276_v1, %v8128_v31 }
 0xe62   : > { %6474 = vst.msk [vmem:[%s14226_s22 + $0x78] sm:$0xff] %vm1003_vm2, %v6472_v35  ;;  %v8013_v23 = vadd.f32 -1.0, %v10116_v17 }
 0xe64   : > { %v5690_v6 = vsel %vm5680_vm4, %v14293_v27, %v8013_v23 }
 0xe65   : > { %v10118_v21 = vpop.eup %10117  ;;  %5692 = vst.msk [vmem:[%s14226_s22 + $0x60] sm:$0xff] %vm1003_vm2, %v5690_v6 }
 0xe66   : > { %v8127_v61 = vadd.f32 -1.0, %v10118_v21 }
 0xe68   : > { %v6471_v18 = vsel %vm6461_vm5, %v6459_v54, %v8127_v61 }
 0xe69   : > { %6473 = vst.msk [vmem:[%s14226_s22 + $0x70] sm:$0xff] %vm1003_vm2, %v6471_v18 }
 0xee5   : > { %v9174_v9 = vpop.f32.mrf.mxu1 }
 0xee7   : > { %v9175_v55 = vpop.f32.mrf.mxu1 }
 0xee8   : > { %v9176_v10 = vadd.f32 %v9175_v55, %v9174_v9 }
 0xee9   : > { %v9177_v29 = vpop.f32.mrf.mxu1 }
 0xeeb   : > { %v9178_v16 = vpop.f32.mrf.mxu1 }
 0xeec   : > { %v9179_v45 = vadd.f32 %v9178_v16, %v9177_v29  ;;  %v7233_v16 = vpop.permute.xlu0 %7232 }
 0xeed   : > { %v9180_v57 = vpop.f32.mrf.mxu1  ;;  %v9840_v11 = vpop.f32.mrf.mxu0 }
 0xeee   : > { %v7167_v36 = vadd.f32 %v9840_v11, %v9179_v45 }
 0xeef   : > { %v9181_v63 = vpop.f32.mrf.mxu1  ;;  %v7161_v53 = vpop.f32.mrf.mxu0 }
 0xef0   : > { %v9182_v60 = vadd.f32 %v9181_v63, %v9180_v57  ;;  %v7162_v33 = vadd.f32 %v9176_v10, %v7161_v53 }
 0xef1   : > { %v9183_v48 = vpop.f32.mrf.mxu1  ;;  %v9843_v1 = vpop.f32.mrf.mxu0 }
 0xef3   : > { %v9184_v15 = vpop.f32.mrf.mxu1  ;;  %v7171_v52 = vpop.f32.mrf.mxu0 }
 0xef4   : > { %v9185_v40 = vadd.f32 %v9184_v15, %v9183_v48  ;;  %v7172_v59 = vadd.f32 %v9182_v60, %v7171_v52  ;;  %v7238_v15 = vpop.permute.xlu1 %7237 }
 0xef5   : > { %v9186_v22 = vpop.f32.mrf.mxu1  ;;  %v9846_v34 = vpop.f32.mrf.mxu0 }
 0xef6   : > { %v7177_v44 = vadd.f32 %v9843_v1, %v9185_v40  ;;  %v7220_v19 = vmax.f32 %v7162_v33, %v7172_v59 }
 0xef7   : > { %v9187_v20 = vpop.f32.mrf.mxu1  ;;  %v7181_v39 = vpop.f32.mrf.mxu0 }
 0xef8   : > { %v9188_v26 = vadd.f32 %v9187_v20, %v9186_v22  ;;  %v7221_v58 = vmax.f32 %v7167_v36, %v7177_v44 }
 0xef9   : > { %v9189_v4 = vpop.f32.mrf.mxu1  ;;  %v9849_v28 = vpop.f32.mrf.mxu0 }
 0xefa   : > { %v7182_v24 = vadd.f32 %v9188_v26, %v7181_v39 }
 0xefb   : > { %v9190_v56 = vpop.f32.mrf.mxu1  ;;  %v7191_v27 = vpop.f32.mrf.mxu0 }
 0xefc   : > { %v9191_v47 = vadd.f32 %v9190_v56, %v9189_v4  ;;  %v7222_v13 = vmax.f32 %v7220_v19, %v7182_v24 }
 0xefd   : > { %v9192_v49 = vpop.f32.mrf.mxu1  ;;  %v9852_v7 = vpop.f32.mrf.mxu0 }
 0xefe   : > { %v7187_v30 = vadd.f32 %v9846_v34, %v9191_v47 }
 0xeff   : > { %v9193_v42 = vpop.f32.mrf.mxu1  ;;  %v7201_v0 = vpop.f32.mrf.mxu0 }
 0xf00   : > { %v9194_v46 = vadd.f32 %v9193_v42, %v9192_v49  ;;  %v7223_v23 = vmax.f32 %v7221_v58, %v7187_v30 }
 0xf01   : > { %v9195_v51 = vpop.f32.mrf.mxu1  ;;  %v9855_v43 = vpop.f32.mrf.mxu0 }
 0xf02   : > { %v7192_v14 = vadd.f32 %v9194_v46, %v7191_v27 }
 0xf03   : > { %v9196_v25 = vpop.f32.mrf.mxu1  ;;  %v7211_v12 = vpop.f32.mrf.mxu0 }
 0xf04   : > { %v9197_v32 = vadd.f32 %v9196_v25, %v9195_v51  ;;  %v7224_v31 = vmax.f32 %v7222_v13, %v7192_v14 }
 0xf05   : > { %v9198_v41 = vpop.f32.mrf.mxu1 }
 0xf06   : > { %v7197_v62 = vadd.f32 %v9849_v28, %v9197_v32 }
 0xf07   : > { %v9199_v5 = vpop.f32.mrf.mxu1 }
 0xf08   : > { %v9200_v2 = vadd.f32 %v9199_v5, %v9198_v41  ;;  %v7225_v9 = vmax.f32 %v7223_v23, %v7197_v62 }
 0xf09   : > { %v9201_v54 = vpop.f32.mrf.mxu1 }
 0xf0a   : > { %v7202_v37 = vadd.f32 %v9200_v2, %v7201_v0 }
 0xf0b   : > { %v9202_v3 = vpop.f32.mrf.mxu1 }
 0xf0c   : > { %v9203_v38 = vadd.f32 %v9202_v3, %v9201_v54  ;;  %v7226_v6 = vmax.f32 %v7224_v31, %v7202_v37 }
 0xf0d   : > { %v9204_v50 = vpop.f32.mrf.mxu1 }
 0xf0e   : > { %v7207_v21 = vadd.f32 %v9852_v7, %v9203_v38 }
 0xf0f   : > { %v9205_v8 = vpop.f32.mrf.mxu1 }
 0xf10   : > { %v9206_v17 = vadd.f32 %v9205_v8, %v9204_v50  ;;  %v7227_v57 = vmax.f32 %v7225_v9, %v7207_v21 }
 0xf11   : > { %v9207_v35 = vpop.f32.mrf.mxu1 }
 0xf12   : > { %v7212_v61 = vadd.f32 %v9206_v17, %v7211_v12 }
 0xf13   : > { %v9208_v18 = vpop.f32.mrf.mxu1 }
 0xf14   : > { %v7228_v55 = vmax.f32 %v7226_v6, %v7212_v61  ;;  %v9209_v29 = vadd.f32 %v9208_v18, %v9207_v35 }
 0xf16   : > { %v7240_v11 = vadd.f32 %v7233_v16, %v7228_v55  ;;  %v7217_v63 = vadd.f32 %v9855_v43, %v9209_v29 }
 0xf18   : > { %v7244_v53 = vmin.f32 %v7240_v11, 0.0  ;;  %v7229_v48 = vmax.f32 %v7227_v57, %v7217_v63  ;;  %vm7242_vm6 = vcmp.gt.f32.partialorder %v7240_v11, 0.0 }
 0xf1a   : > { %v7246_v1 = vmul.f32 1.442695, %v7244_v53  ;;  %v7241_v22 = vadd.f32 %v7238_v15, %v7229_v48 }
 0xf1c   : > { %10119 = vpow2.f32 %v7246_v1  ;;  %v7245_v52 = vmin.f32 %v7241_v22, 0.0  ;;  %vm7243_vm7 = vcmp.gt.f32.partialorder %v7241_v22, 0.0 }
 0xf1e   : > { %v7248_v20 = vmul.f32 1.442695, %v7245_v52 }
 0xf20   : > { %10121 = vpow2.f32 %v7248_v20 }
 0xf29   : > { %v10120_v34 = vpop.eup %10119 }
 0xf2a   : > { %v8241_v4 = vadd.f32 -1.0, %v10120_v34 }
 0xf2c   : > { %v7252_v56 = vsel %vm7242_vm6, %v7240_v11, %v8241_v4 }
 0xf2d   : > { %v10122_v39 = vpop.eup %10121  ;;  %7254 = vst.msk [vmem:[%s14226_s22 + $0x80] sm:$0xff] %vm1003_vm2, %v7252_v56 }
 0xf2e   : > { %v8242_v49 = vadd.f32 -1.0, %v10122_v39 }
 0xf30   : > { %v7253_v42 = vsel %vm7243_vm7, %v7241_v22, %v8242_v49 }
 0xf31   : > { %7255 = vst.msk [vmem:[%s14226_s22 + $0x88] sm:$0xff] %vm1003_vm2, %v7253_v42 }
 0xf32 PF: > { %s15_s18 = sadd.s32 1, %s10129_s18  }
 0xf33   : > { %p12_p4 = scmp.ge.s32.totalorder %s15_s18, 4  }
 0xf35   :  { %14 = sbr.rel (!%p12_p4) target bundleno = 1 (0x1), region = 104 }

</bundles_post_ra>
